<compile_context>
chip_gen: v7x
topology: tpu7x:2x2x1
jax: 0.10.0
libtpu: 0.0.40
codegen_flags: <defaults>
</compile_context>

<pallas_src>
import functools

import numpy as np
import jax
import jax.numpy as jnp
from jax.experimental import pallas as pl
from jax.experimental.pallas import tpu as pltpu

# --- TabNet default hyper-parameters ---
INP_DIM = 15
OUT_DIM = 6
N_D = 64
N_A = 64
N_SHARED = 2
N_IND = 2
N_STEPS = 5
VBS = 1024
HID = N_D + N_A          # 128
HID2 = 2 * HID           # 256
N_FT = N_STEPS           # first_step + (N_STEPS - 1) decision-step feature transformers
N_DEC = N_STEPS - 1
SCALE = float(np.sqrt(0.5))
BN_EPS = 1e-5
LOGIT_PAD = 128          # lane-dense logits output; wrapper slices back to OUT_DIM
_SMAX_ROWS = 256         # sparsemax row sub-chunk (bounds (C,15,15) temporaries)


def _batchnorm(h, gamma, beta):
    """Training-mode BatchNorm1d (batch stats, biased var), fused epilogue.

    a = gamma * rsqrt(var + eps), c = beta - mu * a  ->  h * a + c
    (2 VPU ops per element instead of ~4, across ~25 BNs per forward).
    One-pass E[h^2]-mu^2 variance; fine at fresh-init scale since pre-BN biases
    were dropped.
    # TODO(synk): switch to two-pass variance when loading trained checkpoints
    # whose activations have |mean| >> std (cancellation risk).
    """
    mu = jnp.mean(h, axis=0, keepdims=True)
    ms = jnp.mean(h * h, axis=0, keepdims=True)
    var = jnp.maximum(ms - mu * mu, 0.0)
    a = gamma * jax.lax.rsqrt(var + BN_EPS)
    c = beta - mu * a
    return h * a + c


def _sparsemax_block(zin):
    """Sort-free sparsemax over the last dim for one row sub-chunk
    (exactly equivalent to the torch sort/cumsum formulation)."""
    z = zin - jnp.max(zin, axis=-1, keepdims=True)
    # cmp[b, j, i] = (z[b, i] >= z[b, j])
    cmp = (z[:, None, :] >= z[:, :, None]).astype(jnp.float32)
    k = jnp.sum(cmp, axis=-1)                      # k_j = #{i : z_i >= z_j}
    s = jnp.sum(z[:, None, :] * cmp, axis=-1)      # s_j = sum_{i : z_i >= z_j} z_i
    in_supp = (k * z > s - 1.0).astype(jnp.float32)
    kk = jnp.sum(in_supp, axis=-1, keepdims=True)  # support size
    ss = jnp.sum(z * in_supp, axis=-1, keepdims=True)
    tau = (ss - 1.0) / kk
    return jnp.maximum(z - tau, 0.0)


def _sparsemax(zin):
    """Sparsemax processed in row sub-chunks so the lane/sublane-padded
    (C,16,128) pairwise-compare temporaries stay ~2 MiB per 1024-row tile."""
    rows = zin.shape[0]
    c = _SMAX_ROWS if (rows > _SMAX_ROWS and rows % _SMAX_ROWS == 0) else rows
    if c == rows:
        return _sparsemax_block(zin)
    outs = [_sparsemax_block(zin[r:r + c]) for r in range(0, rows, c)]
    return jnp.concatenate(outs, axis=0)


def tabnet_kernel(
    x_ref, priors_ref,
    bn_in_a_ref, bn_in_c_ref,
    ws0_ref, ws1_ref, bn_sh_g_ref, bn_sh_b_ref,
    wind_ref, bn_ind_g_ref, bn_ind_b_ref,
    watt_ref, att_g_ref, att_b_ref,
    wfc_ref, bfc_ref,
    logits_ref, sloss_ref,
    *, matmul_dtype,
):
    B = x_ref.shape[0]

    def mm(h, w):
        # MXU matmul; weights pre-cast in the wrapper, f32 accumulation always.
        return jnp.dot(h.astype(matmul_dtype), w, preferred_element_type=jnp.float32)

    # Shared Linear weights hoisted out of the fully unrolled step loop.
    ws0 = ws0_ref[...]
    ws1 = ws1_ref[...]

    def glu(h, w, g, b):
        # Linear bias omitted on purpose: a per-feature constant added before a
        # batch-statistics BatchNorm is exactly cancelled by the mean subtraction.
        z = _batchnorm(mm(h, w), g, b)
        return z[:, :HID] * jax.nn.sigmoid(z[:, HID:])

    def feature_transformer(h, ft):
        # shared GLUs (shared Linear weights, per-transformer BN params)
        h = glu(h, ws0, bn_sh_g_ref[ft, 0], bn_sh_b_ref[ft, 0])
        h = (h + glu(h, ws1, bn_sh_g_ref[ft, 1], bn_sh_b_ref[ft, 1])) * SCALE
        # independent GLUs
        for j in range(N_IND):
            h = (h + glu(h, wind_ref[ft, j], bn_ind_g_ref[ft, j],
                         bn_ind_b_ref[ft, j])) * SCALE
        return h

    priors = priors_ref[...]
    # Input BatchNorm1d: full-batch fused scale/shift precomputed in the wrapper
    # (full-batch statistics even when the batch is tiled across the grid).
    xbn = x_ref[...] * bn_in_a_ref[...] + bn_in_c_ref[...]
    xbn_mm = xbn.astype(matmul_dtype)    # cast once; reused by every decision step

    # first_step feature transformer -> initial attention features
    x_a = feature_transformer(xbn_mm, 0)[:, N_D:]

    out = jnp.zeros((B, N_D), jnp.float32)
    ent = jnp.zeros((B, INP_DIM), jnp.float32)   # accumulated -mask*log(mask+eps)

    for t in range(N_DEC):
        # AttentionTransformer (fc bias dropped: cancelled by the following BN)
        a = _batchnorm(mm(x_a, watt_ref[t]), att_g_ref[t], att_b_ref[t])
        mask = _sparsemax(a * priors)
        ent = ent + (-mask) * jnp.log(mask + 1e-10)
        # FeatureTransformer on masked (batch-normed) input
        x_te = feature_transformer(xbn_mm * mask.astype(matmul_dtype), t + 1)
        out = out + jnp.maximum(x_te[:, :N_D], 0.0)
        x_a = x_te[:, N_D:]

    # Lane-dense (128-wide) logits store; the wrapper slices back to OUT_DIM.
    logits_ref[...] = mm(out, wfc_ref[...]) + bfc_ref[...]
    # Per-tile raw entropy sum as its own output block (no revisited/accumulated
    # output -> batch grid axis stays "parallel"); wrapper sums & normalizes.
    ssum = jnp.sum(jnp.sum(ent, axis=1, keepdims=True), axis=0, keepdims=True)
    sloss_ref[...] = jnp.broadcast_to(ssum.reshape(1, 1, 1), (1, 8, 128))


def _vmem_limit_bytes():
    cap = None
    try:
        cap = getattr(pltpu.get_tpu_info(), "vmem_capacity_bytes", None)
    except Exception:
        cap = None
    if cap is None:
        cap = 64 * 1024 * 1024              # assume the smallest (v7x-sized) VMEM
    # 64 MiB scoped limit on 128 MiB parts (v5e/v6e), 48 MiB on 64 MiB parts (v7x).
    return (64 if cap >= 128 * 1024 * 1024 else 48) * 1024 * 1024


def tabnet_forward(x, priors, params, *, matmul_dtype=None, tile_b=None):
    B = x.shape[0]
    if matmul_dtype is None:
        # bf16 MXU inputs only pay off (and are numerically safe through the
        # batch-stat BN chain) at larger batches; keep f32 at small B.
        matmul_dtype = jnp.bfloat16 if B >= 256 else jnp.float32

    # --- batch tiling: default TILE_B == vbs so every GBN layer's per-tile batch
    # statistics exactly reproduce PyTorch's GBN chunking for B > vbs. ---
    if tile_b is None:
        if B <= VBS:
            tile_b = B
        else:
            # TODO(synk): B > vbs with B % vbs != 0 uses torch.chunk's uneven
            # split; not supported here.
            assert B % VBS == 0, "batch sizes > vbs must be a multiple of vbs=1024"
            tile_b = VBS
    assert B % tile_b == 0
    nb = B // tile_b

    # --- input BatchNorm1d uses full-batch statistics regardless of tiling:
    # precompute its fused scale/shift here (tiny [B,15]-wide reduce). ---
    mu = jnp.mean(x, axis=0, keepdims=True)
    var = jnp.mean(jnp.square(x - mu), axis=0, keepdims=True)
    bn_in_a = params["bn_in_g"] * jax.lax.rsqrt(var + BN_EPS)
    bn_in_c = params["bn_in_b"] - mu * bn_in_a

    # Pre-cast MXU weights in the wrapper (halves weight DMA / VMEM when bf16);
    # BN params stay f32.  Pre-BN Linear biases (bs0/bs1/bind/batt) are not
    # passed at all: they are exactly cancelled by the batch-stat BatchNorms.
    wd = matmul_dtype
    ws0 = params["ws0"].astype(wd)
    ws1 = params["ws1"].astype(wd)
    wind = params["wind"].astype(wd)
    watt = params["watt"].astype(wd)
    wfc = jnp.pad(params["wfc"], ((0, 0), (0, LOGIT_PAD - OUT_DIM))).astype(wd)
    bfc = jnp.pad(params["bfc"], ((0, 0), (0, LOGIT_PAD - OUT_DIM)))

    args = (
        x, priors, bn_in_a, bn_in_c,
        ws0, ws1, params["bn_sh_g"], params["bn_sh_b"],
        wind, params["bn_ind_g"], params["bn_ind_b"],
        watt, params["att_g"], params["att_b"],
        wfc, bfc,
    )

    def row_spec(shape):                       # blocked along the batch axis
        zeros = (0,) * (len(shape) - 1)
        return pl.BlockSpec(shape, lambda i: (i,) + zeros)

    def const_spec(shape):                     # identical block every grid step
        zeros = (0,) * len(shape)
        return pl.BlockSpec(shape, lambda i: zeros)

    in_specs = [
        row_spec((tile_b, INP_DIM)),           # x
        row_spec((tile_b, INP_DIM)),           # priors
    ] + [const_spec(a.shape) for a in args[2:]]

    out_specs = (
        pl.BlockSpec((tile_b, LOGIT_PAD), lambda i: (i, 0)),   # padded logits
        pl.BlockSpec((1, 8, 128), lambda i: (i, 0, 0)),        # per-tile ent sums
    )
    out_shape = (
        jax.ShapeDtypeStruct((B, LOGIT_PAD), jnp.float32),
        jax.ShapeDtypeStruct((nb, 8, 128), jnp.float32),
    )

    kernel = functools.partial(tabnet_kernel, matmul_dtype=matmul_dtype)
    logits_pad, ent_part = pl.pallas_call(
        kernel,
        grid=(nb,),
        in_specs=in_specs,
        out_specs=out_specs,
        out_shape=out_shape,
        compiler_params=pltpu.CompilerParams(
            dimension_semantics=("parallel",),   # shard batch tiles across TCs (v7x)
            vmem_limit_bytes=_vmem_limit_bytes(),
        ),
    )(*args)

    logits = logits_pad[:, :OUT_DIM]
    sloss = jnp.sum(ent_part[:, 0, 0]) / (B * INP_DIM)
    return logits, sloss


def init_params(key):
    keys = iter(jax.random.split(key, 64))

    def linear(fan_in, fan_out):
        bound = 1.0 / np.sqrt(fan_in)
        w = jax.random.uniform(next(keys), (fan_in, fan_out), jnp.float32, -bound, bound)
        b = jax.random.uniform(next(keys), (1, fan_out), jnp.float32, -bound, bound)
        return w, b

    ws0, bs0 = linear(INP_DIM, HID2)   # shared Linear(inp_dim, 2*(n_d+n_a))
    ws1, bs1 = linear(HID, HID2)       # shared Linear(n_d+n_a, 2*(n_d+n_a))

    wind, bind = [], []
    for _ in range(N_FT):
        ws, bs = [], []
        for _ in range(N_IND):
            w, b = linear(HID, HID2)
            ws.append(w)
            bs.append(b)
        wind.append(jnp.stack(ws))
        bind.append(jnp.stack(bs))
    wind = jnp.stack(wind)             # [N_FT, N_IND, HID, HID2]
    bind = jnp.stack(bind)             # [N_FT, N_IND, 1, HID2]

    watt, batt = [], []
    for _ in range(N_DEC):
        w, b = linear(N_A, INP_DIM)
        watt.append(w)
        batt.append(b)
    watt = jnp.stack(watt)             # [N_DEC, N_A, INP_DIM]
    batt = jnp.stack(batt)             # [N_DEC, 1, INP_DIM]

    wfc, bfc = linear(N_D, OUT_DIM)

    return dict(
        bn_in_g=jnp.ones((1, INP_DIM), jnp.float32),
        bn_in_b=jnp.zeros((1, INP_DIM), jnp.float32),
        ws0=ws0, bs0=bs0, ws1=ws1, bs1=bs1,
        bn_sh_g=jnp.ones((N_FT, N_SHARED, 1, HID2), jnp.float32),
        bn_sh_b=jnp.zeros((N_FT, N_SHARED, 1, HID2), jnp.float32),
        wind=wind, bind=bind,
        bn_ind_g=jnp.ones((N_FT, N_IND, 1, HID2), jnp.float32),
        bn_ind_b=jnp.zeros((N_FT, N_IND, 1, HID2), jnp.float32),
        watt=watt, batt=batt,
        att_g=jnp.ones((N_DEC, 1, INP_DIM), jnp.float32),
        att_b=jnp.zeros((N_DEC, 1, INP_DIM), jnp.float32),
        wfc=wfc, bfc=bfc,
    )


def ref_forward(x, priors, P, *, vbs=VBS):
    """Plain-JAX reference mirroring the PyTorch forward (biases kept,
    sort-based sparsemax, GBN chunking at `vbs`, full-batch input BN)."""
    HI = jax.lax.Precision.HIGHEST

    def bn_full(h, g, b):
        mu = jnp.mean(h, axis=0, keepdims=True)
        var = jnp.mean((h - mu) ** 2, axis=0, keepdims=True)
        return (h - mu) / jnp.sqrt(var + BN_EPS) * g + b

    def gbn(h, g, b):
        n = h.shape[0]
        if n <= vbs:
            return bn_full(h, g, b)
        chunks = jnp.split(h, n // vbs, axis=0)
        return jnp.concatenate([bn_full(c, g, b) for c in chunks], axis=0)

    def sparsemax(zin):
        z = zin - jnp.max(zin, axis=-1, keepdims=True)
        zs = -jnp.sort(-z, axis=-1)
        cs = jnp.cumsum(zs, axis=-1) - 1.0
        rho = jnp.arange(1, z.shape[-1] + 1, dtype=z.dtype)
        supp = rho * zs > cs
        K = jnp.sum(supp, axis=-1, keepdims=True)
        tau = jnp.take_along_axis(cs, K - 1, axis=-1) / K.astype(z.dtype)
        return jnp.maximum(z - tau, 0.0)

    def glu(h, w, bvec, g, b):
        z = gbn(jnp.dot(h, w, precision=HI) + bvec, g, b)
        return z[:, :HID] * jax.nn.sigmoid(z[:, HID:])

    def ft(h, i):
        h = glu(h, P["ws0"], P["bs0"], P["bn_sh_g"][i, 0], P["bn_sh_b"][i, 0])
        h = (h + glu(h, P["ws1"], P["bs1"], P["bn_sh_g"][i, 1], P["bn_sh_b"][i, 1])) * SCALE
        for j in range(N_IND):
            h = (h + glu(h, P["wind"][i, j], P["bind"][i, j],
                         P["bn_ind_g"][i, j], P["bn_ind_b"][i, j])) * SCALE
        return h

    xbn = bn_full(x, P["bn_in_g"], P["bn_in_b"])
    x_a = ft(xbn, 0)[:, N_D:]
    out = jnp.zeros((x.shape[0], N_D), jnp.float32)
    sl = jnp.float32(0.0)
    for t in range(N_DEC):
        a = gbn(jnp.dot(x_a, P["watt"][t], precision=HI) + P["batt"][t],
                P["att_g"][t], P["att_b"][t])
        mask = sparsemax(a * priors)
        sl = sl + jnp.mean(-mask * jnp.log(mask + 1e-10))
        x_te = ft(xbn * mask, t + 1)
        out = out + jnp.maximum(x_te[:, :N_D], 0.0)
        x_a = x_te[:, N_D:]
    return jnp.dot(out, P["wfc"], precision=HI) + P["bfc"], sl


if __name__ == "__main__":
    key = jax.random.PRNGKey(0)
    kx, kpr, kparam = jax.random.split(key, 3)
    params = init_params(kparam)

    # --- primary test: B=8, single tile (exact PyTorch-semantics path) ---
    B = 8
    x = jax.random.normal(kx, (B, INP_DIM), dtype=jnp.float32)
    priors = jax.random.uniform(kpr, (B, INP_DIM), jnp.float32, 0.5, 1.0)

    logits, sloss = tabnet_forward(x, priors, params)
    jax.block_until_ready((logits, sloss))

    ref_logits, ref_sloss = ref_forward(x, priors, params)
    assert logits.shape == (B, OUT_DIM)
    np.testing.assert_allclose(np.asarray(logits), np.asarray(ref_logits),
                               rtol=2e-2, atol=2e-2)
    np.testing.assert_allclose(float(sloss), float(ref_sloss), rtol=2e-2, atol=2e-2)

    # --- secondary test: exercise the batch-grid path (2 tiles) at a small
    # shape by overriding the tile size; the reference chunks its GBN stats
    # the same way so the comparison remains exact-in-math. ---
    B2 = 16
    x2 = jax.random.normal(jax.random.fold_in(kx, 1), (B2, INP_DIM), dtype=jnp.float32)
    pr2 = jax.random.uniform(jax.random.fold_in(kpr, 1), (B2, INP_DIM),
                             jnp.float32, 0.5, 1.0)
    logits2, sloss2 = tabnet_forward(x2, pr2, params, tile_b=8)
    jax.block_until_ready((logits2, sloss2))
    ref_logits2, ref_sloss2 = ref_forward(x2, pr2, params, vbs=8)
    np.testing.assert_allclose(np.asarray(logits2), np.asarray(ref_logits2),
                               rtol=2e-2, atol=2e-2)
    np.testing.assert_allclose(float(sloss2), float(ref_sloss2), rtol=2e-2, atol=2e-2)

    print("KERNEL_OK")
</pallas_src>

<mosaic_0001>
module attributes {stable_mosaic.version = 11 : i64} {
  func.func @tabnet_kernel(%arg0: i32, %arg1: memref<8x15xf32, #tpu.memory_space<vmem>>, %arg2: memref<8x15xf32, #tpu.memory_space<vmem>>, %arg3: memref<1x15xf32, #tpu.memory_space<vmem>>, %arg4: memref<1x15xf32, #tpu.memory_space<vmem>>, %arg5: memref<15x256xf32, #tpu.memory_space<vmem>>, %arg6: memref<128x256xf32, #tpu.memory_space<vmem>>, %arg7: memref<5x2x1x256xf32, #tpu.memory_space<vmem>>, %arg8: memref<5x2x1x256xf32, #tpu.memory_space<vmem>>, %arg9: memref<5x2x128x256xf32, #tpu.memory_space<vmem>>, %arg10: memref<5x2x1x256xf32, #tpu.memory_space<vmem>>, %arg11: memref<5x2x1x256xf32, #tpu.memory_space<vmem>>, %arg12: memref<4x64x15xf32, #tpu.memory_space<vmem>>, %arg13: memref<4x1x15xf32, #tpu.memory_space<vmem>>, %arg14: memref<4x1x15xf32, #tpu.memory_space<vmem>>, %arg15: memref<64x128xf32, #tpu.memory_space<vmem>>, %arg16: memref<1x128xf32, #tpu.memory_space<vmem>>, %arg17: memref<8x128xf32, #tpu.memory_space<vmem>>, %arg18: memref<1x8x128xf32, #tpu.memory_space<vmem>>) attributes {dimension_semantics = [#tpu.dimension_semantics<parallel>], iteration_bounds = array<i64: 1>, scalar_prefetch = 0 : i64, scratch_operands = 0 : i64, tpu.core_type = #tpu.core_type<tc>, window_params = [{transform_indices = @transform_0, window_bounds = array<i64: 8, 15>}, {transform_indices = @transform_1, window_bounds = array<i64: 8, 15>}, {pipeline_mode = #tpu.pipeline_mode<synchronous>, transform_indices = @transform_2, window_bounds = array<i64: 1, 15>}, {pipeline_mode = #tpu.pipeline_mode<synchronous>, transform_indices = @transform_3, window_bounds = array<i64: 1, 15>}, {pipeline_mode = #tpu.pipeline_mode<synchronous>, transform_indices = @transform_4, window_bounds = array<i64: 15, 256>}, {pipeline_mode = #tpu.pipeline_mode<synchronous>, transform_indices = @transform_5, window_bounds = array<i64: 128, 256>}, {pipeline_mode = #tpu.pipeline_mode<synchronous>, transform_indices = @transform_6, window_bounds = array<i64: 5, 2, 1, 256>}, {pipeline_mode = #tpu.pipeline_mode<synchronous>, transform_indices = @transform_7, window_bounds = array<i64: 5, 2, 1, 256>}, {pipeline_mode = #tpu.pipeline_mode<synchronous>, transform_indices = @transform_8, window_bounds = array<i64: 5, 2, 128, 256>}, {pipeline_mode = #tpu.pipeline_mode<synchronous>, transform_indices = @transform_9, window_bounds = array<i64: 5, 2, 1, 256>}, {pipeline_mode = #tpu.pipeline_mode<synchronous>, transform_indices = @transform_10, window_bounds = array<i64: 5, 2, 1, 256>}, {pipeline_mode = #tpu.pipeline_mode<synchronous>, transform_indices = @transform_11, window_bounds = array<i64: 4, 64, 15>}, {pipeline_mode = #tpu.pipeline_mode<synchronous>, transform_indices = @transform_12, window_bounds = array<i64: 4, 1, 15>}, {pipeline_mode = #tpu.pipeline_mode<synchronous>, transform_indices = @transform_13, window_bounds = array<i64: 4, 1, 15>}, {pipeline_mode = #tpu.pipeline_mode<synchronous>, transform_indices = @transform_14, window_bounds = array<i64: 64, 128>}, {pipeline_mode = #tpu.pipeline_mode<synchronous>, transform_indices = @transform_15, window_bounds = array<i64: 1, 128>}, {transform_indices = @transform_16, window_bounds = array<i64: 8, 128>}, {transform_indices = @transform_17, window_bounds = array<i64: 1, 8, 128>}]} {
    %c0 = arith.constant 0 : index
    %c0_0 = arith.constant 0 : index
    %0 = vector.load %arg5[%c0, %c0_0] : memref<15x256xf32, #tpu.memory_space<vmem>>, vector<15x256xf32>
    %c0_1 = arith.constant 0 : index
    %c0_2 = arith.constant 0 : index
    %1 = vector.load %arg6[%c0_1, %c0_2] : memref<128x256xf32, #tpu.memory_space<vmem>>, vector<128x256xf32>
    %c0_3 = arith.constant 0 : index
    %c0_4 = arith.constant 0 : index
    %2 = vector.load %arg2[%c0_3, %c0_4] : memref<8x15xf32, #tpu.memory_space<vmem>>, vector<8x15xf32>
    %c0_5 = arith.constant 0 : index
    %c0_6 = arith.constant 0 : index
    %3 = vector.load %arg1[%c0_5, %c0_6] : memref<8x15xf32, #tpu.memory_space<vmem>>, vector<8x15xf32>
    %c0_7 = arith.constant 0 : index
    %c0_8 = arith.constant 0 : index
    %4 = vector.load %arg3[%c0_7, %c0_8] : memref<1x15xf32, #tpu.memory_space<vmem>>, vector<1x15xf32>
    %5 = vector.broadcast %4 : vector<1x15xf32> to vector<8x15xf32>
    %6 = arith.mulf %3, %5 : vector<8x15xf32>
    %c0_9 = arith.constant 0 : index
    %c0_10 = arith.constant 0 : index
    %7 = vector.load %arg4[%c0_9, %c0_10] : memref<1x15xf32, #tpu.memory_space<vmem>>, vector<1x15xf32>
    %8 = vector.broadcast %7 : vector<1x15xf32> to vector<8x15xf32>
    %9 = arith.addf %6, %8 : vector<8x15xf32>
    %c0_11 = arith.constant 0 : index
    %c0_12 = arith.constant 0 : index
    %c0_13 = arith.constant 0 : index
    %c0_14 = arith.constant 0 : index
    %10 = vector.load %arg7[%c0_11, %c0_12, %c0_13, %c0_14] : memref<5x2x1x256xf32, #tpu.memory_space<vmem>>, vector<1x1x1x256xf32>
    %11 = vector.shape_cast %10 : vector<1x1x1x256xf32> to vector<1x256xf32>
    %c0_15 = arith.constant 0 : index
    %c0_16 = arith.constant 0 : index
    %c0_17 = arith.constant 0 : index
    %c0_18 = arith.constant 0 : index
    %12 = vector.load %arg8[%c0_15, %c0_16, %c0_17, %c0_18] : memref<5x2x1x256xf32, #tpu.memory_space<vmem>>, vector<1x1x1x256xf32>
    %13 = vector.shape_cast %12 : vector<1x1x1x256xf32> to vector<1x256xf32>
    %cst = arith.constant dense<0.000000e+00> : vector<8x256xf32>
    %14 = tpu.matmul %9, %0, %cst {dimension_numbers = #tpu.dot_dimension_numbers<[1], [0], [0], [1], [0, 0, 1, 1], [], []>} : vector<8x15xf32>, vector<15x256xf32>, vector<8x256xf32> -> vector<8x256xf32>
    %cst_19 = arith.constant dense<0.000000e+00> : vector<256xf32>
    %15 = vector.multi_reduction <add>, %14, %cst_19 [0] : vector<8x256xf32> to vector<256xf32>
    %16 = vector.shape_cast %15 : vector<256xf32> to vector<1x256xf32>
    %cst_20 = arith.constant 8.000000e+00 : f32
    %17 = vector.broadcast %cst_20 : f32 to vector<1x256xf32>
    %18 = arith.divf %16, %17 : vector<1x256xf32>
    %19 = arith.mulf %14, %14 : vector<8x256xf32>
    %cst_21 = arith.constant dense<0.000000e+00> : vector<256xf32>
    %20 = vector.multi_reduction <add>, %19, %cst_21 [0] : vector<8x256xf32> to vector<256xf32>
    %21 = vector.shape_cast %20 : vector<256xf32> to vector<1x256xf32>
    %cst_22 = arith.constant 8.000000e+00 : f32
    %22 = vector.broadcast %cst_22 : f32 to vector<1x256xf32>
    %23 = arith.divf %21, %22 : vector<1x256xf32>
    %24 = arith.mulf %18, %18 : vector<1x256xf32>
    %25 = arith.subf %23, %24 : vector<1x256xf32>
    %cst_23 = arith.constant 0.000000e+00 : f32
    %26 = vector.broadcast %cst_23 : f32 to vector<1x256xf32>
    %27 = arith.maximumf %25, %26 : vector<1x256xf32>
    %cst_24 = arith.constant 9.99999974E-6 : f32
    %28 = vector.broadcast %cst_24 : f32 to vector<1x256xf32>
    %29 = arith.addf %27, %28 : vector<1x256xf32>
    %30 = math.rsqrt %29 : vector<1x256xf32>
    %31 = arith.mulf %11, %30 : vector<1x256xf32>
    %32 = arith.mulf %18, %31 : vector<1x256xf32>
    %33 = arith.subf %13, %32 : vector<1x256xf32>
    %34 = vector.broadcast %31 : vector<1x256xf32> to vector<8x256xf32>
    %35 = arith.mulf %14, %34 : vector<8x256xf32>
    %36 = vector.broadcast %33 : vector<1x256xf32> to vector<8x256xf32>
    %37 = arith.addf %35, %36 : vector<8x256xf32>
    %38 = vector.extract_strided_slice %37 {offsets = [0, 0], sizes = [8, 128], strides = [1, 1]} : vector<8x256xf32> to vector<8x128xf32>
    %39 = vector.extract_strided_slice %37 {offsets = [0, 128], sizes = [8, 128], strides = [1, 1]} : vector<8x256xf32> to vector<8x128xf32>
    %40 = arith.negf %39 : vector<8x128xf32>
    %41 = math.exp %40 : vector<8x128xf32>
    %cst_25 = arith.constant 1.000000e+00 : f32
    %42 = vector.broadcast %cst_25 : f32 to vector<8x128xf32>
    %43 = arith.addf %42, %41 : vector<8x128xf32>
    %44 = arith.divf %42, %43 : vector<8x128xf32>
    %45 = arith.mulf %38, %44 : vector<8x128xf32>
    %c0_26 = arith.constant 0 : index
    %c1 = arith.constant 1 : index
    %c0_27 = arith.constant 0 : index
    %c0_28 = arith.constant 0 : index
    %46 = vector.load %arg7[%c0_26, %c1, %c0_27, %c0_28] : memref<5x2x1x256xf32, #tpu.memory_space<vmem>>, vector<1x1x1x256xf32>
    %47 = vector.shape_cast %46 : vector<1x1x1x256xf32> to vector<1x256xf32>
    %c0_29 = arith.constant 0 : index
    %c1_30 = arith.constant 1 : index
    %c0_31 = arith.constant 0 : index
    %c0_32 = arith.constant 0 : index
    %48 = vector.load %arg8[%c0_29, %c1_30, %c0_31, %c0_32] : memref<5x2x1x256xf32, #tpu.memory_space<vmem>>, vector<1x1x1x256xf32>
    %49 = vector.shape_cast %48 : vector<1x1x1x256xf32> to vector<1x256xf32>
    %cst_33 = arith.constant dense<0.000000e+00> : vector<8x256xf32>
    %50 = tpu.matmul %45, %1, %cst_33 {dimension_numbers = #tpu.dot_dimension_numbers<[1], [0], [0], [1], [0, 0, 1, 1], [], []>} : vector<8x128xf32>, vector<128x256xf32>, vector<8x256xf32> -> vector<8x256xf32>
    %cst_34 = arith.constant dense<0.000000e+00> : vector<256xf32>
    %51 = vector.multi_reduction <add>, %50, %cst_34 [0] : vector<8x256xf32> to vector<256xf32>
    %52 = vector.shape_cast %51 : vector<256xf32> to vector<1x256xf32>
    %cst_35 = arith.constant 8.000000e+00 : f32
    %53 = vector.broadcast %cst_35 : f32 to vector<1x256xf32>
    %54 = arith.divf %52, %53 : vector<1x256xf32>
    %55 = arith.mulf %50, %50 : vector<8x256xf32>
    %cst_36 = arith.constant dense<0.000000e+00> : vector<256xf32>
    %56 = vector.multi_reduction <add>, %55, %cst_36 [0] : vector<8x256xf32> to vector<256xf32>
    %57 = vector.shape_cast %56 : vector<256xf32> to vector<1x256xf32>
    %cst_37 = arith.constant 8.000000e+00 : f32
    %58 = vector.broadcast %cst_37 : f32 to vector<1x256xf32>
    %59 = arith.divf %57, %58 : vector<1x256xf32>
    %60 = arith.mulf %54, %54 : vector<1x256xf32>
    %61 = arith.subf %59, %60 : vector<1x256xf32>
    %cst_38 = arith.constant 0.000000e+00 : f32
    %62 = vector.broadcast %cst_38 : f32 to vector<1x256xf32>
    %63 = arith.maximumf %61, %62 : vector<1x256xf32>
    %cst_39 = arith.constant 9.99999974E-6 : f32
    %64 = vector.broadcast %cst_39 : f32 to vector<1x256xf32>
    %65 = arith.addf %63, %64 : vector<1x256xf32>
    %66 = math.rsqrt %65 : vector<1x256xf32>
    %67 = arith.mulf %47, %66 : vector<1x256xf32>
    %68 = arith.mulf %54, %67 : vector<1x256xf32>
    %69 = arith.subf %49, %68 : vector<1x256xf32>
    %70 = vector.broadcast %67 : vector<1x256xf32> to vector<8x256xf32>
    %71 = arith.mulf %50, %70 : vector<8x256xf32>
    %72 = vector.broadcast %69 : vector<1x256xf32> to vector<8x256xf32>
    %73 = arith.addf %71, %72 : vector<8x256xf32>
    %74 = vector.extract_strided_slice %73 {offsets = [0, 0], sizes = [8, 128], strides = [1, 1]} : vector<8x256xf32> to vector<8x128xf32>
    %75 = vector.extract_strided_slice %73 {offsets = [0, 128], sizes = [8, 128], strides = [1, 1]} : vector<8x256xf32> to vector<8x128xf32>
    %76 = arith.negf %75 : vector<8x128xf32>
    %77 = math.exp %76 : vector<8x128xf32>
    %cst_40 = arith.constant 1.000000e+00 : f32
    %78 = vector.broadcast %cst_40 : f32 to vector<8x128xf32>
    %79 = arith.addf %78, %77 : vector<8x128xf32>
    %80 = arith.divf %78, %79 : vector<8x128xf32>
    %81 = arith.mulf %74, %80 : vector<8x128xf32>
    %82 = arith.addf %45, %81 : vector<8x128xf32>
    %cst_41 = arith.constant 0.707106769 : f32
    %83 = vector.broadcast %cst_41 : f32 to vector<8x128xf32>
    %84 = arith.mulf %82, %83 : vector<8x128xf32>
    %c0_42 = arith.constant 0 : index
    %c0_43 = arith.constant 0 : index
    %c0_44 = arith.constant 0 : index
    %c0_45 = arith.constant 0 : index
    %85 = vector.load %arg9[%c0_42, %c0_43, %c0_44, %c0_45] : memref<5x2x128x256xf32, #tpu.memory_space<vmem>>, vector<1x1x128x256xf32>
    %86 = vector.shape_cast %85 : vector<1x1x128x256xf32> to vector<128x256xf32>
    %c0_46 = arith.constant 0 : index
    %c0_47 = arith.constant 0 : index
    %c0_48 = arith.constant 0 : index
    %c0_49 = arith.constant 0 : index
    %87 = vector.load %arg10[%c0_46, %c0_47, %c0_48, %c0_49] : memref<5x2x1x256xf32, #tpu.memory_space<vmem>>, vector<1x1x1x256xf32>
    %88 = vector.shape_cast %87 : vector<1x1x1x256xf32> to vector<1x256xf32>
    %c0_50 = arith.constant 0 : index
    %c0_51 = arith.constant 0 : index
    %c0_52 = arith.constant 0 : index
    %c0_53 = arith.constant 0 : index
    %89 = vector.load %arg11[%c0_50, %c0_51, %c0_52, %c0_53] : memref<5x2x1x256xf32, #tpu.memory_space<vmem>>, vector<1x1x1x256xf32>
    %90 = vector.shape_cast %89 : vector<1x1x1x256xf32> to vector<1x256xf32>
    %cst_54 = arith.constant dense<0.000000e+00> : vector<8x256xf32>
    %91 = tpu.matmul %84, %86, %cst_54 {dimension_numbers = #tpu.dot_dimension_numbers<[1], [0], [0], [1], [0, 0, 1, 1], [], []>} : vector<8x128xf32>, vector<128x256xf32>, vector<8x256xf32> -> vector<8x256xf32>
    %cst_55 = arith.constant dense<0.000000e+00> : vector<256xf32>
    %92 = vector.multi_reduction <add>, %91, %cst_55 [0] : vector<8x256xf32> to vector<256xf32>
    %93 = vector.shape_cast %92 : vector<256xf32> to vector<1x256xf32>
    %cst_56 = arith.constant 8.000000e+00 : f32
    %94 = vector.broadcast %cst_56 : f32 to vector<1x256xf32>
    %95 = arith.divf %93, %94 : vector<1x256xf32>
    %96 = arith.mulf %91, %91 : vector<8x256xf32>
    %cst_57 = arith.constant dense<0.000000e+00> : vector<256xf32>
    %97 = vector.multi_reduction <add>, %96, %cst_57 [0] : vector<8x256xf32> to vector<256xf32>
    %98 = vector.shape_cast %97 : vector<256xf32> to vector<1x256xf32>
    %cst_58 = arith.constant 8.000000e+00 : f32
    %99 = vector.broadcast %cst_58 : f32 to vector<1x256xf32>
    %100 = arith.divf %98, %99 : vector<1x256xf32>
    %101 = arith.mulf %95, %95 : vector<1x256xf32>
    %102 = arith.subf %100, %101 : vector<1x256xf32>
    %cst_59 = arith.constant 0.000000e+00 : f32
    %103 = vector.broadcast %cst_59 : f32 to vector<1x256xf32>
    %104 = arith.maximumf %102, %103 : vector<1x256xf32>
    %cst_60 = arith.constant 9.99999974E-6 : f32
    %105 = vector.broadcast %cst_60 : f32 to vector<1x256xf32>
    %106 = arith.addf %104, %105 : vector<1x256xf32>
    %107 = math.rsqrt %106 : vector<1x256xf32>
    %108 = arith.mulf %88, %107 : vector<1x256xf32>
    %109 = arith.mulf %95, %108 : vector<1x256xf32>
    %110 = arith.subf %90, %109 : vector<1x256xf32>
    %111 = vector.broadcast %108 : vector<1x256xf32> to vector<8x256xf32>
    %112 = arith.mulf %91, %111 : vector<8x256xf32>
    %113 = vector.broadcast %110 : vector<1x256xf32> to vector<8x256xf32>
    %114 = arith.addf %112, %113 : vector<8x256xf32>
    %115 = vector.extract_strided_slice %114 {offsets = [0, 0], sizes = [8, 128], strides = [1, 1]} : vector<8x256xf32> to vector<8x128xf32>
    %116 = vector.extract_strided_slice %114 {offsets = [0, 128], sizes = [8, 128], strides = [1, 1]} : vector<8x256xf32> to vector<8x128xf32>
    %117 = arith.negf %116 : vector<8x128xf32>
    %118 = math.exp %117 : vector<8x128xf32>
    %cst_61 = arith.constant 1.000000e+00 : f32
    %119 = vector.broadcast %cst_61 : f32 to vector<8x128xf32>
    %120 = arith.addf %119, %118 : vector<8x128xf32>
    %121 = arith.divf %119, %120 : vector<8x128xf32>
    %122 = arith.mulf %115, %121 : vector<8x128xf32>
    %123 = arith.addf %84, %122 : vector<8x128xf32>
    %cst_62 = arith.constant 0.707106769 : f32
    %124 = vector.broadcast %cst_62 : f32 to vector<8x128xf32>
    %125 = arith.mulf %123, %124 : vector<8x128xf32>
    %c0_63 = arith.constant 0 : index
    %c1_64 = arith.constant 1 : index
    %c0_65 = arith.constant 0 : index
    %c0_66 = arith.constant 0 : index
    %126 = vector.load %arg9[%c0_63, %c1_64, %c0_65, %c0_66] : memref<5x2x128x256xf32, #tpu.memory_space<vmem>>, vector<1x1x128x256xf32>
    %127 = vector.shape_cast %126 : vector<1x1x128x256xf32> to vector<128x256xf32>
    %c0_67 = arith.constant 0 : index
    %c1_68 = arith.constant 1 : index
    %c0_69 = arith.constant 0 : index
    %c0_70 = arith.constant 0 : index
    %128 = vector.load %arg10[%c0_67, %c1_68, %c0_69, %c0_70] : memref<5x2x1x256xf32, #tpu.memory_space<vmem>>, vector<1x1x1x256xf32>
    %129 = vector.shape_cast %128 : vector<1x1x1x256xf32> to vector<1x256xf32>
    %c0_71 = arith.constant 0 : index
    %c1_72 = arith.constant 1 : index
    %c0_73 = arith.constant 0 : index
    %c0_74 = arith.constant 0 : index
    %130 = vector.load %arg11[%c0_71, %c1_72, %c0_73, %c0_74] : memref<5x2x1x256xf32, #tpu.memory_space<vmem>>, vector<1x1x1x256xf32>
    %131 = vector.shape_cast %130 : vector<1x1x1x256xf32> to vector<1x256xf32>
    %cst_75 = arith.constant dense<0.000000e+00> : vector<8x256xf32>
    %132 = tpu.matmul %125, %127, %cst_75 {dimension_numbers = #tpu.dot_dimension_numbers<[1], [0], [0], [1], [0, 0, 1, 1], [], []>} : vector<8x128xf32>, vector<128x256xf32>, vector<8x256xf32> -> vector<8x256xf32>
    %cst_76 = arith.constant dense<0.000000e+00> : vector<256xf32>
    %133 = vector.multi_reduction <add>, %132, %cst_76 [0] : vector<8x256xf32> to vector<256xf32>
    %134 = vector.shape_cast %133 : vector<256xf32> to vector<1x256xf32>
    %cst_77 = arith.constant 8.000000e+00 : f32
    %135 = vector.broadcast %cst_77 : f32 to vector<1x256xf32>
    %136 = arith.divf %134, %135 : vector<1x256xf32>
    %137 = arith.mulf %132, %132 : vector<8x256xf32>
    %cst_78 = arith.constant dense<0.000000e+00> : vector<256xf32>
    %138 = vector.multi_reduction <add>, %137, %cst_78 [0] : vector<8x256xf32> to vector<256xf32>
    %139 = vector.shape_cast %138 : vector<256xf32> to vector<1x256xf32>
    %cst_79 = arith.constant 8.000000e+00 : f32
    %140 = vector.broadcast %cst_79 : f32 to vector<1x256xf32>
    %141 = arith.divf %139, %140 : vector<1x256xf32>
    %142 = arith.mulf %136, %136 : vector<1x256xf32>
    %143 = arith.subf %141, %142 : vector<1x256xf32>
    %cst_80 = arith.constant 0.000000e+00 : f32
    %144 = vector.broadcast %cst_80 : f32 to vector<1x256xf32>
    %145 = arith.maximumf %143, %144 : vector<1x256xf32>
    %cst_81 = arith.constant 9.99999974E-6 : f32
    %146 = vector.broadcast %cst_81 : f32 to vector<1x256xf32>
    %147 = arith.addf %145, %146 : vector<1x256xf32>
    %148 = math.rsqrt %147 : vector<1x256xf32>
    %149 = arith.mulf %129, %148 : vector<1x256xf32>
    %150 = arith.mulf %136, %149 : vector<1x256xf32>
    %151 = arith.subf %131, %150 : vector<1x256xf32>
    %152 = vector.broadcast %149 : vector<1x256xf32> to vector<8x256xf32>
    %153 = arith.mulf %132, %152 : vector<8x256xf32>
    %154 = vector.broadcast %151 : vector<1x256xf32> to vector<8x256xf32>
    %155 = arith.addf %153, %154 : vector<8x256xf32>
    %156 = vector.extract_strided_slice %155 {offsets = [0, 0], sizes = [8, 128], strides = [1, 1]} : vector<8x256xf32> to vector<8x128xf32>
    %157 = vector.extract_strided_slice %155 {offsets = [0, 128], sizes = [8, 128], strides = [1, 1]} : vector<8x256xf32> to vector<8x128xf32>
    %158 = arith.negf %157 : vector<8x128xf32>
    %159 = math.exp %158 : vector<8x128xf32>
    %cst_82 = arith.constant 1.000000e+00 : f32
    %160 = vector.broadcast %cst_82 : f32 to vector<8x128xf32>
    %161 = arith.addf %160, %159 : vector<8x128xf32>
    %162 = arith.divf %160, %161 : vector<8x128xf32>
    %163 = arith.mulf %156, %162 : vector<8x128xf32>
    %164 = arith.addf %125, %163 : vector<8x128xf32>
    %cst_83 = arith.constant 0.707106769 : f32
    %165 = vector.broadcast %cst_83 : f32 to vector<8x128xf32>
    %166 = arith.mulf %164, %165 : vector<8x128xf32>
    %167 = vector.extract_strided_slice %166 {offsets = [0, 64], sizes = [8, 64], strides = [1, 1]} : vector<8x128xf32> to vector<8x64xf32>
    %cst_84 = arith.constant 0.000000e+00 : f32
    %168 = vector.broadcast %cst_84 : f32 to vector<8x64xf32>
    %cst_85 = arith.constant 0.000000e+00 : f32
    %169 = vector.broadcast %cst_85 : f32 to vector<8x15xf32>
    %c0_86 = arith.constant 0 : index
    %c0_87 = arith.constant 0 : index
    %c0_88 = arith.constant 0 : index
    %170 = vector.load %arg12[%c0_86, %c0_87, %c0_88] : memref<4x64x15xf32, #tpu.memory_space<vmem>>, vector<1x64x15xf32>
    %171 = vector.shape_cast %170 : vector<1x64x15xf32> to vector<64x15xf32>
    %cst_89 = arith.constant dense<0.000000e+00> : vector<8x15xf32>
    %172 = tpu.matmul %167, %171, %cst_89 {dimension_numbers = #tpu.dot_dimension_numbers<[1], [0], [0], [1], [0, 0, 1, 1], [], []>} : vector<8x64xf32>, vector<64x15xf32>, vector<8x15xf32> -> vector<8x15xf32>
    %c0_90 = arith.constant 0 : index
    %c0_91 = arith.constant 0 : index
    %c0_92 = arith.constant 0 : index
    %173 = vector.load %arg13[%c0_90, %c0_91, %c0_92] : memref<4x1x15xf32, #tpu.memory_space<vmem>>, vector<1x1x15xf32>
    %174 = vector.shape_cast %173 : vector<1x1x15xf32> to vector<1x15xf32>
    %c0_93 = arith.constant 0 : index
    %c0_94 = arith.constant 0 : index
    %c0_95 = arith.constant 0 : index
    %175 = vector.load %arg14[%c0_93, %c0_94, %c0_95] : memref<4x1x15xf32, #tpu.memory_space<vmem>>, vector<1x1x15xf32>
    %176 = vector.shape_cast %175 : vector<1x1x15xf32> to vector<1x15xf32>
    %cst_96 = arith.constant dense<0.000000e+00> : vector<15xf32>
    %177 = vector.multi_reduction <add>, %172, %cst_96 [0] : vector<8x15xf32> to vector<15xf32>
    %178 = vector.shape_cast %177 : vector<15xf32> to vector<1x15xf32>
    %cst_97 = arith.constant 8.000000e+00 : f32
    %179 = vector.broadcast %cst_97 : f32 to vector<1x15xf32>
    %180 = arith.divf %178, %179 : vector<1x15xf32>
    %181 = arith.mulf %172, %172 : vector<8x15xf32>
    %cst_98 = arith.constant dense<0.000000e+00> : vector<15xf32>
    %182 = vector.multi_reduction <add>, %181, %cst_98 [0] : vector<8x15xf32> to vector<15xf32>
    %183 = vector.shape_cast %182 : vector<15xf32> to vector<1x15xf32>
    %cst_99 = arith.constant 8.000000e+00 : f32
    %184 = vector.broadcast %cst_99 : f32 to vector<1x15xf32>
    %185 = arith.divf %183, %184 : vector<1x15xf32>
    %186 = arith.mulf %180, %180 : vector<1x15xf32>
    %187 = arith.subf %185, %186 : vector<1x15xf32>
    %cst_100 = arith.constant 0.000000e+00 : f32
    %188 = vector.broadcast %cst_100 : f32 to vector<1x15xf32>
    %189 = arith.maximumf %187, %188 : vector<1x15xf32>
    %cst_101 = arith.constant 9.99999974E-6 : f32
    %190 = vector.broadcast %cst_101 : f32 to vector<1x15xf32>
    %191 = arith.addf %189, %190 : vector<1x15xf32>
    %192 = math.rsqrt %191 : vector<1x15xf32>
    %193 = arith.mulf %174, %192 : vector<1x15xf32>
    %194 = arith.mulf %180, %193 : vector<1x15xf32>
    %195 = arith.subf %176, %194 : vector<1x15xf32>
    %196 = vector.broadcast %193 : vector<1x15xf32> to vector<8x15xf32>
    %197 = arith.mulf %172, %196 : vector<8x15xf32>
    %198 = vector.broadcast %195 : vector<1x15xf32> to vector<8x15xf32>
    %199 = arith.addf %197, %198 : vector<8x15xf32>
    %200 = arith.mulf %199, %2 : vector<8x15xf32>
    %cst_102 = arith.constant dense<0xFF800000> : vector<8xf32>
    %201 = vector.multi_reduction <maximumf>, %200, %cst_102 [1] : vector<8x15xf32> to vector<8xf32>
    %202 = vector.shape_cast %201 : vector<8xf32> to vector<8x1xf32>
    %203 = vector.broadcast %202 : vector<8x1xf32> to vector<8x15xf32>
    %204 = arith.subf %200, %203 : vector<8x15xf32>
    %205 = vector.shape_cast %204 : vector<8x15xf32> to vector<8x1x15xf32>
    %206 = vector.shape_cast %204 : vector<8x15xf32> to vector<8x15x1xf32>
    %207 = vector.broadcast %205 : vector<8x1x15xf32> to vector<8x15x15xf32>
    %208 = vector.broadcast %206 : vector<8x15x1xf32> to vector<8x15x15xf32>
    %209 = arith.cmpf oge, %207, %208 : vector<8x15x15xf32>
    %210 = arith.extui %209 : vector<8x15x15xi1> to vector<8x15x15xi32>
    %211 = arith.sitofp %210 : vector<8x15x15xi32> to vector<8x15x15xf32>
    %cst_103 = arith.constant dense<0.000000e+00> : vector<8x15xf32>
    %212 = vector.multi_reduction <add>, %211, %cst_103 [2] : vector<8x15x15xf32> to vector<8x15xf32>
    %213 = vector.shape_cast %204 : vector<8x15xf32> to vector<8x1x15xf32>
    %214 = vector.broadcast %213 : vector<8x1x15xf32> to vector<8x15x15xf32>
    %215 = arith.mulf %214, %211 : vector<8x15x15xf32>
    %cst_104 = arith.constant dense<0.000000e+00> : vector<8x15xf32>
    %216 = vector.multi_reduction <add>, %215, %cst_104 [2] : vector<8x15x15xf32> to vector<8x15xf32>
    %217 = arith.mulf %212, %204 : vector<8x15xf32>
    %cst_105 = arith.constant 1.000000e+00 : f32
    %218 = vector.broadcast %cst_105 : f32 to vector<8x15xf32>
    %219 = arith.subf %216, %218 : vector<8x15xf32>
    %220 = arith.cmpf ogt, %217, %219 : vector<8x15xf32>
    %221 = arith.extui %220 : vector<8x15xi1> to vector<8x15xi32>
    %222 = arith.sitofp %221 : vector<8x15xi32> to vector<8x15xf32>
    %cst_106 = arith.constant dense<0.000000e+00> : vector<8xf32>
    %223 = vector.multi_reduction <add>, %222, %cst_106 [1] : vector<8x15xf32> to vector<8xf32>
    %224 = vector.shape_cast %223 : vector<8xf32> to vector<8x1xf32>
    %225 = arith.mulf %204, %222 : vector<8x15xf32>
    %cst_107 = arith.constant dense<0.000000e+00> : vector<8xf32>
    %226 = vector.multi_reduction <add>, %225, %cst_107 [1] : vector<8x15xf32> to vector<8xf32>
    %227 = vector.shape_cast %226 : vector<8xf32> to vector<8x1xf32>
    %cst_108 = arith.constant 1.000000e+00 : f32
    %228 = vector.broadcast %cst_108 : f32 to vector<8x1xf32>
    %229 = arith.subf %227, %228 : vector<8x1xf32>
    %230 = arith.divf %229, %224 : vector<8x1xf32>
    %231 = vector.broadcast %230 : vector<8x1xf32> to vector<8x15xf32>
    %232 = arith.subf %204, %231 : vector<8x15xf32>
    %cst_109 = arith.constant 0.000000e+00 : f32
    %233 = vector.broadcast %cst_109 : f32 to vector<8x15xf32>
    %234 = arith.maximumf %232, %233 : vector<8x15xf32>
    %cst_110 = arith.constant 0.000000e+00 : f32
    %235 = vector.broadcast %cst_110 : f32 to vector<8x15xf32>
    %236 = arith.subf %235, %234 : vector<8x15xf32>
    %cst_111 = arith.constant 1.000000e-10 : f32
    %237 = vector.broadcast %cst_111 : f32 to vector<8x15xf32>
    %238 = arith.addf %234, %237 : vector<8x15xf32>
    %239 = math.log %238 : vector<8x15xf32>
    %240 = arith.mulf %236, %239 : vector<8x15xf32>
    %241 = arith.addf %169, %240 : vector<8x15xf32>
    %242 = arith.mulf %9, %234 : vector<8x15xf32>
    %c1_112 = arith.constant 1 : index
    %c0_113 = arith.constant 0 : index
    %c0_114 = arith.constant 0 : index
    %c0_115 = arith.constant 0 : index
    %243 = vector.load %arg7[%c1_112, %c0_113, %c0_114, %c0_115] : memref<5x2x1x256xf32, #tpu.memory_space<vmem>>, vector<1x1x1x256xf32>
    %244 = vector.shape_cast %243 : vector<1x1x1x256xf32> to vector<1x256xf32>
    %c1_116 = arith.constant 1 : index
    %c0_117 = arith.constant 0 : index
    %c0_118 = arith.constant 0 : index
    %c0_119 = arith.constant 0 : index
    %245 = vector.load %arg8[%c1_116, %c0_117, %c0_118, %c0_119] : memref<5x2x1x256xf32, #tpu.memory_space<vmem>>, vector<1x1x1x256xf32>
    %246 = vector.shape_cast %245 : vector<1x1x1x256xf32> to vector<1x256xf32>
    %cst_120 = arith.constant dense<0.000000e+00> : vector<8x256xf32>
    %247 = tpu.matmul %242, %0, %cst_120 {dimension_numbers = #tpu.dot_dimension_numbers<[1], [0], [0], [1], [0, 0, 1, 1], [], []>} : vector<8x15xf32>, vector<15x256xf32>, vector<8x256xf32> -> vector<8x256xf32>
    %cst_121 = arith.constant dense<0.000000e+00> : vector<256xf32>
    %248 = vector.multi_reduction <add>, %247, %cst_121 [0] : vector<8x256xf32> to vector<256xf32>
    %249 = vector.shape_cast %248 : vector<256xf32> to vector<1x256xf32>
    %cst_122 = arith.constant 8.000000e+00 : f32
    %250 = vector.broadcast %cst_122 : f32 to vector<1x256xf32>
    %251 = arith.divf %249, %250 : vector<1x256xf32>
    %252 = arith.mulf %247, %247 : vector<8x256xf32>
    %cst_123 = arith.constant dense<0.000000e+00> : vector<256xf32>
    %253 = vector.multi_reduction <add>, %252, %cst_123 [0] : vector<8x256xf32> to vector<256xf32>
    %254 = vector.shape_cast %253 : vector<256xf32> to vector<1x256xf32>
    %cst_124 = arith.constant 8.000000e+00 : f32
    %255 = vector.broadcast %cst_124 : f32 to vector<1x256xf32>
    %256 = arith.divf %254, %255 : vector<1x256xf32>
    %257 = arith.mulf %251, %251 : vector<1x256xf32>
    %258 = arith.subf %256, %257 : vector<1x256xf32>
    %cst_125 = arith.constant 0.000000e+00 : f32
    %259 = vector.broadcast %cst_125 : f32 to vector<1x256xf32>
    %260 = arith.maximumf %258, %259 : vector<1x256xf32>
    %cst_126 = arith.constant 9.99999974E-6 : f32
    %261 = vector.broadcast %cst_126 : f32 to vector<1x256xf32>
    %262 = arith.addf %260, %261 : vector<1x256xf32>
    %263 = math.rsqrt %262 : vector<1x256xf32>
    %264 = arith.mulf %244, %263 : vector<1x256xf32>
    %265 = arith.mulf %251, %264 : vector<1x256xf32>
    %266 = arith.subf %246, %265 : vector<1x256xf32>
    %267 = vector.broadcast %264 : vector<1x256xf32> to vector<8x256xf32>
    %268 = arith.mulf %247, %267 : vector<8x256xf32>
    %269 = vector.broadcast %266 : vector<1x256xf32> to vector<8x256xf32>
    %270 = arith.addf %268, %269 : vector<8x256xf32>
    %271 = vector.extract_strided_slice %270 {offsets = [0, 0], sizes = [8, 128], strides = [1, 1]} : vector<8x256xf32> to vector<8x128xf32>
    %272 = vector.extract_strided_slice %270 {offsets = [0, 128], sizes = [8, 128], strides = [1, 1]} : vector<8x256xf32> to vector<8x128xf32>
    %273 = arith.negf %272 : vector<8x128xf32>
    %274 = math.exp %273 : vector<8x128xf32>
    %cst_127 = arith.constant 1.000000e+00 : f32
    %275 = vector.broadcast %cst_127 : f32 to vector<8x128xf32>
    %276 = arith.addf %275, %274 : vector<8x128xf32>
    %277 = arith.divf %275, %276 : vector<8x128xf32>
    %278 = arith.mulf %271, %277 : vector<8x128xf32>
    %c1_128 = arith.constant 1 : index
    %c1_129 = arith.constant 1 : index
    %c0_130 = arith.constant 0 : index
    %c0_131 = arith.constant 0 : index
    %279 = vector.load %arg7[%c1_128, %c1_129, %c0_130, %c0_131] : memref<5x2x1x256xf32, #tpu.memory_space<vmem>>, vector<1x1x1x256xf32>
    %280 = vector.shape_cast %279 : vector<1x1x1x256xf32> to vector<1x256xf32>
    %c1_132 = arith.constant 1 : index
    %c1_133 = arith.constant 1 : index
    %c0_134 = arith.constant 0 : index
    %c0_135 = arith.constant 0 : index
    %281 = vector.load %arg8[%c1_132, %c1_133, %c0_134, %c0_135] : memref<5x2x1x256xf32, #tpu.memory_space<vmem>>, vector<1x1x1x256xf32>
    %282 = vector.shape_cast %281 : vector<1x1x1x256xf32> to vector<1x256xf32>
    %cst_136 = arith.constant dense<0.000000e+00> : vector<8x256xf32>
    %283 = tpu.matmul %278, %1, %cst_136 {dimension_numbers = #tpu.dot_dimension_numbers<[1], [0], [0], [1], [0, 0, 1, 1], [], []>} : vector<8x128xf32>, vector<128x256xf32>, vector<8x256xf32> -> vector<8x256xf32>
    %cst_137 = arith.constant dense<0.000000e+00> : vector<256xf32>
    %284 = vector.multi_reduction <add>, %283, %cst_137 [0] : vector<8x256xf32> to vector<256xf32>
    %285 = vector.shape_cast %284 : vector<256xf32> to vector<1x256xf32>
    %cst_138 = arith.constant 8.000000e+00 : f32
    %286 = vector.broadcast %cst_138 : f32 to vector<1x256xf32>
    %287 = arith.divf %285, %286 : vector<1x256xf32>
    %288 = arith.mulf %283, %283 : vector<8x256xf32>
    %cst_139 = arith.constant dense<0.000000e+00> : vector<256xf32>
    %289 = vector.multi_reduction <add>, %288, %cst_139 [0] : vector<8x256xf32> to vector<256xf32>
    %290 = vector.shape_cast %289 : vector<256xf32> to vector<1x256xf32>
    %cst_140 = arith.constant 8.000000e+00 : f32
    %291 = vector.broadcast %cst_140 : f32 to vector<1x256xf32>
    %292 = arith.divf %290, %291 : vector<1x256xf32>
    %293 = arith.mulf %287, %287 : vector<1x256xf32>
    %294 = arith.subf %292, %293 : vector<1x256xf32>
    %cst_141 = arith.constant 0.000000e+00 : f32
    %295 = vector.broadcast %cst_141 : f32 to vector<1x256xf32>
    %296 = arith.maximumf %294, %295 : vector<1x256xf32>
    %cst_142 = arith.constant 9.99999974E-6 : f32
    %297 = vector.broadcast %cst_142 : f32 to vector<1x256xf32>
    %298 = arith.addf %296, %297 : vector<1x256xf32>
    %299 = math.rsqrt %298 : vector<1x256xf32>
    %300 = arith.mulf %280, %299 : vector<1x256xf32>
    %301 = arith.mulf %287, %300 : vector<1x256xf32>
    %302 = arith.subf %282, %301 : vector<1x256xf32>
    %303 = vector.broadcast %300 : vector<1x256xf32> to vector<8x256xf32>
    %304 = arith.mulf %283, %303 : vector<8x256xf32>
    %305 = vector.broadcast %302 : vector<1x256xf32> to vector<8x256xf32>
    %306 = arith.addf %304, %305 : vector<8x256xf32>
    %307 = vector.extract_strided_slice %306 {offsets = [0, 0], sizes = [8, 128], strides = [1, 1]} : vector<8x256xf32> to vector<8x128xf32>
    %308 = vector.extract_strided_slice %306 {offsets = [0, 128], sizes = [8, 128], strides = [1, 1]} : vector<8x256xf32> to vector<8x128xf32>
    %309 = arith.negf %308 : vector<8x128xf32>
    %310 = math.exp %309 : vector<8x128xf32>
    %cst_143 = arith.constant 1.000000e+00 : f32
    %311 = vector.broadcast %cst_143 : f32 to vector<8x128xf32>
    %312 = arith.addf %311, %310 : vector<8x128xf32>
    %313 = arith.divf %311, %312 : vector<8x128xf32>
    %314 = arith.mulf %307, %313 : vector<8x128xf32>
    %315 = arith.addf %278, %314 : vector<8x128xf32>
    %cst_144 = arith.constant 0.707106769 : f32
    %316 = vector.broadcast %cst_144 : f32 to vector<8x128xf32>
    %317 = arith.mulf %315, %316 : vector<8x128xf32>
    %c1_145 = arith.constant 1 : index
    %c0_146 = arith.constant 0 : index
    %c0_147 = arith.constant 0 : index
    %c0_148 = arith.constant 0 : index
    %318 = vector.load %arg9[%c1_145, %c0_146, %c0_147, %c0_148] : memref<5x2x128x256xf32, #tpu.memory_space<vmem>>, vector<1x1x128x256xf32>
    %319 = vector.shape_cast %318 : vector<1x1x128x256xf32> to vector<128x256xf32>
    %c1_149 = arith.constant 1 : index
    %c0_150 = arith.constant 0 : index
    %c0_151 = arith.constant 0 : index
    %c0_152 = arith.constant 0 : index
    %320 = vector.load %arg10[%c1_149, %c0_150, %c0_151, %c0_152] : memref<5x2x1x256xf32, #tpu.memory_space<vmem>>, vector<1x1x1x256xf32>
    %321 = vector.shape_cast %320 : vector<1x1x1x256xf32> to vector<1x256xf32>
    %c1_153 = arith.constant 1 : index
    %c0_154 = arith.constant 0 : index
    %c0_155 = arith.constant 0 : index
    %c0_156 = arith.constant 0 : index
    %322 = vector.load %arg11[%c1_153, %c0_154, %c0_155, %c0_156] : memref<5x2x1x256xf32, #tpu.memory_space<vmem>>, vector<1x1x1x256xf32>
    %323 = vector.shape_cast %322 : vector<1x1x1x256xf32> to vector<1x256xf32>
    %cst_157 = arith.constant dense<0.000000e+00> : vector<8x256xf32>
    %324 = tpu.matmul %317, %319, %cst_157 {dimension_numbers = #tpu.dot_dimension_numbers<[1], [0], [0], [1], [0, 0, 1, 1], [], []>} : vector<8x128xf32>, vector<128x256xf32>, vector<8x256xf32> -> vector<8x256xf32>
    %cst_158 = arith.constant dense<0.000000e+00> : vector<256xf32>
    %325 = vector.multi_reduction <add>, %324, %cst_158 [0] : vector<8x256xf32> to vector<256xf32>
    %326 = vector.shape_cast %325 : vector<256xf32> to vector<1x256xf32>
    %cst_159 = arith.constant 8.000000e+00 : f32
    %327 = vector.broadcast %cst_159 : f32 to vector<1x256xf32>
    %328 = arith.divf %326, %327 : vector<1x256xf32>
    %329 = arith.mulf %324, %324 : vector<8x256xf32>
    %cst_160 = arith.constant dense<0.000000e+00> : vector<256xf32>
    %330 = vector.multi_reduction <add>, %329, %cst_160 [0] : vector<8x256xf32> to vector<256xf32>
    %331 = vector.shape_cast %330 : vector<256xf32> to vector<1x256xf32>
    %cst_161 = arith.constant 8.000000e+00 : f32
    %332 = vector.broadcast %cst_161 : f32 to vector<1x256xf32>
    %333 = arith.divf %331, %332 : vector<1x256xf32>
    %334 = arith.mulf %328, %328 : vector<1x256xf32>
    %335 = arith.subf %333, %334 : vector<1x256xf32>
    %cst_162 = arith.constant 0.000000e+00 : f32
    %336 = vector.broadcast %cst_162 : f32 to vector<1x256xf32>
    %337 = arith.maximumf %335, %336 : vector<1x256xf32>
    %cst_163 = arith.constant 9.99999974E-6 : f32
    %338 = vector.broadcast %cst_163 : f32 to vector<1x256xf32>
    %339 = arith.addf %337, %338 : vector<1x256xf32>
    %340 = math.rsqrt %339 : vector<1x256xf32>
    %341 = arith.mulf %321, %340 : vector<1x256xf32>
    %342 = arith.mulf %328, %341 : vector<1x256xf32>
    %343 = arith.subf %323, %342 : vector<1x256xf32>
    %344 = vector.broadcast %341 : vector<1x256xf32> to vector<8x256xf32>
    %345 = arith.mulf %324, %344 : vector<8x256xf32>
    %346 = vector.broadcast %343 : vector<1x256xf32> to vector<8x256xf32>
    %347 = arith.addf %345, %346 : vector<8x256xf32>
    %348 = vector.extract_strided_slice %347 {offsets = [0, 0], sizes = [8, 128], strides = [1, 1]} : vector<8x256xf32> to vector<8x128xf32>
    %349 = vector.extract_strided_slice %347 {offsets = [0, 128], sizes = [8, 128], strides = [1, 1]} : vector<8x256xf32> to vector<8x128xf32>
    %350 = arith.negf %349 : vector<8x128xf32>
    %351 = math.exp %350 : vector<8x128xf32>
    %cst_164 = arith.constant 1.000000e+00 : f32
    %352 = vector.broadcast %cst_164 : f32 to vector<8x128xf32>
    %353 = arith.addf %352, %351 : vector<8x128xf32>
    %354 = arith.divf %352, %353 : vector<8x128xf32>
    %355 = arith.mulf %348, %354 : vector<8x128xf32>
    %356 = arith.addf %317, %355 : vector<8x128xf32>
    %cst_165 = arith.constant 0.707106769 : f32
    %357 = vector.broadcast %cst_165 : f32 to vector<8x128xf32>
    %358 = arith.mulf %356, %357 : vector<8x128xf32>
    %c1_166 = arith.constant 1 : index
    %c1_167 = arith.constant 1 : index
    %c0_168 = arith.constant 0 : index
    %c0_169 = arith.constant 0 : index
    %359 = vector.load %arg9[%c1_166, %c1_167, %c0_168, %c0_169] : memref<5x2x128x256xf32, #tpu.memory_space<vmem>>, vector<1x1x128x256xf32>
    %360 = vector.shape_cast %359 : vector<1x1x128x256xf32> to vector<128x256xf32>
    %c1_170 = arith.constant 1 : index
    %c1_171 = arith.constant 1 : index
    %c0_172 = arith.constant 0 : index
    %c0_173 = arith.constant 0 : index
    %361 = vector.load %arg10[%c1_170, %c1_171, %c0_172, %c0_173] : memref<5x2x1x256xf32, #tpu.memory_space<vmem>>, vector<1x1x1x256xf32>
    %362 = vector.shape_cast %361 : vector<1x1x1x256xf32> to vector<1x256xf32>
    %c1_174 = arith.constant 1 : index
    %c1_175 = arith.constant 1 : index
    %c0_176 = arith.constant 0 : index
    %c0_177 = arith.constant 0 : index
    %363 = vector.load %arg11[%c1_174, %c1_175, %c0_176, %c0_177] : memref<5x2x1x256xf32, #tpu.memory_space<vmem>>, vector<1x1x1x256xf32>
    %364 = vector.shape_cast %363 : vector<1x1x1x256xf32> to vector<1x256xf32>
    %cst_178 = arith.constant dense<0.000000e+00> : vector<8x256xf32>
    %365 = tpu.matmul %358, %360, %cst_178 {dimension_numbers = #tpu.dot_dimension_numbers<[1], [0], [0], [1], [0, 0, 1, 1], [], []>} : vector<8x128xf32>, vector<128x256xf32>, vector<8x256xf32> -> vector<8x256xf32>
    %cst_179 = arith.constant dense<0.000000e+00> : vector<256xf32>
    %366 = vector.multi_reduction <add>, %365, %cst_179 [0] : vector<8x256xf32> to vector<256xf32>
    %367 = vector.shape_cast %366 : vector<256xf32> to vector<1x256xf32>
    %cst_180 = arith.constant 8.000000e+00 : f32
    %368 = vector.broadcast %cst_180 : f32 to vector<1x256xf32>
    %369 = arith.divf %367, %368 : vector<1x256xf32>
    %370 = arith.mulf %365, %365 : vector<8x256xf32>
    %cst_181 = arith.constant dense<0.000000e+00> : vector<256xf32>
    %371 = vector.multi_reduction <add>, %370, %cst_181 [0] : vector<8x256xf32> to vector<256xf32>
    %372 = vector.shape_cast %371 : vector<256xf32> to vector<1x256xf32>
    %cst_182 = arith.constant 8.000000e+00 : f32
    %373 = vector.broadcast %cst_182 : f32 to vector<1x256xf32>
    %374 = arith.divf %372, %373 : vector<1x256xf32>
    %375 = arith.mulf %369, %369 : vector<1x256xf32>
    %376 = arith.subf %374, %375 : vector<1x256xf32>
    %cst_183 = arith.constant 0.000000e+00 : f32
    %377 = vector.broadcast %cst_183 : f32 to vector<1x256xf32>
    %378 = arith.maximumf %376, %377 : vector<1x256xf32>
    %cst_184 = arith.constant 9.99999974E-6 : f32
    %379 = vector.broadcast %cst_184 : f32 to vector<1x256xf32>
    %380 = arith.addf %378, %379 : vector<1x256xf32>
    %381 = math.rsqrt %380 : vector<1x256xf32>
    %382 = arith.mulf %362, %381 : vector<1x256xf32>
    %383 = arith.mulf %369, %382 : vector<1x256xf32>
    %384 = arith.subf %364, %383 : vector<1x256xf32>
    %385 = vector.broadcast %382 : vector<1x256xf32> to vector<8x256xf32>
    %386 = arith.mulf %365, %385 : vector<8x256xf32>
    %387 = vector.broadcast %384 : vector<1x256xf32> to vector<8x256xf32>
    %388 = arith.addf %386, %387 : vector<8x256xf32>
    %389 = vector.extract_strided_slice %388 {offsets = [0, 0], sizes = [8, 128], strides = [1, 1]} : vector<8x256xf32> to vector<8x128xf32>
    %390 = vector.extract_strided_slice %388 {offsets = [0, 128], sizes = [8, 128], strides = [1, 1]} : vector<8x256xf32> to vector<8x128xf32>
    %391 = arith.negf %390 : vector<8x128xf32>
    %392 = math.exp %391 : vector<8x128xf32>
    %cst_185 = arith.constant 1.000000e+00 : f32
    %393 = vector.broadcast %cst_185 : f32 to vector<8x128xf32>
    %394 = arith.addf %393, %392 : vector<8x128xf32>
    %395 = arith.divf %393, %394 : vector<8x128xf32>
    %396 = arith.mulf %389, %395 : vector<8x128xf32>
    %397 = arith.addf %358, %396 : vector<8x128xf32>
    %cst_186 = arith.constant 0.707106769 : f32
    %398 = vector.broadcast %cst_186 : f32 to vector<8x128xf32>
    %399 = arith.mulf %397, %398 : vector<8x128xf32>
    %400 = vector.extract_strided_slice %399 {offsets = [0, 0], sizes = [8, 64], strides = [1, 1]} : vector<8x128xf32> to vector<8x64xf32>
    %cst_187 = arith.constant 0.000000e+00 : f32
    %401 = vector.broadcast %cst_187 : f32 to vector<8x64xf32>
    %402 = arith.maximumf %400, %401 : vector<8x64xf32>
    %403 = arith.addf %168, %402 : vector<8x64xf32>
    %404 = vector.extract_strided_slice %399 {offsets = [0, 64], sizes = [8, 64], strides = [1, 1]} : vector<8x128xf32> to vector<8x64xf32>
    %c1_188 = arith.constant 1 : index
    %c0_189 = arith.constant 0 : index
    %c0_190 = arith.constant 0 : index
    %405 = vector.load %arg12[%c1_188, %c0_189, %c0_190] : memref<4x64x15xf32, #tpu.memory_space<vmem>>, vector<1x64x15xf32>
    %406 = vector.shape_cast %405 : vector<1x64x15xf32> to vector<64x15xf32>
    %cst_191 = arith.constant dense<0.000000e+00> : vector<8x15xf32>
    %407 = tpu.matmul %404, %406, %cst_191 {dimension_numbers = #tpu.dot_dimension_numbers<[1], [0], [0], [1], [0, 0, 1, 1], [], []>} : vector<8x64xf32>, vector<64x15xf32>, vector<8x15xf32> -> vector<8x15xf32>
    %c1_192 = arith.constant 1 : index
    %c0_193 = arith.constant 0 : index
    %c0_194 = arith.constant 0 : index
    %408 = vector.load %arg13[%c1_192, %c0_193, %c0_194] : memref<4x1x15xf32, #tpu.memory_space<vmem>>, vector<1x1x15xf32>
    %409 = vector.shape_cast %408 : vector<1x1x15xf32> to vector<1x15xf32>
    %c1_195 = arith.constant 1 : index
    %c0_196 = arith.constant 0 : index
    %c0_197 = arith.constant 0 : index
    %410 = vector.load %arg14[%c1_195, %c0_196, %c0_197] : memref<4x1x15xf32, #tpu.memory_space<vmem>>, vector<1x1x15xf32>
    %411 = vector.shape_cast %410 : vector<1x1x15xf32> to vector<1x15xf32>
    %cst_198 = arith.constant dense<0.000000e+00> : vector<15xf32>
    %412 = vector.multi_reduction <add>, %407, %cst_198 [0] : vector<8x15xf32> to vector<15xf32>
    %413 = vector.shape_cast %412 : vector<15xf32> to vector<1x15xf32>
    %cst_199 = arith.constant 8.000000e+00 : f32
    %414 = vector.broadcast %cst_199 : f32 to vector<1x15xf32>
    %415 = arith.divf %413, %414 : vector<1x15xf32>
    %416 = arith.mulf %407, %407 : vector<8x15xf32>
    %cst_200 = arith.constant dense<0.000000e+00> : vector<15xf32>
    %417 = vector.multi_reduction <add>, %416, %cst_200 [0] : vector<8x15xf32> to vector<15xf32>
    %418 = vector.shape_cast %417 : vector<15xf32> to vector<1x15xf32>
    %cst_201 = arith.constant 8.000000e+00 : f32
    %419 = vector.broadcast %cst_201 : f32 to vector<1x15xf32>
    %420 = arith.divf %418, %419 : vector<1x15xf32>
    %421 = arith.mulf %415, %415 : vector<1x15xf32>
    %422 = arith.subf %420, %421 : vector<1x15xf32>
    %cst_202 = arith.constant 0.000000e+00 : f32
    %423 = vector.broadcast %cst_202 : f32 to vector<1x15xf32>
    %424 = arith.maximumf %422, %423 : vector<1x15xf32>
    %cst_203 = arith.constant 9.99999974E-6 : f32
    %425 = vector.broadcast %cst_203 : f32 to vector<1x15xf32>
    %426 = arith.addf %424, %425 : vector<1x15xf32>
    %427 = math.rsqrt %426 : vector<1x15xf32>
    %428 = arith.mulf %409, %427 : vector<1x15xf32>
    %429 = arith.mulf %415, %428 : vector<1x15xf32>
    %430 = arith.subf %411, %429 : vector<1x15xf32>
    %431 = vector.broadcast %428 : vector<1x15xf32> to vector<8x15xf32>
    %432 = arith.mulf %407, %431 : vector<8x15xf32>
    %433 = vector.broadcast %430 : vector<1x15xf32> to vector<8x15xf32>
    %434 = arith.addf %432, %433 : vector<8x15xf32>
    %435 = arith.mulf %434, %2 : vector<8x15xf32>
    %cst_204 = arith.constant dense<0xFF800000> : vector<8xf32>
    %436 = vector.multi_reduction <maximumf>, %435, %cst_204 [1] : vector<8x15xf32> to vector<8xf32>
    %437 = vector.shape_cast %436 : vector<8xf32> to vector<8x1xf32>
    %438 = vector.broadcast %437 : vector<8x1xf32> to vector<8x15xf32>
    %439 = arith.subf %435, %438 : vector<8x15xf32>
    %440 = vector.shape_cast %439 : vector<8x15xf32> to vector<8x1x15xf32>
    %441 = vector.shape_cast %439 : vector<8x15xf32> to vector<8x15x1xf32>
    %442 = vector.broadcast %440 : vector<8x1x15xf32> to vector<8x15x15xf32>
    %443 = vector.broadcast %441 : vector<8x15x1xf32> to vector<8x15x15xf32>
    %444 = arith.cmpf oge, %442, %443 : vector<8x15x15xf32>
    %445 = arith.extui %444 : vector<8x15x15xi1> to vector<8x15x15xi32>
    %446 = arith.sitofp %445 : vector<8x15x15xi32> to vector<8x15x15xf32>
    %cst_205 = arith.constant dense<0.000000e+00> : vector<8x15xf32>
    %447 = vector.multi_reduction <add>, %446, %cst_205 [2] : vector<8x15x15xf32> to vector<8x15xf32>
    %448 = vector.shape_cast %439 : vector<8x15xf32> to vector<8x1x15xf32>
    %449 = vector.broadcast %448 : vector<8x1x15xf32> to vector<8x15x15xf32>
    %450 = arith.mulf %449, %446 : vector<8x15x15xf32>
    %cst_206 = arith.constant dense<0.000000e+00> : vector<8x15xf32>
    %451 = vector.multi_reduction <add>, %450, %cst_206 [2] : vector<8x15x15xf32> to vector<8x15xf32>
    %452 = arith.mulf %447, %439 : vector<8x15xf32>
    %cst_207 = arith.constant 1.000000e+00 : f32
    %453 = vector.broadcast %cst_207 : f32 to vector<8x15xf32>
    %454 = arith.subf %451, %453 : vector<8x15xf32>
    %455 = arith.cmpf ogt, %452, %454 : vector<8x15xf32>
    %456 = arith.extui %455 : vector<8x15xi1> to vector<8x15xi32>
    %457 = arith.sitofp %456 : vector<8x15xi32> to vector<8x15xf32>
    %cst_208 = arith.constant dense<0.000000e+00> : vector<8xf32>
    %458 = vector.multi_reduction <add>, %457, %cst_208 [1] : vector<8x15xf32> to vector<8xf32>
    %459 = vector.shape_cast %458 : vector<8xf32> to vector<8x1xf32>
    %460 = arith.mulf %439, %457 : vector<8x15xf32>
    %cst_209 = arith.constant dense<0.000000e+00> : vector<8xf32>
    %461 = vector.multi_reduction <add>, %460, %cst_209 [1] : vector<8x15xf32> to vector<8xf32>
    %462 = vector.shape_cast %461 : vector<8xf32> to vector<8x1xf32>
    %cst_210 = arith.constant 1.000000e+00 : f32
    %463 = vector.broadcast %cst_210 : f32 to vector<8x1xf32>
    %464 = arith.subf %462, %463 : vector<8x1xf32>
    %465 = arith.divf %464, %459 : vector<8x1xf32>
    %466 = vector.broadcast %465 : vector<8x1xf32> to vector<8x15xf32>
    %467 = arith.subf %439, %466 : vector<8x15xf32>
    %cst_211 = arith.constant 0.000000e+00 : f32
    %468 = vector.broadcast %cst_211 : f32 to vector<8x15xf32>
    %469 = arith.maximumf %467, %468 : vector<8x15xf32>
    %cst_212 = arith.constant 0.000000e+00 : f32
    %470 = vector.broadcast %cst_212 : f32 to vector<8x15xf32>
    %471 = arith.subf %470, %469 : vector<8x15xf32>
    %cst_213 = arith.constant 1.000000e-10 : f32
    %472 = vector.broadcast %cst_213 : f32 to vector<8x15xf32>
    %473 = arith.addf %469, %472 : vector<8x15xf32>
    %474 = math.log %473 : vector<8x15xf32>
    %475 = arith.mulf %471, %474 : vector<8x15xf32>
    %476 = arith.addf %241, %475 : vector<8x15xf32>
    %477 = arith.mulf %9, %469 : vector<8x15xf32>
    %c2 = arith.constant 2 : index
    %c0_214 = arith.constant 0 : index
    %c0_215 = arith.constant 0 : index
    %c0_216 = arith.constant 0 : index
    %478 = vector.load %arg7[%c2, %c0_214, %c0_215, %c0_216] : memref<5x2x1x256xf32, #tpu.memory_space<vmem>>, vector<1x1x1x256xf32>
    %479 = vector.shape_cast %478 : vector<1x1x1x256xf32> to vector<1x256xf32>
    %c2_217 = arith.constant 2 : index
    %c0_218 = arith.constant 0 : index
    %c0_219 = arith.constant 0 : index
    %c0_220 = arith.constant 0 : index
    %480 = vector.load %arg8[%c2_217, %c0_218, %c0_219, %c0_220] : memref<5x2x1x256xf32, #tpu.memory_space<vmem>>, vector<1x1x1x256xf32>
    %481 = vector.shape_cast %480 : vector<1x1x1x256xf32> to vector<1x256xf32>
    %cst_221 = arith.constant dense<0.000000e+00> : vector<8x256xf32>
    %482 = tpu.matmul %477, %0, %cst_221 {dimension_numbers = #tpu.dot_dimension_numbers<[1], [0], [0], [1], [0, 0, 1, 1], [], []>} : vector<8x15xf32>, vector<15x256xf32>, vector<8x256xf32> -> vector<8x256xf32>
    %cst_222 = arith.constant dense<0.000000e+00> : vector<256xf32>
    %483 = vector.multi_reduction <add>, %482, %cst_222 [0] : vector<8x256xf32> to vector<256xf32>
    %484 = vector.shape_cast %483 : vector<256xf32> to vector<1x256xf32>
    %cst_223 = arith.constant 8.000000e+00 : f32
    %485 = vector.broadcast %cst_223 : f32 to vector<1x256xf32>
    %486 = arith.divf %484, %485 : vector<1x256xf32>
    %487 = arith.mulf %482, %482 : vector<8x256xf32>
    %cst_224 = arith.constant dense<0.000000e+00> : vector<256xf32>
    %488 = vector.multi_reduction <add>, %487, %cst_224 [0] : vector<8x256xf32> to vector<256xf32>
    %489 = vector.shape_cast %488 : vector<256xf32> to vector<1x256xf32>
    %cst_225 = arith.constant 8.000000e+00 : f32
    %490 = vector.broadcast %cst_225 : f32 to vector<1x256xf32>
    %491 = arith.divf %489, %490 : vector<1x256xf32>
    %492 = arith.mulf %486, %486 : vector<1x256xf32>
    %493 = arith.subf %491, %492 : vector<1x256xf32>
    %cst_226 = arith.constant 0.000000e+00 : f32
    %494 = vector.broadcast %cst_226 : f32 to vector<1x256xf32>
    %495 = arith.maximumf %493, %494 : vector<1x256xf32>
    %cst_227 = arith.constant 9.99999974E-6 : f32
    %496 = vector.broadcast %cst_227 : f32 to vector<1x256xf32>
    %497 = arith.addf %495, %496 : vector<1x256xf32>
    %498 = math.rsqrt %497 : vector<1x256xf32>
    %499 = arith.mulf %479, %498 : vector<1x256xf32>
    %500 = arith.mulf %486, %499 : vector<1x256xf32>
    %501 = arith.subf %481, %500 : vector<1x256xf32>
    %502 = vector.broadcast %499 : vector<1x256xf32> to vector<8x256xf32>
    %503 = arith.mulf %482, %502 : vector<8x256xf32>
    %504 = vector.broadcast %501 : vector<1x256xf32> to vector<8x256xf32>
    %505 = arith.addf %503, %504 : vector<8x256xf32>
    %506 = vector.extract_strided_slice %505 {offsets = [0, 0], sizes = [8, 128], strides = [1, 1]} : vector<8x256xf32> to vector<8x128xf32>
    %507 = vector.extract_strided_slice %505 {offsets = [0, 128], sizes = [8, 128], strides = [1, 1]} : vector<8x256xf32> to vector<8x128xf32>
    %508 = arith.negf %507 : vector<8x128xf32>
    %509 = math.exp %508 : vector<8x128xf32>
    %cst_228 = arith.constant 1.000000e+00 : f32
    %510 = vector.broadcast %cst_228 : f32 to vector<8x128xf32>
    %511 = arith.addf %510, %509 : vector<8x128xf32>
    %512 = arith.divf %510, %511 : vector<8x128xf32>
    %513 = arith.mulf %506, %512 : vector<8x128xf32>
    %c2_229 = arith.constant 2 : index
    %c1_230 = arith.constant 1 : index
    %c0_231 = arith.constant 0 : index
    %c0_232 = arith.constant 0 : index
    %514 = vector.load %arg7[%c2_229, %c1_230, %c0_231, %c0_232] : memref<5x2x1x256xf32, #tpu.memory_space<vmem>>, vector<1x1x1x256xf32>
    %515 = vector.shape_cast %514 : vector<1x1x1x256xf32> to vector<1x256xf32>
    %c2_233 = arith.constant 2 : index
    %c1_234 = arith.constant 1 : index
    %c0_235 = arith.constant 0 : index
    %c0_236 = arith.constant 0 : index
    %516 = vector.load %arg8[%c2_233, %c1_234, %c0_235, %c0_236] : memref<5x2x1x256xf32, #tpu.memory_space<vmem>>, vector<1x1x1x256xf32>
    %517 = vector.shape_cast %516 : vector<1x1x1x256xf32> to vector<1x256xf32>
    %cst_237 = arith.constant dense<0.000000e+00> : vector<8x256xf32>
    %518 = tpu.matmul %513, %1, %cst_237 {dimension_numbers = #tpu.dot_dimension_numbers<[1], [0], [0], [1], [0, 0, 1, 1], [], []>} : vector<8x128xf32>, vector<128x256xf32>, vector<8x256xf32> -> vector<8x256xf32>
    %cst_238 = arith.constant dense<0.000000e+00> : vector<256xf32>
    %519 = vector.multi_reduction <add>, %518, %cst_238 [0] : vector<8x256xf32> to vector<256xf32>
    %520 = vector.shape_cast %519 : vector<256xf32> to vector<1x256xf32>
    %cst_239 = arith.constant 8.000000e+00 : f32
    %521 = vector.broadcast %cst_239 : f32 to vector<1x256xf32>
    %522 = arith.divf %520, %521 : vector<1x256xf32>
    %523 = arith.mulf %518, %518 : vector<8x256xf32>
    %cst_240 = arith.constant dense<0.000000e+00> : vector<256xf32>
    %524 = vector.multi_reduction <add>, %523, %cst_240 [0] : vector<8x256xf32> to vector<256xf32>
    %525 = vector.shape_cast %524 : vector<256xf32> to vector<1x256xf32>
    %cst_241 = arith.constant 8.000000e+00 : f32
    %526 = vector.broadcast %cst_241 : f32 to vector<1x256xf32>
    %527 = arith.divf %525, %526 : vector<1x256xf32>
    %528 = arith.mulf %522, %522 : vector<1x256xf32>
    %529 = arith.subf %527, %528 : vector<1x256xf32>
    %cst_242 = arith.constant 0.000000e+00 : f32
    %530 = vector.broadcast %cst_242 : f32 to vector<1x256xf32>
    %531 = arith.maximumf %529, %530 : vector<1x256xf32>
    %cst_243 = arith.constant 9.99999974E-6 : f32
    %532 = vector.broadcast %cst_243 : f32 to vector<1x256xf32>
    %533 = arith.addf %531, %532 : vector<1x256xf32>
    %534 = math.rsqrt %533 : vector<1x256xf32>
    %535 = arith.mulf %515, %534 : vector<1x256xf32>
    %536 = arith.mulf %522, %535 : vector<1x256xf32>
    %537 = arith.subf %517, %536 : vector<1x256xf32>
    %538 = vector.broadcast %535 : vector<1x256xf32> to vector<8x256xf32>
    %539 = arith.mulf %518, %538 : vector<8x256xf32>
    %540 = vector.broadcast %537 : vector<1x256xf32> to vector<8x256xf32>
    %541 = arith.addf %539, %540 : vector<8x256xf32>
    %542 = vector.extract_strided_slice %541 {offsets = [0, 0], sizes = [8, 128], strides = [1, 1]} : vector<8x256xf32> to vector<8x128xf32>
    %543 = vector.extract_strided_slice %541 {offsets = [0, 128], sizes = [8, 128], strides = [1, 1]} : vector<8x256xf32> to vector<8x128xf32>
    %544 = arith.negf %543 : vector<8x128xf32>
    %545 = math.exp %544 : vector<8x128xf32>
    %cst_244 = arith.constant 1.000000e+00 : f32
    %546 = vector.broadcast %cst_244 : f32 to vector<8x128xf32>
    %547 = arith.addf %546, %545 : vector<8x128xf32>
    %548 = arith.divf %546, %547 : vector<8x128xf32>
    %549 = arith.mulf %542, %548 : vector<8x128xf32>
    %550 = arith.addf %513, %549 : vector<8x128xf32>
    %cst_245 = arith.constant 0.707106769 : f32
    %551 = vector.broadcast %cst_245 : f32 to vector<8x128xf32>
    %552 = arith.mulf %550, %551 : vector<8x128xf32>
    %c2_246 = arith.constant 2 : index
    %c0_247 = arith.constant 0 : index
    %c0_248 = arith.constant 0 : index
    %c0_249 = arith.constant 0 : index
    %553 = vector.load %arg9[%c2_246, %c0_247, %c0_248, %c0_249] : memref<5x2x128x256xf32, #tpu.memory_space<vmem>>, vector<1x1x128x256xf32>
    %554 = vector.shape_cast %553 : vector<1x1x128x256xf32> to vector<128x256xf32>
    %c2_250 = arith.constant 2 : index
    %c0_251 = arith.constant 0 : index
    %c0_252 = arith.constant 0 : index
    %c0_253 = arith.constant 0 : index
    %555 = vector.load %arg10[%c2_250, %c0_251, %c0_252, %c0_253] : memref<5x2x1x256xf32, #tpu.memory_space<vmem>>, vector<1x1x1x256xf32>
    %556 = vector.shape_cast %555 : vector<1x1x1x256xf32> to vector<1x256xf32>
    %c2_254 = arith.constant 2 : index
    %c0_255 = arith.constant 0 : index
    %c0_256 = arith.constant 0 : index
    %c0_257 = arith.constant 0 : index
    %557 = vector.load %arg11[%c2_254, %c0_255, %c0_256, %c0_257] : memref<5x2x1x256xf32, #tpu.memory_space<vmem>>, vector<1x1x1x256xf32>
    %558 = vector.shape_cast %557 : vector<1x1x1x256xf32> to vector<1x256xf32>
    %cst_258 = arith.constant dense<0.000000e+00> : vector<8x256xf32>
    %559 = tpu.matmul %552, %554, %cst_258 {dimension_numbers = #tpu.dot_dimension_numbers<[1], [0], [0], [1], [0, 0, 1, 1], [], []>} : vector<8x128xf32>, vector<128x256xf32>, vector<8x256xf32> -> vector<8x256xf32>
    %cst_259 = arith.constant dense<0.000000e+00> : vector<256xf32>
    %560 = vector.multi_reduction <add>, %559, %cst_259 [0] : vector<8x256xf32> to vector<256xf32>
    %561 = vector.shape_cast %560 : vector<256xf32> to vector<1x256xf32>
    %cst_260 = arith.constant 8.000000e+00 : f32
    %562 = vector.broadcast %cst_260 : f32 to vector<1x256xf32>
    %563 = arith.divf %561, %562 : vector<1x256xf32>
    %564 = arith.mulf %559, %559 : vector<8x256xf32>
    %cst_261 = arith.constant dense<0.000000e+00> : vector<256xf32>
    %565 = vector.multi_reduction <add>, %564, %cst_261 [0] : vector<8x256xf32> to vector<256xf32>
    %566 = vector.shape_cast %565 : vector<256xf32> to vector<1x256xf32>
    %cst_262 = arith.constant 8.000000e+00 : f32
    %567 = vector.broadcast %cst_262 : f32 to vector<1x256xf32>
    %568 = arith.divf %566, %567 : vector<1x256xf32>
    %569 = arith.mulf %563, %563 : vector<1x256xf32>
    %570 = arith.subf %568, %569 : vector<1x256xf32>
    %cst_263 = arith.constant 0.000000e+00 : f32
    %571 = vector.broadcast %cst_263 : f32 to vector<1x256xf32>
    %572 = arith.maximumf %570, %571 : vector<1x256xf32>
    %cst_264 = arith.constant 9.99999974E-6 : f32
    %573 = vector.broadcast %cst_264 : f32 to vector<1x256xf32>
    %574 = arith.addf %572, %573 : vector<1x256xf32>
    %575 = math.rsqrt %574 : vector<1x256xf32>
    %576 = arith.mulf %556, %575 : vector<1x256xf32>
    %577 = arith.mulf %563, %576 : vector<1x256xf32>
    %578 = arith.subf %558, %577 : vector<1x256xf32>
    %579 = vector.broadcast %576 : vector<1x256xf32> to vector<8x256xf32>
    %580 = arith.mulf %559, %579 : vector<8x256xf32>
    %581 = vector.broadcast %578 : vector<1x256xf32> to vector<8x256xf32>
    %582 = arith.addf %580, %581 : vector<8x256xf32>
    %583 = vector.extract_strided_slice %582 {offsets = [0, 0], sizes = [8, 128], strides = [1, 1]} : vector<8x256xf32> to vector<8x128xf32>
    %584 = vector.extract_strided_slice %582 {offsets = [0, 128], sizes = [8, 128], strides = [1, 1]} : vector<8x256xf32> to vector<8x128xf32>
    %585 = arith.negf %584 : vector<8x128xf32>
    %586 = math.exp %585 : vector<8x128xf32>
    %cst_265 = arith.constant 1.000000e+00 : f32
    %587 = vector.broadcast %cst_265 : f32 to vector<8x128xf32>
    %588 = arith.addf %587, %586 : vector<8x128xf32>
    %589 = arith.divf %587, %588 : vector<8x128xf32>
    %590 = arith.mulf %583, %589 : vector<8x128xf32>
    %591 = arith.addf %552, %590 : vector<8x128xf32>
    %cst_266 = arith.constant 0.707106769 : f32
    %592 = vector.broadcast %cst_266 : f32 to vector<8x128xf32>
    %593 = arith.mulf %591, %592 : vector<8x128xf32>
    %c2_267 = arith.constant 2 : index
    %c1_268 = arith.constant 1 : index
    %c0_269 = arith.constant 0 : index
    %c0_270 = arith.constant 0 : index
    %594 = vector.load %arg9[%c2_267, %c1_268, %c0_269, %c0_270] : memref<5x2x128x256xf32, #tpu.memory_space<vmem>>, vector<1x1x128x256xf32>
    %595 = vector.shape_cast %594 : vector<1x1x128x256xf32> to vector<128x256xf32>
    %c2_271 = arith.constant 2 : index
    %c1_272 = arith.constant 1 : index
    %c0_273 = arith.constant 0 : index
    %c0_274 = arith.constant 0 : index
    %596 = vector.load %arg10[%c2_271, %c1_272, %c0_273, %c0_274] : memref<5x2x1x256xf32, #tpu.memory_space<vmem>>, vector<1x1x1x256xf32>
    %597 = vector.shape_cast %596 : vector<1x1x1x256xf32> to vector<1x256xf32>
    %c2_275 = arith.constant 2 : index
    %c1_276 = arith.constant 1 : index
    %c0_277 = arith.constant 0 : index
    %c0_278 = arith.constant 0 : index
    %598 = vector.load %arg11[%c2_275, %c1_276, %c0_277, %c0_278] : memref<5x2x1x256xf32, #tpu.memory_space<vmem>>, vector<1x1x1x256xf32>
    %599 = vector.shape_cast %598 : vector<1x1x1x256xf32> to vector<1x256xf32>
    %cst_279 = arith.constant dense<0.000000e+00> : vector<8x256xf32>
    %600 = tpu.matmul %593, %595, %cst_279 {dimension_numbers = #tpu.dot_dimension_numbers<[1], [0], [0], [1], [0, 0, 1, 1], [], []>} : vector<8x128xf32>, vector<128x256xf32>, vector<8x256xf32> -> vector<8x256xf32>
    %cst_280 = arith.constant dense<0.000000e+00> : vector<256xf32>
    %601 = vector.multi_reduction <add>, %600, %cst_280 [0] : vector<8x256xf32> to vector<256xf32>
    %602 = vector.shape_cast %601 : vector<256xf32> to vector<1x256xf32>
    %cst_281 = arith.constant 8.000000e+00 : f32
    %603 = vector.broadcast %cst_281 : f32 to vector<1x256xf32>
    %604 = arith.divf %602, %603 : vector<1x256xf32>
    %605 = arith.mulf %600, %600 : vector<8x256xf32>
    %cst_282 = arith.constant dense<0.000000e+00> : vector<256xf32>
    %606 = vector.multi_reduction <add>, %605, %cst_282 [0] : vector<8x256xf32> to vector<256xf32>
    %607 = vector.shape_cast %606 : vector<256xf32> to vector<1x256xf32>
    %cst_283 = arith.constant 8.000000e+00 : f32
    %608 = vector.broadcast %cst_283 : f32 to vector<1x256xf32>
    %609 = arith.divf %607, %608 : vector<1x256xf32>
    %610 = arith.mulf %604, %604 : vector<1x256xf32>
    %611 = arith.subf %609, %610 : vector<1x256xf32>
    %cst_284 = arith.constant 0.000000e+00 : f32
    %612 = vector.broadcast %cst_284 : f32 to vector<1x256xf32>
    %613 = arith.maximumf %611, %612 : vector<1x256xf32>
    %cst_285 = arith.constant 9.99999974E-6 : f32
    %614 = vector.broadcast %cst_285 : f32 to vector<1x256xf32>
    %615 = arith.addf %613, %614 : vector<1x256xf32>
    %616 = math.rsqrt %615 : vector<1x256xf32>
    %617 = arith.mulf %597, %616 : vector<1x256xf32>
    %618 = arith.mulf %604, %617 : vector<1x256xf32>
    %619 = arith.subf %599, %618 : vector<1x256xf32>
    %620 = vector.broadcast %617 : vector<1x256xf32> to vector<8x256xf32>
    %621 = arith.mulf %600, %620 : vector<8x256xf32>
    %622 = vector.broadcast %619 : vector<1x256xf32> to vector<8x256xf32>
    %623 = arith.addf %621, %622 : vector<8x256xf32>
    %624 = vector.extract_strided_slice %623 {offsets = [0, 0], sizes = [8, 128], strides = [1, 1]} : vector<8x256xf32> to vector<8x128xf32>
    %625 = vector.extract_strided_slice %623 {offsets = [0, 128], sizes = [8, 128], strides = [1, 1]} : vector<8x256xf32> to vector<8x128xf32>
    %626 = arith.negf %625 : vector<8x128xf32>
    %627 = math.exp %626 : vector<8x128xf32>
    %cst_286 = arith.constant 1.000000e+00 : f32
    %628 = vector.broadcast %cst_286 : f32 to vector<8x128xf32>
    %629 = arith.addf %628, %627 : vector<8x128xf32>
    %630 = arith.divf %628, %629 : vector<8x128xf32>
    %631 = arith.mulf %624, %630 : vector<8x128xf32>
    %632 = arith.addf %593, %631 : vector<8x128xf32>
    %cst_287 = arith.constant 0.707106769 : f32
    %633 = vector.broadcast %cst_287 : f32 to vector<8x128xf32>
    %634 = arith.mulf %632, %633 : vector<8x128xf32>
    %635 = vector.extract_strided_slice %634 {offsets = [0, 0], sizes = [8, 64], strides = [1, 1]} : vector<8x128xf32> to vector<8x64xf32>
    %cst_288 = arith.constant 0.000000e+00 : f32
    %636 = vector.broadcast %cst_288 : f32 to vector<8x64xf32>
    %637 = arith.maximumf %635, %636 : vector<8x64xf32>
    %638 = arith.addf %403, %637 : vector<8x64xf32>
    %639 = vector.extract_strided_slice %634 {offsets = [0, 64], sizes = [8, 64], strides = [1, 1]} : vector<8x128xf32> to vector<8x64xf32>
    %c2_289 = arith.constant 2 : index
    %c0_290 = arith.constant 0 : index
    %c0_291 = arith.constant 0 : index
    %640 = vector.load %arg12[%c2_289, %c0_290, %c0_291] : memref<4x64x15xf32, #tpu.memory_space<vmem>>, vector<1x64x15xf32>
    %641 = vector.shape_cast %640 : vector<1x64x15xf32> to vector<64x15xf32>
    %cst_292 = arith.constant dense<0.000000e+00> : vector<8x15xf32>
    %642 = tpu.matmul %639, %641, %cst_292 {dimension_numbers = #tpu.dot_dimension_numbers<[1], [0], [0], [1], [0, 0, 1, 1], [], []>} : vector<8x64xf32>, vector<64x15xf32>, vector<8x15xf32> -> vector<8x15xf32>
    %c2_293 = arith.constant 2 : index
    %c0_294 = arith.constant 0 : index
    %c0_295 = arith.constant 0 : index
    %643 = vector.load %arg13[%c2_293, %c0_294, %c0_295] : memref<4x1x15xf32, #tpu.memory_space<vmem>>, vector<1x1x15xf32>
    %644 = vector.shape_cast %643 : vector<1x1x15xf32> to vector<1x15xf32>
    %c2_296 = arith.constant 2 : index
    %c0_297 = arith.constant 0 : index
    %c0_298 = arith.constant 0 : index
    %645 = vector.load %arg14[%c2_296, %c0_297, %c0_298] : memref<4x1x15xf32, #tpu.memory_space<vmem>>, vector<1x1x15xf32>
    %646 = vector.shape_cast %645 : vector<1x1x15xf32> to vector<1x15xf32>
    %cst_299 = arith.constant dense<0.000000e+00> : vector<15xf32>
    %647 = vector.multi_reduction <add>, %642, %cst_299 [0] : vector<8x15xf32> to vector<15xf32>
    %648 = vector.shape_cast %647 : vector<15xf32> to vector<1x15xf32>
    %cst_300 = arith.constant 8.000000e+00 : f32
    %649 = vector.broadcast %cst_300 : f32 to vector<1x15xf32>
    %650 = arith.divf %648, %649 : vector<1x15xf32>
    %651 = arith.mulf %642, %642 : vector<8x15xf32>
    %cst_301 = arith.constant dense<0.000000e+00> : vector<15xf32>
    %652 = vector.multi_reduction <add>, %651, %cst_301 [0] : vector<8x15xf32> to vector<15xf32>
    %653 = vector.shape_cast %652 : vector<15xf32> to vector<1x15xf32>
    %cst_302 = arith.constant 8.000000e+00 : f32
    %654 = vector.broadcast %cst_302 : f32 to vector<1x15xf32>
    %655 = arith.divf %653, %654 : vector<1x15xf32>
    %656 = arith.mulf %650, %650 : vector<1x15xf32>
    %657 = arith.subf %655, %656 : vector<1x15xf32>
    %cst_303 = arith.constant 0.000000e+00 : f32
    %658 = vector.broadcast %cst_303 : f32 to vector<1x15xf32>
    %659 = arith.maximumf %657, %658 : vector<1x15xf32>
    %cst_304 = arith.constant 9.99999974E-6 : f32
    %660 = vector.broadcast %cst_304 : f32 to vector<1x15xf32>
    %661 = arith.addf %659, %660 : vector<1x15xf32>
    %662 = math.rsqrt %661 : vector<1x15xf32>
    %663 = arith.mulf %644, %662 : vector<1x15xf32>
    %664 = arith.mulf %650, %663 : vector<1x15xf32>
    %665 = arith.subf %646, %664 : vector<1x15xf32>
    %666 = vector.broadcast %663 : vector<1x15xf32> to vector<8x15xf32>
    %667 = arith.mulf %642, %666 : vector<8x15xf32>
    %668 = vector.broadcast %665 : vector<1x15xf32> to vector<8x15xf32>
    %669 = arith.addf %667, %668 : vector<8x15xf32>
    %670 = arith.mulf %669, %2 : vector<8x15xf32>
    %cst_305 = arith.constant dense<0xFF800000> : vector<8xf32>
    %671 = vector.multi_reduction <maximumf>, %670, %cst_305 [1] : vector<8x15xf32> to vector<8xf32>
    %672 = vector.shape_cast %671 : vector<8xf32> to vector<8x1xf32>
    %673 = vector.broadcast %672 : vector<8x1xf32> to vector<8x15xf32>
    %674 = arith.subf %670, %673 : vector<8x15xf32>
    %675 = vector.shape_cast %674 : vector<8x15xf32> to vector<8x1x15xf32>
    %676 = vector.shape_cast %674 : vector<8x15xf32> to vector<8x15x1xf32>
    %677 = vector.broadcast %675 : vector<8x1x15xf32> to vector<8x15x15xf32>
    %678 = vector.broadcast %676 : vector<8x15x1xf32> to vector<8x15x15xf32>
    %679 = arith.cmpf oge, %677, %678 : vector<8x15x15xf32>
    %680 = arith.extui %679 : vector<8x15x15xi1> to vector<8x15x15xi32>
    %681 = arith.sitofp %680 : vector<8x15x15xi32> to vector<8x15x15xf32>
    %cst_306 = arith.constant dense<0.000000e+00> : vector<8x15xf32>
    %682 = vector.multi_reduction <add>, %681, %cst_306 [2] : vector<8x15x15xf32> to vector<8x15xf32>
    %683 = vector.shape_cast %674 : vector<8x15xf32> to vector<8x1x15xf32>
    %684 = vector.broadcast %683 : vector<8x1x15xf32> to vector<8x15x15xf32>
    %685 = arith.mulf %684, %681 : vector<8x15x15xf32>
    %cst_307 = arith.constant dense<0.000000e+00> : vector<8x15xf32>
    %686 = vector.multi_reduction <add>, %685, %cst_307 [2] : vector<8x15x15xf32> to vector<8x15xf32>
    %687 = arith.mulf %682, %674 : vector<8x15xf32>
    %cst_308 = arith.constant 1.000000e+00 : f32
    %688 = vector.broadcast %cst_308 : f32 to vector<8x15xf32>
    %689 = arith.subf %686, %688 : vector<8x15xf32>
    %690 = arith.cmpf ogt, %687, %689 : vector<8x15xf32>
    %691 = arith.extui %690 : vector<8x15xi1> to vector<8x15xi32>
    %692 = arith.sitofp %691 : vector<8x15xi32> to vector<8x15xf32>
    %cst_309 = arith.constant dense<0.000000e+00> : vector<8xf32>
    %693 = vector.multi_reduction <add>, %692, %cst_309 [1] : vector<8x15xf32> to vector<8xf32>
    %694 = vector.shape_cast %693 : vector<8xf32> to vector<8x1xf32>
    %695 = arith.mulf %674, %692 : vector<8x15xf32>
    %cst_310 = arith.constant dense<0.000000e+00> : vector<8xf32>
    %696 = vector.multi_reduction <add>, %695, %cst_310 [1] : vector<8x15xf32> to vector<8xf32>
    %697 = vector.shape_cast %696 : vector<8xf32> to vector<8x1xf32>
    %cst_311 = arith.constant 1.000000e+00 : f32
    %698 = vector.broadcast %cst_311 : f32 to vector<8x1xf32>
    %699 = arith.subf %697, %698 : vector<8x1xf32>
    %700 = arith.divf %699, %694 : vector<8x1xf32>
    %701 = vector.broadcast %700 : vector<8x1xf32> to vector<8x15xf32>
    %702 = arith.subf %674, %701 : vector<8x15xf32>
    %cst_312 = arith.constant 0.000000e+00 : f32
    %703 = vector.broadcast %cst_312 : f32 to vector<8x15xf32>
    %704 = arith.maximumf %702, %703 : vector<8x15xf32>
    %cst_313 = arith.constant 0.000000e+00 : f32
    %705 = vector.broadcast %cst_313 : f32 to vector<8x15xf32>
    %706 = arith.subf %705, %704 : vector<8x15xf32>
    %cst_314 = arith.constant 1.000000e-10 : f32
    %707 = vector.broadcast %cst_314 : f32 to vector<8x15xf32>
    %708 = arith.addf %704, %707 : vector<8x15xf32>
    %709 = math.log %708 : vector<8x15xf32>
    %710 = arith.mulf %706, %709 : vector<8x15xf32>
    %711 = arith.addf %476, %710 : vector<8x15xf32>
    %712 = arith.mulf %9, %704 : vector<8x15xf32>
    %c3 = arith.constant 3 : index
    %c0_315 = arith.constant 0 : index
    %c0_316 = arith.constant 0 : index
    %c0_317 = arith.constant 0 : index
    %713 = vector.load %arg7[%c3, %c0_315, %c0_316, %c0_317] : memref<5x2x1x256xf32, #tpu.memory_space<vmem>>, vector<1x1x1x256xf32>
    %714 = vector.shape_cast %713 : vector<1x1x1x256xf32> to vector<1x256xf32>
    %c3_318 = arith.constant 3 : index
    %c0_319 = arith.constant 0 : index
    %c0_320 = arith.constant 0 : index
    %c0_321 = arith.constant 0 : index
    %715 = vector.load %arg8[%c3_318, %c0_319, %c0_320, %c0_321] : memref<5x2x1x256xf32, #tpu.memory_space<vmem>>, vector<1x1x1x256xf32>
    %716 = vector.shape_cast %715 : vector<1x1x1x256xf32> to vector<1x256xf32>
    %cst_322 = arith.constant dense<0.000000e+00> : vector<8x256xf32>
    %717 = tpu.matmul %712, %0, %cst_322 {dimension_numbers = #tpu.dot_dimension_numbers<[1], [0], [0], [1], [0, 0, 1, 1], [], []>} : vector<8x15xf32>, vector<15x256xf32>, vector<8x256xf32> -> vector<8x256xf32>
    %cst_323 = arith.constant dense<0.000000e+00> : vector<256xf32>
    %718 = vector.multi_reduction <add>, %717, %cst_323 [0] : vector<8x256xf32> to vector<256xf32>
    %719 = vector.shape_cast %718 : vector<256xf32> to vector<1x256xf32>
    %cst_324 = arith.constant 8.000000e+00 : f32
    %720 = vector.broadcast %cst_324 : f32 to vector<1x256xf32>
    %721 = arith.divf %719, %720 : vector<1x256xf32>
    %722 = arith.mulf %717, %717 : vector<8x256xf32>
    %cst_325 = arith.constant dense<0.000000e+00> : vector<256xf32>
    %723 = vector.multi_reduction <add>, %722, %cst_325 [0] : vector<8x256xf32> to vector<256xf32>
    %724 = vector.shape_cast %723 : vector<256xf32> to vector<1x256xf32>
    %cst_326 = arith.constant 8.000000e+00 : f32
    %725 = vector.broadcast %cst_326 : f32 to vector<1x256xf32>
    %726 = arith.divf %724, %725 : vector<1x256xf32>
    %727 = arith.mulf %721, %721 : vector<1x256xf32>
    %728 = arith.subf %726, %727 : vector<1x256xf32>
    %cst_327 = arith.constant 0.000000e+00 : f32
    %729 = vector.broadcast %cst_327 : f32 to vector<1x256xf32>
    %730 = arith.maximumf %728, %729 : vector<1x256xf32>
    %cst_328 = arith.constant 9.99999974E-6 : f32
    %731 = vector.broadcast %cst_328 : f32 to vector<1x256xf32>
    %732 = arith.addf %730, %731 : vector<1x256xf32>
    %733 = math.rsqrt %732 : vector<1x256xf32>
    %734 = arith.mulf %714, %733 : vector<1x256xf32>
    %735 = arith.mulf %721, %734 : vector<1x256xf32>
    %736 = arith.subf %716, %735 : vector<1x256xf32>
    %737 = vector.broadcast %734 : vector<1x256xf32> to vector<8x256xf32>
    %738 = arith.mulf %717, %737 : vector<8x256xf32>
    %739 = vector.broadcast %736 : vector<1x256xf32> to vector<8x256xf32>
    %740 = arith.addf %738, %739 : vector<8x256xf32>
    %741 = vector.extract_strided_slice %740 {offsets = [0, 0], sizes = [8, 128], strides = [1, 1]} : vector<8x256xf32> to vector<8x128xf32>
    %742 = vector.extract_strided_slice %740 {offsets = [0, 128], sizes = [8, 128], strides = [1, 1]} : vector<8x256xf32> to vector<8x128xf32>
    %743 = arith.negf %742 : vector<8x128xf32>
    %744 = math.exp %743 : vector<8x128xf32>
    %cst_329 = arith.constant 1.000000e+00 : f32
    %745 = vector.broadcast %cst_329 : f32 to vector<8x128xf32>
    %746 = arith.addf %745, %744 : vector<8x128xf32>
    %747 = arith.divf %745, %746 : vector<8x128xf32>
    %748 = arith.mulf %741, %747 : vector<8x128xf32>
    %c3_330 = arith.constant 3 : index
    %c1_331 = arith.constant 1 : index
    %c0_332 = arith.constant 0 : index
    %c0_333 = arith.constant 0 : index
    %749 = vector.load %arg7[%c3_330, %c1_331, %c0_332, %c0_333] : memref<5x2x1x256xf32, #tpu.memory_space<vmem>>, vector<1x1x1x256xf32>
    %750 = vector.shape_cast %749 : vector<1x1x1x256xf32> to vector<1x256xf32>
    %c3_334 = arith.constant 3 : index
    %c1_335 = arith.constant 1 : index
    %c0_336 = arith.constant 0 : index
    %c0_337 = arith.constant 0 : index
    %751 = vector.load %arg8[%c3_334, %c1_335, %c0_336, %c0_337] : memref<5x2x1x256xf32, #tpu.memory_space<vmem>>, vector<1x1x1x256xf32>
    %752 = vector.shape_cast %751 : vector<1x1x1x256xf32> to vector<1x256xf32>
    %cst_338 = arith.constant dense<0.000000e+00> : vector<8x256xf32>
    %753 = tpu.matmul %748, %1, %cst_338 {dimension_numbers = #tpu.dot_dimension_numbers<[1], [0], [0], [1], [0, 0, 1, 1], [], []>} : vector<8x128xf32>, vector<128x256xf32>, vector<8x256xf32> -> vector<8x256xf32>
    %cst_339 = arith.constant dense<0.000000e+00> : vector<256xf32>
    %754 = vector.multi_reduction <add>, %753, %cst_339 [0] : vector<8x256xf32> to vector<256xf32>
    %755 = vector.shape_cast %754 : vector<256xf32> to vector<1x256xf32>
    %cst_340 = arith.constant 8.000000e+00 : f32
    %756 = vector.broadcast %cst_340 : f32 to vector<1x256xf32>
    %757 = arith.divf %755, %756 : vector<1x256xf32>
    %758 = arith.mulf %753, %753 : vector<8x256xf32>
    %cst_341 = arith.constant dense<0.000000e+00> : vector<256xf32>
    %759 = vector.multi_reduction <add>, %758, %cst_341 [0] : vector<8x256xf32> to vector<256xf32>
    %760 = vector.shape_cast %759 : vector<256xf32> to vector<1x256xf32>
    %cst_342 = arith.constant 8.000000e+00 : f32
    %761 = vector.broadcast %cst_342 : f32 to vector<1x256xf32>
    %762 = arith.divf %760, %761 : vector<1x256xf32>
    %763 = arith.mulf %757, %757 : vector<1x256xf32>
    %764 = arith.subf %762, %763 : vector<1x256xf32>
    %cst_343 = arith.constant 0.000000e+00 : f32
    %765 = vector.broadcast %cst_343 : f32 to vector<1x256xf32>
    %766 = arith.maximumf %764, %765 : vector<1x256xf32>
    %cst_344 = arith.constant 9.99999974E-6 : f32
    %767 = vector.broadcast %cst_344 : f32 to vector<1x256xf32>
    %768 = arith.addf %766, %767 : vector<1x256xf32>
    %769 = math.rsqrt %768 : vector<1x256xf32>
    %770 = arith.mulf %750, %769 : vector<1x256xf32>
    %771 = arith.mulf %757, %770 : vector<1x256xf32>
    %772 = arith.subf %752, %771 : vector<1x256xf32>
    %773 = vector.broadcast %770 : vector<1x256xf32> to vector<8x256xf32>
    %774 = arith.mulf %753, %773 : vector<8x256xf32>
    %775 = vector.broadcast %772 : vector<1x256xf32> to vector<8x256xf32>
    %776 = arith.addf %774, %775 : vector<8x256xf32>
    %777 = vector.extract_strided_slice %776 {offsets = [0, 0], sizes = [8, 128], strides = [1, 1]} : vector<8x256xf32> to vector<8x128xf32>
    %778 = vector.extract_strided_slice %776 {offsets = [0, 128], sizes = [8, 128], strides = [1, 1]} : vector<8x256xf32> to vector<8x128xf32>
    %779 = arith.negf %778 : vector<8x128xf32>
    %780 = math.exp %779 : vector<8x128xf32>
    %cst_345 = arith.constant 1.000000e+00 : f32
    %781 = vector.broadcast %cst_345 : f32 to vector<8x128xf32>
    %782 = arith.addf %781, %780 : vector<8x128xf32>
    %783 = arith.divf %781, %782 : vector<8x128xf32>
    %784 = arith.mulf %777, %783 : vector<8x128xf32>
    %785 = arith.addf %748, %784 : vector<8x128xf32>
    %cst_346 = arith.constant 0.707106769 : f32
    %786 = vector.broadcast %cst_346 : f32 to vector<8x128xf32>
    %787 = arith.mulf %785, %786 : vector<8x128xf32>
    %c3_347 = arith.constant 3 : index
    %c0_348 = arith.constant 0 : index
    %c0_349 = arith.constant 0 : index
    %c0_350 = arith.constant 0 : index
    %788 = vector.load %arg9[%c3_347, %c0_348, %c0_349, %c0_350] : memref<5x2x128x256xf32, #tpu.memory_space<vmem>>, vector<1x1x128x256xf32>
    %789 = vector.shape_cast %788 : vector<1x1x128x256xf32> to vector<128x256xf32>
    %c3_351 = arith.constant 3 : index
    %c0_352 = arith.constant 0 : index
    %c0_353 = arith.constant 0 : index
    %c0_354 = arith.constant 0 : index
    %790 = vector.load %arg10[%c3_351, %c0_352, %c0_353, %c0_354] : memref<5x2x1x256xf32, #tpu.memory_space<vmem>>, vector<1x1x1x256xf32>
    %791 = vector.shape_cast %790 : vector<1x1x1x256xf32> to vector<1x256xf32>
    %c3_355 = arith.constant 3 : index
    %c0_356 = arith.constant 0 : index
    %c0_357 = arith.constant 0 : index
    %c0_358 = arith.constant 0 : index
    %792 = vector.load %arg11[%c3_355, %c0_356, %c0_357, %c0_358] : memref<5x2x1x256xf32, #tpu.memory_space<vmem>>, vector<1x1x1x256xf32>
    %793 = vector.shape_cast %792 : vector<1x1x1x256xf32> to vector<1x256xf32>
    %cst_359 = arith.constant dense<0.000000e+00> : vector<8x256xf32>
    %794 = tpu.matmul %787, %789, %cst_359 {dimension_numbers = #tpu.dot_dimension_numbers<[1], [0], [0], [1], [0, 0, 1, 1], [], []>} : vector<8x128xf32>, vector<128x256xf32>, vector<8x256xf32> -> vector<8x256xf32>
    %cst_360 = arith.constant dense<0.000000e+00> : vector<256xf32>
    %795 = vector.multi_reduction <add>, %794, %cst_360 [0] : vector<8x256xf32> to vector<256xf32>
    %796 = vector.shape_cast %795 : vector<256xf32> to vector<1x256xf32>
    %cst_361 = arith.constant 8.000000e+00 : f32
    %797 = vector.broadcast %cst_361 : f32 to vector<1x256xf32>
    %798 = arith.divf %796, %797 : vector<1x256xf32>
    %799 = arith.mulf %794, %794 : vector<8x256xf32>
    %cst_362 = arith.constant dense<0.000000e+00> : vector<256xf32>
    %800 = vector.multi_reduction <add>, %799, %cst_362 [0] : vector<8x256xf32> to vector<256xf32>
    %801 = vector.shape_cast %800 : vector<256xf32> to vector<1x256xf32>
    %cst_363 = arith.constant 8.000000e+00 : f32
    %802 = vector.broadcast %cst_363 : f32 to vector<1x256xf32>
    %803 = arith.divf %801, %802 : vector<1x256xf32>
    %804 = arith.mulf %798, %798 : vector<1x256xf32>
    %805 = arith.subf %803, %804 : vector<1x256xf32>
    %cst_364 = arith.constant 0.000000e+00 : f32
    %806 = vector.broadcast %cst_364 : f32 to vector<1x256xf32>
    %807 = arith.maximumf %805, %806 : vector<1x256xf32>
    %cst_365 = arith.constant 9.99999974E-6 : f32
    %808 = vector.broadcast %cst_365 : f32 to vector<1x256xf32>
    %809 = arith.addf %807, %808 : vector<1x256xf32>
    %810 = math.rsqrt %809 : vector<1x256xf32>
    %811 = arith.mulf %791, %810 : vector<1x256xf32>
    %812 = arith.mulf %798, %811 : vector<1x256xf32>
    %813 = arith.subf %793, %812 : vector<1x256xf32>
    %814 = vector.broadcast %811 : vector<1x256xf32> to vector<8x256xf32>
    %815 = arith.mulf %794, %814 : vector<8x256xf32>
    %816 = vector.broadcast %813 : vector<1x256xf32> to vector<8x256xf32>
    %817 = arith.addf %815, %816 : vector<8x256xf32>
    %818 = vector.extract_strided_slice %817 {offsets = [0, 0], sizes = [8, 128], strides = [1, 1]} : vector<8x256xf32> to vector<8x128xf32>
    %819 = vector.extract_strided_slice %817 {offsets = [0, 128], sizes = [8, 128], strides = [1, 1]} : vector<8x256xf32> to vector<8x128xf32>
    %820 = arith.negf %819 : vector<8x128xf32>
    %821 = math.exp %820 : vector<8x128xf32>
    %cst_366 = arith.constant 1.000000e+00 : f32
    %822 = vector.broadcast %cst_366 : f32 to vector<8x128xf32>
    %823 = arith.addf %822, %821 : vector<8x128xf32>
    %824 = arith.divf %822, %823 : vector<8x128xf32>
    %825 = arith.mulf %818, %824 : vector<8x128xf32>
    %826 = arith.addf %787, %825 : vector<8x128xf32>
    %cst_367 = arith.constant 0.707106769 : f32
    %827 = vector.broadcast %cst_367 : f32 to vector<8x128xf32>
    %828 = arith.mulf %826, %827 : vector<8x128xf32>
    %c3_368 = arith.constant 3 : index
    %c1_369 = arith.constant 1 : index
    %c0_370 = arith.constant 0 : index
    %c0_371 = arith.constant 0 : index
    %829 = vector.load %arg9[%c3_368, %c1_369, %c0_370, %c0_371] : memref<5x2x128x256xf32, #tpu.memory_space<vmem>>, vector<1x1x128x256xf32>
    %830 = vector.shape_cast %829 : vector<1x1x128x256xf32> to vector<128x256xf32>
    %c3_372 = arith.constant 3 : index
    %c1_373 = arith.constant 1 : index
    %c0_374 = arith.constant 0 : index
    %c0_375 = arith.constant 0 : index
    %831 = vector.load %arg10[%c3_372, %c1_373, %c0_374, %c0_375] : memref<5x2x1x256xf32, #tpu.memory_space<vmem>>, vector<1x1x1x256xf32>
    %832 = vector.shape_cast %831 : vector<1x1x1x256xf32> to vector<1x256xf32>
    %c3_376 = arith.constant 3 : index
    %c1_377 = arith.constant 1 : index
    %c0_378 = arith.constant 0 : index
    %c0_379 = arith.constant 0 : index
    %833 = vector.load %arg11[%c3_376, %c1_377, %c0_378, %c0_379] : memref<5x2x1x256xf32, #tpu.memory_space<vmem>>, vector<1x1x1x256xf32>
    %834 = vector.shape_cast %833 : vector<1x1x1x256xf32> to vector<1x256xf32>
    %cst_380 = arith.constant dense<0.000000e+00> : vector<8x256xf32>
    %835 = tpu.matmul %828, %830, %cst_380 {dimension_numbers = #tpu.dot_dimension_numbers<[1], [0], [0], [1], [0, 0, 1, 1], [], []>} : vector<8x128xf32>, vector<128x256xf32>, vector<8x256xf32> -> vector<8x256xf32>
    %cst_381 = arith.constant dense<0.000000e+00> : vector<256xf32>
    %836 = vector.multi_reduction <add>, %835, %cst_381 [0] : vector<8x256xf32> to vector<256xf32>
    %837 = vector.shape_cast %836 : vector<256xf32> to vector<1x256xf32>
    %cst_382 = arith.constant 8.000000e+00 : f32
    %838 = vector.broadcast %cst_382 : f32 to vector<1x256xf32>
    %839 = arith.divf %837, %838 : vector<1x256xf32>
    %840 = arith.mulf %835, %835 : vector<8x256xf32>
    %cst_383 = arith.constant dense<0.000000e+00> : vector<256xf32>
    %841 = vector.multi_reduction <add>, %840, %cst_383 [0] : vector<8x256xf32> to vector<256xf32>
    %842 = vector.shape_cast %841 : vector<256xf32> to vector<1x256xf32>
    %cst_384 = arith.constant 8.000000e+00 : f32
    %843 = vector.broadcast %cst_384 : f32 to vector<1x256xf32>
    %844 = arith.divf %842, %843 : vector<1x256xf32>
    %845 = arith.mulf %839, %839 : vector<1x256xf32>
    %846 = arith.subf %844, %845 : vector<1x256xf32>
    %cst_385 = arith.constant 0.000000e+00 : f32
    %847 = vector.broadcast %cst_385 : f32 to vector<1x256xf32>
    %848 = arith.maximumf %846, %847 : vector<1x256xf32>
    %cst_386 = arith.constant 9.99999974E-6 : f32
    %849 = vector.broadcast %cst_386 : f32 to vector<1x256xf32>
    %850 = arith.addf %848, %849 : vector<1x256xf32>
    %851 = math.rsqrt %850 : vector<1x256xf32>
    %852 = arith.mulf %832, %851 : vector<1x256xf32>
    %853 = arith.mulf %839, %852 : vector<1x256xf32>
    %854 = arith.subf %834, %853 : vector<1x256xf32>
    %855 = vector.broadcast %852 : vector<1x256xf32> to vector<8x256xf32>
    %856 = arith.mulf %835, %855 : vector<8x256xf32>
    %857 = vector.broadcast %854 : vector<1x256xf32> to vector<8x256xf32>
    %858 = arith.addf %856, %857 : vector<8x256xf32>
    %859 = vector.extract_strided_slice %858 {offsets = [0, 0], sizes = [8, 128], strides = [1, 1]} : vector<8x256xf32> to vector<8x128xf32>
    %860 = vector.extract_strided_slice %858 {offsets = [0, 128], sizes = [8, 128], strides = [1, 1]} : vector<8x256xf32> to vector<8x128xf32>
    %861 = arith.negf %860 : vector<8x128xf32>
    %862 = math.exp %861 : vector<8x128xf32>
    %cst_387 = arith.constant 1.000000e+00 : f32
    %863 = vector.broadcast %cst_387 : f32 to vector<8x128xf32>
    %864 = arith.addf %863, %862 : vector<8x128xf32>
    %865 = arith.divf %863, %864 : vector<8x128xf32>
    %866 = arith.mulf %859, %865 : vector<8x128xf32>
    %867 = arith.addf %828, %866 : vector<8x128xf32>
    %cst_388 = arith.constant 0.707106769 : f32
    %868 = vector.broadcast %cst_388 : f32 to vector<8x128xf32>
    %869 = arith.mulf %867, %868 : vector<8x128xf32>
    %870 = vector.extract_strided_slice %869 {offsets = [0, 0], sizes = [8, 64], strides = [1, 1]} : vector<8x128xf32> to vector<8x64xf32>
    %cst_389 = arith.constant 0.000000e+00 : f32
    %871 = vector.broadcast %cst_389 : f32 to vector<8x64xf32>
    %872 = arith.maximumf %870, %871 : vector<8x64xf32>
    %873 = arith.addf %638, %872 : vector<8x64xf32>
    %874 = vector.extract_strided_slice %869 {offsets = [0, 64], sizes = [8, 64], strides = [1, 1]} : vector<8x128xf32> to vector<8x64xf32>
    %c3_390 = arith.constant 3 : index
    %c0_391 = arith.constant 0 : index
    %c0_392 = arith.constant 0 : index
    %875 = vector.load %arg12[%c3_390, %c0_391, %c0_392] : memref<4x64x15xf32, #tpu.memory_space<vmem>>, vector<1x64x15xf32>
    %876 = vector.shape_cast %875 : vector<1x64x15xf32> to vector<64x15xf32>
    %cst_393 = arith.constant dense<0.000000e+00> : vector<8x15xf32>
    %877 = tpu.matmul %874, %876, %cst_393 {dimension_numbers = #tpu.dot_dimension_numbers<[1], [0], [0], [1], [0, 0, 1, 1], [], []>} : vector<8x64xf32>, vector<64x15xf32>, vector<8x15xf32> -> vector<8x15xf32>
    %c3_394 = arith.constant 3 : index
    %c0_395 = arith.constant 0 : index
    %c0_396 = arith.constant 0 : index
    %878 = vector.load %arg13[%c3_394, %c0_395, %c0_396] : memref<4x1x15xf32, #tpu.memory_space<vmem>>, vector<1x1x15xf32>
    %879 = vector.shape_cast %878 : vector<1x1x15xf32> to vector<1x15xf32>
    %c3_397 = arith.constant 3 : index
    %c0_398 = arith.constant 0 : index
    %c0_399 = arith.constant 0 : index
    %880 = vector.load %arg14[%c3_397, %c0_398, %c0_399] : memref<4x1x15xf32, #tpu.memory_space<vmem>>, vector<1x1x15xf32>
    %881 = vector.shape_cast %880 : vector<1x1x15xf32> to vector<1x15xf32>
    %cst_400 = arith.constant dense<0.000000e+00> : vector<15xf32>
    %882 = vector.multi_reduction <add>, %877, %cst_400 [0] : vector<8x15xf32> to vector<15xf32>
    %883 = vector.shape_cast %882 : vector<15xf32> to vector<1x15xf32>
    %cst_401 = arith.constant 8.000000e+00 : f32
    %884 = vector.broadcast %cst_401 : f32 to vector<1x15xf32>
    %885 = arith.divf %883, %884 : vector<1x15xf32>
    %886 = arith.mulf %877, %877 : vector<8x15xf32>
    %cst_402 = arith.constant dense<0.000000e+00> : vector<15xf32>
    %887 = vector.multi_reduction <add>, %886, %cst_402 [0] : vector<8x15xf32> to vector<15xf32>
    %888 = vector.shape_cast %887 : vector<15xf32> to vector<1x15xf32>
    %cst_403 = arith.constant 8.000000e+00 : f32
    %889 = vector.broadcast %cst_403 : f32 to vector<1x15xf32>
    %890 = arith.divf %888, %889 : vector<1x15xf32>
    %891 = arith.mulf %885, %885 : vector<1x15xf32>
    %892 = arith.subf %890, %891 : vector<1x15xf32>
    %cst_404 = arith.constant 0.000000e+00 : f32
    %893 = vector.broadcast %cst_404 : f32 to vector<1x15xf32>
    %894 = arith.maximumf %892, %893 : vector<1x15xf32>
    %cst_405 = arith.constant 9.99999974E-6 : f32
    %895 = vector.broadcast %cst_405 : f32 to vector<1x15xf32>
    %896 = arith.addf %894, %895 : vector<1x15xf32>
    %897 = math.rsqrt %896 : vector<1x15xf32>
    %898 = arith.mulf %879, %897 : vector<1x15xf32>
    %899 = arith.mulf %885, %898 : vector<1x15xf32>
    %900 = arith.subf %881, %899 : vector<1x15xf32>
    %901 = vector.broadcast %898 : vector<1x15xf32> to vector<8x15xf32>
    %902 = arith.mulf %877, %901 : vector<8x15xf32>
    %903 = vector.broadcast %900 : vector<1x15xf32> to vector<8x15xf32>
    %904 = arith.addf %902, %903 : vector<8x15xf32>
    %905 = arith.mulf %904, %2 : vector<8x15xf32>
    %cst_406 = arith.constant dense<0xFF800000> : vector<8xf32>
    %906 = vector.multi_reduction <maximumf>, %905, %cst_406 [1] : vector<8x15xf32> to vector<8xf32>
    %907 = vector.shape_cast %906 : vector<8xf32> to vector<8x1xf32>
    %908 = vector.broadcast %907 : vector<8x1xf32> to vector<8x15xf32>
    %909 = arith.subf %905, %908 : vector<8x15xf32>
    %910 = vector.shape_cast %909 : vector<8x15xf32> to vector<8x1x15xf32>
    %911 = vector.shape_cast %909 : vector<8x15xf32> to vector<8x15x1xf32>
    %912 = vector.broadcast %910 : vector<8x1x15xf32> to vector<8x15x15xf32>
    %913 = vector.broadcast %911 : vector<8x15x1xf32> to vector<8x15x15xf32>
    %914 = arith.cmpf oge, %912, %913 : vector<8x15x15xf32>
    %915 = arith.extui %914 : vector<8x15x15xi1> to vector<8x15x15xi32>
    %916 = arith.sitofp %915 : vector<8x15x15xi32> to vector<8x15x15xf32>
    %cst_407 = arith.constant dense<0.000000e+00> : vector<8x15xf32>
    %917 = vector.multi_reduction <add>, %916, %cst_407 [2] : vector<8x15x15xf32> to vector<8x15xf32>
    %918 = vector.shape_cast %909 : vector<8x15xf32> to vector<8x1x15xf32>
    %919 = vector.broadcast %918 : vector<8x1x15xf32> to vector<8x15x15xf32>
    %920 = arith.mulf %919, %916 : vector<8x15x15xf32>
    %cst_408 = arith.constant dense<0.000000e+00> : vector<8x15xf32>
    %921 = vector.multi_reduction <add>, %920, %cst_408 [2] : vector<8x15x15xf32> to vector<8x15xf32>
    %922 = arith.mulf %917, %909 : vector<8x15xf32>
    %cst_409 = arith.constant 1.000000e+00 : f32
    %923 = vector.broadcast %cst_409 : f32 to vector<8x15xf32>
    %924 = arith.subf %921, %923 : vector<8x15xf32>
    %925 = arith.cmpf ogt, %922, %924 : vector<8x15xf32>
    %926 = arith.extui %925 : vector<8x15xi1> to vector<8x15xi32>
    %927 = arith.sitofp %926 : vector<8x15xi32> to vector<8x15xf32>
    %cst_410 = arith.constant dense<0.000000e+00> : vector<8xf32>
    %928 = vector.multi_reduction <add>, %927, %cst_410 [1] : vector<8x15xf32> to vector<8xf32>
    %929 = vector.shape_cast %928 : vector<8xf32> to vector<8x1xf32>
    %930 = arith.mulf %909, %927 : vector<8x15xf32>
    %cst_411 = arith.constant dense<0.000000e+00> : vector<8xf32>
    %931 = vector.multi_reduction <add>, %930, %cst_411 [1] : vector<8x15xf32> to vector<8xf32>
    %932 = vector.shape_cast %931 : vector<8xf32> to vector<8x1xf32>
    %cst_412 = arith.constant 1.000000e+00 : f32
    %933 = vector.broadcast %cst_412 : f32 to vector<8x1xf32>
    %934 = arith.subf %932, %933 : vector<8x1xf32>
    %935 = arith.divf %934, %929 : vector<8x1xf32>
    %936 = vector.broadcast %935 : vector<8x1xf32> to vector<8x15xf32>
    %937 = arith.subf %909, %936 : vector<8x15xf32>
    %cst_413 = arith.constant 0.000000e+00 : f32
    %938 = vector.broadcast %cst_413 : f32 to vector<8x15xf32>
    %939 = arith.maximumf %937, %938 : vector<8x15xf32>
    %cst_414 = arith.constant 0.000000e+00 : f32
    %940 = vector.broadcast %cst_414 : f32 to vector<8x15xf32>
    %941 = arith.subf %940, %939 : vector<8x15xf32>
    %cst_415 = arith.constant 1.000000e-10 : f32
    %942 = vector.broadcast %cst_415 : f32 to vector<8x15xf32>
    %943 = arith.addf %939, %942 : vector<8x15xf32>
    %944 = math.log %943 : vector<8x15xf32>
    %945 = arith.mulf %941, %944 : vector<8x15xf32>
    %946 = arith.addf %711, %945 : vector<8x15xf32>
    %947 = arith.mulf %9, %939 : vector<8x15xf32>
    %c4 = arith.constant 4 : index
    %c0_416 = arith.constant 0 : index
    %c0_417 = arith.constant 0 : index
    %c0_418 = arith.constant 0 : index
    %948 = vector.load %arg7[%c4, %c0_416, %c0_417, %c0_418] : memref<5x2x1x256xf32, #tpu.memory_space<vmem>>, vector<1x1x1x256xf32>
    %949 = vector.shape_cast %948 : vector<1x1x1x256xf32> to vector<1x256xf32>
    %c4_419 = arith.constant 4 : index
    %c0_420 = arith.constant 0 : index
    %c0_421 = arith.constant 0 : index
    %c0_422 = arith.constant 0 : index
    %950 = vector.load %arg8[%c4_419, %c0_420, %c0_421, %c0_422] : memref<5x2x1x256xf32, #tpu.memory_space<vmem>>, vector<1x1x1x256xf32>
    %951 = vector.shape_cast %950 : vector<1x1x1x256xf32> to vector<1x256xf32>
    %cst_423 = arith.constant dense<0.000000e+00> : vector<8x256xf32>
    %952 = tpu.matmul %947, %0, %cst_423 {dimension_numbers = #tpu.dot_dimension_numbers<[1], [0], [0], [1], [0, 0, 1, 1], [], []>} : vector<8x15xf32>, vector<15x256xf32>, vector<8x256xf32> -> vector<8x256xf32>
    %cst_424 = arith.constant dense<0.000000e+00> : vector<256xf32>
    %953 = vector.multi_reduction <add>, %952, %cst_424 [0] : vector<8x256xf32> to vector<256xf32>
    %954 = vector.shape_cast %953 : vector<256xf32> to vector<1x256xf32>
    %cst_425 = arith.constant 8.000000e+00 : f32
    %955 = vector.broadcast %cst_425 : f32 to vector<1x256xf32>
    %956 = arith.divf %954, %955 : vector<1x256xf32>
    %957 = arith.mulf %952, %952 : vector<8x256xf32>
    %cst_426 = arith.constant dense<0.000000e+00> : vector<256xf32>
    %958 = vector.multi_reduction <add>, %957, %cst_426 [0] : vector<8x256xf32> to vector<256xf32>
    %959 = vector.shape_cast %958 : vector<256xf32> to vector<1x256xf32>
    %cst_427 = arith.constant 8.000000e+00 : f32
    %960 = vector.broadcast %cst_427 : f32 to vector<1x256xf32>
    %961 = arith.divf %959, %960 : vector<1x256xf32>
    %962 = arith.mulf %956, %956 : vector<1x256xf32>
    %963 = arith.subf %961, %962 : vector<1x256xf32>
    %cst_428 = arith.constant 0.000000e+00 : f32
    %964 = vector.broadcast %cst_428 : f32 to vector<1x256xf32>
    %965 = arith.maximumf %963, %964 : vector<1x256xf32>
    %cst_429 = arith.constant 9.99999974E-6 : f32
    %966 = vector.broadcast %cst_429 : f32 to vector<1x256xf32>
    %967 = arith.addf %965, %966 : vector<1x256xf32>
    %968 = math.rsqrt %967 : vector<1x256xf32>
    %969 = arith.mulf %949, %968 : vector<1x256xf32>
    %970 = arith.mulf %956, %969 : vector<1x256xf32>
    %971 = arith.subf %951, %970 : vector<1x256xf32>
    %972 = vector.broadcast %969 : vector<1x256xf32> to vector<8x256xf32>
    %973 = arith.mulf %952, %972 : vector<8x256xf32>
    %974 = vector.broadcast %971 : vector<1x256xf32> to vector<8x256xf32>
    %975 = arith.addf %973, %974 : vector<8x256xf32>
    %976 = vector.extract_strided_slice %975 {offsets = [0, 0], sizes = [8, 128], strides = [1, 1]} : vector<8x256xf32> to vector<8x128xf32>
    %977 = vector.extract_strided_slice %975 {offsets = [0, 128], sizes = [8, 128], strides = [1, 1]} : vector<8x256xf32> to vector<8x128xf32>
    %978 = arith.negf %977 : vector<8x128xf32>
    %979 = math.exp %978 : vector<8x128xf32>
    %cst_430 = arith.constant 1.000000e+00 : f32
    %980 = vector.broadcast %cst_430 : f32 to vector<8x128xf32>
    %981 = arith.addf %980, %979 : vector<8x128xf32>
    %982 = arith.divf %980, %981 : vector<8x128xf32>
    %983 = arith.mulf %976, %982 : vector<8x128xf32>
    %c4_431 = arith.constant 4 : index
    %c1_432 = arith.constant 1 : index
    %c0_433 = arith.constant 0 : index
    %c0_434 = arith.constant 0 : index
    %984 = vector.load %arg7[%c4_431, %c1_432, %c0_433, %c0_434] : memref<5x2x1x256xf32, #tpu.memory_space<vmem>>, vector<1x1x1x256xf32>
    %985 = vector.shape_cast %984 : vector<1x1x1x256xf32> to vector<1x256xf32>
    %c4_435 = arith.constant 4 : index
    %c1_436 = arith.constant 1 : index
    %c0_437 = arith.constant 0 : index
    %c0_438 = arith.constant 0 : index
    %986 = vector.load %arg8[%c4_435, %c1_436, %c0_437, %c0_438] : memref<5x2x1x256xf32, #tpu.memory_space<vmem>>, vector<1x1x1x256xf32>
    %987 = vector.shape_cast %986 : vector<1x1x1x256xf32> to vector<1x256xf32>
    %cst_439 = arith.constant dense<0.000000e+00> : vector<8x256xf32>
    %988 = tpu.matmul %983, %1, %cst_439 {dimension_numbers = #tpu.dot_dimension_numbers<[1], [0], [0], [1], [0, 0, 1, 1], [], []>} : vector<8x128xf32>, vector<128x256xf32>, vector<8x256xf32> -> vector<8x256xf32>
    %cst_440 = arith.constant dense<0.000000e+00> : vector<256xf32>
    %989 = vector.multi_reduction <add>, %988, %cst_440 [0] : vector<8x256xf32> to vector<256xf32>
    %990 = vector.shape_cast %989 : vector<256xf32> to vector<1x256xf32>
    %cst_441 = arith.constant 8.000000e+00 : f32
    %991 = vector.broadcast %cst_441 : f32 to vector<1x256xf32>
    %992 = arith.divf %990, %991 : vector<1x256xf32>
    %993 = arith.mulf %988, %988 : vector<8x256xf32>
    %cst_442 = arith.constant dense<0.000000e+00> : vector<256xf32>
    %994 = vector.multi_reduction <add>, %993, %cst_442 [0] : vector<8x256xf32> to vector<256xf32>
    %995 = vector.shape_cast %994 : vector<256xf32> to vector<1x256xf32>
    %cst_443 = arith.constant 8.000000e+00 : f32
    %996 = vector.broadcast %cst_443 : f32 to vector<1x256xf32>
    %997 = arith.divf %995, %996 : vector<1x256xf32>
    %998 = arith.mulf %992, %992 : vector<1x256xf32>
    %999 = arith.subf %997, %998 : vector<1x256xf32>
    %cst_444 = arith.constant 0.000000e+00 : f32
    %1000 = vector.broadcast %cst_444 : f32 to vector<1x256xf32>
    %1001 = arith.maximumf %999, %1000 : vector<1x256xf32>
    %cst_445 = arith.constant 9.99999974E-6 : f32
    %1002 = vector.broadcast %cst_445 : f32 to vector<1x256xf32>
    %1003 = arith.addf %1001, %1002 : vector<1x256xf32>
    %1004 = math.rsqrt %1003 : vector<1x256xf32>
    %1005 = arith.mulf %985, %1004 : vector<1x256xf32>
    %1006 = arith.mulf %992, %1005 : vector<1x256xf32>
    %1007 = arith.subf %987, %1006 : vector<1x256xf32>
    %1008 = vector.broadcast %1005 : vector<1x256xf32> to vector<8x256xf32>
    %1009 = arith.mulf %988, %1008 : vector<8x256xf32>
    %1010 = vector.broadcast %1007 : vector<1x256xf32> to vector<8x256xf32>
    %1011 = arith.addf %1009, %1010 : vector<8x256xf32>
    %1012 = vector.extract_strided_slice %1011 {offsets = [0, 0], sizes = [8, 128], strides = [1, 1]} : vector<8x256xf32> to vector<8x128xf32>
    %1013 = vector.extract_strided_slice %1011 {offsets = [0, 128], sizes = [8, 128], strides = [1, 1]} : vector<8x256xf32> to vector<8x128xf32>
    %1014 = arith.negf %1013 : vector<8x128xf32>
    %1015 = math.exp %1014 : vector<8x128xf32>
    %cst_446 = arith.constant 1.000000e+00 : f32
    %1016 = vector.broadcast %cst_446 : f32 to vector<8x128xf32>
    %1017 = arith.addf %1016, %1015 : vector<8x128xf32>
    %1018 = arith.divf %1016, %1017 : vector<8x128xf32>
    %1019 = arith.mulf %1012, %1018 : vector<8x128xf32>
    %1020 = arith.addf %983, %1019 : vector<8x128xf32>
    %cst_447 = arith.constant 0.707106769 : f32
    %1021 = vector.broadcast %cst_447 : f32 to vector<8x128xf32>
    %1022 = arith.mulf %1020, %1021 : vector<8x128xf32>
    %c4_448 = arith.constant 4 : index
    %c0_449 = arith.constant 0 : index
    %c0_450 = arith.constant 0 : index
    %c0_451 = arith.constant 0 : index
    %1023 = vector.load %arg9[%c4_448, %c0_449, %c0_450, %c0_451] : memref<5x2x128x256xf32, #tpu.memory_space<vmem>>, vector<1x1x128x256xf32>
    %1024 = vector.shape_cast %1023 : vector<1x1x128x256xf32> to vector<128x256xf32>
    %c4_452 = arith.constant 4 : index
    %c0_453 = arith.constant 0 : index
    %c0_454 = arith.constant 0 : index
    %c0_455 = arith.constant 0 : index
    %1025 = vector.load %arg10[%c4_452, %c0_453, %c0_454, %c0_455] : memref<5x2x1x256xf32, #tpu.memory_space<vmem>>, vector<1x1x1x256xf32>
    %1026 = vector.shape_cast %1025 : vector<1x1x1x256xf32> to vector<1x256xf32>
    %c4_456 = arith.constant 4 : index
    %c0_457 = arith.constant 0 : index
    %c0_458 = arith.constant 0 : index
    %c0_459 = arith.constant 0 : index
    %1027 = vector.load %arg11[%c4_456, %c0_457, %c0_458, %c0_459] : memref<5x2x1x256xf32, #tpu.memory_space<vmem>>, vector<1x1x1x256xf32>
    %1028 = vector.shape_cast %1027 : vector<1x1x1x256xf32> to vector<1x256xf32>
    %cst_460 = arith.constant dense<0.000000e+00> : vector<8x256xf32>
    %1029 = tpu.matmul %1022, %1024, %cst_460 {dimension_numbers = #tpu.dot_dimension_numbers<[1], [0], [0], [1], [0, 0, 1, 1], [], []>} : vector<8x128xf32>, vector<128x256xf32>, vector<8x256xf32> -> vector<8x256xf32>
    %cst_461 = arith.constant dense<0.000000e+00> : vector<256xf32>
    %1030 = vector.multi_reduction <add>, %1029, %cst_461 [0] : vector<8x256xf32> to vector<256xf32>
    %1031 = vector.shape_cast %1030 : vector<256xf32> to vector<1x256xf32>
    %cst_462 = arith.constant 8.000000e+00 : f32
    %1032 = vector.broadcast %cst_462 : f32 to vector<1x256xf32>
    %1033 = arith.divf %1031, %1032 : vector<1x256xf32>
    %1034 = arith.mulf %1029, %1029 : vector<8x256xf32>
    %cst_463 = arith.constant dense<0.000000e+00> : vector<256xf32>
    %1035 = vector.multi_reduction <add>, %1034, %cst_463 [0] : vector<8x256xf32> to vector<256xf32>
    %1036 = vector.shape_cast %1035 : vector<256xf32> to vector<1x256xf32>
    %cst_464 = arith.constant 8.000000e+00 : f32
    %1037 = vector.broadcast %cst_464 : f32 to vector<1x256xf32>
    %1038 = arith.divf %1036, %1037 : vector<1x256xf32>
    %1039 = arith.mulf %1033, %1033 : vector<1x256xf32>
    %1040 = arith.subf %1038, %1039 : vector<1x256xf32>
    %cst_465 = arith.constant 0.000000e+00 : f32
    %1041 = vector.broadcast %cst_465 : f32 to vector<1x256xf32>
    %1042 = arith.maximumf %1040, %1041 : vector<1x256xf32>
    %cst_466 = arith.constant 9.99999974E-6 : f32
    %1043 = vector.broadcast %cst_466 : f32 to vector<1x256xf32>
    %1044 = arith.addf %1042, %1043 : vector<1x256xf32>
    %1045 = math.rsqrt %1044 : vector<1x256xf32>
    %1046 = arith.mulf %1026, %1045 : vector<1x256xf32>
    %1047 = arith.mulf %1033, %1046 : vector<1x256xf32>
    %1048 = arith.subf %1028, %1047 : vector<1x256xf32>
    %1049 = vector.broadcast %1046 : vector<1x256xf32> to vector<8x256xf32>
    %1050 = arith.mulf %1029, %1049 : vector<8x256xf32>
    %1051 = vector.broadcast %1048 : vector<1x256xf32> to vector<8x256xf32>
    %1052 = arith.addf %1050, %1051 : vector<8x256xf32>
    %1053 = vector.extract_strided_slice %1052 {offsets = [0, 0], sizes = [8, 128], strides = [1, 1]} : vector<8x256xf32> to vector<8x128xf32>
    %1054 = vector.extract_strided_slice %1052 {offsets = [0, 128], sizes = [8, 128], strides = [1, 1]} : vector<8x256xf32> to vector<8x128xf32>
    %1055 = arith.negf %1054 : vector<8x128xf32>
    %1056 = math.exp %1055 : vector<8x128xf32>
    %cst_467 = arith.constant 1.000000e+00 : f32
    %1057 = vector.broadcast %cst_467 : f32 to vector<8x128xf32>
    %1058 = arith.addf %1057, %1056 : vector<8x128xf32>
    %1059 = arith.divf %1057, %1058 : vector<8x128xf32>
    %1060 = arith.mulf %1053, %1059 : vector<8x128xf32>
    %1061 = arith.addf %1022, %1060 : vector<8x128xf32>
    %cst_468 = arith.constant 0.707106769 : f32
    %1062 = vector.broadcast %cst_468 : f32 to vector<8x128xf32>
    %1063 = arith.mulf %1061, %1062 : vector<8x128xf32>
    %c4_469 = arith.constant 4 : index
    %c1_470 = arith.constant 1 : index
    %c0_471 = arith.constant 0 : index
    %c0_472 = arith.constant 0 : index
    %1064 = vector.load %arg9[%c4_469, %c1_470, %c0_471, %c0_472] : memref<5x2x128x256xf32, #tpu.memory_space<vmem>>, vector<1x1x128x256xf32>
    %1065 = vector.shape_cast %1064 : vector<1x1x128x256xf32> to vector<128x256xf32>
    %c4_473 = arith.constant 4 : index
    %c1_474 = arith.constant 1 : index
    %c0_475 = arith.constant 0 : index
    %c0_476 = arith.constant 0 : index
    %1066 = vector.load %arg10[%c4_473, %c1_474, %c0_475, %c0_476] : memref<5x2x1x256xf32, #tpu.memory_space<vmem>>, vector<1x1x1x256xf32>
    %1067 = vector.shape_cast %1066 : vector<1x1x1x256xf32> to vector<1x256xf32>
    %c4_477 = arith.constant 4 : index
    %c1_478 = arith.constant 1 : index
    %c0_479 = arith.constant 0 : index
    %c0_480 = arith.constant 0 : index
    %1068 = vector.load %arg11[%c4_477, %c1_478, %c0_479, %c0_480] : memref<5x2x1x256xf32, #tpu.memory_space<vmem>>, vector<1x1x1x256xf32>
    %1069 = vector.shape_cast %1068 : vector<1x1x1x256xf32> to vector<1x256xf32>
    %cst_481 = arith.constant dense<0.000000e+00> : vector<8x256xf32>
    %1070 = tpu.matmul %1063, %1065, %cst_481 {dimension_numbers = #tpu.dot_dimension_numbers<[1], [0], [0], [1], [0, 0, 1, 1], [], []>} : vector<8x128xf32>, vector<128x256xf32>, vector<8x256xf32> -> vector<8x256xf32>
    %cst_482 = arith.constant dense<0.000000e+00> : vector<256xf32>
    %1071 = vector.multi_reduction <add>, %1070, %cst_482 [0] : vector<8x256xf32> to vector<256xf32>
    %1072 = vector.shape_cast %1071 : vector<256xf32> to vector<1x256xf32>
    %cst_483 = arith.constant 8.000000e+00 : f32
    %1073 = vector.broadcast %cst_483 : f32 to vector<1x256xf32>
    %1074 = arith.divf %1072, %1073 : vector<1x256xf32>
    %1075 = arith.mulf %1070, %1070 : vector<8x256xf32>
    %cst_484 = arith.constant dense<0.000000e+00> : vector<256xf32>
    %1076 = vector.multi_reduction <add>, %1075, %cst_484 [0] : vector<8x256xf32> to vector<256xf32>
    %1077 = vector.shape_cast %1076 : vector<256xf32> to vector<1x256xf32>
    %cst_485 = arith.constant 8.000000e+00 : f32
    %1078 = vector.broadcast %cst_485 : f32 to vector<1x256xf32>
    %1079 = arith.divf %1077, %1078 : vector<1x256xf32>
    %1080 = arith.mulf %1074, %1074 : vector<1x256xf32>
    %1081 = arith.subf %1079, %1080 : vector<1x256xf32>
    %cst_486 = arith.constant 0.000000e+00 : f32
    %1082 = vector.broadcast %cst_486 : f32 to vector<1x256xf32>
    %1083 = arith.maximumf %1081, %1082 : vector<1x256xf32>
    %cst_487 = arith.constant 9.99999974E-6 : f32
    %1084 = vector.broadcast %cst_487 : f32 to vector<1x256xf32>
    %1085 = arith.addf %1083, %1084 : vector<1x256xf32>
    %1086 = math.rsqrt %1085 : vector<1x256xf32>
    %1087 = arith.mulf %1067, %1086 : vector<1x256xf32>
    %1088 = arith.mulf %1074, %1087 : vector<1x256xf32>
    %1089 = arith.subf %1069, %1088 : vector<1x256xf32>
    %1090 = vector.broadcast %1087 : vector<1x256xf32> to vector<8x256xf32>
    %1091 = arith.mulf %1070, %1090 : vector<8x256xf32>
    %1092 = vector.broadcast %1089 : vector<1x256xf32> to vector<8x256xf32>
    %1093 = arith.addf %1091, %1092 : vector<8x256xf32>
    %1094 = vector.extract_strided_slice %1093 {offsets = [0, 0], sizes = [8, 128], strides = [1, 1]} : vector<8x256xf32> to vector<8x128xf32>
    %1095 = vector.extract_strided_slice %1093 {offsets = [0, 128], sizes = [8, 128], strides = [1, 1]} : vector<8x256xf32> to vector<8x128xf32>
    %1096 = arith.negf %1095 : vector<8x128xf32>
    %1097 = math.exp %1096 : vector<8x128xf32>
    %cst_488 = arith.constant 1.000000e+00 : f32
    %1098 = vector.broadcast %cst_488 : f32 to vector<8x128xf32>
    %1099 = arith.addf %1098, %1097 : vector<8x128xf32>
    %1100 = arith.divf %1098, %1099 : vector<8x128xf32>
    %1101 = arith.mulf %1094, %1100 : vector<8x128xf32>
    %1102 = arith.addf %1063, %1101 : vector<8x128xf32>
    %cst_489 = arith.constant 0.707106769 : f32
    %1103 = vector.broadcast %cst_489 : f32 to vector<8x128xf32>
    %1104 = arith.mulf %1102, %1103 : vector<8x128xf32>
    %1105 = vector.extract_strided_slice %1104 {offsets = [0, 0], sizes = [8, 64], strides = [1, 1]} : vector<8x128xf32> to vector<8x64xf32>
    %cst_490 = arith.constant 0.000000e+00 : f32
    %1106 = vector.broadcast %cst_490 : f32 to vector<8x64xf32>
    %1107 = arith.maximumf %1105, %1106 : vector<8x64xf32>
    %1108 = arith.addf %873, %1107 : vector<8x64xf32>
    %c0_491 = arith.constant 0 : index
    %c0_492 = arith.constant 0 : index
    %1109 = vector.load %arg15[%c0_491, %c0_492] : memref<64x128xf32, #tpu.memory_space<vmem>>, vector<64x128xf32>
    %cst_493 = arith.constant dense<0.000000e+00> : vector<8x128xf32>
    %1110 = tpu.matmul %1108, %1109, %cst_493 {dimension_numbers = #tpu.dot_dimension_numbers<[1], [0], [0], [1], [0, 0, 1, 1], [], []>} : vector<8x64xf32>, vector<64x128xf32>, vector<8x128xf32> -> vector<8x128xf32>
    %c0_494 = arith.constant 0 : index
    %c0_495 = arith.constant 0 : index
    %1111 = vector.load %arg16[%c0_494, %c0_495] : memref<1x128xf32, #tpu.memory_space<vmem>>, vector<1x128xf32>
    %1112 = vector.broadcast %1111 : vector<1x128xf32> to vector<8x128xf32>
    %1113 = arith.addf %1110, %1112 : vector<8x128xf32>
    %c0_496 = arith.constant 0 : index
    %c0_497 = arith.constant 0 : index
    %1114 = vector.load %arg17[%c0_496, %c0_497] : memref<8x128xf32, #tpu.memory_space<vmem>>, vector<8x128xf32>
    tpu.vector_store %arg17[%c0_496, %c0_497], %1113 {strides = array<i32>} : memref<8x128xf32, #tpu.memory_space<vmem>>, vector<8x128xf32>,
    %cst_498 = arith.constant dense<0.000000e+00> : vector<8xf32>
    %1115 = vector.multi_reduction <add>, %946, %cst_498 [1] : vector<8x15xf32> to vector<8xf32>
    %1116 = vector.shape_cast %1115 : vector<8xf32> to vector<8x1xf32>
    %cst_499 = arith.constant dense<0.000000e+00> : vector<1xf32>
    %1117 = vector.multi_reduction <add>, %1116, %cst_499 [0] : vector<8x1xf32> to vector<1xf32>
    %1118 = vector.shape_cast %1117 : vector<1xf32> to vector<1x1xf32>
    %1119 = vector.shape_cast %1118 : vector<1x1xf32> to vector<1x1x1xf32>
    %1120 = vector.shape_cast %1119 : vector<1x1x1xf32> to vector<1x1x1xf32>
    %1121 = vector.broadcast %1120 : vector<1x1x1xf32> to vector<1x8x128xf32>
    %c0_500 = arith.constant 0 : index
    %c0_501 = arith.constant 0 : index
    %c0_502 = arith.constant 0 : index
    %1122 = vector.load %arg18[%c0_500, %c0_501, %c0_502] : memref<1x8x128xf32, #tpu.memory_space<vmem>>, vector<1x8x128xf32>
    tpu.vector_store %arg18[%c0_500, %c0_501, %c0_502], %1121 {strides = array<i32>} : memref<1x8x128xf32, #tpu.memory_space<vmem>>, vector<1x8x128xf32>,
    return
  }
  func.func @transform_0(%arg0: i32) -> (i32, i32) {
    %c0_i32 = arith.constant 0 : i32
    %c0_i32_0 = arith.constant 0 : i32
    return %arg0, %c0_i32 : i32, i32
  }
  func.func @transform_1(%arg0: i32) -> (i32, i32) {
    %c0_i32 = arith.constant 0 : i32
    %c0_i32_0 = arith.constant 0 : i32
    return %arg0, %c0_i32 : i32, i32
  }
  func.func @transform_2(%arg0: i32) -> (i32, i32) {
    %c0_i32 = arith.constant 0 : i32
    %c0_i32_0 = arith.constant 0 : i32
    %c0_i32_1 = arith.constant 0 : i32
    return %c0_i32, %c0_i32_0 : i32, i32
  }
  func.func @transform_3(%arg0: i32) -> (i32, i32) {
    %c0_i32 = arith.constant 0 : i32
    %c0_i32_0 = arith.constant 0 : i32
    %c0_i32_1 = arith.constant 0 : i32
    return %c0_i32, %c0_i32_0 : i32, i32
  }
  func.func @transform_4(%arg0: i32) -> (i32, i32) {
    %c0_i32 = arith.constant 0 : i32
    %c0_i32_0 = arith.constant 0 : i32
    %c0_i32_1 = arith.constant 0 : i32
    return %c0_i32, %c0_i32_0 : i32, i32
  }
  func.func @transform_5(%arg0: i32) -> (i32, i32) {
    %c0_i32 = arith.constant 0 : i32
    %c0_i32_0 = arith.constant 0 : i32
    %c0_i32_1 = arith.constant 0 : i32
    return %c0_i32, %c0_i32_0 : i32, i32
  }
  func.func @transform_6(%arg0: i32) -> (i32, i32, i32, i32) {
    %c0_i32 = arith.constant 0 : i32
    %c0_i32_0 = arith.constant 0 : i32
    %c0_i32_1 = arith.constant 0 : i32
    %c0_i32_2 = arith.constant 0 : i32
    %c0_i32_3 = arith.constant 0 : i32
    return %c0_i32, %c0_i32_0, %c0_i32_1, %c0_i32_2 : i32, i32, i32, i32
  }
  func.func @transform_7(%arg0: i32) -> (i32, i32, i32, i32) {
    %c0_i32 = arith.constant 0 : i32
    %c0_i32_0 = arith.constant 0 : i32
    %c0_i32_1 = arith.constant 0 : i32
    %c0_i32_2 = arith.constant 0 : i32
    %c0_i32_3 = arith.constant 0 : i32
    return %c0_i32, %c0_i32_0, %c0_i32_1, %c0_i32_2 : i32, i32, i32, i32
  }
  func.func @transform_8(%arg0: i32) -> (i32, i32, i32, i32) {
    %c0_i32 = arith.constant 0 : i32
    %c0_i32_0 = arith.constant 0 : i32
    %c0_i32_1 = arith.constant 0 : i32
    %c0_i32_2 = arith.constant 0 : i32
    %c0_i32_3 = arith.constant 0 : i32
    return %c0_i32, %c0_i32_0, %c0_i32_1, %c0_i32_2 : i32, i32, i32, i32
  }
  func.func @transform_9(%arg0: i32) -> (i32, i32, i32, i32) {
    %c0_i32 = arith.constant 0 : i32
    %c0_i32_0 = arith.constant 0 : i32
    %c0_i32_1 = arith.constant 0 : i32
    %c0_i32_2 = arith.constant 0 : i32
    %c0_i32_3 = arith.constant 0 : i32
    return %c0_i32, %c0_i32_0, %c0_i32_1, %c0_i32_2 : i32, i32, i32, i32
  }
  func.func @transform_10(%arg0: i32) -> (i32, i32, i32, i32) {
    %c0_i32 = arith.constant 0 : i32
    %c0_i32_0 = arith.constant 0 : i32
    %c0_i32_1 = arith.constant 0 : i32
    %c0_i32_2 = arith.constant 0 : i32
    %c0_i32_3 = arith.constant 0 : i32
    return %c0_i32, %c0_i32_0, %c0_i32_1, %c0_i32_2 : i32, i32, i32, i32
  }
  func.func @transform_11(%arg0: i32) -> (i32, i32, i32) {
    %c0_i32 = arith.constant 0 : i32
    %c0_i32_0 = arith.constant 0 : i32
    %c0_i32_1 = arith.constant 0 : i32
    %c0_i32_2 = arith.constant 0 : i32
    return %c0_i32, %c0_i32_0, %c0_i32_1 : i32, i32, i32
  }
  func.func @transform_12(%arg0: i32) -> (i32, i32, i32) {
    %c0_i32 = arith.constant 0 : i32
    %c0_i32_0 = arith.constant 0 : i32
    %c0_i32_1 = arith.constant 0 : i32
    %c0_i32_2 = arith.constant 0 : i32
    return %c0_i32, %c0_i32_0, %c0_i32_1 : i32, i32, i32
  }
  func.func @transform_13(%arg0: i32) -> (i32, i32, i32) {
    %c0_i32 = arith.constant 0 : i32
    %c0_i32_0 = arith.constant 0 : i32
    %c0_i32_1 = arith.constant 0 : i32
    %c0_i32_2 = arith.constant 0 : i32
    return %c0_i32, %c0_i32_0, %c0_i32_1 : i32, i32, i32
  }
  func.func @transform_14(%arg0: i32) -> (i32, i32) {
    %c0_i32 = arith.constant 0 : i32
    %c0_i32_0 = arith.constant 0 : i32
    %c0_i32_1 = arith.constant 0 : i32
    return %c0_i32, %c0_i32_0 : i32, i32
  }
  func.func @transform_15(%arg0: i32) -> (i32, i32) {
    %c0_i32 = arith.constant 0 : i32
    %c0_i32_0 = arith.constant 0 : i32
    %c0_i32_1 = arith.constant 0 : i32
    return %c0_i32, %c0_i32_0 : i32, i32
  }
  func.func @transform_16(%arg0: i32) -> (i32, i32) {
    %c0_i32 = arith.constant 0 : i32
    %c0_i32_0 = arith.constant 0 : i32
    return %arg0, %c0_i32 : i32, i32
  }
  func.func @transform_17(%arg0: i32) -> (i32, i32, i32) {
    %c0_i32 = arith.constant 0 : i32
    %c0_i32_0 = arith.constant 0 : i32
    %c0_i32_1 = arith.constant 0 : i32
    return %arg0, %c0_i32, %c0_i32_0 : i32, i32, i32
  }
}

</mosaic_0001>

<bundles_post_ra>
// kernel: tpu_custom_call.1
= control target key start
LH: loop header
LB: loop body
LE: loop exit
PB: predicated region body
PF: predicated region fallthrough
CT: control target
= control target key end

     0   :  { %s11587_s0 = inlined_call_operand.hbm [shape: f32[8,15], index: 0, kind: input, shape index: {}]   ;;  %s11588_s1 = inlined_call_operand.hbm [shape: f32[8,15], index: 1, kind: input, shape index: {}]   ;;  %s11589_s2 = inlined_call_operand.hbm [shape: f32[1,15], index: 2, kind: input, shape index: {}]   ;;  %s11590_s3 = inlined_call_operand.hbm [shape: f32[1,15], index: 3, kind: input, shape index: {}]   ;;  %s11591_s4 = inlined_call_operand.hbm [shape: f32[15,256], index: 4, kind: input, shape index: {}]   ;;  %s11592_s5 = inlined_call_operand.hbm [shape: f32[128,256], index: 5, kind: input, shape index: {}]   ;;  %s11593_s6 = inlined_call_operand.hbm [shape: f32[5,2,1,256], index: 6, kind: input, shape index: {}]   ;;  %s11594_s7 = inlined_call_operand.hbm [shape: f32[5,2,1,256], index: 7, kind: input, shape index: {}]   ;;  %s11595_s8 = inlined_call_operand.hbm [shape: f32[5,2,128,256], index: 8, kind: input, shape index: {}]   ;;  %s11596_s9 = inlined_call_operand.hbm [shape: f32[5,2,1,256], index: 9, kind: input, shape index: {}]   ;;  %s11597_s10 = inlined_call_operand.hbm [shape: f32[5,2,1,256], index: 10, kind: input, shape index: {}]   ;;  %s11598_s11 = inlined_call_operand.vmem [shape: f32[4,64,15], index: 11, kind: input, shape index: {}]   ;;  %s11599_s12 = inlined_call_operand.hbm [shape: f32[4,1,15], index: 12, kind: input, shape index: {}]   ;;  %s11600_s13 = inlined_call_operand.hbm [shape: f32[4,1,15], index: 13, kind: input, shape index: {}]   ;;  %s11601_s14 = inlined_call_operand.hbm [shape: f32[64,128], index: 14, kind: input, shape index: {}]   ;;  %s11602_s15 = inlined_call_operand.hbm [shape: f32[1,128], index: 15, kind: input, shape index: {}]   ;;  %s11603_s16 = inlined_call_operand.hbm [shape: f32[8,128], index: 16, kind: output, shape index: {0}]   ;;  %s11604_s17 = inlined_call_operand.hbm [shape: f32[1,8,128], index: 17, kind: output, shape index: {1}]  }
   0x1   :  { %11677 = sst [smem:[#allocation67_spill]] %s11587_s0 }
   0x2   :  { %11678 = sst [smem:[#allocation68_spill]] %s11588_s1 }
   0x3   :  { %23 = vsyncpa [#allocation3], 0 }
   0x4   :  { %24 = vsyncpa [#allocation6], 0 }
   0x5   :  { %25 = vsyncpa [#allocation9], 0 }
   0x6   :  { %26 = vsyncpa [#allocation12], 0 }
   0x7   :  { %27 = vsyncpa [#allocation15], 0 }
   0x8   :  { %28 = vsyncpa [#allocation18], 0 }
   0x9   :  { %29 = vsyncpa [#allocation21], 0 }
   0xa   :  { %30 = vsyncpa [#allocation24], 0 }
   0xb   :  { %31 = vsyncpa [#allocation4], 0 }
   0xc   :  { %32 = vsyncpa [#allocation28], 0  ;;  %s9611_s24 = smov [#allocation5]   ;;  %s9612_s26 = smov [#allocation8]  }
   0xd   :  { %s49_s25 = sshll.u32 %s9611_s24, 4  ;;  %s69_s27 = sshll.u32 %s9612_s26, 4  ;;  %s50_s25 = int_to_ptr.vmem [resolvable:$true] %s49_s25  ;;  %s70_s27 = int_to_ptr.vmem [resolvable:$true] %s69_s27 }
   0xe   :  { %s11679_s0 = sld [smem:[#allocation68_spill]] }
  0x14   :  { %s9217_s30 = scalar_lea.hbm %s11679_s0, 128 }
  0x15   :  { %p9218_p0 = scmp.ne.s32.totalorder %s11679_s0, %s9217_s30  ;;  %p9221_p1 = scmp.lt.u32.totalorder %s9217_s30, %s11679_s0 }
  0x17   :  { %p9223_p2 = pnand %p9221_p1, %p9218_p0 }
  0x19   :  { %9226 = shalt.err (!%p9223_p2)
}
  0x1a   :  { %s9227_s21 = scalar_lea.vmem %s50_s25, 128  ;;  %p9232_p4 = scmp.lt.s32.totalorder %s50_s25, %s50_s25 }
  0x1b   :  { %p9228_p3 = scmp.ne.s32.totalorder %s50_s25, %s9227_s21  ;;  %p9233_p5 = scmp.lt.s32.totalorder %s9227_s21, %s9227_s21 }
  0x1d   :  { %p9234_p6 = por %p9233_p5, %p9232_p4 }
  0x1f   :  { %p9235_p7 = pnand %p9234_p6, %p9228_p3 }
  0x21   :  { %9238 = shalt.err (!%p9235_p7)
}
  0x22   :  { %52 = dma.hbm_to_vmem [thread:$0]  %s11679_s0, 128, %s50_s25, [#allocation6]  }
  0x23   :  { %s9239_s28 = scalar_lea.hbm %s11590_s3, 16 }
  0x24   :  { %p9240_p8 = scmp.ne.s32.totalorder %s11590_s3, %s9239_s28  ;;  %p9243_p9 = scmp.lt.u32.totalorder %s9239_s28, %s11590_s3 }
  0x26   :  { %p9245_p10 = pnand %p9243_p9, %p9240_p8 }
  0x28   :  { %9248 = shalt.err (!%p9245_p10)
}
  0x29   :  { %s9249_s1 = scalar_lea.vmem %s70_s27, 16  ;;  %s9253_s20 = scalar_lea.vmem %s70_s27, 32 }
  0x2a   :  { %p9250_p11 = scmp.ne.s32.totalorder %s70_s27, %s9249_s1  ;;  %p9254_p12 = scmp.lt.s32.totalorder %s70_s27, %s70_s27 }
  0x2b   :  { %p9255_p13 = scmp.lt.s32.totalorder %s9253_s20, %s9249_s1 }
  0x2d   :  { %p9256_p0 = por %p9255_p13, %p9254_p12 }
  0x2f   :  { %p9257_p1 = pnand %p9256_p0, %p9250_p11 }
  0x31   :  { %9260 = shalt.err (!%p9257_p1)
}
  0x32   :  { %72 = dma.hbm_to_vmem [thread:$0]  %s11590_s3, 16, %s70_s27, [#allocation9]  }
  0x33   :  { %s9613_s21 = smov [#allocation11]   ;;  %s9261_s26 = scalar_lea.hbm %s11592_s5, 4096 }
  0x34   :  { %s90_s22 = sshll.u32 %s9613_s21, 4  ;;  %p9262_p2 = scmp.ne.s32.totalorder %s11592_s5, %s9261_s26  ;;  %s91_s22 = int_to_ptr.vmem [resolvable:$true] %s90_s22 }
  0x35   :  { %p9265_p3 = scmp.lt.u32.totalorder %s9261_s26, %s11592_s5 }
  0x37   :  { %p9267_p4 = pnand %p9265_p3, %p9262_p2 }
  0x39   :  { %9270 = shalt.err (!%p9267_p4)
}
  0x3a   :  { %s9271_s19 = scalar_lea.vmem %s91_s22, 4096  ;;  %p9276_p6 = scmp.lt.s32.totalorder %s91_s22, %s91_s22 }
  0x3b   :  { %p9272_p5 = scmp.ne.s32.totalorder %s91_s22, %s9271_s19  ;;  %p9277_p7 = scmp.lt.s32.totalorder %s9271_s19, %s9271_s19 }
  0x3d   :  { %p9278_p8 = por %p9277_p7, %p9276_p6 }
  0x3f   :  { %p9279_p9 = pnand %p9278_p8, %p9272_p5 }
  0x41   :  { %9282 = shalt.err (!%p9279_p9)
}
  0x42   :  { %s9614_s3 = smov 256   ;;  %s9615_s27 = smov 16  }
  0x43   :  { %96 = dma.hbm_to_vmem [thread:$0]  %s11592_s5, 4096, %s91_s22, [#allocation12], %s9614_s3, %s9614_s3, %s9615_s27  }
  0x44   :  { %s9616_s25 = smov [#allocation14]   ;;  %s9617_s21 = smov [#allocation17]  }
  0x45   :  { %s114_s0 = sshll.u32 %s9616_s25, 4  ;;  %s138_s23 = sshll.u32 %s9617_s21, 4  ;;  %s115_s0 = int_to_ptr.vmem [resolvable:$true] %s114_s0  ;;  %s139_s23 = int_to_ptr.vmem [resolvable:$true] %s138_s23 }
  0x46   :  { %s9283_s28 = scalar_lea.hbm %s11594_s7, 320 }
  0x47   :  { %p9284_p10 = scmp.ne.s32.totalorder %s11594_s7, %s9283_s28  ;;  %p9287_p11 = scmp.lt.u32.totalorder %s9283_s28, %s11594_s7 }
  0x49   :  { %p9289_p12 = pnand %p9287_p11, %p9284_p10 }
  0x4b   :  { %9292 = shalt.err (!%p9289_p12)
}
  0x4c   :  { %s9293_s5 = scalar_lea.vmem %s115_s0, 320  ;;  %p9298_p0 = scmp.lt.s32.totalorder %s115_s0, %s115_s0 }
  0x4d   :  { %p9294_p13 = scmp.ne.s32.totalorder %s115_s0, %s9293_s5  ;;  %p9299_p1 = scmp.lt.s32.totalorder %s9293_s5, %s9293_s5 }
  0x4f   :  { %p9300_p2 = por %p9299_p1, %p9298_p0 }
  0x51   :  { %p9301_p3 = pnand %p9300_p2, %p9294_p13 }
  0x53   :  { %9304 = shalt.err (!%p9301_p3)
}
  0x54   :  { %s11608_s22 = smov 32   ;;  %s9619_s1 = smov 2  }
  0x55   :  { %120 = dma.hbm_to_vmem [thread:$0]  %s11594_s7, 320, %s115_s0, [#allocation15], %s11608_s22, %s11608_s22, %s9619_s1  }
  0x56   :  { %s9305_s26 = scalar_lea.hbm %s11596_s9, 320 }
  0x57   :  { %p9306_p4 = scmp.ne.s32.totalorder %s11596_s9, %s9305_s26  ;;  %p9309_p5 = scmp.lt.u32.totalorder %s9305_s26, %s11596_s9 }
  0x59   :  { %p9311_p6 = pnand %p9309_p5, %p9306_p4 }
  0x5b   :  { %9314 = shalt.err (!%p9311_p6)
}
  0x5c   :  { %s9315_s19 = scalar_lea.vmem %s139_s23, 320  ;;  %p9320_p8 = scmp.lt.s32.totalorder %s139_s23, %s139_s23 }
  0x5d   :  { %p9316_p7 = scmp.ne.s32.totalorder %s139_s23, %s9315_s19  ;;  %p9321_p9 = scmp.lt.s32.totalorder %s9315_s19, %s9315_s19 }
  0x5f   :  { %p9322_p10 = por %p9321_p9, %p9320_p8 }
  0x61   :  { %p9323_p11 = pnand %p9322_p10, %p9316_p7 }
  0x63   :  { %9326 = shalt.err (!%p9323_p11)
}
  0x64   :  { %144 = dma.hbm_to_vmem [thread:$0]  %s11596_s9, 320, %s139_s23, [#allocation18], %s11608_s22, %s11608_s22, %s9619_s1  }
  0x65   :  { %s9620_s5 = smov [#allocation20]   ;;  %s9327_s24 = scalar_lea.hbm %s11599_s12, 64 }
  0x66   :  { %s164_s20 = sshll.u32 %s9620_s5, 4  ;;  %p9328_p12 = scmp.ne.s32.totalorder %s11599_s12, %s9327_s24  ;;  %s165_s20 = int_to_ptr.vmem [resolvable:$true] %s164_s20 }
  0x67   :  { %p9331_p13 = scmp.lt.u32.totalorder %s9327_s24, %s11599_s12 }
  0x69   :  { %p9333_p0 = pnand %p9331_p13, %p9328_p12 }
  0x6b   :  { %9336 = shalt.err (!%p9333_p0)
}
  0x6c   :  { %s9337_s30 = scalar_lea.vmem %s165_s20, 64  ;;  %p9342_p2 = scmp.lt.s32.totalorder %s165_s20, %s165_s20 }
  0x6d   :  { %p9338_p1 = scmp.ne.s32.totalorder %s165_s20, %s9337_s30  ;;  %p9343_p3 = scmp.lt.s32.totalorder %s9337_s30, %s9337_s30 }
  0x6f   :  { %p9344_p4 = por %p9343_p3, %p9342_p2 }
  0x71   :  { %p9345_p5 = pnand %p9344_p4, %p9338_p1 }
  0x73   :  { %9348 = shalt.err (!%p9345_p5)
}
  0x74   :  { %s11607_s9 = smov 1   ;;  %s9622_s7 = smov [#allocation23]  }
  0x75   :  { %170 = dma.hbm_to_vmem [thread:$0]  %s11599_s12, 64, %s165_s20, [#allocation21], %s9615_s27, %s9615_s27, %s11607_s9  }
  0x76   :  { %s188_s0 = sshll.u32 %s9622_s7, 4  ;;  %s9349_s21 = scalar_lea.hbm %s11601_s14, 1024  ;;  %s189_s0 = int_to_ptr.vmem [resolvable:$true] %s188_s0 }
  0x77   :  { %p9350_p6 = scmp.ne.s32.totalorder %s11601_s14, %s9349_s21  ;;  %p9353_p7 = scmp.lt.u32.totalorder %s9349_s21, %s11601_s14 }
  0x79   :  { %p9355_p8 = pnand %p9353_p7, %p9350_p6 }
  0x7b   :  { %9358 = shalt.err (!%p9355_p8)
}
  0x7c   :  { %s9359_s18 = scalar_lea.vmem %s189_s0, 1024  ;;  %p9364_p10 = scmp.lt.s32.totalorder %s189_s0, %s189_s0 }
  0x7d   :  { %p9360_p9 = scmp.ne.s32.totalorder %s189_s0, %s9359_s18  ;;  %p9365_p11 = scmp.lt.s32.totalorder %s9359_s18, %s9359_s18 }
  0x7f   :  { %p9366_p12 = por %p9365_p11, %p9364_p10 }
  0x81   :  { %p9367_p13 = pnand %p9366_p12, %p9360_p9 }
  0x83   :  { %9370 = shalt.err (!%p9367_p13)
}
  0x84   :  { %s9623_s12 = smov 128   ;;  %s9624_s20 = smov 8  }
  0x85   :  { %194 = dma.hbm_to_vmem [thread:$0]  %s11601_s14, 1024, %s189_s0, [#allocation24], %s9623_s12, %s9623_s12, %s9624_s20  }
  0x86   :  { %s9625_s19 = smov [#allocation2]   ;;  %s9626_s5 = smov [#allocation7]  }
  0x87   :  { %s39_s7 = sshll.u32 %s9625_s19, 4  ;;  %s59_s25 = sshll.u32 %s9626_s5, 4  ;;  %s40_s7 = int_to_ptr.vmem [resolvable:$true] %s39_s7  ;;  %s60_s25 = int_to_ptr.vmem [resolvable:$true] %s59_s25 }
  0x88   :  { %s11680_s26 = sld [smem:[#allocation67_spill]] }
  0x8e   :  { %s9371_s28 = scalar_lea.hbm %s11680_s26, 128 }
  0x8f   :  { %p9372_p0 = scmp.ne.s32.totalorder %s11680_s26, %s9371_s28  ;;  %p9375_p1 = scmp.lt.u32.totalorder %s9371_s28, %s11680_s26 }
  0x91   :  { %p9377_p2 = pnand %p9375_p1, %p9372_p0 }
  0x93   :  { %9380 = shalt.err (!%p9377_p2)
}
  0x94   :  { %s9381_s14 = scalar_lea.vmem %s40_s7, 128  ;;  %p9386_p4 = scmp.lt.s32.totalorder %s40_s7, %s40_s7 }
  0x95   :  { %p9382_p3 = scmp.ne.s32.totalorder %s40_s7, %s9381_s14  ;;  %p9387_p5 = scmp.lt.s32.totalorder %s9381_s14, %s9381_s14 }
  0x97   :  { %p9388_p6 = por %p9387_p5, %p9386_p4 }
  0x99   :  { %p9389_p7 = pnand %p9388_p6, %p9382_p3 }
  0x9b   :  { %9392 = shalt.err (!%p9389_p7)
}
  0x9c   :  { %42 = dma.hbm_to_vmem [thread:$0]  %s11680_s26, 128, %s40_s7, [#allocation3]  }
  0x9d   :  { %s9393_s23 = scalar_lea.hbm %s11589_s2, 16 }
  0x9e   :  { %p9394_p8 = scmp.ne.s32.totalorder %s11589_s2, %s9393_s23  ;;  %p9397_p9 = scmp.lt.u32.totalorder %s9393_s23, %s11589_s2 }
  0xa0   :  { %p9399_p10 = pnand %p9397_p9, %p9394_p8 }
  0xa2   :  { %9402 = shalt.err (!%p9399_p10)
}
  0xa3   :  { %s9403_s21 = scalar_lea.vmem %s60_s25, 16  ;;  %s9407_s24 = scalar_lea.vmem %s60_s25, 32 }
  0xa4   :  { %p9404_p11 = scmp.ne.s32.totalorder %s60_s25, %s9403_s21  ;;  %p9408_p12 = scmp.lt.s32.totalorder %s60_s25, %s60_s25 }
  0xa5   :  { %p9409_p13 = scmp.lt.s32.totalorder %s9407_s24, %s9403_s21 }
  0xa7   :  { %p9410_p0 = por %p9409_p13, %p9408_p12 }
  0xa9   :  { %p9411_p1 = pnand %p9410_p0, %p9404_p11 }
  0xab   :  { %9414 = shalt.err (!%p9411_p1)
}
  0xac   :  { %62 = dma.hbm_to_vmem [thread:$0]  %s11589_s2, 16, %s60_s25, [#allocation6]  }
  0xad   :  { %s9627_s28 = smov [#allocation10]   ;;  %s9628_s18 = smov [#allocation13]  }
  0xae   :  { %s78_s29 = sshll.u32 %s9627_s28, 4  ;;  %s102_s14 = sshll.u32 %s9628_s18, 4  ;;  %s79_s29 = int_to_ptr.vmem [resolvable:$true] %s78_s29  ;;  %s9852_s14 = int_to_ptr.vmem [resolvable:$true] %s102_s14 }
  0xaf   :  { %s9415_s20 = scalar_lea.hbm %s11591_s4, 512 }
  0xb0   :  { %p9416_p2 = scmp.ne.s32.totalorder %s11591_s4, %s9415_s20  ;;  %p9419_p3 = scmp.lt.u32.totalorder %s9415_s20, %s11591_s4 }
  0xb2   :  { %p9421_p4 = pnand %p9419_p3, %p9416_p2 }
  0xb4   :  { %9424 = shalt.err (!%p9421_p4)
}
  0xb5   :  { %s9425_s2 = scalar_lea.vmem %s79_s29, 512  ;;  %p9430_p6 = scmp.lt.s32.totalorder %s79_s29, %s79_s29 }
  0xb6   :  { %p9426_p5 = scmp.ne.s32.totalorder %s79_s29, %s9425_s2  ;;  %p9431_p7 = scmp.lt.s32.totalorder %s9425_s2, %s9425_s2 }
  0xb8   :  { %p9432_p8 = por %p9431_p7, %p9430_p6 }
  0xba   :  { %p9433_p9 = pnand %p9432_p8, %p9426_p5 }
  0xbc   :  { %9436 = shalt.err (!%p9433_p9)
}
  0xbd   :  { %84 = dma.hbm_to_vmem [thread:$0]  %s11591_s4, 512, %s79_s29, [#allocation9], %s9614_s3, %s9614_s3, %s9615_s27  }
  0xbe   :  { %s9437_s24 = scalar_lea.hbm %s11593_s6, 320 }
  0xbf   :  { %p9438_p10 = scmp.ne.s32.totalorder %s11593_s6, %s9437_s24  ;;  %p9441_p11 = scmp.lt.u32.totalorder %s9437_s24, %s11593_s6 }
  0xc1   :  { %p9443_p12 = pnand %p9441_p11, %p9438_p10 }
  0xc3   :  { %9446 = shalt.err (!%p9443_p12)
}
  0xc4   :  { %s9447_s0 = scalar_lea.vmem %s9852_s14, 320  ;;  %p9452_p0 = scmp.lt.s32.totalorder %s9852_s14, %s9852_s14 }
  0xc5   :  { %p9448_p13 = scmp.ne.s32.totalorder %s9852_s14, %s9447_s0  ;;  %p9453_p1 = scmp.lt.s32.totalorder %s9447_s0, %s9447_s0 }
  0xc7   :  { %p9454_p2 = por %p9453_p1, %p9452_p0 }
  0xc9   :  { %p9455_p3 = pnand %p9454_p2, %p9448_p13 }
  0xcb   :  { %9458 = shalt.err (!%p9455_p3)
}
  0xcc   :  { %s11681_s4 = smov 32   ;;  %s9629_s20 = smov [#allocation16]  }
  0xcd   :  { %108 = dma.hbm_to_vmem [thread:$0]  %s11593_s6, 320, %s9852_s14, [#allocation12], %s11681_s4, %s11681_s4, %s9619_s1  }
  0xce   :  { %s126_s30 = sshll.u32 %s9629_s20, 4  ;;  %s9630_s23 = smov [#allocation19]   ;;  %s127_s30 = int_to_ptr.vmem [resolvable:$true] %s126_s30 }
  0xcf   :  { %s150_s19 = sshll.u32 %s9630_s23, 4  ;;  %s9459_s25 = scalar_lea.hbm %s11595_s8, 40960  ;;  %s9889_s19 = int_to_ptr.vmem [resolvable:$true] %s150_s19 }
  0xd0   :  { %p9460_p4 = scmp.ne.s32.totalorder %s11595_s8, %s9459_s25  ;;  %p9463_p5 = scmp.lt.u32.totalorder %s9459_s25, %s11595_s8 }
  0xd2   :  { %p9465_p6 = pnand %p9463_p5, %p9460_p4 }
  0xd4   :  { %9468 = shalt.err (!%p9465_p6)
}
  0xd5   :  { %s9469_s6 = scalar_lea.vmem %s127_s30, 40960  ;;  %p9474_p8 = scmp.lt.s32.totalorder %s127_s30, %s127_s30 }
  0xd6   :  { %p9470_p7 = scmp.ne.s32.totalorder %s127_s30, %s9469_s6  ;;  %p9475_p9 = scmp.lt.s32.totalorder %s9469_s6, %s9469_s6 }
  0xd8   :  { %p9476_p10 = por %p9475_p9, %p9474_p8 }
  0xda   :  { %p9477_p11 = pnand %p9476_p10, %p9470_p7 }
  0xdc   :  { %9480 = shalt.err (!%p9477_p11)
}
  0xdd   :  { %132 = dma.hbm_to_vmem [thread:$0]  %s11595_s8, 40960, %s127_s30, [#allocation15], %s9614_s3, %s9614_s3, %s9615_s27  }
  0xde   :  { %s9481_s18 = scalar_lea.hbm %s11597_s10, 320 }
  0xdf   :  { %p9482_p12 = scmp.ne.s32.totalorder %s11597_s10, %s9481_s18  ;;  %p9485_p13 = scmp.lt.u32.totalorder %s9481_s18, %s11597_s10 }
  0xe1   :  { %p9487_p0 = pnand %p9485_p13, %p9482_p12 }
  0xe3   :  { %9490 = shalt.err (!%p9487_p0)
}
  0xe4   :  { %s9491_s23 = scalar_lea.vmem %s9889_s19, 320  ;;  %p9496_p2 = scmp.lt.s32.totalorder %s9889_s19, %s9889_s19 }
  0xe5   :  { %p9492_p1 = scmp.ne.s32.totalorder %s9889_s19, %s9491_s23  ;;  %p9497_p3 = scmp.lt.s32.totalorder %s9491_s23, %s9491_s23 }
  0xe7   :  { %p9498_p4 = por %p9497_p3, %p9496_p2 }
  0xe9   :  { %p9499_p5 = pnand %p9498_p4, %p9492_p1 }
  0xeb   :  { %9502 = shalt.err (!%p9499_p5)
}
  0xec   :  { %156 = dma.hbm_to_vmem [thread:$0]  %s11597_s10, 320, %s9889_s19, [#allocation18], %s11681_s4, %s11681_s4, %s9619_s1  }
  0xed   :  { %s9631_s30 = smov [#allocation22]   ;;  %s9632_s2 = smov [#allocation25]  }
  0xee   :  { %s176_s22 = sshll.u32 %s9631_s30, 4  ;;  %s201_s25 = sshll.u32 %s9632_s2, 4  ;;  %s177_s22 = int_to_ptr.vmem [resolvable:$true] %s176_s22  ;;  %s202_s25 = int_to_ptr.vmem [resolvable:$true] %s201_s25 }
  0xef   :  { %s9503_s21 = scalar_lea.hbm %s11600_s13, 64 }
  0xf0   :  { %p9504_p6 = scmp.ne.s32.totalorder %s11600_s13, %s9503_s21  ;;  %p9507_p7 = scmp.lt.u32.totalorder %s9503_s21, %s11600_s13 }
  0xf2   :  { %p9509_p8 = pnand %p9507_p7, %p9504_p6 }
  0xf4   :  { %9512 = shalt.err (!%p9509_p8)
}
  0xf5   :  { %s9513_s10 = scalar_lea.vmem %s177_s22, 64  ;;  %p9518_p10 = scmp.lt.s32.totalorder %s177_s22, %s177_s22 }
  0xf6   :  { %p9514_p9 = scmp.ne.s32.totalorder %s177_s22, %s9513_s10  ;;  %p9519_p11 = scmp.lt.s32.totalorder %s9513_s10, %s9513_s10 }
  0xf8   :  { %p9520_p12 = por %p9519_p11, %p9518_p10 }
  0xfa   :  { %p9521_p13 = pnand %p9520_p12, %p9514_p9 }
  0xfc   :  { %9524 = shalt.err (!%p9521_p13)
}
  0xfd   :  { %s11682_s1 = smov 1   ;;  %s9525_s18 = scalar_lea.hbm %s11602_s15, 16 }
  0xfe   :  { %182 = dma.hbm_to_vmem [thread:$0]  %s11600_s13, 64, %s177_s22, [#allocation21], %s9615_s27, %s9615_s27, %s11682_s1  }
  0xff   :  { %p9526_p0 = scmp.ne.s32.totalorder %s11602_s15, %s9525_s18  ;;  %p9529_p1 = scmp.lt.u32.totalorder %s9525_s18, %s11602_s15 }
 0x101   :  { %p9531_p2 = pnand %p9529_p1, %p9526_p0 }
 0x103   :  { %9534 = shalt.err (!%p9531_p2)
}
 0x104   :  { %s9535_s23 = scalar_lea.vmem %s202_s25, 16  ;;  %s9539_s8 = scalar_lea.vmem %s202_s25, 32 }
 0x105   :  { %p9536_p3 = scmp.ne.s32.totalorder %s202_s25, %s9535_s23  ;;  %p9540_p4 = scmp.lt.s32.totalorder %s202_s25, %s202_s25 }
 0x106   :  { %p9541_p5 = scmp.lt.s32.totalorder %s9539_s8, %s9535_s23 }
 0x108   :  { %p9542_p6 = por %p9541_p5, %p9540_p4 }
 0x10a   :  { %p9543_p7 = pnand %p9542_p6, %p9536_p3 }
 0x10c   :  { %9546 = shalt.err (!%p9543_p7)
}
 0x10d   :  { %204 = dma.hbm_to_vmem [thread:$0]  %s11602_s15, 16, %s202_s25, [#allocation24]  }
 0x10e   :  { %9591 = dma.done.wait [#allocation3], 128  }
 0x10f   :  { %9592 = vsyncadd [#allocation3], 4294967168 }
 0x110   :  { %9593 = dma.done.wait [#allocation6], 144  }
 0x111   :  { %9594 = vsyncadd [#allocation6], 4294967152 }
 0x112   :  { %9595 = dma.done.wait [#allocation9], 528  }
 0x113   :  { %9596 = vsyncadd [#allocation9], 4294966768 }
 0x114   :  { %9597 = dma.done.wait [#allocation12], 4416  }
 0x115   :  { %9598 = vsyncadd [#allocation12], 4294962880 }
 0x116   :  { %9599 = dma.done.wait [#allocation15], 41280  }
 0x117   :  { %9600 = vsyncadd [#allocation15], 4294926016 }
 0x118   :  { %9601 = dma.done.wait [#allocation18], 640  }
 0x119   :  { %9602 = vsyncadd [#allocation18], 4294966656 }
 0x11a   :  { %9603 = dma.done.wait [#allocation21], 128  }
 0x11b   :  { %9604 = vsyncadd [#allocation21], 4294967168 }
 0x11c   :  { %9605 = dma.done.wait [#allocation24], 1040  }
 0x11d   :  { %9606 = vsyncadd [#allocation24], 4294966256  ;;  %v11615_v0 = vmov 0.0   ;;  %vm310_vm0 = vcmask 1046528   ;;  %vm9634_vm1 = vmmov 1   ;;  %v11683_v1 = vmov 0 }
 0x11e   :  { %381 = vmatprep.mubr.f32.mxu0 %v11615_v0  ;;  %570 = vmatprep.mubr.f32.mxu1 %v11615_v0  ;;  %vm9955_vm2 = vmpackc.low %vm310_vm0, %vm9634_vm1  ;;  %v251_v2 = vld [vmem:[#allocation10 + $0x8] sm:$0xff]  ;;  %v253_v3 = vld [vmem:[#allocation10 + $0x18] sm:$0x7f]  ;;  %vm306_vm3 = vcmask 121856   ;;  %vm9637_vm4 = vmmov 0   ;;  %s9638_s19 = smov 64  }
 0x11f   :  { %v11684_v1 = vsel %vm9955_vm2, 4294967295, %v11683_v1  ;;  %v250_v4 = vld [vmem:[#allocation10] sm:$0xff]  ;;  %v9959_v5 = vpack.c.bf16 %v253_v3, %v251_v2  ;;  %v252_v6 = vld [vmem:[#allocation10 + $0x10] sm:$0x7f]  ;;  %v7864_v8 = vld [vmem:[#allocation7] ss:$0 sm:$0xff] }
 0x120   :  { %11685 = vst [vmem:[#allocation39_spill] sm:$0xff] %v11684_v1  ;;  %v287_v7 = vld [vmem:[#allocation2] sm:$0xff]  ;;  %v9961_v9 = vpack.c.bf16 %v252_v6, %v250_v4  ;;  %v7865_v11 = vld [vmem:[#allocation8] ss:$0 sm:$0xff]  ;;  %v254_v16 = vld [vmem:[#allocation11] sm:$0xff]  ;;  %vm11646_vm5 = vcmask 523264  }
 0x121   :  { %11686 = vst [vmem:[#allocation40_spill] sm:$0xff] %v9959_v5  ;;  %v295_v10 = vmul.f32 %v7864_v8, %v287_v7  ;;  %8269 = vmatprep.subr.msk.bf16.mxu0 %vm9955_vm2, %v9959_v5  ;;  %v255_v13 = vld [vmem:[#allocation11 + $0x8] sm:$0xff]  ;;  %v257_v14 = vld [vmem:[#allocation11 + $0x18] sm:$0xff]  ;;  %v256_v17 = vld [vmem:[#allocation11 + $0x10] sm:$0xff]  ;;  %vm1494_vm8 = vcmask 120832  }
 0x122   :  { %11687 = vst [vmem:[#allocation41_spill] sm:$0xff] %v9961_v9  ;;  %8272 = vmatpush1.bf16.msk.msra.mxu0 %vm9955_vm2, %v9961_v9  ;;  %v9974_v15 = vpack.c.bf16 %v257_v14, %v255_v13  ;;  %v9976_v18 = vpack.c.bf16 %v256_v17, %v254_v16  ;;  %v259_v19 = vld [vmem:[#allocation11 + $0x28] sm:$0xff]  ;;  %v261_v20 = vld [vmem:[#allocation11 + $0x38] sm:$0xff]  ;;  %v258_v22 = vld [vmem:[#allocation11 + $0x20] sm:$0xff] }
 0x123   :  { %v9969_v12 = vadd.f32 %v7865_v11, %v295_v10  ;;  %v9980_v21 = vpack.c.bf16 %v261_v20, %v259_v19  ;;  %v260_v23 = vld [vmem:[#allocation11 + $0x30] sm:$0xff]  ;;  %v263_v25 = vld [vmem:[#allocation11 + $0x48] sm:$0xff]  ;;  %v265_v26 = vld [vmem:[#allocation11 + $0x58] sm:$0xff] }
 0x124   :  { %11688 = vst [vmem:[#allocation42_spill] sm:$0xff] %v9974_v15  ;;  %11689 = vst [vmem:[#allocation43_spill] sm:$0xff] %v9976_v18  ;;  %8274 = vmatprep.subr.bf16.mxu1 %v9974_v15  ;;  %v9982_v24 = vpack.c.bf16 %v260_v23, %v258_v22  ;;  %v9986_v27 = vpack.c.bf16 %v265_v26, %v263_v25  ;;  %v262_v28 = vld [vmem:[#allocation11 + $0x40] sm:$0xff]  ;;  %v264_v29 = vld [vmem:[#allocation11 + $0x50] sm:$0xff] }
 0x125   :  { %7868 = vmatmul.mubr.msk.f32.vlgmr.msra.gmra.mrb[0].mxu0 %vm306_vm3, %v9969_v12  ;;  %8276 = vmatpush1.bf16.msra.mxu1 %v9976_v18  ;;  %11690 = vst [vmem:[#allocation44_spill] sm:$0xff] %v9980_v21  ;;  %v9988_v30 = vpack.c.bf16 %v264_v29, %v262_v28  ;;  %v267_v31 = vld [vmem:[#allocation11 + $0x68] sm:$0xff]  ;;  %v269_v32 = vld [vmem:[#allocation11 + $0x78] sm:$0xff]  ;;  %v266_v34 = vld [vmem:[#allocation11 + $0x60] sm:$0xff] }
 0x126   :  { %790 = vmatprep.mubr.f32.mxu0 %v11615_v0  ;;  %11691 = vst [vmem:[#allocation45_spill] sm:$0xff] %v9982_v24  ;;  %8278 = vmatprep.subr.bf16.mxu1 %v9980_v21  ;;  %11692 = vst [vmem:[#allocation46_spill] sm:$0xff] %v9986_v27  ;;  %v9992_v33 = vpack.c.bf16 %v269_v32, %v267_v31  ;;  %v268_v35 = vld [vmem:[#allocation11 + $0x70] sm:$0xff]  ;;  %v271_v37 = vld [vmem:[#allocation11 + $0x88] sm:$0xff] }
 0x127   :  { %11693 = vst [vmem:[#allocation47_spill] sm:$0xff] %v9988_v30  ;;  %v9994_v36 = vpack.c.bf16 %v268_v35, %v266_v34  ;;  %v273_v38 = vld [vmem:[#allocation11 + $0x98] sm:$0xff]  ;;  %v270_v40 = vld [vmem:[#allocation11 + $0x80] sm:$0xff]  ;;  %v272_v41 = vld [vmem:[#allocation11 + $0x90] sm:$0xff] }
 0x128   :  { %11694 = vst [vmem:[#allocation48_spill] sm:$0xff] %v9992_v33  ;;  %v9998_v39 = vpack.c.bf16 %v273_v38, %v271_v37  ;;  %v10000_v42 = vpack.c.bf16 %v272_v41, %v270_v40  ;;  %v275_v43 = vld [vmem:[#allocation11 + $0xa8] sm:$0xff]  ;;  %v277_v44 = vld [vmem:[#allocation11 + $0xb8] sm:$0xff]  ;;  %v274_v46 = vld [vmem:[#allocation11 + $0xa0] sm:$0xff] }
 0x129   :  { %8280 = vmatpush1.bf16.msra.mxu1 %v9982_v24  ;;  %11695 = vst [vmem:[#allocation49_spill] sm:$0xff] %v9994_v36  ;;  %v10004_v45 = vpack.c.bf16 %v277_v44, %v275_v43  ;;  %v276_v47 = vld [vmem:[#allocation11 + $0xb0] sm:$0xff]  ;;  %v279_v49 = vld [vmem:[#allocation11 + $0xc8] sm:$0xff]  ;;  %v281_v50 = vld [vmem:[#allocation11 + $0xd8] sm:$0xff] }
 0x12a   :  { %8282 = vmatprep.subr.bf16.mxu1 %v9986_v27  ;;  %11696 = vst [vmem:[#allocation50_spill] sm:$0xff] %v9998_v39  ;;  %11697 = vst [vmem:[#allocation51_spill] sm:$0xff] %v10000_v42  ;;  %v10006_v48 = vpack.c.bf16 %v276_v47, %v274_v46  ;;  %v278_v51 = vld [vmem:[#allocation11 + $0xc0] sm:$0xff]  ;;  %v10009_v52 = vpack.c.bf16 %v281_v50, %v279_v49  ;;  %v280_v53 = vld [vmem:[#allocation11 + $0xd0] sm:$0xff] }
 0x12b   :  { %11698 = vst [vmem:[#allocation52_spill] sm:$0xff] %v10004_v45  ;;  %v283_v54 = vld [vmem:[#allocation11 + $0xe8] sm:$0xff]  ;;  %v285_v55 = vld [vmem:[#allocation11 + $0xf8] sm:$0xff]  ;;  %v10012_v56 = vpack.c.bf16 %v280_v53, %v278_v51  ;;  %v282_v58 = vld [vmem:[#allocation11 + $0xe0] sm:$0xff] }
 0x12c   :  { %11699 = vst [vmem:[#allocation53_spill] sm:$0xff] %v10006_v48  ;;  %11700 = vst [vmem:[#allocation54_spill] sm:$0xff] %v10009_v52  ;;  %v10015_v57 = vpack.c.bf16 %v285_v55, %v283_v54  ;;  %v284_v59 = vld [vmem:[#allocation11 + $0xf0] sm:$0xff]  ;;  %v9635_v55 = vmov 1966171168  }
 0x12d   :  { %8284 = vmatpush1.bf16.msra.mxu1 %v9988_v30  ;;  %11701 = vst [vmem:[#allocation55_spill] sm:$0xff] %v10012_v56  ;;  %v10018_v60 = vpack.c.bf16 %v284_v59, %v282_v58  ;;  %v433_v58 = vunpack.c.l.s4 %v9635_v55  ;;  %v11612_v59 = vlaneseq }
 0x12e   :  { %8286 = vmatprep.subr.bf16.mxu1 %v9992_v33  ;;  %11702 = vst [vmem:[#allocation56_spill] sm:$0xff] %v10015_v57 }
 0x12f   :  { %11703 = vst [vmem:[#allocation57_spill] sm:$0xff] %v10018_v60 }
 0x131   :  { %8288 = vmatpush1.bf16.msra.mxu1 %v9994_v36 }
 0x132   :  { %8290 = vmatprep.subr.bf16.mxu1 %v9998_v39 }
 0x135   :  { %8292 = vmatpush1.bf16.msra.mxu1 %v10000_v42 }
 0x136   :  { %8294 = vmatprep.subr.bf16.mxu1 %v10004_v45 }
 0x139   :  { %8296 = vmatpush1.bf16.msra.mxu1 %v10006_v48 }
 0x13a   :  { %8298 = vmatprep.subr.bf16.mxu1 %v10009_v52 }
 0x13d   :  { %8300 = vmatpush1.bf16.msra.mxu1 %v10012_v56 }
 0x13e   :  { %8302 = vmatprep.subr.bf16.mxu1 %v10015_v57 }
 0x141   :  { %8304 = vmatpush1.bf16.msra.mxu1 %v10018_v60 }
 0x1f8   :  { %v383_v61 = vpop.f32.mrb[0].mxu0 }
 0x1f9   :  { %v388_v62 = vrot.slane %v383_v61, 4  ;;  %v403_v63 = vmul.f32 %v383_v61, %v383_v61  ;;  %v385_v2 = vpop.f32.mrb[1].mxu0 }
 0x1fa   :  { %v394_v3 = vrot.slane %v385_v2, 4  ;;  %v404_v4 = vmul.f32 %v385_v2, %v385_v2 }
 0x1fb   :  { %v389_v6 = vadd.f32 %v388_v62, %v383_v61  ;;  %v405_v7 = vrot.slane %v403_v63, 4  ;;  %v434_v62 = vunpack.c.0.s8 %v433_v58  ;;  %v696_v58 = vld [vmem:[#allocation16 + $0x20] sm:$0xff] }
 0x1fc   :  { %v395_v8 = vadd.f32 %v394_v3, %v385_v2  ;;  %v411_v10 = vrot.slane %v404_v4, 4 }
 0x1fd   :  { %v390_v11 = vrot.slane %v389_v6, 2  ;;  %v406_v13 = vadd.f32 %v405_v7, %v403_v63  ;;  %v10023_v63 = vshrl.u32 %v11612_v59, 7 }
 0x1fe   :  { %v396_v14 = vrot.slane %v395_v8, 2  ;;  %v412_v16 = vadd.f32 %v411_v10, %v404_v4  ;;  %v304_v10 = vld [vmem:[#allocation13] sm:$0x3] }
 0x1ff   :  { %v391_v17 = vadd.f32 %v390_v11, %v389_v6  ;;  %v407_v19 = vrot.slane %v406_v13, 2  ;;  %v10026_v4 = vsub.s32 %v434_v62, %v10023_v63  ;;  %v698_v62 = vld [vmem:[#allocation16 + $0x30] sm:$0xff] }
 0x200   :  { %v397_v20 = vadd.f32 %v396_v14, %v395_v8  ;;  %v413_v22 = vrot.slane %v412_v16, 2  ;;  %v10034_v14 = vsub.s32 1, %v10023_v63 }
 0x201   :  { %v392_v23 = vrot.slane %v391_v17, 1  ;;  %v408_v25 = vadd.f32 %v407_v19, %v406_v13  ;;  %11704 = vst [vmem:[#allocation58_spill] sm:$0xff] %v10026_v4  ;;  %v10031_v13 = vsub.s32 0, %v10023_v63 }
 0x202   :  { %v398_v26 = vrot.slane %v397_v20, 1  ;;  %v414_v28 = vadd.f32 %v413_v22, %v412_v16  ;;  %11706 = vst [vmem:[#allocation60_spill] sm:$0xff] %v10034_v14 }
 0x203   :  { %v393_v29 = vadd.f32 %v392_v23, %v391_v17  ;;  %v409_v31 = vrot.slane %v408_v25, 1  ;;  %11705 = vst [vmem:[#allocation59_spill] sm:$0xff] %v10031_v13 }
 0x204   :  { %v399_v32 = vadd.f32 %v398_v26, %v397_v20  ;;  %v415_v34 = vrot.slane %v414_v28, 1 }
 0x205   :  { %v401_v35 = vmul.f32 0.125, %v393_v29  ;;  %v410_v37 = vadd.f32 %v409_v31, %v408_v25  ;;  %v305_v29 = vld [vmem:[#allocation14] sm:$0x3] }
 0x206   :  { %v402_v38 = vmul.f32 0.125, %v399_v32  ;;  %v416_v40 = vadd.f32 %v415_v34, %v414_v28 }
 0x207   :  { %v417_v41 = vmul.f32 0.125, %v410_v37  ;;  %v419_v43 = vmul.f32 %v401_v35, %v401_v35 }
 0x208   :  { %v418_v44 = vmul.f32 0.125, %v416_v40  ;;  %v420_v46 = vmul.f32 %v402_v38, %v402_v38 }
 0x209   :  { %v421_v47 = vsub.f32 %v417_v41, %v419_v43 }
 0x20a   :  { %v422_v49 = vsub.f32 %v418_v44, %v420_v46  ;;  %v695_v46 = vld [vmem:[#allocation16 + $0x18] sm:$0xff] }
 0x20b   :  { %v423_v50 = vmax.f32 %v421_v47, 0.0 }
 0x20c   :  { %v424_v51 = vmax.f32 %v422_v49, 0.0  ;;  %v692_v49 = vld [vmem:[#allocation16] sm:$0xff] }
 0x20d   :  { %v425_v53 = vadd.f32 1e-05, %v423_v50  ;;  %v694_v50 = vld [vmem:[#allocation16 + $0x10] sm:$0xff] }
 0x20e   :  { %v426_v54 = vadd.f32 1e-05, %v424_v51  ;;  %v8307_v51 = vpack.c.bf16 %v694_v50, %v692_v49  ;;  %v718_v49 = vld [vmem:[#allocation16 + $0xd0] sm:$0xff]  ;;  %v721_v50 = vld [vmem:[#allocation16 + $0xe8] sm:$0xff] }
 0x20f   :  { %9030 = vrsqrt.f32 %v425_v53  ;;  %v697_v53 = vld [vmem:[#allocation16 + $0x28] sm:$0xff] }
 0x210   :  { %9032 = vrsqrt.f32 %v426_v54  ;;  %v699_v54 = vld [vmem:[#allocation16 + $0x38] sm:$0xff] }
 0x211   :  { %v8309_v55 = vpack.c.bf16 %v699_v54, %v697_v53 }
 0x219   :  { %v9031_v3 = vpop.eup %9030 }
 0x21a   :  { %v9033_v6 = vpop.eup %9032 }
 0x21b   :  { %v431_v7 = vcombine.low %v9031_v3, %v9033_v6  ;;  %v8311_v3 = vpack.c.bf16 %v698_v62, %v696_v58  ;;  %v701_v6 = vld [vmem:[#allocation16 + $0x48] sm:$0xff]  ;;  %v722_v58 = vld [vmem:[#allocation16 + $0xf0] sm:$0xff] }
 0x21d   :  { %v438_v8 = vrot.slane %v431_v7, %v10026_v4  ;;  %v703_v7 = vld [vmem:[#allocation16 + $0x58] sm:$0xff] }
 0x21f   :  { %v445_v11 = vrot.slane %v438_v8, %v10026_v4  ;;  %v8313_v8 = vpack.c.bf16 %v703_v7, %v701_v6 }
 0x221   :  { %v447_v16 = vmul.f32 %v445_v11, %v304_v10  ;;  %v700_v10 = vld [vmem:[#allocation16 + $0x40] sm:$0xff]  ;;  %v702_v11 = vld [vmem:[#allocation16 + $0x50] sm:$0xff] }
 0x223   :  { %v452_v17 = vrot.slane %v447_v16, %v10031_v13  ;;  %v456_v19 = vrot.slane %v447_v16, %v10034_v14  ;;  %v8315_v16 = vpack.c.bf16 %v702_v11, %v700_v10 }
 0x225   :  { %v459_v20 = vmul.f32 %v452_v17, %v401_v35  ;;  %v460_v22 = vmul.f32 %v456_v19, %v402_v38  ;;  %v481_v23 = vmul.f32 %v456_v19, %v385_v2  ;;  %v480_v25 = vmul.f32 %v452_v17, %v383_v61  ;;  %v693_v38 = vld [vmem:[#allocation16 + $0x8] sm:$0xff]  ;;  %v707_v19 = vld [vmem:[#allocation16 + $0x78] sm:$0xff] }
 0x226   :  { %v8305_v47 = vpack.c.bf16 %v695_v46, %v693_v38  ;;  %v705_v17 = vld [vmem:[#allocation16 + $0x68] sm:$0xff] }
 0x227   :  { %v463_v26 = vcombine.low %v459_v20, %v460_v22  ;;  %v8317_v20 = vpack.c.bf16 %v707_v19, %v705_v17  ;;  %v704_v22 = vld [vmem:[#allocation16 + $0x60] sm:$0xff] }
 0x228   :  { %8306 = vmatprep.subr.bf16.mxu0 %v8305_v47  ;;  %v716_v47 = vld [vmem:[#allocation16 + $0xc0] sm:$0xff] }
 0x229   :  { %v470_v28 = vrot.slane %v463_v26, %v10026_v4  ;;  %8308 = vmatpush1.bf16.msra.mxu0 %v8307_v51  ;;  %v709_v26 = vld [vmem:[#allocation16 + $0x88] sm:$0xff]  ;;  %v723_v51 = vld [vmem:[#allocation16 + $0xf8] sm:$0xff]  ;;  %v8331_v53 = vpack.c.bf16 %v718_v49, %v716_v47 }
 0x22a   :  { %8310 = vmatprep.subr.bf16.mxu0 %v8309_v55  ;;  %v8333_v54 = vpack.c.bf16 %v723_v51, %v721_v50  ;;  %v720_v55 = vld [vmem:[#allocation16 + $0xe0] sm:$0xff] }
 0x22b   :  { %v477_v31 = vrot.slane %v470_v28, %v10026_v4  ;;  %v711_v28 = vld [vmem:[#allocation16 + $0x98] sm:$0xff]  ;;  %v8335_v62 = vpack.c.bf16 %v722_v58, %v720_v55 }
 0x22d   :  { %v479_v32 = vsub.f32 %v305_v29, %v477_v31  ;;  %8312 = vmatpush1.bf16.msra.mxu0 %v8311_v3  ;;  %v8321_v29 = vpack.c.bf16 %v711_v28, %v709_v26  ;;  %v708_v31 = vld [vmem:[#allocation16 + $0x80] sm:$0xff] }
 0x22e   :  { %8314 = vmatprep.subr.bf16.mxu0 %v8313_v8 }
 0x22f   :  { %v490_v34 = vrot.slane %v479_v32, %v10034_v14  ;;  %v486_v37 = vrot.slane %v479_v32, %v10031_v13  ;;  %v710_v32 = vld [vmem:[#allocation16 + $0x90] sm:$0xff] }
 0x231   :  { %v494_v40 = vadd.f32 %v490_v34, %v481_v23  ;;  %v493_v41 = vadd.f32 %v486_v37, %v480_v25  ;;  %8316 = vmatpush1.bf16.msra.mxu0 %v8315_v16  ;;  %v706_v23 = vld [vmem:[#allocation16 + $0x70] sm:$0xff]  ;;  %v8323_v34 = vpack.c.bf16 %v710_v32, %v708_v31  ;;  %v713_v37 = vld [vmem:[#allocation16 + $0xa8] sm:$0xff] }
 0x232   :  { %v8319_v25 = vpack.c.bf16 %v706_v23, %v704_v22  ;;  %8318 = vmatprep.subr.bf16.mxu0 %v8317_v20 }
 0x233   :  { %v7869_v43 = vmul.f32 -1.442695, %v494_v40  ;;  %v715_v40 = vld [vmem:[#allocation16 + $0xb8] sm:$0xff] }
 0x235   :  { %9034 = vpow2.f32 %v7869_v43  ;;  %8320 = vmatpush1.bf16.msra.mxu0 %v8319_v25  ;;  %v8325_v43 = vpack.c.bf16 %v715_v40, %v713_v37 }
 0x236   :  { %8322 = vmatprep.subr.bf16.mxu0 %v8321_v29 }
 0x239   :  { %8324 = vmatpush1.bf16.msra.mxu0 %v8323_v34 }
 0x23a   :  { %8326 = vmatprep.subr.bf16.mxu0 %v8325_v43 }
 0x23f   :  { %v9035_v44 = vpop.eup %9034 }
 0x240   :  { %v498_v35 = vadd.f32 1.0, %v9035_v44  ;;  %v714_v44 = vld [vmem:[#allocation16 + $0xb0] sm:$0xff] }
 0x242   :  { %9036 = vrcp.f32 %v498_v35  ;;  %v717_v35 = vld [vmem:[#allocation16 + $0xc8] sm:$0xff] }
 0x24c   :  { %v9037_v2 = vpop.eup %9036 }
 0x24d   :  { %v10042_v61 = vmul.f32 %v9037_v2, %v493_v41  ;;  %v712_v41 = vld [vmem:[#allocation16 + $0xa0] sm:$0xff]  ;;  %v719_v2 = vld [vmem:[#allocation16 + $0xd8] sm:$0xff] }
 0x24e   :  { %v8327_v38 = vpack.c.bf16 %v714_v44, %v712_v41  ;;  %v8329_v46 = vpack.c.bf16 %v719_v2, %v717_v35 }
 0x24f   :  { %571 = vmatmul.mubr.f32.vlgmr.msra.gmra.mrb[0].mxu1 %v10042_v61 }
 0x250   :  { %1013 = vmatprep.mubr.f32.mxu1 %v11615_v0  ;;  %8328 = vmatpush1.bf16.msra.mxu0 %v8327_v38 }
 0x251   :  { %8330 = vmatprep.subr.bf16.mxu0 %v8329_v46 }
 0x254   :  { %8332 = vmatpush1.bf16.msra.mxu0 %v8331_v53 }
 0x255   :  { %8334 = vmatprep.subr.bf16.mxu0 %v8333_v54 }
 0x258   :  { %8336 = vmatpush1.bf16.msra.mxu0 %v8335_v62 }
 0x322   :  { %v572_v3 = vpop.f32.mrb[0].mxu1 }
 0x323   :  { %v577_v6 = vrot.slane %v572_v3, 4  ;;  %v591_v7 = vmul.f32 %v572_v3, %v572_v3  ;;  %v574_v8 = vpop.f32.mrb[1].mxu1 }
 0x324   :  { %v583_v10 = vrot.slane %v574_v8, 4  ;;  %v592_v11 = vmul.f32 %v574_v8, %v574_v8 }
 0x325   :  { %v578_v16 = vadd.f32 %v577_v6, %v572_v3  ;;  %v593_v17 = vrot.slane %v591_v7, 4 }
 0x326   :  { %v584_v19 = vadd.f32 %v583_v10, %v574_v8  ;;  %v599_v20 = vrot.slane %v592_v11, 4 }
 0x327   :  { %v579_v22 = vrot.slane %v578_v16, 2  ;;  %v594_v23 = vadd.f32 %v593_v17, %v591_v7 }
 0x328   :  { %v585_v25 = vrot.slane %v584_v19, 2  ;;  %v600_v26 = vadd.f32 %v599_v20, %v592_v11  ;;  %v503_v20 = vld [vmem:[#allocation13 + $0x2] sm:$0x3] }
 0x329   :  { %v580_v28 = vadd.f32 %v579_v22, %v578_v16  ;;  %v595_v29 = vrot.slane %v594_v23, 2 }
 0x32a   :  { %v586_v31 = vadd.f32 %v585_v25, %v584_v19  ;;  %v601_v32 = vrot.slane %v600_v26, 2 }
 0x32b   :  { %v581_v34 = vrot.slane %v580_v28, 1  ;;  %v596_v37 = vadd.f32 %v595_v29, %v594_v23 }
 0x32c   :  { %v587_v40 = vrot.slane %v586_v31, 1  ;;  %v602_v41 = vadd.f32 %v601_v32, %v600_v26 }
 0x32d   :  { %v582_v43 = vadd.f32 %v581_v34, %v580_v28  ;;  %v597_v44 = vrot.slane %v596_v37, 1 }
 0x32e   :  { %v588_v35 = vadd.f32 %v587_v40, %v586_v31  ;;  %v603_v2 = vrot.slane %v602_v41, 1  ;;  %v505_v40 = vld [vmem:[#allocation14 + $0x2] sm:$0x3] }
 0x32f   :  { %v589_v38 = vmul.f32 0.125, %v582_v43  ;;  %v598_v46 = vadd.f32 %v597_v44, %v596_v37 }
 0x330   :  { %v590_v47 = vmul.f32 0.125, %v588_v35  ;;  %v604_v49 = vadd.f32 %v603_v2, %v602_v41 }
 0x331   :  { %v605_v50 = vmul.f32 0.125, %v598_v46  ;;  %v607_v51 = vmul.f32 %v589_v38, %v589_v38 }
 0x332   :  { %v606_v53 = vmul.f32 0.125, %v604_v49  ;;  %v608_v54 = vmul.f32 %v590_v47, %v590_v47 }
 0x333   :  { %v609_v55 = vsub.f32 %v605_v50, %v607_v51 }
 0x334   :  { %v610_v58 = vsub.f32 %v606_v53, %v608_v54  ;;  %v914_v53 = vld [vmem:[#allocation16 + $0x108] sm:$0xff]  ;;  %v916_v54 = vld [vmem:[#allocation16 + $0x118] sm:$0xff] }
 0x335   :  { %v611_v62 = vmax.f32 %v609_v55, 0.0  ;;  %v8337_v55 = vpack.c.bf16 %v916_v54, %v914_v53 }
 0x336   :  { %v612_v6 = vmax.f32 %v610_v58, 0.0  ;;  %v913_v58 = vld [vmem:[#allocation16 + $0x100] sm:$0xff] }
 0x337   :  { %v613_v7 = vadd.f32 1e-05, %v611_v62  ;;  %v915_v62 = vld [vmem:[#allocation16 + $0x110] sm:$0xff]  ;;  %8338 = vmatprep.subr.bf16.mxu1 %v8337_v55  ;;  %v937_v55 = vld [vmem:[#allocation16 + $0x1c0] sm:$0xff] }
 0x338   :  { %v614_v10 = vadd.f32 1e-05, %v612_v6  ;;  %v8339_v6 = vpack.c.bf16 %v915_v62, %v913_v58  ;;  %v939_v58 = vld [vmem:[#allocation16 + $0x1d0] sm:$0xff]  ;;  %v942_v62 = vld [vmem:[#allocation16 + $0x1e8] sm:$0xff] }
 0x339   :  { %9038 = vrsqrt.f32 %v613_v7  ;;  %v918_v7 = vld [vmem:[#allocation16 + $0x128] sm:$0xff] }
 0x33a   :  { %9040 = vrsqrt.f32 %v614_v10  ;;  %8340 = vmatpush1.bf16.msra.mxu1 %v8339_v6  ;;  %v920_v10 = vld [vmem:[#allocation16 + $0x138] sm:$0xff] }
 0x33b   :  { %v944_v6 = vld [vmem:[#allocation16 + $0x1f8] sm:$0xff] }
 0x343   :  { %v9039_v11 = vpop.eup %9038 }
 0x344   :  { %v9041_v16 = vpop.eup %9040 }
 0x345   :  { %v619_v17 = vcombine.low %v9039_v11, %v9041_v16  ;;  %v8341_v11 = vpack.c.bf16 %v920_v10, %v918_v7  ;;  %v917_v16 = vld [vmem:[#allocation16 + $0x120] sm:$0xff]  ;;  %v8363_v7 = vpack.c.bf16 %v939_v58, %v937_v55  ;;  %v8365_v10 = vpack.c.bf16 %v944_v6, %v942_v62 }
 0x347   :  { %v626_v19 = vrot.slane %v619_v17, %v10026_v4  ;;  %v919_v17 = vld [vmem:[#allocation16 + $0x130] sm:$0xff]  ;;  %8342 = vmatprep.subr.bf16.mxu1 %v8341_v11  ;;  %v941_v11 = vld [vmem:[#allocation16 + $0x1e0] sm:$0xff] }
 0x349   :  { %v633_v22 = vrot.slane %v626_v19, %v10026_v4  ;;  %v8343_v19 = vpack.c.bf16 %v919_v17, %v917_v16  ;;  %v943_v16 = vld [vmem:[#allocation16 + $0x1f0] sm:$0xff] }
 0x34a   :  { %v8367_v17 = vpack.c.bf16 %v943_v16, %v941_v11 }
 0x34b   :  { %v635_v23 = vmul.f32 %v633_v22, %v503_v20  ;;  %8344 = vmatpush1.bf16.msra.mxu1 %v8343_v19  ;;  %v924_v20 = vld [vmem:[#allocation16 + $0x158] sm:$0xff] }
 0x34d   :  { %v640_v25 = vrot.slane %v635_v23, %v10031_v13  ;;  %v644_v26 = vrot.slane %v635_v23, %v10034_v14  ;;  %v921_v23 = vld [vmem:[#allocation16 + $0x140] sm:$0xff] }
 0x34f   :  { %v647_v28 = vmul.f32 %v640_v25, %v589_v38  ;;  %v648_v29 = vmul.f32 %v644_v26, %v590_v47  ;;  %v668_v31 = vmul.f32 %v640_v25, %v572_v3  ;;  %v669_v32 = vmul.f32 %v644_v26, %v574_v8  ;;  %v923_v25 = vld [vmem:[#allocation16 + $0x150] sm:$0xff] }
 0x350   :  { %v8347_v26 = vpack.c.bf16 %v923_v25, %v921_v23 }
 0x351   :  { %v651_v34 = vcombine.low %v647_v28, %v648_v29  ;;  %v926_v28 = vld [vmem:[#allocation16 + $0x168] sm:$0xff]  ;;  %v928_v29 = vld [vmem:[#allocation16 + $0x178] sm:$0xff] }
 0x353   :  { %v658_v37 = vrot.slane %v651_v34, %v10026_v4  ;;  %v927_v34 = vld [vmem:[#allocation16 + $0x170] sm:$0xff] }
 0x355   :  { %v665_v41 = vrot.slane %v658_v37, %v10026_v4 }
 0x357   :  { %v667_v43 = vsub.f32 %v505_v40, %v665_v41  ;;  %v930_v40 = vld [vmem:[#allocation16 + $0x188] sm:$0xff]  ;;  %v932_v41 = vld [vmem:[#allocation16 + $0x198] sm:$0xff] }
 0x359   :  { %v674_v44 = vrot.slane %v667_v43, %v10031_v13  ;;  %v678_v35 = vrot.slane %v667_v43, %v10034_v14  ;;  %v8353_v43 = vpack.c.bf16 %v932_v41, %v930_v40 }
 0x35b   :  { %v682_v2 = vadd.f32 %v678_v35, %v669_v32  ;;  %v681_v46 = vadd.f32 %v674_v44, %v668_v31  ;;  %v8349_v31 = vpack.c.bf16 %v928_v29, %v926_v28  ;;  %v925_v32 = vld [vmem:[#allocation16 + $0x160] sm:$0xff]  ;;  %v931_v35 = vld [vmem:[#allocation16 + $0x190] sm:$0xff] }
 0x35c   :  { %v8351_v37 = vpack.c.bf16 %v927_v34, %v925_v32  ;;  %v929_v44 = vld [vmem:[#allocation16 + $0x180] sm:$0xff] }
 0x35d   :  { %v7870_v49 = vmul.f32 -1.442695, %v682_v2  ;;  %v8355_v2 = vpack.c.bf16 %v931_v35, %v929_v44 }
 0x35f   :  { %9042 = vpow2.f32 %v7870_v49  ;;  %v936_v49 = vld [vmem:[#allocation16 + $0x1b8] sm:$0xff] }
 0x369   :  { %v9043_v50 = vpop.eup %9042 }
 0x36a   :  { %v686_v38 = vadd.f32 1.0, %v9043_v50  ;;  %v933_v50 = vld [vmem:[#allocation16 + $0x1a0] sm:$0xff] }
 0x36c   :  { %9044 = vrcp.f32 %v686_v38 }
 0x376   :  { %v9045_v3 = vpop.eup %9044 }
 0x377   :  { %v689_v8 = vmul.f32 %v9045_v3, %v681_v46  ;;  %v934_v46 = vld [vmem:[#allocation16 + $0x1a8] sm:$0xff]  ;;  %v935_v3 = vld [vmem:[#allocation16 + $0x1b0] sm:$0xff] }
 0x378   :  { %v8357_v38 = vpack.c.bf16 %v936_v49, %v934_v46  ;;  %v8359_v53 = vpack.c.bf16 %v935_v3, %v933_v50 }
 0x379   :  { %v690_v47 = vadd.f32 %v689_v8, %v10042_v61  ;;  %v922_v61 = vld [vmem:[#allocation16 + $0x148] sm:$0xff] }
 0x37a   :  { %v8345_v22 = vpack.c.bf16 %v924_v20, %v922_v61  ;;  %v938_v8 = vld [vmem:[#allocation16 + $0x1c8] sm:$0xff] }
 0x37b   :  { %v10055_v51 = vmul.f32 0.70710677, %v690_v47  ;;  %v940_v47 = vld [vmem:[#allocation16 + $0x1d8] sm:$0xff] }
 0x37c   :  { %8346 = vmatprep.subr.bf16.mxu1 %v8345_v22  ;;  %v8361_v54 = vpack.c.bf16 %v940_v47, %v938_v8 }
 0x37d   :  { %791 = vmatmul.mubr.f32.vlgmr.msra.gmra.mrb[2].mxu0 %v10055_v51  ;;  %8348 = vmatpush1.bf16.msra.mxu1 %v8347_v26 }
 0x37e   :  { %8350 = vmatprep.subr.bf16.mxu1 %v8349_v31  ;;  %8188 = vmatprep.mubr.msk.f32.mxu0 %vm9637_vm4, %v11615_v0 }
 0x381   :  { %8352 = vmatpush1.bf16.msra.mxu1 %v8351_v37 }
 0x382   :  { %8354 = vmatprep.subr.bf16.mxu1 %v8353_v43 }
 0x385   :  { %8356 = vmatpush1.bf16.msra.mxu1 %v8355_v2 }
 0x386   :  { %8358 = vmatprep.subr.bf16.mxu1 %v8357_v38 }
 0x389   :  { %8360 = vmatpush1.bf16.msra.mxu1 %v8359_v53 }
 0x38a   :  { %8362 = vmatprep.subr.bf16.mxu1 %v8361_v54 }
 0x38d   :  { %8364 = vmatpush1.bf16.msra.mxu1 %v8363_v7 }
 0x38e   :  { %8366 = vmatprep.subr.bf16.mxu1 %v8365_v10 }
 0x391   :  { %8368 = vmatpush1.bf16.msra.mxu1 %v8367_v17 }
 0x450   :  { %v792_v19 = vpop.f32.mrb[2].mxu0 }
 0x451   :  { %v797_v61 = vrot.slane %v792_v19, 4  ;;  %v811_v20 = vmul.f32 %v792_v19, %v792_v19  ;;  %v794_v22 = vpop.f32.mrb[3].mxu0 }
 0x452   :  { %v803_v23 = vrot.slane %v794_v22, 4  ;;  %v812_v25 = vmul.f32 %v794_v22, %v794_v22 }
 0x453   :  { %v798_v26 = vadd.f32 %v797_v61, %v792_v19  ;;  %v813_v28 = vrot.slane %v811_v20, 4 }
 0x454   :  { %v804_v29 = vadd.f32 %v803_v23, %v794_v22  ;;  %v819_v31 = vrot.slane %v812_v25, 4 }
 0x455   :  { %v799_v32 = vrot.slane %v798_v26, 2  ;;  %v814_v34 = vadd.f32 %v813_v28, %v811_v20 }
 0x456   :  { %v805_v37 = vrot.slane %v804_v29, 2  ;;  %v820_v40 = vadd.f32 %v819_v31, %v812_v25  ;;  %v724_v31 = vld [vmem:[#allocation17] sm:$0x3] }
 0x457   :  { %v800_v41 = vadd.f32 %v799_v32, %v798_v26  ;;  %v815_v43 = vrot.slane %v814_v34, 2 }
 0x458   :  { %v806_v44 = vadd.f32 %v805_v37, %v804_v29  ;;  %v821_v35 = vrot.slane %v820_v40, 2 }
 0x459   :  { %v801_v2 = vrot.slane %v800_v41, 1  ;;  %v816_v46 = vadd.f32 %v815_v43, %v814_v34 }
 0x45a   :  { %v807_v49 = vrot.slane %v806_v44, 1  ;;  %v822_v50 = vadd.f32 %v821_v35, %v820_v40 }
 0x45b   :  { %v802_v38 = vadd.f32 %v801_v2, %v800_v41  ;;  %v817_v3 = vrot.slane %v816_v46, 1 }
 0x45c   :  { %v808_v8 = vadd.f32 %v807_v49, %v806_v44  ;;  %v823_v47 = vrot.slane %v822_v50, 1  ;;  %v725_v49 = vld [vmem:[#allocation19] sm:$0x3] }
 0x45d   :  { %v809_v53 = vmul.f32 0.125, %v802_v38  ;;  %v818_v54 = vadd.f32 %v817_v3, %v816_v46 }
 0x45e   :  { %v810_v55 = vmul.f32 0.125, %v808_v8  ;;  %v824_v58 = vadd.f32 %v823_v47, %v822_v50 }
 0x45f   :  { %v825_v62 = vmul.f32 0.125, %v818_v54  ;;  %v827_v6 = vmul.f32 %v809_v53, %v809_v53 }
 0x460   :  { %v826_v7 = vmul.f32 0.125, %v824_v58  ;;  %v828_v10 = vmul.f32 %v810_v55, %v810_v55 }
 0x461   :  { %v829_v11 = vsub.f32 %v825_v62, %v827_v6 }
 0x462   :  { %v830_v16 = vsub.f32 %v826_v7, %v828_v10  ;;  %v1135_v7 = vld [vmem:[%s11598_s11] sm:$0xff]  ;;  %v1136_v10 = vld [vmem:[%s11598_s11 + $0x8] sm:$0xff] }
 0x463   :  { %v831_v17 = vmax.f32 %v829_v11, 0.0  ;;  %v1137_v11 = vld [vmem:[%s11598_s11 + $0x10] sm:$0xff] }
 0x464   :  { %v832_v61 = vmax.f32 %v830_v16, 0.0  ;;  %v11610_v16 = vmov 0.0|0.0  }
 0x465   :  { %v833_v20 = vadd.f32 1e-05, %v831_v17  ;;  %8369 = vmatprep.subr.bf16.mxu0 %v11610_v16  ;;  %v1138_v17 = vld [vmem:[%s11598_s11 + $0x18] sm:$0xff] }
 0x466   :  { %v834_v23 = vadd.f32 1e-05, %v832_v61  ;;  %v8373_v61 = vpack.c.bf16 %v1138_v17, %v1137_v11 }
 0x467   :  { %9046 = vrsqrt.f32 %v833_v20  ;;  %v1139_v20 = vld [vmem:[%s11598_s11 + $0x20] sm:$0xff] }
 0x468   :  { %9048 = vrsqrt.f32 %v834_v23  ;;  %v1140_v23 = vld [vmem:[%s11598_s11 + $0x28] sm:$0xff] }
 0x471   :  { %v9047_v25 = vpop.eup %9046 }
 0x472   :  { %v9049_v26 = vpop.eup %9048 }
 0x473   :  { %v839_v28 = vcombine.low %v9047_v25, %v9049_v26  ;;  %v8376_v25 = vpack.c.bf16 %v1140_v23, %v1139_v20  ;;  %v1141_v26 = vld [vmem:[%s11598_s11 + $0x30] sm:$0xff] }
 0x475   :  { %v846_v29 = vrot.slane %v839_v28, %v10026_v4  ;;  %v1142_v28 = vld [vmem:[%s11598_s11 + $0x38] sm:$0xff] }
 0x477   :  { %v853_v32 = vrot.slane %v846_v29, %v10026_v4  ;;  %v8379_v29 = vpack.c.bf16 %v1142_v28, %v1141_v26 }
 0x479   :  { %v855_v34 = vmul.f32 %v853_v32, %v724_v31 }
 0x47b   :  { %v860_v37 = vrot.slane %v855_v34, %v10031_v13  ;;  %v864_v40 = vrot.slane %v855_v34, %v10034_v14 }
 0x47d   :  { %v867_v41 = vmul.f32 %v860_v37, %v809_v53  ;;  %v868_v43 = vmul.f32 %v864_v40, %v810_v55  ;;  %v888_v44 = vmul.f32 %v860_v37, %v792_v19  ;;  %v889_v35 = vmul.f32 %v864_v40, %v794_v22 }
 0x47f   :  { %v871_v2 = vcombine.low %v867_v41, %v868_v43 }
 0x481   :  { %v878_v46 = vrot.slane %v871_v2, %v10026_v4 }
 0x483   :  { %v885_v50 = vrot.slane %v878_v46, %v10026_v4 }
 0x485   :  { %v887_v38 = vsub.f32 %v725_v49, %v885_v50 }
 0x487   :  { %v894_v3 = vrot.slane %v887_v38, %v10031_v13  ;;  %v898_v8 = vrot.slane %v887_v38, %v10034_v14 }
 0x489   :  { %v902_v47 = vadd.f32 %v898_v8, %v889_v35  ;;  %v901_v54 = vadd.f32 %v894_v3, %v888_v44 }
 0x48b   :  { %v7871_v58 = vmul.f32 -1.442695, %v902_v47 }
 0x48d   :  { %9050 = vpow2.f32 %v7871_v58 }
 0x497   :  { %v9051_v62 = vpop.eup %9050 }
 0x498   :  { %v906_v53 = vadd.f32 1.0, %v9051_v62 }
 0x49a   :  { %9052 = vrcp.f32 %v906_v53 }
 0x4a4   :  { %v9053_v19 = vpop.eup %9052 }
 0x4a5   :  { %v909_v22 = vmul.f32 %v9053_v19, %v901_v54 }
 0x4a7   :  { %v910_v55 = vadd.f32 %v909_v22, %v10055_v51  ;;  %v8370_v51 = vpack.c.bf16 %v1136_v10, %v1135_v7 }
 0x4a9   :  { %v10067_v6 = vmul.f32 0.70710677, %v910_v55  ;;  %8371 = vmatpush3.bf16.msra.mxu0 %v8370_v51 }
 0x4aa   :  { %8372 = vmatprep.subr.bf16.mxu0 %v11610_v16 }
 0x4ab   :  { %1014 = vmatmul.mubr.f32.vlgmr.msra.gmra.mrb[2].mxu1 %v10067_v6 }
 0x4ac   :  { %2444 = vmatprep.mubr.f32.mxu1 %v11615_v0 }
 0x4ad   :  { %8374 = vmatpush3.bf16.msra.mxu0 %v8373_v61 }
 0x4ae   :  { %8375 = vmatprep.subr.bf16.mxu0 %v11610_v16 }
 0x4b1   :  { %8377 = vmatpush3.bf16.msra.mxu0 %v8376_v25 }
 0x4b2   :  { %8378 = vmatprep.subr.bf16.mxu0 %v11610_v16 }
 0x4b5   :  { %8380 = vmatpush3.bf16.msra.mxu0 %v8379_v29 }
 0x4b6   :  { %8383 = vmatprep.subr.msk.bf16.mxu0 %vm9955_vm2, %v9959_v5 }
 0x57e   :  { %v1015_v31 = vpop.f32.mrb[2].mxu1 }
 0x57f   :  { %v1020_v32 = vrot.slane %v1015_v31, 4  ;;  %v1034_v34 = vmul.f32 %v1015_v31, %v1015_v31  ;;  %v1017_v37 = vpop.f32.mrb[3].mxu1 }
 0x580   :  { %v1026_v40 = vrot.slane %v1017_v37, 4  ;;  %v1035_v41 = vmul.f32 %v1017_v37, %v1017_v37 }
 0x581   :  { %v1021_v43 = vadd.f32 %v1020_v32, %v1015_v31  ;;  %v1036_v44 = vrot.slane %v1034_v34, 4 }
 0x582   :  { %v1027_v35 = vadd.f32 %v1026_v40, %v1017_v37  ;;  %v1042_v2 = vrot.slane %v1035_v41, 4 }
 0x583   :  { %v1022_v46 = vrot.slane %v1021_v43, 2  ;;  %v1037_v49 = vadd.f32 %v1036_v44, %v1034_v34 }
 0x584   :  { %v1028_v50 = vrot.slane %v1027_v35, 2  ;;  %v1043_v38 = vadd.f32 %v1042_v2, %v1035_v41 }
 0x585   :  { %v1023_v3 = vadd.f32 %v1022_v46, %v1021_v43  ;;  %v1038_v8 = vrot.slane %v1037_v49, 2  ;;  %v946_v46 = vld [vmem:[#allocation17 + $0x2] sm:$0x3] }
 0x586   :  { %v1029_v47 = vadd.f32 %v1028_v50, %v1027_v35  ;;  %v1044_v54 = vrot.slane %v1043_v38, 2 }
 0x587   :  { %v1024_v58 = vrot.slane %v1023_v3, 1  ;;  %v1039_v62 = vadd.f32 %v1038_v8, %v1037_v49 }
 0x588   :  { %v1030_v53 = vrot.slane %v1029_v47, 1  ;;  %v1045_v19 = vadd.f32 %v1044_v54, %v1043_v38 }
 0x589   :  { %v1025_v22 = vadd.f32 %v1024_v58, %v1023_v3  ;;  %v1040_v55 = vrot.slane %v1039_v62, 1 }
 0x58a   :  { %v1031_v7 = vadd.f32 %v1030_v53, %v1029_v47  ;;  %v1046_v10 = vrot.slane %v1045_v19, 1 }
 0x58b   :  { %v1032_v11 = vmul.f32 0.125, %v1025_v22  ;;  %v1041_v51 = vadd.f32 %v1040_v55, %v1039_v62 }
 0x58c   :  { %v1033_v17 = vmul.f32 0.125, %v1031_v7  ;;  %v1047_v61 = vadd.f32 %v1046_v10, %v1045_v19  ;;  %v948_v19 = vld [vmem:[#allocation19 + $0x2] sm:$0x3] }
 0x58d   :  { %v1048_v20 = vmul.f32 0.125, %v1041_v51  ;;  %v1050_v23 = vmul.f32 %v1032_v11, %v1032_v11 }
 0x58e   :  { %v1049_v25 = vmul.f32 0.125, %v1047_v61  ;;  %v1051_v26 = vmul.f32 %v1033_v17, %v1033_v17 }
 0x58f   :  { %v1052_v28 = vsub.f32 %v1048_v20, %v1050_v23 }
 0x590   :  { %v1053_v29 = vsub.f32 %v1049_v25, %v1051_v26 }
 0x591   :  { %v1054_v32 = vmax.f32 %v1052_v28, 0.0 }
 0x592   :  { %v1055_v34 = vmax.f32 %v1053_v29, 0.0 }
 0x593   :  { %v1056_v40 = vadd.f32 1e-05, %v1054_v32 }
 0x594   :  { %v1057_v41 = vadd.f32 1e-05, %v1055_v34 }
 0x595   :  { %9054 = vrsqrt.f32 %v1056_v40 }
 0x596   :  { %9056 = vrsqrt.f32 %v1057_v41 }
 0x59f   :  { %v9055_v43 = vpop.eup %9054 }
 0x5a0   :  { %v9057_v44 = vpop.eup %9056 }
 0x5a1   :  { %v1062_v35 = vcombine.low %v9055_v43, %v9057_v44 }
 0x5a3   :  { %v1069_v2 = vrot.slane %v1062_v35, %v10026_v4 }
 0x5a5   :  { %v1076_v49 = vrot.slane %v1069_v2, %v10026_v4 }
 0x5a7   :  { %v1078_v50 = vmul.f32 %v1076_v49, %v946_v46 }
 0x5a9   :  { %v1083_v38 = vrot.slane %v1078_v50, %v10031_v13  ;;  %v1087_v3 = vrot.slane %v1078_v50, %v10034_v14 }
 0x5ab   :  { %v1090_v8 = vmul.f32 %v1083_v38, %v1032_v11  ;;  %v1091_v47 = vmul.f32 %v1087_v3, %v1033_v17  ;;  %v1112_v54 = vmul.f32 %v1087_v3, %v1017_v37  ;;  %v1111_v58 = vmul.f32 %v1083_v38, %v1015_v31 }
 0x5ad   :  { %v1094_v62 = vcombine.low %v1090_v8, %v1091_v47 }
 0x5af   :  { %v1101_v53 = vrot.slane %v1094_v62, %v10026_v4 }
 0x5b1   :  { %v1108_v22 = vrot.slane %v1101_v53, %v10026_v4 }
 0x5b3   :  { %v1110_v55 = vsub.f32 %v948_v19, %v1108_v22  ;;  %v1219_v22 = vld [vmem:[#allocation20] sm:$0x1] }
 0x5b5   :  { %v1121_v7 = vrot.slane %v1110_v55, %v10034_v14  ;;  %v1117_v10 = vrot.slane %v1110_v55, %v10031_v13 }
 0x5b7   :  { %v1125_v51 = vadd.f32 %v1121_v7, %v1112_v54  ;;  %v1124_v61 = vadd.f32 %v1117_v10, %v1111_v58  ;;  %v1220_v10 = vld [vmem:[#allocation22] sm:$0x1] }
 0x5b9   :  { %v7872_v20 = vmul.f32 -1.442695, %v1125_v51 }
 0x5bb   :  { %9058 = vpow2.f32 %v7872_v20 }
 0x5c5   :  { %v9059_v23 = vpop.eup %9058 }
 0x5c6   :  { %v1129_v11 = vadd.f32 1.0, %v9059_v23 }
 0x5c8   :  { %9060 = vrcp.f32 %v1129_v11 }
 0x5d2   :  { %v9061_v37 = vpop.eup %9060 }
 0x5d3   :  { %v1132_v31 = vmul.f32 %v9061_v37, %v1124_v61  ;;  %v286_v37 = vld [vmem:[#allocation5] sm:$0xff] }
 0x5d5   :  { %v1133_v17 = vadd.f32 %v1132_v31, %v10067_v6 }
 0x5d7   :  { %v1134_v25 = vmul.f32 0.70710677, %v1133_v17 }
 0x5d9   :  { %1144 = vrot.lane.b32.xlu0 %v1134_v25, %s9638_s19 }
 0x64b   :  { %v1145_v26 = vpop.permute.xlu0 %1144 }
 0x64c   :  { %8189 = vmatmul.mubr.msk.f32.vlgmr.msra.gmra.mrb[4].mxu0 %vm11646_vm5, %v1145_v26  ;;  %v10126_v26 = vsub.s32 4, %v10023_v63 }
 0x64d   :  { %8386 = vmatpush1.bf16.msk.msra.mxu0 %vm9955_vm2, %v9961_v9  ;;  %2033 = vmatprep.mubr.f32.mxu0 %v11615_v0  ;;  %v11713_v9 = vmov 0.0  }
 0x64e   :  { %8388 = vmatprep.subr.bf16.mxu0 %v9974_v15  ;;  %11707 = vst [vmem:[#allocation61_spill] sm:$0xff] %v10126_v26 }
 0x71f   :  { %v1215_v28 = vpop.f32.mrb[4].mxu0 }
 0x720   :  { %v1221_v29 = vsel %vm306_vm3, %v1215_v28, 0.0  ;;  %v1229_v6 = vmul.f32 %v1215_v28, %v1215_v28  ;;  %v8190_v32 = vpop.f32.mrb[5].mxu0 }
 0x721   :  { %v1222_v34 = vrot.slane %v1221_v29, 4 }
 0x722   :  { %v1230_v40 = vsel %vm306_vm3, %v1229_v6, 0.0 }
 0x723   :  { %v1223_v41 = vadd.f32 %v1222_v34, %v1221_v29  ;;  %v1231_v43 = vrot.slane %v1230_v40, 4  ;;  %v10135_v34 = vsub.s32 2, %v10023_v63 }
 0x725   :  { %v1224_v44 = vrot.slane %v1223_v41, 2  ;;  %v1232_v35 = vadd.f32 %v1231_v43, %v1230_v40  ;;  %11708 = vst [vmem:[#allocation62_spill] sm:$0xff] %v10135_v34  ;;  %v10142_v43 = vsub.s32 3, %v10023_v63 }
 0x727   :  { %v1225_v2 = vadd.f32 %v1224_v44, %v1223_v41  ;;  %v1233_v46 = vrot.slane %v1232_v35, 2  ;;  %11709 = vst [vmem:[#allocation63_spill] sm:$0xff] %v10142_v43 }
 0x729   :  { %v1226_v49 = vrot.slane %v1225_v2, 1  ;;  %v1234_v50 = vadd.f32 %v1233_v46, %v1232_v35  ;;  %v10147_v35 = vsub.s32 5, %v10023_v63  ;;  %v10152_v46 = vsub.s32 6, %v10023_v63 }
 0x72b   :  { %v1227_v38 = vadd.f32 %v1226_v49, %v1225_v2  ;;  %v1235_v3 = vrot.slane %v1234_v50, 1  ;;  %11710 = vst [vmem:[#allocation64_spill] sm:$0xff] %v10147_v35  ;;  %11711 = vst [vmem:[#allocation65_spill] sm:$0xff] %v10152_v46 }
 0x72d   :  { %v1228_v8 = vmul.f32 0.125, %v1227_v38  ;;  %v1236_v47 = vadd.f32 %v1235_v3, %v1234_v50  ;;  %v10157_v50 = vsub.s32 7, %v10023_v63 }
 0x72f   :  { %v1237_v54 = vmul.f32 0.125, %v1236_v47  ;;  %v1238_v58 = vmul.f32 %v1228_v8, %v1228_v8  ;;  %11712 = vst [vmem:[#allocation66_spill] sm:$0xff] %v10157_v50 }
 0x731   :  { %v1239_v62 = vsub.f32 %v1237_v54, %v1238_v58 }
 0x733   :  { %v1240_v53 = vmax.f32 %v1239_v62, 0.0 }
 0x735   :  { %v1241_v19 = vadd.f32 1e-05, %v1240_v53 }
 0x737   :  { %9062 = vrsqrt.f32 %v1241_v19 }
 0x741   :  { %v9063_v55 = vpop.eup %9062 }
 0x742   :  { %v1243_v7 = vmul.f32 %v9063_v55, %v1219_v22 }
 0x744   :  { %v1244_v51 = vmul.f32 %v1243_v7, %v1228_v8  ;;  %v1250_v61 = vrot.slane %v1243_v7, %v10031_v13 }
 0x746   :  { %v1245_v20 = vsub.f32 %v1220_v10, %v1244_v51  ;;  %v1252_v23 = vmul.f32 %v1250_v61, %v1215_v28 }
 0x748   :  { %v1257_v11 = vrot.slane %v1245_v20, %v10031_v13 }
 0x74a   :  { %v1259_v31 = vadd.f32 %v1257_v11, %v1252_v23 }
 0x74c   :  { %v1260_v17 = vmul.f32 %v1259_v31, %v286_v37 }
 0x74e   :  { %v1261_v25 = vsel %vm306_vm3, %v1260_v17, -inf }
 0x74f   :  { %1262 = vmax.xlane.f32.xlu0 %v1261_v25 }
 0x7dc   :  { %v1263_v29 = vpop.xlane.xlu0 %1262 }
 0x7dd   :  { %v10128_v6 = vsub.f32 %v1260_v17, %v1263_v29 }
 0x7df   :  { %v1362_v32 = vrot.slane %v10128_v6, %v10126_v26  ;;  %v1318_v28 = vrot.slane %v10128_v6, %v10031_v13  ;;  %v1340_v40 = vrot.slane %v10128_v6, %v10135_v34  ;;  %v1329_v41 = vrot.slane %v10128_v6, %v10034_v14 }
 0x7e0   :  { %v1351_v44 = vrot.slane %v10128_v6, %v10142_v43  ;;  %v1373_v2 = vrot.slane %v10128_v6, %v10147_v35  ;;  %v1384_v49 = vrot.slane %v10128_v6, %v10152_v46  ;;  %v10161_v38 = vrot.slane %v10128_v6, %v10157_v50 }
 0x7e1   :  { %1368 = vbcast.lane.b32.xlu0 %v1362_v32, 264  ;;  %1320 = vbcast.lane.b32.xlu1 %v1318_v28, 256  ;;  %v1273_v3 = vrot.slane %v10128_v6, %v10026_v4  ;;  %v1266_v31 = vcombine.high %v10128_v6, %v10128_v6 }
 0x7e3   :  { %v1289_v8 = vrot.slane %v1273_v3, %v10026_v4  ;;  %v1281_v54 = vcombine.high %v1273_v3, %v1273_v3 }
 0x7e5   :  { %1609 = vbcast.lane.b32.xlu0 %v1318_v28, 256  ;;  %1324 = vbcast.lane.b32.xlu1 %v1318_v28, 264  ;;  %v10169_v47 = vrot.slane %v1289_v8, %v10031_v13  ;;  %v1303_v19 = vrot.slane %v1281_v54, %v10026_v4  ;;  %v1311_v23 = vcombine.high %v1289_v8, %v1289_v8 }
 0x7e7   :  { %v10183_v7 = vrot.slane %v1303_v19, %v10031_v13  ;;  %v10200_v17 = vrot.slane %v1311_v23, %v10031_v13 }
 0x7e9   :  { %1631 = vbcast.lane.b32.xlu0 %v1340_v40, 256  ;;  %1331 = vbcast.lane.b32.xlu1 %v1329_v41, 256 }
 0x7ed   :  { %1642 = vbcast.lane.b32.xlu0 %v1351_v44, 256  ;;  %1335 = vbcast.lane.b32.xlu1 %v1329_v41, 264 }
 0x7f1   :  { %1653 = vbcast.lane.b32.xlu0 %v1362_v32, 256  ;;  %1342 = vbcast.lane.b32.xlu1 %v1340_v40, 256 }
 0x7f5   :  { %1664 = vbcast.lane.b32.xlu0 %v1373_v2, 256  ;;  %1346 = vbcast.lane.b32.xlu1 %v1340_v40, 264 }
 0x7f9   :  { %1675 = vbcast.lane.b32.xlu0 %v1384_v49, 256  ;;  %1353 = vbcast.lane.b32.xlu1 %v1351_v44, 256 }
 0x7fd   :  { %1357 = vbcast.lane.b32.xlu1 %v1351_v44, 264 }
 0x801   :  { %1364 = vbcast.lane.b32.xlu1 %v1362_v32, 256 }
 0x805   :  { %1375 = vbcast.lane.b32.xlu1 %v1373_v2, 256 }
 0x809   :  { %1379 = vbcast.lane.b32.xlu1 %v1373_v2, 264 }
 0x80d   :  { %1386 = vbcast.lane.b32.xlu1 %v1384_v49, 256 }
 0x811   :  { %1390 = vbcast.lane.b32.xlu1 %v1384_v49, 264 }
 0x815   :  { %1397 = vbcast.lane.b32.xlu1 %v10161_v38, 256 }
 0x819   :  { %1401 = vbcast.lane.b32.xlu1 %v10161_v38, 264 }
 0x81d   :  { %1613 = vbcast.lane.b32.xlu1 %v1318_v28, 264  ;;  %v1280_v28 = vrot.slane %v1266_v31, %v10026_v4 }
 0x821   :  { %1620 = vbcast.lane.b32.xlu1 %v1329_v41, 256 }
 0x825   :  { %1624 = vbcast.lane.b32.xlu1 %v1329_v41, 264  ;;  %v1313_v41 = vcombine.high %v1303_v19, %v1303_v19 }
 0x827   :  { %v10217_v3 = vrot.slane %v1313_v41, %v10031_v13 }
 0x829   :  { %1635 = vbcast.lane.b32.xlu1 %v1340_v40, 264 }
 0x82d   :  { %1646 = vbcast.lane.b32.xlu1 %v1351_v44, 264 }
 0x831   :  { %1657 = vbcast.lane.b32.xlu1 %v1362_v32, 264 }
 0x835   :  { %1668 = vbcast.lane.b32.xlu1 %v1373_v2, 264 }
 0x839   :  { %1679 = vbcast.lane.b32.xlu1 %v1384_v49, 264  ;;  %v1296_v49 = vrot.slane %v1280_v28, %v10026_v4 }
 0x83b   :  { %v10226_v19 = vrot.slane %v1296_v49, %v10031_v13 }
 0x853   :  { %v1321_v58 = vpop.permute.xlu1 %1320 }
 0x854   :  { %vm1443_vm6 = vcmp.ge.f32.partialorder %v10169_v47, %v1321_v58  ;;  %v1369_v58 = vpop.permute.xlu0 %1368 }
 0x855   :  { %v10173_v62 = vsel %vm1443_vm6, 1.0, %v11615_v0  ;;  %vm1452_vm14 = vcmp.ge.f32.partialorder %v10226_v19, %v1369_v58  ;;  %v1312_v58 = vcombine.high %v1296_v49, %v1296_v49 }
 0x856   :  { %v1491_v53 = vsel %vm306_vm3, %v10173_v62, 0.0  ;;  %v1540_v59 = vmul.f32 %v10173_v62, %v10169_v47 }
 0x857   :  { %v1325_v22 = vpop.permute.xlu1 %1324  ;;  %1492 = vadd.xlane.f32.xlu0 %v1491_v53 }
 0x858   :  { %vm1444_vm7 = vcmp.ge.f32.partialorder %v10169_v47, %v1325_v22 }
 0x859   :  { %v10180_v55 = vsel %vm1444_vm7, 1.0, %v11615_v0 }
 0x85a   :  { %v1495_v51 = vsel %vm1494_vm8, %v10180_v55, 0.0 }
 0x85b   :  { %v1332_v10 = vpop.permute.xlu1 %1331 }
 0x85c   :  { %vm1445_vm9 = vcmp.ge.f32.partialorder %v10183_v7, %v1332_v10  ;;  %v1282_v10 = vcombine.high %v1280_v28, %v1280_v28 }
 0x85d   :  { %1496 = vadd.xlane.f32.xlu1 %v1495_v51  ;;  %v10189_v61 = vsel %vm1445_vm9, 1.0, %v11615_v0 }
 0x85e   :  { %v1498_v20 = vsel %vm306_vm3, %v10189_v61, 0.0 }
 0x85f   :  { %v1336_v11 = vpop.permute.xlu1 %1335  ;;  %1499 = vadd.xlane.f32.xlu0 %v1498_v20 }
 0x860   :  { %vm1446_vm10 = vcmp.ge.f32.partialorder %v10183_v7, %v1336_v11  ;;  %v1310_v11 = vrot.slane %v1282_v10, %v10026_v4 }
 0x861   :  { %v10195_v37 = vsel %vm1446_vm10, 1.0, %v11615_v0 }
 0x862   :  { %v1501_v25 = vsel %vm1494_vm8, %v10195_v37, 0.0  ;;  %v10244_v28 = vrot.slane %v1310_v11, %v10031_v13 }
 0x863   :  { %v1343_v29 = vpop.permute.xlu1 %1342  ;;  %1502 = vadd.xlane.f32.xlu0 %v1501_v25  ;;  %v10239_v25 = vsel %vm1452_vm14, 1.0, %v11615_v0 }
 0x864   :  { %vm1447_vm11 = vcmp.ge.f32.partialorder %v10200_v17, %v1343_v29 }
 0x865   :  { %v10206_v32 = vsel %vm1447_vm11, 1.0, %v11615_v0 }
 0x866   :  { %v1504_v40 = vsel %vm306_vm3, %v10206_v32, 0.0 }
 0x867   :  { %v1347_v44 = vpop.permute.xlu1 %1346  ;;  %1505 = vadd.xlane.f32.xlu0 %v1504_v40  ;;  %v1519_v40 = vsel %vm1494_vm8, %v10239_v25, 0.0 }
 0x868   :  { %vm1448_vm12 = vcmp.ge.f32.partialorder %v10200_v17, %v1347_v44 }
 0x869   :  { %v10213_v2 = vsel %vm1448_vm12, 1.0, %v11615_v0 }
 0x86a   :  { %v1507_v8 = vsel %vm1494_vm8, %v10213_v2, 0.0 }
 0x86b   :  { %v1354_v54 = vpop.permute.xlu1 %1353  ;;  %1508 = vadd.xlane.f32.xlu1 %v1507_v8 }
 0x86c   :  { %vm1449_vm13 = vcmp.ge.f32.partialorder %v10217_v3, %v1354_v54 }
 0x86d   :  { %v10223_v53 = vsel %vm1449_vm13, 1.0, %v11615_v0 }
 0x86e   :  { %v1510_v22 = vsel %vm306_vm3, %v10223_v53, 0.0 }
 0x86f   :  { %v1358_v51 = vpop.permute.xlu1 %1357  ;;  %1511 = vadd.xlane.f32.xlu0 %v1510_v22 }
 0x870   :  { %vm1450_vm15 = vcmp.ge.f32.partialorder %v10217_v3, %v1358_v51  ;;  %v1430_v51 = vrot.slane %v1312_v58, %v10031_v13 }
 0x871   :  { %v10233_v20 = vsel %vm1450_vm15, 1.0, %v11615_v0 }
 0x872   :  { %v1513_v23 = vsel %vm1494_vm8, %v10233_v20, 0.0 }
 0x873   :  { %v1365_v31 = vpop.permute.xlu1 %1364  ;;  %1514 = vadd.xlane.f32.xlu1 %v1513_v23 }
 0x874   :  { %vm1451_vm0 = vcmp.ge.f32.partialorder %v10226_v19, %v1365_v31 }
 0x875   :  { %v7882_v29 = vsel %vm1451_vm0, 1.0, %v11615_v0 }
 0x876   :  { %v1516_v41 = vsel %vm306_vm3, %v7882_v29, 0.0 }
 0x877   :  { %v1376_v44 = vpop.permute.xlu1 %1375  ;;  %1520 = vadd.xlane.f32.xlu1 %v1519_v40  ;;  %1517 = vadd.xlane.f32.xlu0 %v1516_v41 }
 0x878   :  { %vm1453_vm1 = vcmp.ge.f32.partialorder %v10244_v28, %v1376_v44  ;;  %v1314_v44 = vcombine.high %v1310_v11, %v1310_v11 }
 0x879   :  { %v7884_v8 = vsel %vm1453_vm1, 1.0, %v11615_v0 }
 0x87a   :  { %v1522_v54 = vsel %vm306_vm3, %v7884_v8, 0.0 }
 0x87b   :  { %v1380_v22 = vpop.permute.xlu1 %1379  ;;  %1523 = vadd.xlane.f32.xlu0 %v1522_v54  ;;  %v1434_v54 = vrot.slane %v1314_v44, %v10031_v13  ;;  %v1556_v44 = vsel %vm306_vm3, %v1540_v59, 0.0 }
 0x87c   :  { %vm1454_vm6 = vcmp.ge.f32.partialorder %v10244_v28, %v1380_v22 }
 0x87d   :  { %v7885_v10 = vsel %vm1454_vm6, 1.0, %v11615_v0 }
 0x87e   :  { %v1525_v23 = vsel %vm1494_vm8, %v7885_v10, 0.0 }
 0x87f   :  { %v1387_v31 = vpop.permute.xlu1 %1386  ;;  %1526 = vadd.xlane.f32.xlu1 %v1525_v23 }
 0x880   :  { %vm1455_vm7 = vcmp.ge.f32.partialorder %v1430_v51, %v1387_v31 }
 0x881   :  { %v7886_v40 = vsel %vm1455_vm7, 1.0, %v11615_v0 }
 0x882   :  { %v1528_v41 = vsel %vm306_vm3, %v7886_v40, 0.0 }
 0x883   :  { %v1391_v16 = vpop.permute.xlu1 %1390  ;;  %1529 = vadd.xlane.f32.xlu0 %v1528_v41 }
 0x884   :  { %vm1456_vm9 = vcmp.ge.f32.partialorder %v1430_v51, %v1391_v16 }
 0x885   :  { %v7887_v49 = vsel %vm1456_vm9, 1.0, %v11615_v0 }
 0x886   :  { %v1531_v22 = vsel %vm1494_vm8, %v7887_v49, 0.0 }
 0x887   :  { %v1398_v58 = vpop.permute.xlu1 %1397  ;;  %1532 = vadd.xlane.f32.xlu1 %v1531_v22  ;;  %v1541_v22 = vmul.f32 %v10180_v55, %v10169_v47  ;;  %v1545_v55 = vmul.f32 %v10213_v2, %v10200_v17  ;;  %v1549_v2 = vmul.f32 %v10239_v25, %v10226_v19 }
 0x888   :  { %vm1457_vm10 = vcmp.ge.f32.partialorder %v1434_v54, %v1398_v58  ;;  %v1542_v58 = vmul.f32 %v10189_v61, %v10183_v7  ;;  %v1546_v61 = vmul.f32 %v10223_v53, %v10217_v3  ;;  %v1550_v53 = vmul.f32 %v7884_v8, %v10244_v28 }
 0x889   :  { %v7888_v23 = vsel %vm1457_vm10, 1.0, %v11615_v0  ;;  %v1559_v50 = vsel %vm1494_vm8, %v1541_v22, 0.0 }
 0x88a   :  { %v1534_v31 = vsel %vm306_vm3, %v7888_v23, 0.0  ;;  %v1562_v62 = vsel %vm306_vm3, %v1542_v58, 0.0  ;;  %v1586_v22 = vsel %vm306_vm3, %v1550_v53, 0.0 }
 0x88b   :  { %v1402_v11 = vpop.permute.xlu1 %1401  ;;  %1535 = vadd.xlane.f32.xlu0 %v1534_v31  ;;  %v1543_v31 = vmul.f32 %v10195_v37, %v10183_v7  ;;  %v1574_v7 = vsel %vm306_vm3, %v1546_v61, 0.0  ;;  %v1548_v37 = vmul.f32 %v7882_v29, %v10226_v19  ;;  %v9639_v19 = vmov 0  }
 0x88c   :  { %vm1458_vm11 = vcmp.ge.f32.partialorder %v1434_v54, %v1402_v11  ;;  %v1544_v11 = vmul.f32 %v10206_v32, %v10200_v17  ;;  %8868 = vset.pattern.permute.xlu0 %v9639_v19  ;;  %8874 = vset.pattern.permute.xlu1 %v9639_v19 }
 0x88d   :  { %v7889_v16 = vsel %vm1458_vm11, 1.0, %v11615_v0  ;;  %v1565_v59 = vsel %vm1494_vm8, %v1543_v31, 0.0  ;;  %v1580_v17 = vsel %vm306_vm3, %v1548_v37, 0.0  ;;  %v1554_v31 = vmul.f32 %v7888_v23, %v1434_v54 }
 0x88e   :  { %v1537_v41 = vsel %vm1494_vm8, %v7889_v16, 0.0  ;;  %v1568_v47 = vsel %vm306_vm3, %v1544_v11, 0.0  ;;  %v1555_v11 = vmul.f32 %v7889_v16, %v1434_v54 }
 0x88f   :  { %1538 = vadd.xlane.f32.xlu1 %v1537_v41  ;;  %1557 = vadd.xlane.f32.xlu0 %v1556_v44  ;;  %v1571_v41 = vsel %vm1494_vm8, %v1545_v55, 0.0  ;;  %v1583_v44 = vsel %vm1494_vm8, %v1549_v2, 0.0  ;;  %v1598_v8 = vsel %vm306_vm3, %v1554_v31, 0.0 }
 0x893   :  { %1560 = vadd.xlane.f32.xlu1 %v1559_v50  ;;  %1563 = vadd.xlane.f32.xlu0 %v1562_v62  ;;  %v1547_v50 = vmul.f32 %v10233_v20, %v10217_v3  ;;  %v1551_v3 = vmul.f32 %v7885_v10, %v10244_v28  ;;  %v1552_v20 = vmul.f32 %v7886_v40, %v1430_v51  ;;  %v1601_v28 = vsel %vm1494_vm8, %v1555_v11, 0.0  ;;  %v1610_v10 = vpop.permute.xlu0 %1609 }
 0x894   :  { %v1553_v62 = vmul.f32 %v7887_v49, %v1430_v51  ;;  %v1614_v51 = vpop.permute.xlu1 %1613 }
 0x895   :  { %v1577_v32 = vsel %vm1494_vm8, %v1547_v50, 0.0  ;;  %v1589_v29 = vsel %vm1494_vm8, %v1551_v3, 0.0  ;;  %v1592_v58 = vsel %vm306_vm3, %v1552_v20, 0.0 }
 0x896   :  { %v1595_v25 = vsel %vm1494_vm8, %v1553_v62, 0.0 }
 0x897   :  { %1566 = vadd.xlane.f32.xlu1 %v1565_v59  ;;  %1569 = vadd.xlane.f32.xlu0 %v1568_v47  ;;  %v1632_v40 = vpop.permute.xlu0 %1631 }
 0x898   :  { %v1621_v49 = vpop.permute.xlu1 %1620 }
 0x89b   :  { %1572 = vadd.xlane.f32.xlu1 %v1571_v41  ;;  %1575 = vadd.xlane.f32.xlu0 %v1574_v7  ;;  %v1643_v23 = vpop.permute.xlu0 %1642 }
 0x89c   :  { %v1625_v59 = vpop.permute.xlu1 %1624 }
 0x89f   :  { %1578 = vadd.xlane.f32.xlu1 %v1577_v32  ;;  %1581 = vadd.xlane.f32.xlu0 %v1580_v17  ;;  %v10304_v47 = vpop.permute.xlu0 %1653 }
 0x8a0   :  { %v1636_v55 = vpop.permute.xlu1 %1635 }
 0x8a3   :  { %1584 = vadd.xlane.f32.xlu1 %v1583_v44  ;;  %1587 = vadd.xlane.f32.xlu0 %v1586_v22  ;;  %v10306_v61 = vpop.permute.xlu0 %1664 }
 0x8a4   :  { %v1647_v54 = vpop.permute.xlu1 %1646 }
 0x8a7   :  { %1590 = vadd.xlane.f32.xlu1 %v1589_v29  ;;  %1593 = vadd.xlane.f32.xlu0 %v1592_v58  ;;  %v10308_v16 = vpop.permute.xlu0 %1675 }
 0x8a8   :  { %v10310_v41 = vpop.permute.xlu1 %1657 }
 0x8ab   :  { %1596 = vadd.xlane.f32.xlu1 %v1595_v25  ;;  %1599 = vadd.xlane.f32.xlu0 %v1598_v8 }
 0x8ac   :  { %v10312_v37 = vpop.permute.xlu1 %1668 }
 0x8af   :  { %1602 = vadd.xlane.f32.xlu1 %v1601_v28 }
 0x8b0   :  { %v10314_v32 = vpop.permute.xlu1 %1679 }
 0x8c0   :  { %1690 = vbcast.lane.b32.xlu1 %v10161_v38, 264 }
 0x8c1   :  { %1686 = vbcast.lane.b32.xlu0 %v10161_v38, 256 }
 0x8e4   :  { %v1493_v7 = vpop.xlane.xlu0 %1492 }
 0x8e5   :  { %v1708_v28 = vmul.f32 %v1610_v10, %v1493_v7 }
 0x8ea   :  { %v1497_v17 = vpop.xlane.xlu1 %1496 }
 0x8eb   :  { %v1709_v35 = vmul.f32 %v1614_v51, %v1497_v17 }
 0x8ec   :  { %v1500_v50 = vpop.xlane.xlu0 %1499 }
 0x8ed   :  { %v1710_v34 = vmul.f32 %v1621_v49, %v1500_v50 }
 0x8f0   :  { %v1503_v38 = vpop.xlane.xlu0 %1502 }
 0x8f1   :  { %v1711_v15 = vmul.f32 %v1625_v59, %v1503_v38 }
 0x8f4   :  { %v1506_v2 = vpop.xlane.xlu0 %1505 }
 0x8f5   :  { %v1712_v10 = vmul.f32 %v1632_v40, %v1506_v2 }
 0x8f8   :  { %v1509_v53 = vpop.xlane.xlu1 %1508 }
 0x8f9   :  { %v1713_v51 = vmul.f32 %v1636_v55, %v1509_v53 }
 0x8fc   :  { %v1512_v44 = vpop.xlane.xlu0 %1511 }
 0x8fd   :  { %v1714_v50 = vmul.f32 %v1643_v23, %v1512_v44 }
 0x900   :  { %v1515_v22 = vpop.xlane.xlu1 %1514 }
 0x904   :  { %v1518_v3 = vpop.xlane.xlu0 %1517  ;;  %v1521_v20 = vpop.xlane.xlu1 %1520 }
 0x905   :  { %v1716_v40 = vmul.f32 %v10304_v47, %v1518_v3 }
 0x908   :  { %v1524_v29 = vpop.xlane.xlu0 %1523 }
 0x909   :  { %v1718_v44 = vmul.f32 %v10306_v61, %v1524_v29 }
 0x90c   :  { %v10316_v58 = vpop.xlane.xlu1 %1526 }
 0x90d   :  { %v1719_v47 = vmul.f32 %v10312_v37, %v10316_v58 }
 0x910   :  { %v10318_v62 = vpop.xlane.xlu0 %1529 }
 0x914   :  { %v10320_v31 = vpop.xlane.xlu1 %1532 }
 0x918   :  { %v10322_v19 = vpop.xlane.xlu0 %1535 }
 0x91c   :  { %v10324_v25 = vpop.xlane.xlu1 %1538  ;;  %v1558_v8 = vpop.xlane.xlu0 %1557 }
 0x91d   :  { %v7890_v11 = vadd.f32 -1.0, %v1558_v8 }
 0x91f   :  { %vm1740_vm12 = vcmp.gt.f32.partialorder %v1708_v28, %v7890_v11 }
 0x920   :  { %v1561_v0 = vpop.xlane.xlu1 %1560  ;;  %v1564_v46 = vpop.xlane.xlu0 %1563  ;;  %v7906_v1 = vsel %vm1740_vm12, 1.0, %v11713_v9 }
 0x921   :  { %v7891_v26 = vadd.f32 -1.0, %v1561_v0  ;;  %v7892_v43 = vadd.f32 -1.0, %v1564_v46 }
 0x923   :  { %vm1741_vm13 = vcmp.gt.f32.partialorder %v1709_v35, %v7891_v26  ;;  %vm1742_vm14 = vcmp.gt.f32.partialorder %v1710_v34, %v7892_v43 }
 0x924   :  { %v7907_v5 = vsel %vm1741_vm13, 1.0, %v11713_v9  ;;  %v1567_v14 = vpop.xlane.xlu1 %1566  ;;  %v1570_v13 = vpop.xlane.xlu0 %1569  ;;  %v7908_v0 = vsel %vm1742_vm14, 1.0, %v11713_v9 }
 0x925   :  { %v7893_v4 = vadd.f32 -1.0, %v1567_v14  ;;  %v7894_v60 = vadd.f32 -1.0, %v1570_v13  ;;  %v8869_v8 = vpack.i.bf16 %v7907_v5, %v7906_v1  ;;  %v1715_v14 = vmul.f32 %v1647_v54, %v1515_v22 }
 0x927   :  { %vm1743_vm15 = vcmp.gt.f32.partialorder %v1711_v15, %v7893_v4  ;;  %8870 = vperm.xlu0 %8868, %v8869_v8   ;;  %vm1744_vm0 = vcmp.gt.f32.partialorder %v1712_v10, %v7894_v60  ;;  %v1717_v60 = vmul.f32 %v10310_v41, %v1521_v20  ;;  %v1720_v10 = vmul.f32 %v10308_v16, %v10318_v62 }
 0x928   :  { %v7909_v46 = vsel %vm1743_vm15, 1.0, %v11713_v9  ;;  %v1573_v26 = vpop.xlane.xlu1 %1572  ;;  %v1576_v35 = vpop.xlane.xlu0 %1575  ;;  %v7910_v1 = vsel %vm1744_vm0, 1.0, %v11713_v9 }
 0x929   :  { %v7895_v49 = vadd.f32 -1.0, %v1573_v26  ;;  %v7896_v59 = vadd.f32 -1.0, %v1576_v35  ;;  %v8875_v7 = vpack.i.bf16 %v7909_v46, %v7908_v0 }
 0x92b   :  { %vm1745_vm1 = vcmp.gt.f32.partialorder %v1713_v51, %v7895_v49  ;;  %8876 = vperm.xlu1 %8874, %v8875_v7   ;;  %vm1746_vm6 = vcmp.gt.f32.partialorder %v1714_v50, %v7896_v59  ;;  %v1721_v51 = vmul.f32 %v10314_v32, %v10320_v31 }
 0x92c   :  { %v7911_v5 = vsel %vm1745_vm1, 1.0, %v11713_v9  ;;  %v1579_v15 = vpop.xlane.xlu1 %1578  ;;  %v1582_v4 = vpop.xlane.xlu0 %1581  ;;  %v7912_v23 = vsel %vm1746_vm6, 1.0, %v11713_v9  ;;  %vm1863_vm1 = vcmask 130112   ;;  %vm1928_vm6 = vcmask 1041409  }
 0x92d   :  { %v7897_v13 = vadd.f32 -1.0, %v1579_v15  ;;  %v7898_v34 = vadd.f32 -1.0, %v1582_v4  ;;  %v8880_v43 = vpack.i.bf16 %v7911_v5, %v7910_v1  ;;  %v11714_v4 = vlaneseq }
 0x92f   :  { %vm1747_vm7 = vcmp.gt.f32.partialorder %v1715_v14, %v7897_v13  ;;  %8881 = vperm.xlu1 %8874, %v8880_v43   ;;  %vm1748_vm9 = vcmp.gt.f32.partialorder %v1716_v40, %v7898_v34  ;;  %v1853_v13 = vand.u32 127, %v11714_v4 }
 0x930   :  { %v7913_v55 = vsel %vm1747_vm7, 1.0, %v11713_v9  ;;  %v1585_v54 = vpop.xlane.xlu1 %1584  ;;  %v1588_v38 = vpop.xlane.xlu0 %1587  ;;  %v7914_v22 = vsel %vm1748_vm9, 1.0, %v11713_v9  ;;  %vm1930_vm7 = vcmask 1042434   ;;  %vm1932_vm9 = vcmask 1043459  }
 0x931   :  { %v7899_v17 = vadd.f32 -1.0, %v1585_v54  ;;  %v7900_v2 = vadd.f32 -1.0, %v1588_v38  ;;  %v8885_v53 = vpack.i.bf16 %v7913_v55, %v7912_v23  ;;  %v1858_v43 = vadd.s32 4294967288, %v1853_v13 }
 0x932   :  { %v10355_v54 = vsub.s32 %v1853_v13, %v10023_v63 }
 0x933   :  { %vm1749_vm10 = vcmp.gt.f32.partialorder %v1717_v60, %v7899_v17  ;;  %8886 = vperm.xlu0 %8868, %v8885_v53   ;;  %vm1750_vm11 = vcmp.gt.f32.partialorder %v1718_v44, %v7900_v2 }
 0x934   :  { %v7915_v41 = vsel %vm1749_vm10, 1.0, %v11713_v9  ;;  %v1591_v3 = vpop.xlane.xlu1 %1590  ;;  %v1594_v20 = vpop.xlane.xlu0 %1593  ;;  %v7916_v61 = vsel %vm1750_vm11, 1.0, %v11713_v9  ;;  %vm1934_vm10 = vcmask 1044484   ;;  %vm1936_vm11 = vcmask 1045509  }
 0x935   :  { %v7901_v11 = vadd.f32 -1.0, %v1591_v3  ;;  %v7902_v28 = vadd.f32 -1.0, %v1594_v20  ;;  %v8890_v8 = vpack.i.bf16 %v7915_v41, %v7914_v22 }
 0x937   :  { %vm1751_vm12 = vcmp.gt.f32.partialorder %v1719_v47, %v7901_v11  ;;  %8891 = vperm.xlu1 %8874, %v8890_v8   ;;  %vm1752_vm13 = vcmp.gt.f32.partialorder %v1720_v10, %v7902_v28 }
 0x938   :  { %v7917_v29 = vsel %vm1751_vm12, 1.0, %v11713_v9  ;;  %v1597_v37 = vpop.xlane.xlu1 %1596  ;;  %v1600_v58 = vpop.xlane.xlu0 %1599  ;;  %v7918_v26 = vsel %vm1752_vm13, 1.0, %v11713_v9  ;;  %vm1938_vm12 = vcmask 1046534   ;;  %vm1940_vm13 = vcmask 1047559  }
 0x939   :  { %v7903_v0 = vadd.f32 -1.0, %v1597_v37  ;;  %v8895_v46 = vpack.i.bf16 %v7917_v29, %v7916_v61  ;;  %v7904_v7 = vadd.f32 -1.0, %v1600_v58 }
 0x93b   :  { %vm1753_vm14 = vcmp.gt.f32.partialorder %v1721_v51, %v7903_v0  ;;  %8896 = vperm.xlu0 %8868, %v8895_v46  }
 0x93c   :  { %v7919_v16 = vsel %vm1753_vm14, 1.0, %v11713_v9  ;;  %v1603_v62 = vpop.xlane.xlu1 %1602  ;;  %v1687_v35 = vpop.permute.xlu0 %1686 }
 0x93d   :  { %v1722_v49 = vmul.f32 %v1687_v35, %v10322_v19  ;;  %v8900_v59 = vpack.i.bf16 %v7919_v16, %v7918_v26  ;;  %v7905_v14 = vadd.f32 -1.0, %v1603_v62 }
 0x93f   :  { %8901 = vperm.xlu1 %8874, %v8900_v59   ;;  %vm1754_vm15 = vcmp.gt.f32.partialorder %v1722_v49, %v7904_v7 }
 0x940   :  { %v1691_v50 = vpop.permute.xlu1 %1690  ;;  %v7920_v31 = vsel %vm1754_vm15, 1.0, %v11713_v9 }
 0x941   :  { %v1723_v32 = vmul.f32 %v1691_v50, %v10324_v25  ;;  %v10358_v25 = vsub.s32 %v1858_v43, %v10023_v63 }
 0x943   :  { %vm1755_vm0 = vcmp.gt.f32.partialorder %v1723_v32, %v7905_v14 }
 0x944   :  { %v7921_v1 = vsel %vm1755_vm0, 1.0, %v11713_v9 }
 0x945   :  { %v8905_v5 = vpack.i.bf16 %v7921_v1, %v7920_v31 }
 0x947   :  { %8906 = vperm.xlu0 %8868, %v8905_v5  }
 0x9a6   :  { %v8871_v34 = vpop.permute.xlu0 %8870 }
 0x9a7   :  { %v8873_v53 = vunpack.i.h.bf16 %v8871_v34  ;;  %v8872_v44 = vunpack.i.l.bf16 %v8871_v34 }
 0x9a9   :  { %v1862_v58 = vrot.slane %v8873_v53, %v10358_v25  ;;  %v1857_v51 = vrot.slane %v8872_v44, %v10355_v54 }
 0x9aa   :  { %v8877_v15 = vpop.permute.xlu1 %8876 }
 0x9ab   :  { %v8879_v23 = vunpack.i.h.bf16 %v8877_v15  ;;  %v8878_v55 = vunpack.i.l.bf16 %v8877_v15  ;;  %v1864_v14 = vsel %vm1863_vm1, %v1862_v58, %v1857_v51 }
 0x9ad   :  { %v1872_v11 = vrot.slane %v8879_v23, %v10358_v25  ;;  %v1868_v28 = vrot.slane %v8878_v55, %v10355_v54 }
 0x9ae   :  { %v8882_v19 = vpop.permute.xlu1 %8881 }
 0x9af   :  { %v8884_v38 = vunpack.i.h.bf16 %v8882_v19  ;;  %v8883_v17 = vunpack.i.l.bf16 %v8882_v19  ;;  %v1873_v62 = vsel %vm1863_vm1, %v1872_v11, %v1868_v28 }
 0x9b0   :  { %v1929_v31 = vsel %vm1928_vm6, %v1873_v62, %v1864_v14 }
 0x9b1   :  { %v1881_v61 = vrot.slane %v8884_v38, %v10358_v25  ;;  %v1877_v63 = vrot.slane %v8883_v17, %v10355_v54 }
 0x9b2   :  { %v8887_v40 = vpop.permute.xlu0 %8886 }
 0x9b3   :  { %v8889_v47 = vunpack.i.h.bf16 %v8887_v40  ;;  %v8888_v22 = vunpack.i.l.bf16 %v8887_v40  ;;  %v1882_v59 = vsel %vm1863_vm1, %v1881_v61, %v1877_v63 }
 0x9b4   :  { %v1931_v15 = vsel %vm1930_vm7, %v1882_v59, %v1929_v31 }
 0x9b5   :  { %v1890_v0 = vrot.slane %v8889_v47, %v10358_v25  ;;  %v1886_v46 = vrot.slane %v8888_v22, %v10355_v54 }
 0x9b6   :  { %v8892_v60 = vpop.permute.xlu1 %8891 }
 0x9b7   :  { %v8894_v41 = vunpack.i.h.bf16 %v8892_v60  ;;  %v8893_v3 = vunpack.i.l.bf16 %v8892_v60  ;;  %v1891_v32 = vsel %vm1863_vm1, %v1890_v0, %v1886_v46 }
 0x9b8   :  { %v1933_v43 = vsel %vm1932_vm9, %v1891_v32, %v1931_v15 }
 0x9b9   :  { %v1899_v26 = vrot.slane %v8894_v41, %v10358_v25  ;;  %v1895_v16 = vrot.slane %v8893_v3, %v10355_v54 }
 0x9ba   :  { %v8897_v2 = vpop.permute.xlu0 %8896 }
 0x9bb   :  { %v8899_v8 = vunpack.i.h.bf16 %v8897_v2  ;;  %v8898_v10 = vunpack.i.l.bf16 %v8897_v2  ;;  %v1900_v1 = vsel %vm1863_vm1, %v1899_v26, %v1895_v16 }
 0x9bc   :  { %v1935_v23 = vsel %vm1934_vm10, %v1900_v1, %v1933_v43 }
 0x9bd   :  { %v1908_v35 = vrot.slane %v8899_v8, %v10358_v25  ;;  %v1904_v49 = vrot.slane %v8898_v10, %v10355_v54 }
 0x9be   :  { %v8902_v20 = vpop.permute.xlu1 %8901 }
 0x9bf   :  { %v8904_v29 = vunpack.i.h.bf16 %v8902_v20  ;;  %v8903_v37 = vunpack.i.l.bf16 %v8902_v20  ;;  %v1909_v34 = vsel %vm1863_vm1, %v1908_v35, %v1904_v49 }
 0x9c0   :  { %v1937_v55 = vsel %vm1936_vm11, %v1909_v34, %v1935_v23 }
 0x9c1   :  { %v1917_v7 = vrot.slane %v8904_v29, %v10358_v25  ;;  %v1913_v50 = vrot.slane %v8903_v37, %v10355_v54 }
 0x9c3   :  { %v1918_v19 = vsel %vm1863_vm1, %v1917_v7, %v1913_v50 }
 0x9c4   :  { %v1939_v17 = vsel %vm1938_vm12, %v1918_v19, %v1937_v55 }
 0x9c6   :  { %v8907_v5 = vpop.permute.xlu0 %8906 }
 0x9c7   :  { %v8909_v4 = vunpack.i.h.bf16 %v8907_v5  ;;  %v8908_v13 = vunpack.i.l.bf16 %v8907_v5 }
 0x9c9   :  { %v1926_v40 = vrot.slane %v8909_v4, %v10358_v25  ;;  %v1922_v60 = vrot.slane %v8908_v13, %v10355_v54 }
 0x9cb   :  { %v1927_v38 = vsel %vm1863_vm1, %v1926_v40, %v1922_v60 }
 0x9cc   :  { %v1941_v2 = vsel %vm1940_vm13, %v1927_v38, %v1939_v17 }
 0x9cd   :  { %v1943_v53 = vsel %vm306_vm3, %v1941_v2, 0.0  ;;  %v1946_v44 = vmul.f32 %v1941_v2, %v10128_v6 }
 0x9ce   :  { %1944 = vadd.xlane.f32.xlu1 %v1943_v53 }
 0x9cf   :  { %v1947_v47 = vsel %vm306_vm3, %v1946_v44, 0.0 }
 0x9d0   :  { %1948 = vadd.xlane.f32.xlu0 %v1947_v47 }
 0xa5b   :  { %v1945_v22 = vpop.xlane.xlu1 %1944 }
 0xa5c   :  { %9064 = vrcp.f32 %v1945_v22 }
 0xa5d   :  { %v1949_v41 = vpop.xlane.xlu0 %1948 }
 0xa5e   :  { %v7922_v3 = vadd.f32 -1.0, %v1949_v41 }
 0xa66   :  { %v9065_v20 = vpop.eup %9064 }
 0xa67   :  { %v1952_v11 = vmul.f32 %v9065_v20, %v7922_v3 }
 0xa69   :  { %v1953_v28 = vsub.f32 %v10128_v6, %v1952_v11  ;;  %v11715_v6 = vld [vmem:[#allocation57_spill] sm:$0xff] }
 0xa6b   :  { %v10395_v8 = vmax.f32 %v1953_v28, 0.0 }
 0xa6d   :  { %v1961_v10 = vmul.f32 %v10395_v8, %v9969_v12 }
 0xa6f   :  { %7925 = vmatmul.mubr.msk.f32.vlgmr.msra.gmra.mrb[6].mxu0 %vm306_vm3, %v1961_v10  ;;  %v11716_v10 = vld [vmem:[#allocation58_spill] sm:$0xff] }
 0xa70   :  { %8390 = vmatpush1.bf16.msra.mxu0 %v9976_v18  ;;  %2221 = vmatprep.mubr.f32.mxu0 %v11713_v9 }
 0xa71   :  { %8392 = vmatprep.subr.bf16.mxu0 %v9980_v21 }
 0xa74   :  { %8394 = vmatpush1.bf16.msra.mxu0 %v9982_v24 }
 0xa75   :  { %8396 = vmatprep.subr.bf16.mxu0 %v9986_v27 }
 0xa78   :  { %8398 = vmatpush1.bf16.msra.mxu0 %v9988_v30 }
 0xa79   :  { %8400 = vmatprep.subr.bf16.mxu0 %v9992_v33 }
 0xa7c   :  { %8402 = vmatpush1.bf16.msra.mxu0 %v9994_v36 }
 0xa7d   :  { %8404 = vmatprep.subr.bf16.mxu0 %v9998_v39 }
 0xa80   :  { %8406 = vmatpush1.bf16.msra.mxu0 %v10000_v42 }
 0xa81   :  { %8408 = vmatprep.subr.bf16.mxu0 %v10004_v45 }
 0xa84   :  { %8410 = vmatpush1.bf16.msra.mxu0 %v10006_v48 }
 0xa85   :  { %8412 = vmatprep.subr.bf16.mxu0 %v10009_v52 }
 0xa88   :  { %8414 = vmatpush1.bf16.msra.mxu0 %v10012_v56 }
 0xa89   :  { %8416 = vmatprep.subr.bf16.mxu0 %v10015_v57 }
 0xa8c   :  { %8418 = vmatpush1.bf16.msra.mxu0 %v11715_v6 }
 0xb42   :  { %v2035_v61 = vpop.f32.mrb[6].mxu0 }
 0xb43   :  { %v2040_v63 = vrot.slane %v2035_v61, 4  ;;  %v2054_v29 = vmul.f32 %v2035_v61, %v2035_v61  ;;  %v2037_v37 = vpop.f32.mrb[7].mxu0 }
 0xb44   :  { %v2046_v58 = vrot.slane %v2037_v37, 4  ;;  %v2055_v51 = vmul.f32 %v2037_v37, %v2037_v37 }
 0xb45   :  { %v2041_v0 = vadd.f32 %v2040_v63, %v2035_v61  ;;  %v2056_v46 = vrot.slane %v2054_v29, 4 }
 0xb46   :  { %v2047_v26 = vadd.f32 %v2046_v58, %v2037_v37  ;;  %v2062_v16 = vrot.slane %v2055_v51, 4 }
 0xb47   :  { %v2042_v62 = vrot.slane %v2041_v0, 2  ;;  %v2057_v35 = vadd.f32 %v2056_v46, %v2054_v29  ;;  %v1963_v29 = vld [vmem:[#allocation13 + $0x4] sm:$0x3] }
 0xb48   :  { %v2048_v49 = vrot.slane %v2047_v26, 2  ;;  %v2063_v59 = vadd.f32 %v2062_v16, %v2055_v51 }
 0xb49   :  { %v2043_v7 = vadd.f32 %v2042_v62, %v2041_v0  ;;  %v2058_v50 = vrot.slane %v2057_v35, 2  ;;  %v11717_v0 = vld [vmem:[#allocation59_spill] sm:$0xff] }
 0xb4a   :  { %v2049_v14 = vadd.f32 %v2048_v49, %v2047_v26  ;;  %v2064_v32 = vrot.slane %v2063_v59, 2  ;;  %v11718_v26 = vld [vmem:[#allocation60_spill] sm:$0xff] }
 0xb4b   :  { %v2044_v31 = vrot.slane %v2043_v7, 1  ;;  %v2059_v1 = vadd.f32 %v2058_v50, %v2057_v35 }
 0xb4c   :  { %v2050_v5 = vrot.slane %v2049_v14, 1  ;;  %v2065_v15 = vadd.f32 %v2064_v32, %v2063_v59 }
 0xb4d   :  { %v2045_v4 = vadd.f32 %v2044_v31, %v2043_v7  ;;  %v2060_v13 = vrot.slane %v2059_v1, 1 }
 0xb4e   :  { %v2051_v34 = vadd.f32 %v2050_v5, %v2049_v14  ;;  %v2066_v19 = vrot.slane %v2065_v15, 1  ;;  %v1965_v14 = vld [vmem:[#allocation14 + $0x4] sm:$0x3] }
 0xb4f   :  { %v2052_v43 = vmul.f32 0.125, %v2045_v4  ;;  %v2061_v40 = vadd.f32 %v2060_v13, %v2059_v1 }
 0xb50   :  { %v2053_v60 = vmul.f32 0.125, %v2051_v34  ;;  %v2067_v23 = vadd.f32 %v2066_v19, %v2065_v15 }
 0xb51   :  { %v2068_v55 = vmul.f32 0.125, %v2061_v40  ;;  %v2070_v38 = vmul.f32 %v2052_v43, %v2052_v43  ;;  %v2347_v40 = vld [vmem:[#allocation16 + $0x218] sm:$0xff] }
 0xb52   :  { %v2069_v17 = vmul.f32 0.125, %v2067_v23  ;;  %v2071_v2 = vmul.f32 %v2053_v60, %v2053_v60  ;;  %v2344_v23 = vld [vmem:[#allocation16 + $0x200] sm:$0xff] }
 0xb53   :  { %v2072_v53 = vsub.f32 %v2068_v55, %v2070_v38  ;;  %v2346_v55 = vld [vmem:[#allocation16 + $0x210] sm:$0xff] }
 0xb54   :  { %v2073_v44 = vsub.f32 %v2069_v17, %v2071_v2  ;;  %v8421_v38 = vpack.c.bf16 %v2346_v55, %v2344_v23  ;;  %v2349_v17 = vld [vmem:[#allocation16 + $0x228] sm:$0xff]  ;;  %v2351_v2 = vld [vmem:[#allocation16 + $0x238] sm:$0xff] }
 0xb55   :  { %v2074_v47 = vmax.f32 %v2072_v53, 0.0  ;;  %v8423_v53 = vpack.c.bf16 %v2351_v2, %v2349_v17  ;;  %v2374_v17 = vld [vmem:[#allocation16 + $0x2f0] sm:$0xff] }
 0xb56   :  { %v2075_v22 = vmax.f32 %v2073_v44, 0.0  ;;  %v2348_v44 = vld [vmem:[#allocation16 + $0x220] sm:$0xff] }
 0xb57   :  { %v2076_v41 = vadd.f32 1e-05, %v2074_v47  ;;  %v2350_v47 = vld [vmem:[#allocation16 + $0x230] sm:$0xff] }
 0xb58   :  { %v2077_v3 = vadd.f32 1e-05, %v2075_v22  ;;  %v8425_v22 = vpack.c.bf16 %v2350_v47, %v2348_v44 }
 0xb59   :  { %9066 = vrsqrt.f32 %v2076_v41  ;;  %v2353_v41 = vld [vmem:[#allocation16 + $0x248] sm:$0xff] }
 0xb5a   :  { %9068 = vrsqrt.f32 %v2077_v3  ;;  %v2355_v3 = vld [vmem:[#allocation16 + $0x258] sm:$0xff] }
 0xb63   :  { %v9067_v20 = vpop.eup %9066 }
 0xb64   :  { %v9069_v11 = vpop.eup %9068 }
 0xb65   :  { %v2082_v28 = vcombine.low %v9067_v20, %v9069_v11  ;;  %v8427_v20 = vpack.c.bf16 %v2355_v3, %v2353_v41  ;;  %v2352_v11 = vld [vmem:[#allocation16 + $0x240] sm:$0xff] }
 0xb67   :  { %v2089_v63 = vrot.slane %v2082_v28, %v11716_v10  ;;  %v2354_v28 = vld [vmem:[#allocation16 + $0x250] sm:$0xff] }
 0xb69   :  { %v2096_v58 = vrot.slane %v2089_v63, %v11716_v10  ;;  %v8429_v63 = vpack.c.bf16 %v2354_v28, %v2352_v11 }
 0xb6b   :  { %v2098_v51 = vmul.f32 %v2096_v58, %v1963_v29  ;;  %v2357_v29 = vld [vmem:[#allocation16 + $0x268] sm:$0xff]  ;;  %v2359_v58 = vld [vmem:[#allocation16 + $0x278] sm:$0xff] }
 0xb6d   :  { %v2103_v46 = vrot.slane %v2098_v51, %v11717_v0  ;;  %v2107_v16 = vrot.slane %v2098_v51, %v11718_v26  ;;  %v8431_v51 = vpack.c.bf16 %v2359_v58, %v2357_v29 }
 0xb6f   :  { %v2110_v62 = vmul.f32 %v2103_v46, %v2052_v43  ;;  %v2111_v35 = vmul.f32 %v2107_v16, %v2053_v60  ;;  %v2132_v49 = vmul.f32 %v2107_v16, %v2037_v37  ;;  %v2131_v59 = vmul.f32 %v2103_v46, %v2035_v61  ;;  %v2345_v43 = vld [vmem:[#allocation16 + $0x208] sm:$0xff]  ;;  %v2356_v46 = vld [vmem:[#allocation16 + $0x260] sm:$0xff]  ;;  %v2358_v16 = vld [vmem:[#allocation16 + $0x270] sm:$0xff] }
 0xb70   :  { %v8419_v60 = vpack.c.bf16 %v2347_v40, %v2345_v43  ;;  %v2370_v43 = vld [vmem:[#allocation16 + $0x2d0] sm:$0xff]  ;;  %v2373_v40 = vld [vmem:[#allocation16 + $0x2e8] sm:$0xff] }
 0xb71   :  { %v2114_v7 = vcombine.low %v2110_v62, %v2111_v35  ;;  %v8433_v62 = vpack.c.bf16 %v2358_v16, %v2356_v46  ;;  %v2361_v35 = vld [vmem:[#allocation16 + $0x288] sm:$0xff] }
 0xb72   :  { %8420 = vmatprep.subr.bf16.mxu1 %v8419_v60  ;;  %v2375_v60 = vld [vmem:[#allocation16 + $0x2f8] sm:$0xff] }
 0xb73   :  { %v2121_v50 = vrot.slane %v2114_v7, %v11716_v10  ;;  %8422 = vmatpush1.bf16.msra.mxu1 %v8421_v38  ;;  %v8447_v55 = vpack.c.bf16 %v2375_v60, %v2373_v40  ;;  %v2372_v38 = vld [vmem:[#allocation16 + $0x2e0] sm:$0xff] }
 0xb74   :  { %8424 = vmatprep.subr.bf16.mxu1 %v8423_v53  ;;  %v8449_v2 = vpack.c.bf16 %v2374_v17, %v2372_v38  ;;  %v11719_v53 = vmov 0.0|0.0  }
 0xb75   :  { %v2128_v32 = vrot.slane %v2121_v50, %v11716_v10  ;;  %v2362_v50 = vld [vmem:[#allocation16 + $0x290] sm:$0xff] }
 0xb77   :  { %v2130_v31 = vsub.f32 %v1965_v14, %v2128_v32  ;;  %8426 = vmatpush1.bf16.msra.mxu1 %v8425_v22  ;;  %v2365_v14 = vld [vmem:[#allocation16 + $0x2a8] sm:$0xff]  ;;  %v2367_v32 = vld [vmem:[#allocation16 + $0x2b8] sm:$0xff] }
 0xb78   :  { %8428 = vmatprep.subr.bf16.mxu1 %v8427_v20 }
 0xb79   :  { %v2141_v1 = vrot.slane %v2130_v31, %v11718_v26  ;;  %v2137_v5 = vrot.slane %v2130_v31, %v11717_v0 }
 0xb7b   :  { %v2145_v15 = vadd.f32 %v2141_v1, %v2132_v49  ;;  %v2144_v4 = vadd.f32 %v2137_v5, %v2131_v59  ;;  %8430 = vmatpush1.bf16.msra.mxu1 %v8429_v63  ;;  %v2363_v49 = vld [vmem:[#allocation16 + $0x298] sm:$0xff]  ;;  %v2360_v59 = vld [vmem:[#allocation16 + $0x280] sm:$0xff]  ;;  %v8439_v1 = vpack.c.bf16 %v2367_v32, %v2365_v14 }
 0xb7c   :  { %8432 = vmatprep.subr.bf16.mxu1 %v8431_v51  ;;  %v8435_v7 = vpack.c.bf16 %v2363_v49, %v2361_v35  ;;  %v8437_v31 = vpack.c.bf16 %v2362_v50, %v2360_v59  ;;  %v2364_v5 = vld [vmem:[#allocation16 + $0x2a0] sm:$0xff] }
 0xb7d   :  { %v7926_v13 = vmul.f32 -1.442695, %v2145_v15  ;;  %v2366_v15 = vld [vmem:[#allocation16 + $0x2b0] sm:$0xff] }
 0xb7f   :  { %9070 = vpow2.f32 %v7926_v13  ;;  %8434 = vmatpush1.bf16.msra.mxu1 %v8433_v62  ;;  %v2371_v13 = vld [vmem:[#allocation16 + $0x2d8] sm:$0xff] }
 0xb80   :  { %8436 = vmatprep.subr.bf16.mxu1 %v8435_v7 }
 0xb83   :  { %8438 = vmatpush1.bf16.msra.mxu1 %v8437_v31 }
 0xb84   :  { %8440 = vmatprep.subr.bf16.mxu1 %v8439_v1 }
 0xb89   :  { %v9071_v34 = vpop.eup %9070 }
 0xb8a   :  { %v2149_v19 = vadd.f32 1.0, %v9071_v34  ;;  %v8441_v34 = vpack.c.bf16 %v2366_v15, %v2364_v5 }
 0xb8c   :  { %9072 = vrcp.f32 %v2149_v19  ;;  %8442 = vmatpush1.bf16.msra.mxu1 %v8441_v34 }
 0xb96   :  { %v9073_v37 = vpop.eup %9072 }
 0xb97   :  { %v10424_v61 = vmul.f32 %v9073_v37, %v2144_v4  ;;  %v2369_v4 = vld [vmem:[#allocation16 + $0x2c8] sm:$0xff]  ;;  %v2368_v37 = vld [vmem:[#allocation16 + $0x2c0] sm:$0xff] }
 0xb98   :  { %v8443_v19 = vpack.c.bf16 %v2371_v13, %v2369_v4  ;;  %v8445_v23 = vpack.c.bf16 %v2370_v43, %v2368_v37 }
 0xb99   :  { %2222 = vmatmul.mubr.f32.vlgmr.msra.gmra.mrb[8].mxu0 %v10424_v61 }
 0xb9a   :  { %2667 = vmatprep.mubr.f32.mxu0 %v11713_v9  ;;  %8444 = vmatprep.subr.bf16.mxu1 %v8443_v19 }
 0xb9b   :  { %8446 = vmatpush1.bf16.msra.mxu1 %v8445_v23 }
 0xb9c   :  { %8448 = vmatprep.subr.bf16.mxu1 %v8447_v55 }
 0xb9f   :  { %8450 = vmatpush1.bf16.msra.mxu1 %v8449_v2 }
 0xba0   :  { %8483 = vmatprep.subr.bf16.mxu1 %v11719_v53 }
 0xc6c   :  { %v2223_v44 = vpop.f32.mrb[8].mxu0 }
 0xc6d   :  { %v2228_v47 = vrot.slane %v2223_v44, 4  ;;  %v2242_v22 = vmul.f32 %v2223_v44, %v2223_v44  ;;  %v2225_v41 = vpop.f32.mrb[9].mxu0 }
 0xc6e   :  { %v2234_v3 = vrot.slane %v2225_v41, 4  ;;  %v2243_v20 = vmul.f32 %v2225_v41, %v2225_v41 }
 0xc6f   :  { %v2229_v11 = vadd.f32 %v2228_v47, %v2223_v44  ;;  %v2244_v28 = vrot.slane %v2242_v22, 4 }
 0xc70   :  { %v2235_v63 = vadd.f32 %v2234_v3, %v2225_v41  ;;  %v2250_v29 = vrot.slane %v2243_v20, 4 }
 0xc71   :  { %v2230_v58 = vrot.slane %v2229_v11, 2  ;;  %v2245_v51 = vadd.f32 %v2244_v28, %v2242_v22  ;;  %v2154_v28 = vld [vmem:[#allocation13 + $0x6] sm:$0x3] }
 0xc72   :  { %v2236_v46 = vrot.slane %v2235_v63, 2  ;;  %v2251_v16 = vadd.f32 %v2250_v29, %v2243_v20 }
 0xc73   :  { %v2231_v62 = vadd.f32 %v2230_v58, %v2229_v11  ;;  %v2246_v35 = vrot.slane %v2245_v51, 2 }
 0xc74   :  { %v2237_v49 = vadd.f32 %v2236_v46, %v2235_v63  ;;  %v2252_v59 = vrot.slane %v2251_v16, 2 }
 0xc75   :  { %v2232_v7 = vrot.slane %v2231_v62, 1  ;;  %v2247_v50 = vadd.f32 %v2246_v35, %v2245_v51 }
 0xc76   :  { %v2238_v14 = vrot.slane %v2237_v49, 1  ;;  %v2253_v32 = vadd.f32 %v2252_v59, %v2251_v16 }
 0xc77   :  { %v2233_v31 = vadd.f32 %v2232_v7, %v2231_v62  ;;  %v2248_v1 = vrot.slane %v2247_v50, 1  ;;  %v2156_v7 = vld [vmem:[#allocation14 + $0x6] sm:$0x3] }
 0xc78   :  { %v2239_v5 = vadd.f32 %v2238_v14, %v2237_v49  ;;  %v2254_v15 = vrot.slane %v2253_v32, 1 }
 0xc79   :  { %v2240_v4 = vmul.f32 0.125, %v2233_v31  ;;  %v2249_v13 = vadd.f32 %v2248_v1, %v2247_v50 }
 0xc7a   :  { %v2241_v34 = vmul.f32 0.125, %v2239_v5  ;;  %v2255_v19 = vadd.f32 %v2254_v15, %v2253_v32 }
 0xc7b   :  { %v2256_v37 = vmul.f32 0.125, %v2249_v13  ;;  %v2258_v43 = vmul.f32 %v2240_v4, %v2240_v4 }
 0xc7c   :  { %v2257_v40 = vmul.f32 0.125, %v2255_v19  ;;  %v2259_v60 = vmul.f32 %v2241_v34, %v2241_v34 }
 0xc7d   :  { %v2260_v23 = vsub.f32 %v2256_v37, %v2258_v43  ;;  %v2568_v37 = vld [vmem:[#allocation16 + $0x308] sm:$0xff]  ;;  %v2570_v43 = vld [vmem:[#allocation16 + $0x318] sm:$0xff] }
 0xc7e   :  { %v2261_v55 = vsub.f32 %v2257_v40, %v2259_v60  ;;  %v8451_v40 = vpack.c.bf16 %v2570_v43, %v2568_v37  ;;  %v2567_v60 = vld [vmem:[#allocation16 + $0x300] sm:$0xff]  ;;  %v2593_v43 = vld [vmem:[#allocation16 + $0x3d0] sm:$0xff] }
 0xc7f   :  { %v2262_v38 = vmax.f32 %v2260_v23, 0.0  ;;  %v2569_v23 = vld [vmem:[#allocation16 + $0x310] sm:$0xff]  ;;  %v2591_v37 = vld [vmem:[#allocation16 + $0x3c0] sm:$0xff] }
 0xc80   :  { %v2263_v17 = vmax.f32 %v2261_v55, 0.0  ;;  %v8453_v55 = vpack.c.bf16 %v2569_v23, %v2567_v60  ;;  %8452 = vmatprep.subr.bf16.mxu0 %v8451_v40  ;;  %v2596_v40 = vld [vmem:[#allocation16 + $0x3e8] sm:$0xff]  ;;  %v2598_v60 = vld [vmem:[#allocation16 + $0x3f8] sm:$0xff]  ;;  %v8477_v23 = vpack.c.bf16 %v2593_v43, %v2591_v37 }
 0xc81   :  { %v2264_v2 = vadd.f32 1e-05, %v2262_v38  ;;  %v2572_v38 = vld [vmem:[#allocation16 + $0x328] sm:$0xff] }
 0xc82   :  { %v2265_v47 = vadd.f32 1e-05, %v2263_v17  ;;  %8454 = vmatpush1.bf16.msra.mxu0 %v8453_v55  ;;  %v2574_v17 = vld [vmem:[#allocation16 + $0x338] sm:$0xff]  ;;  %v8479_v55 = vpack.c.bf16 %v2598_v60, %v2596_v40 }
 0xc83   :  { %9074 = vrsqrt.f32 %v2264_v2  ;;  %v8455_v2 = vpack.c.bf16 %v2574_v17, %v2572_v38  ;;  %v2595_v38 = vld [vmem:[#allocation16 + $0x3e0] sm:$0xff]  ;;  %v2597_v17 = vld [vmem:[#allocation16 + $0x3f0] sm:$0xff] }
 0xc84   :  { %9076 = vrsqrt.f32 %v2265_v47  ;;  %v2571_v47 = vld [vmem:[#allocation16 + $0x320] sm:$0xff] }
 0xc85   :  { %8456 = vmatprep.subr.bf16.mxu0 %v8455_v2  ;;  %v8481_v2 = vpack.c.bf16 %v2597_v17, %v2595_v38 }
 0xc8d   :  { %v9075_v22 = vpop.eup %9074 }
 0xc8e   :  { %v9077_v3 = vpop.eup %9076 }
 0xc8f   :  { %v2270_v20 = vcombine.low %v9075_v22, %v9077_v3  ;;  %v2576_v3 = vld [vmem:[#allocation16 + $0x348] sm:$0xff] }
 0xc91   :  { %v2277_v11 = vrot.slane %v2270_v20, %v11716_v10  ;;  %v2578_v20 = vld [vmem:[#allocation16 + $0x358] sm:$0xff] }
 0xc93   :  { %v2284_v63 = vrot.slane %v2277_v11, %v11716_v10  ;;  %v8459_v11 = vpack.c.bf16 %v2578_v20, %v2576_v3 }
 0xc95   :  { %v2286_v29 = vmul.f32 %v2284_v63, %v2154_v28  ;;  %v2575_v28 = vld [vmem:[#allocation16 + $0x340] sm:$0xff]  ;;  %v2577_v63 = vld [vmem:[#allocation16 + $0x350] sm:$0xff] }
 0xc97   :  { %v2291_v58 = vrot.slane %v2286_v29, %v11717_v0  ;;  %v2295_v51 = vrot.slane %v2286_v29, %v11718_v26  ;;  %v8461_v29 = vpack.c.bf16 %v2577_v63, %v2575_v28 }
 0xc99   :  { %v2298_v46 = vmul.f32 %v2291_v58, %v2240_v4  ;;  %v2299_v16 = vmul.f32 %v2295_v51, %v2241_v34  ;;  %v2319_v62 = vmul.f32 %v2291_v58, %v2223_v44  ;;  %v2320_v35 = vmul.f32 %v2295_v51, %v2225_v41  ;;  %v2580_v58 = vld [vmem:[#allocation16 + $0x368] sm:$0xff]  ;;  %v2582_v51 = vld [vmem:[#allocation16 + $0x378] sm:$0xff] }
 0xc9b   :  { %v2302_v49 = vcombine.low %v2298_v46, %v2299_v16  ;;  %v8463_v46 = vpack.c.bf16 %v2582_v51, %v2580_v58  ;;  %v2579_v16 = vld [vmem:[#allocation16 + $0x360] sm:$0xff] }
 0xc9d   :  { %v2309_v59 = vrot.slane %v2302_v49, %v11716_v10  ;;  %v2584_v49 = vld [vmem:[#allocation16 + $0x388] sm:$0xff] }
 0xc9f   :  { %v2316_v50 = vrot.slane %v2309_v59, %v11716_v10  ;;  %v2586_v59 = vld [vmem:[#allocation16 + $0x398] sm:$0xff] }
 0xca1   :  { %v2318_v14 = vsub.f32 %v2156_v7, %v2316_v50  ;;  %v2583_v7 = vld [vmem:[#allocation16 + $0x380] sm:$0xff]  ;;  %v8467_v50 = vpack.c.bf16 %v2586_v59, %v2584_v49 }
 0xca3   :  { %v2325_v32 = vrot.slane %v2318_v14, %v11717_v0  ;;  %v2329_v31 = vrot.slane %v2318_v14, %v11718_v26  ;;  %v2585_v14 = vld [vmem:[#allocation16 + $0x390] sm:$0xff] }
 0xca5   :  { %v2333_v1 = vadd.f32 %v2329_v31, %v2320_v35  ;;  %v2332_v5 = vadd.f32 %v2325_v32, %v2319_v62  ;;  %v2581_v62 = vld [vmem:[#allocation16 + $0x370] sm:$0xff]  ;;  %v2588_v32 = vld [vmem:[#allocation16 + $0x3a8] sm:$0xff]  ;;  %v2590_v31 = vld [vmem:[#allocation16 + $0x3b8] sm:$0xff] }
 0xca6   :  { %v8465_v35 = vpack.c.bf16 %v2581_v62, %v2579_v16 }
 0xca7   :  { %v7927_v15 = vmul.f32 -1.442695, %v2333_v1  ;;  %v8469_v1 = vpack.c.bf16 %v2585_v14, %v2583_v7 }
 0xca9   :  { %9078 = vpow2.f32 %v7927_v15  ;;  %v2587_v15 = vld [vmem:[#allocation16 + $0x3a0] sm:$0xff] }
 0xcb3   :  { %v9079_v13 = vpop.eup %9078 }
 0xcb4   :  { %v2337_v4 = vadd.f32 1.0, %v9079_v13  ;;  %v2589_v13 = vld [vmem:[#allocation16 + $0x3b0] sm:$0xff] }
 0xcb6   :  { %9080 = vrcp.f32 %v2337_v4  ;;  %v2592_v4 = vld [vmem:[#allocation16 + $0x3c8] sm:$0xff] }
 0xcc0   :  { %v9081_v44 = vpop.eup %9080 }
 0xcc1   :  { %v2340_v41 = vmul.f32 %v9081_v44, %v2332_v5  ;;  %v8471_v5 = vpack.c.bf16 %v2590_v31, %v2588_v32  ;;  %v2594_v44 = vld [vmem:[#allocation16 + $0x3d8] sm:$0xff] }
 0xcc3   :  { %v2341_v34 = vadd.f32 %v2340_v41, %v10424_v61  ;;  %v2573_v61 = vld [vmem:[#allocation16 + $0x330] sm:$0xff]  ;;  %v8473_v41 = vpack.c.bf16 %v2589_v13, %v2587_v15 }
 0xcc4   :  { %v8457_v22 = vpack.c.bf16 %v2573_v61, %v2571_v47  ;;  %v11720_v47 = vld [vmem:[#allocation40_spill] sm:$0xff] }
 0xcc5   :  { %v10438_v19 = vmul.f32 0.70710677, %v2341_v34  ;;  %v8475_v34 = vpack.c.bf16 %v2594_v44, %v2592_v4 }
 0xcc6   :  { %8458 = vmatpush1.bf16.msra.mxu0 %v8457_v22 }
 0xcc7   :  { %2445 = vmatmul.mubr.f32.vlgmr.msra.gmra.mrb[4].mxu1 %v10438_v19  ;;  %8460 = vmatprep.subr.bf16.mxu0 %v8459_v11 }
 0xcc8   :  { %8207 = vmatprep.mubr.msk.f32.mxu1 %vm9637_vm4, %v11713_v9 }
 0xcca   :  { %8462 = vmatpush1.bf16.msra.mxu0 %v8461_v29 }
 0xccb   :  { %8464 = vmatprep.subr.bf16.mxu0 %v8463_v46 }
 0xcce   :  { %8466 = vmatpush1.bf16.msra.mxu0 %v8465_v35 }
 0xccf   :  { %8468 = vmatprep.subr.bf16.mxu0 %v8467_v50 }
 0xcd2   :  { %8470 = vmatpush1.bf16.msra.mxu0 %v8469_v1 }
 0xcd3   :  { %8472 = vmatprep.subr.bf16.mxu0 %v8471_v5 }
 0xcd6   :  { %8474 = vmatpush1.bf16.msra.mxu0 %v8473_v41 }
 0xcd7   :  { %8476 = vmatprep.subr.bf16.mxu0 %v8475_v34 }
 0xcda   :  { %8478 = vmatpush1.bf16.msra.mxu0 %v8477_v23 }
 0xcdb   :  { %8480 = vmatprep.subr.bf16.mxu0 %v8479_v55 }
 0xcde   :  { %8482 = vmatpush1.bf16.msra.mxu0 %v8481_v2 }
 0xcdf   :  { %8497 = vmatprep.subr.msk.bf16.mxu0 %vm9955_vm2, %v11720_v47 }
 0xd9a   :  { %v2446_v22 = vpop.f32.mrb[4].mxu1 }
 0xd9b   :  { %v2451_v3 = vrot.slane %v2446_v22, 4  ;;  %v2465_v20 = vmul.f32 %v2446_v22, %v2446_v22  ;;  %v2448_v11 = vpop.f32.mrb[5].mxu1 }
 0xd9c   :  { %v2457_v28 = vrot.slane %v2448_v11, 4  ;;  %v2466_v63 = vmul.f32 %v2448_v11, %v2448_v11 }
 0xd9d   :  { %v2452_v29 = vadd.f32 %v2451_v3, %v2446_v22  ;;  %v2467_v58 = vrot.slane %v2465_v20, 4 }
 0xd9e   :  { %v2458_v51 = vadd.f32 %v2457_v28, %v2448_v11  ;;  %v2473_v46 = vrot.slane %v2466_v63, 4 }
 0xd9f   :  { %v2453_v16 = vrot.slane %v2452_v29, 2  ;;  %v2468_v62 = vadd.f32 %v2467_v58, %v2465_v20 }
 0xda0   :  { %v2459_v35 = vrot.slane %v2458_v51, 2  ;;  %v2474_v49 = vadd.f32 %v2473_v46, %v2466_v63  ;;  %v2377_v46 = vld [vmem:[#allocation17 + $0x4] sm:$0x3] }
 0xda1   :  { %v2454_v59 = vadd.f32 %v2453_v16, %v2452_v29  ;;  %v2469_v7 = vrot.slane %v2468_v62, 2 }
 0xda2   :  { %v2460_v50 = vadd.f32 %v2459_v35, %v2458_v51  ;;  %v2475_v14 = vrot.slane %v2474_v49, 2 }
 0xda3   :  { %v2455_v32 = vrot.slane %v2454_v59, 1  ;;  %v2470_v31 = vadd.f32 %v2469_v7, %v2468_v62 }
 0xda4   :  { %v2461_v1 = vrot.slane %v2460_v50, 1  ;;  %v2476_v5 = vadd.f32 %v2475_v14, %v2474_v49 }
 0xda5   :  { %v2456_v15 = vadd.f32 %v2455_v32, %v2454_v59  ;;  %v2471_v13 = vrot.slane %v2470_v31, 1 }
 0xda6   :  { %v2462_v4 = vadd.f32 %v2461_v1, %v2460_v50  ;;  %v2477_v44 = vrot.slane %v2476_v5, 1  ;;  %v2379_v1 = vld [vmem:[#allocation19 + $0x4] sm:$0x3] }
 0xda7   :  { %v2463_v41 = vmul.f32 0.125, %v2456_v15  ;;  %v2472_v34 = vadd.f32 %v2471_v13, %v2470_v31 }
 0xda8   :  { %v2464_v37 = vmul.f32 0.125, %v2462_v4  ;;  %v2478_v43 = vadd.f32 %v2477_v44, %v2476_v5 }
 0xda9   :  { %v2479_v40 = vmul.f32 0.125, %v2472_v34  ;;  %v2481_v60 = vmul.f32 %v2463_v41, %v2463_v41 }
 0xdaa   :  { %v2480_v23 = vmul.f32 0.125, %v2478_v43  ;;  %v2482_v55 = vmul.f32 %v2464_v37, %v2464_v37 }
 0xdab   :  { %v2483_v38 = vsub.f32 %v2479_v40, %v2481_v60 }
 0xdac   :  { %v2484_v17 = vsub.f32 %v2480_v23, %v2482_v55  ;;  %v11722_v23 = vld [vmem:[#allocation41_spill] sm:$0xff]  ;;  %v7930_v55 = vld [vmem:[%s11598_s11 + $0x40] sm:$0xff] }
 0xdad   :  { %v2485_v2 = vmax.f32 %v2483_v38, 0.0  ;;  %v7931_v38 = vld [vmem:[%s11598_s11 + $0x48] sm:$0xff] }
 0xdae   :  { %v2486_v3 = vmax.f32 %v2484_v17, 0.0  ;;  %v8484_v17 = vpack.c.bf16 %v7931_v38, %v7930_v55 }
 0xdaf   :  { %v2487_v20 = vadd.f32 1e-05, %v2485_v2  ;;  %v7933_v2 = vld [vmem:[%s11598_s11 + $0x58] sm:$0xff] }
 0xdb0   :  { %v2488_v28 = vadd.f32 1e-05, %v2486_v3  ;;  %8485 = vmatpush3.bf16.msra.mxu1 %v8484_v17 }
 0xdb1   :  { %9082 = vrsqrt.f32 %v2487_v20  ;;  %8486 = vmatprep.subr.bf16.mxu1 %v11719_v53  ;;  %v7934_v20 = vld [vmem:[%s11598_s11 + $0x60] sm:$0xff] }
 0xdb2   :  { %9084 = vrsqrt.f32 %v2488_v28  ;;  %v7935_v28 = vld [vmem:[%s11598_s11 + $0x68] sm:$0xff] }
 0xdbb   :  { %v9083_v63 = vpop.eup %9082 }
 0xdbc   :  { %v9085_v29 = vpop.eup %9084 }
 0xdbd   :  { %v2493_v58 = vcombine.low %v9083_v63, %v9085_v29  ;;  %v8490_v63 = vpack.c.bf16 %v7935_v28, %v7934_v20  ;;  %v7936_v29 = vld [vmem:[%s11598_s11 + $0x70] sm:$0xff] }
 0xdbf   :  { %v2500_v51 = vrot.slane %v2493_v58, %v11716_v10  ;;  %v7937_v58 = vld [vmem:[%s11598_s11 + $0x78] sm:$0xff] }
 0xdc1   :  { %v2507_v16 = vrot.slane %v2500_v51, %v11716_v10  ;;  %v8493_v51 = vpack.c.bf16 %v7937_v58, %v7936_v29 }
 0xdc3   :  { %v2509_v62 = vmul.f32 %v2507_v16, %v2377_v46  ;;  %v11723_v46 = vld [vmem:[#allocation42_spill] sm:$0xff] }
 0xdc5   :  { %v2514_v35 = vrot.slane %v2509_v62, %v11717_v0  ;;  %v2518_v49 = vrot.slane %v2509_v62, %v11718_v26 }
 0xdc7   :  { %v2521_v59 = vmul.f32 %v2514_v35, %v2463_v41  ;;  %v2522_v7 = vmul.f32 %v2518_v49, %v2464_v37  ;;  %v2542_v50 = vmul.f32 %v2514_v35, %v2446_v22  ;;  %v2543_v14 = vmul.f32 %v2518_v49, %v2448_v11 }
 0xdc9   :  { %v2525_v32 = vcombine.low %v2521_v59, %v2522_v7 }
 0xdcb   :  { %v2532_v31 = vrot.slane %v2525_v32, %v11716_v10 }
 0xdcd   :  { %v2539_v5 = vrot.slane %v2532_v31, %v11716_v10 }
 0xdcf   :  { %v2541_v15 = vsub.f32 %v2379_v1, %v2539_v5 }
 0xdd1   :  { %v2548_v13 = vrot.slane %v2541_v15, %v11717_v0  ;;  %v2552_v4 = vrot.slane %v2541_v15, %v11718_v26 }
 0xdd3   :  { %v2556_v44 = vadd.f32 %v2552_v4, %v2543_v14  ;;  %v2555_v34 = vadd.f32 %v2548_v13, %v2542_v50 }
 0xdd5   :  { %v7928_v43 = vmul.f32 -1.442695, %v2556_v44 }
 0xdd7   :  { %9086 = vpow2.f32 %v7928_v43 }
 0xde1   :  { %v9087_v40 = vpop.eup %9086 }
 0xde2   :  { %v2560_v41 = vadd.f32 1.0, %v9087_v40 }
 0xde4   :  { %9088 = vrcp.f32 %v2560_v41 }
 0xdee   :  { %v9089_v22 = vpop.eup %9088 }
 0xdef   :  { %v2563_v11 = vmul.f32 %v9089_v22, %v2555_v34 }
 0xdf1   :  { %v2564_v37 = vadd.f32 %v2563_v11, %v10438_v19  ;;  %v7932_v19 = vld [vmem:[%s11598_s11 + $0x50] sm:$0xff] }
 0xdf2   :  { %v8487_v3 = vpack.c.bf16 %v7933_v2, %v7932_v19 }
 0xdf3   :  { %v10455_v60 = vmul.f32 0.70710677, %v2564_v37 }
 0xdf4   :  { %8488 = vmatpush3.bf16.msra.mxu1 %v8487_v3 }
 0xdf5   :  { %2668 = vmatmul.mubr.f32.vlgmr.msra.gmra.mrb[10].mxu0 %v10455_v60  ;;  %8489 = vmatprep.subr.bf16.mxu1 %v11719_v53 }
 0xdf6   :  { %8500 = vmatpush1.bf16.msk.msra.mxu0 %vm9955_vm2, %v11722_v23  ;;  %3679 = vmatprep.mubr.f32.mxu0 %v11713_v9 }
 0xdf8   :  { %8491 = vmatpush3.bf16.msra.mxu1 %v8490_v63 }
 0xdf9   :  { %8492 = vmatprep.subr.bf16.mxu1 %v11719_v53 }
 0xdfc   :  { %8494 = vmatpush3.bf16.msra.mxu1 %v8493_v51 }
 0xdfd   :  { %8502 = vmatprep.subr.bf16.mxu1 %v11723_v46 }
 0xec8   :  { %v2669_v16 = vpop.f32.mrb[10].mxu0 }
 0xec9   :  { %v2674_v62 = vrot.slane %v2669_v16, 4  ;;  %v2688_v35 = vmul.f32 %v2669_v16, %v2669_v16  ;;  %v2671_v49 = vpop.f32.mrb[11].mxu0 }
 0xeca   :  { %v2680_v59 = vrot.slane %v2671_v49, 4  ;;  %v2689_v7 = vmul.f32 %v2671_v49, %v2671_v49 }
 0xecb   :  { %v2675_v50 = vadd.f32 %v2674_v62, %v2669_v16  ;;  %v2690_v14 = vrot.slane %v2688_v35, 4 }
 0xecc   :  { %v2681_v32 = vadd.f32 %v2680_v59, %v2671_v49  ;;  %v2696_v31 = vrot.slane %v2689_v7, 4 }
 0xecd   :  { %v2676_v1 = vrot.slane %v2675_v50, 2  ;;  %v2691_v5 = vadd.f32 %v2690_v14, %v2688_v35 }
 0xece   :  { %v2682_v15 = vrot.slane %v2681_v32, 2  ;;  %v2697_v13 = vadd.f32 %v2696_v31, %v2689_v7 }
 0xecf   :  { %v2677_v4 = vadd.f32 %v2676_v1, %v2675_v50  ;;  %v2692_v44 = vrot.slane %v2691_v5, 2 }
 0xed0   :  { %v2683_v34 = vadd.f32 %v2682_v15, %v2681_v32  ;;  %v2698_v43 = vrot.slane %v2697_v13, 2 }
 0xed1   :  { %v2678_v40 = vrot.slane %v2677_v4, 1  ;;  %v2693_v41 = vadd.f32 %v2692_v44, %v2691_v5  ;;  %v2600_v5 = vld [vmem:[#allocation17 + $0x6] sm:$0x3] }
 0xed2   :  { %v2684_v22 = vrot.slane %v2683_v34, 1  ;;  %v2699_v11 = vadd.f32 %v2698_v43, %v2697_v13 }
 0xed3   :  { %v2679_v37 = vadd.f32 %v2678_v40, %v2677_v4  ;;  %v2694_v55 = vrot.slane %v2693_v41, 1 }
 0xed4   :  { %v2685_v38 = vadd.f32 %v2684_v22, %v2683_v34  ;;  %v2700_v19 = vrot.slane %v2699_v11, 1 }
 0xed5   :  { %v2686_v17 = vmul.f32 0.125, %v2679_v37  ;;  %v2695_v2 = vadd.f32 %v2694_v55, %v2693_v41  ;;  %v2602_v37 = vld [vmem:[#allocation19 + $0x6] sm:$0x3] }
 0xed6   :  { %v2687_v3 = vmul.f32 0.125, %v2685_v38  ;;  %v2701_v20 = vadd.f32 %v2700_v19, %v2699_v11 }
 0xed7   :  { %v2702_v28 = vmul.f32 0.125, %v2695_v2  ;;  %v2704_v63 = vmul.f32 %v2686_v17, %v2686_v17 }
 0xed8   :  { %v2703_v29 = vmul.f32 0.125, %v2701_v20  ;;  %v2705_v58 = vmul.f32 %v2687_v3, %v2687_v3 }
 0xed9   :  { %v2706_v51 = vsub.f32 %v2702_v28, %v2704_v63 }
 0xeda   :  { %v2707_v62 = vsub.f32 %v2703_v29, %v2705_v58 }
 0xedb   :  { %v2708_v35 = vmax.f32 %v2706_v51, 0.0 }
 0xedc   :  { %v2709_v59 = vmax.f32 %v2707_v62, 0.0 }
 0xedd   :  { %v2710_v7 = vadd.f32 1e-05, %v2708_v35 }
 0xede   :  { %v2711_v50 = vadd.f32 1e-05, %v2709_v59 }
 0xedf   :  { %9090 = vrsqrt.f32 %v2710_v7 }
 0xee0   :  { %9092 = vrsqrt.f32 %v2711_v50 }
 0xee9   :  { %v9091_v14 = vpop.eup %9090 }
 0xeea   :  { %v9093_v32 = vpop.eup %9092 }
 0xeeb   :  { %v2716_v31 = vcombine.low %v9091_v14, %v9093_v32 }
 0xeed   :  { %v2723_v1 = vrot.slane %v2716_v31, %v11716_v10 }
 0xeef   :  { %v2730_v15 = vrot.slane %v2723_v1, %v11716_v10 }
 0xef1   :  { %v2732_v13 = vmul.f32 %v2730_v15, %v2600_v5 }
 0xef3   :  { %v2737_v4 = vrot.slane %v2732_v13, %v11717_v0  ;;  %v2741_v44 = vrot.slane %v2732_v13, %v11718_v26 }
 0xef5   :  { %v2744_v34 = vmul.f32 %v2737_v4, %v2686_v17  ;;  %v2745_v43 = vmul.f32 %v2741_v44, %v2687_v3  ;;  %v2766_v40 = vmul.f32 %v2741_v44, %v2671_v49  ;;  %v2765_v41 = vmul.f32 %v2737_v4, %v2669_v16 }
 0xef7   :  { %v2748_v22 = vcombine.low %v2744_v34, %v2745_v43 }
 0xef9   :  { %v2755_v11 = vrot.slane %v2748_v22, %v11716_v10 }
 0xefb   :  { %v2762_v55 = vrot.slane %v2755_v11, %v11716_v10 }
 0xefd   :  { %v2764_v38 = vsub.f32 %v2602_v37, %v2762_v55 }
 0xeff   :  { %v2775_v19 = vrot.slane %v2764_v38, %v11718_v26  ;;  %v2771_v2 = vrot.slane %v2764_v38, %v11717_v0  ;;  %v2876_v38 = vld [vmem:[#allocation20 + $0x1] sm:$0x1] }
 0xf01   :  { %v2779_v20 = vadd.f32 %v2775_v19, %v2766_v40  ;;  %v2778_v28 = vadd.f32 %v2771_v2, %v2765_v41 }
 0xf03   :  { %v7929_v63 = vmul.f32 -1.442695, %v2779_v20  ;;  %v2878_v20 = vld [vmem:[#allocation22 + $0x1] sm:$0x1] }
 0xf05   :  { %9094 = vpow2.f32 %v7929_v63 }
 0xf0f   :  { %v9095_v29 = vpop.eup %9094 }
 0xf10   :  { %v2783_v17 = vadd.f32 1.0, %v9095_v29 }
 0xf12   :  { %9096 = vrcp.f32 %v2783_v17 }
 0xf1c   :  { %v9097_v49 = vpop.eup %9096 }
 0xf1d   :  { %v2786_v16 = vmul.f32 %v9097_v49, %v2778_v28 }
 0xf1f   :  { %v2787_v3 = vadd.f32 %v2786_v16, %v10455_v60 }
 0xf21   :  { %v10499_v58 = vmul.f32 0.70710677, %v2787_v3  ;;  %v9214_v3 = vld [vmem:[#allocation5] sm:$0xff] }
 0xf23   :  { %2801 = vrot.lane.b32.xlu0 %v10499_v58, %s9638_s19 }
 0xf95   :  { %v2802_v51 = vpop.permute.xlu0 %2801 }
 0xf96   :  { %8208 = vmatmul.mubr.msk.f32.vlgmr.msra.gmra.mrb[6].mxu1 %vm11646_vm5, %v2802_v51 }
 0xf97   :  { %8504 = vmatpush1.bf16.msra.mxu1 %v9976_v18  ;;  %3867 = vmatprep.mubr.f32.mxu1 %v11713_v9 }
 0xf98   :  { %8506 = vmatprep.subr.bf16.mxu1 %v9980_v21 }
 0xf9b   :  { %8508 = vmatpush1.bf16.msra.mxu1 %v9982_v24 }
 0xf9c   :  { %8510 = vmatprep.subr.bf16.mxu1 %v9986_v27 }
 0xf9f   :  { %8512 = vmatpush1.bf16.msra.mxu1 %v9988_v30 }
 0xfa0   :  { %8514 = vmatprep.subr.bf16.mxu1 %v9992_v33 }
 0xfa3   :  { %8516 = vmatpush1.bf16.msra.mxu1 %v9994_v36 }
 0xfa4   :  { %8518 = vmatprep.subr.bf16.mxu1 %v9998_v39 }
 0xfa7   :  { %8520 = vmatpush1.bf16.msra.mxu1 %v10000_v42 }
 0xfa8   :  { %8522 = vmatprep.subr.bf16.mxu1 %v10004_v45 }
 0xfab   :  { %8524 = vmatpush1.bf16.msra.mxu1 %v10006_v48 }
 0xfac   :  { %8526 = vmatprep.subr.bf16.mxu1 %v10009_v52 }
 0xfaf   :  { %8528 = vmatpush1.bf16.msra.mxu1 %v10012_v56 }
 0xfb0   :  { %8530 = vmatprep.subr.bf16.mxu1 %v10015_v57 }
 0xfb3   :  { %8532 = vmatpush1.bf16.msra.mxu1 %v11715_v6 }
0x1069   :  { %v2871_v60 = vpop.f32.mrb[6].mxu1 }
0x106a   :  { %v2879_v62 = vsel %vm306_vm3, %v2871_v60, 0.0  ;;  %v2887_v35 = vmul.f32 %v2871_v60, %v2871_v60  ;;  %v8209_v59 = vpop.f32.mrb[7].mxu1 }
0x106b   :  { %v2880_v7 = vrot.slane %v2879_v62, 4 }
0x106c   :  { %v2888_v50 = vsel %vm306_vm3, %v2887_v35, 0.0 }
0x106d   :  { %v2881_v14 = vadd.f32 %v2880_v7, %v2879_v62  ;;  %v2889_v32 = vrot.slane %v2888_v50, 4 }
0x106f   :  { %v2882_v31 = vrot.slane %v2881_v14, 2  ;;  %v2890_v1 = vadd.f32 %v2889_v32, %v2888_v50  ;;  %v11725_v32 = vld [vmem:[#allocation63_spill] sm:$0xff] }
0x1071   :  { %v2883_v5 = vadd.f32 %v2882_v31, %v2881_v14  ;;  %v2891_v15 = vrot.slane %v2890_v1, 2 }
0x1073   :  { %v2884_v13 = vrot.slane %v2883_v5, 1  ;;  %v2892_v4 = vadd.f32 %v2891_v15, %v2890_v1  ;;  %v11726_v1 = vld [vmem:[#allocation61_spill] sm:$0xff]  ;;  %v11727_v15 = vld [vmem:[#allocation64_spill] sm:$0xff] }
0x1075   :  { %v2885_v44 = vadd.f32 %v2884_v13, %v2883_v5  ;;  %v2893_v34 = vrot.slane %v2892_v4, 1 }
0x1077   :  { %v2886_v43 = vmul.f32 0.125, %v2885_v44  ;;  %v2894_v40 = vadd.f32 %v2893_v34, %v2892_v4  ;;  %v11728_v4 = vld [vmem:[#allocation65_spill] sm:$0xff]  ;;  %v11729_v34 = vld [vmem:[#allocation66_spill] sm:$0xff] }
0x1079   :  { %v2895_v41 = vmul.f32 0.125, %v2894_v40  ;;  %v2896_v22 = vmul.f32 %v2886_v43, %v2886_v43 }
0x107b   :  { %v2897_v11 = vsub.f32 %v2895_v41, %v2896_v22 }
0x107d   :  { %v2898_v37 = vmax.f32 %v2897_v11, 0.0 }
0x107f   :  { %v2899_v55 = vadd.f32 1e-05, %v2898_v37 }
0x1081   :  { %9098 = vrsqrt.f32 %v2899_v55 }
0x108b   :  { %v9099_v19 = vpop.eup %9098 }
0x108c   :  { %v2901_v2 = vmul.f32 %v9099_v19, %v2876_v38 }
0x108e   :  { %v2902_v28 = vmul.f32 %v2901_v2, %v2886_v43  ;;  %v2908_v63 = vrot.slane %v2901_v2, %v11717_v0 }
0x1090   :  { %v2903_v29 = vsub.f32 %v2878_v20, %v2902_v28  ;;  %v2910_v17 = vmul.f32 %v2908_v63, %v2871_v60  ;;  %v11724_v60 = vld [vmem:[#allocation62_spill] sm:$0xff] }
0x1092   :  { %v2915_v49 = vrot.slane %v2903_v29, %v11717_v0 }
0x1094   :  { %v2917_v16 = vadd.f32 %v2915_v49, %v2910_v17 }
0x1096   :  { %v2918_v51 = vmul.f32 %v9214_v3, %v2917_v16 }
0x1098   :  { %v2919_v62 = vsel %vm306_vm3, %v2918_v51, -inf }
0x1099   :  { %2920 = vmax.xlane.f32.xlu1 %v2919_v62 }
0x1126   :  { %v2921_v35 = vpop.xlane.xlu1 %2920 }
0x1127   :  { %v10525_v59 = vsub.f32 %v2918_v51, %v2921_v35 }
0x1129   :  { %v2976_v7 = vrot.slane %v10525_v59, %v11717_v0  ;;  %v2987_v50 = vrot.slane %v10525_v59, %v11718_v26  ;;  %v2998_v14 = vrot.slane %v10525_v59, %v11724_v60  ;;  %v3009_v31 = vrot.slane %v10525_v59, %v11725_v32 }
0x112a   :  { %v3020_v5 = vrot.slane %v10525_v59, %v11726_v1  ;;  %v3031_v13 = vrot.slane %v10525_v59, %v11727_v15  ;;  %v3042_v44 = vrot.slane %v10525_v59, %v11728_v4  ;;  %v10543_v43 = vrot.slane %v10525_v59, %v11729_v34 }
0x112b   :  { %2982 = vbcast.lane.b32.xlu0 %v2976_v7, 264  ;;  %2978 = vbcast.lane.b32.xlu1 %v2976_v7, 256  ;;  %v2931_v40 = vrot.slane %v10525_v59, %v11716_v10  ;;  %v2924_v20 = vcombine.high %v10525_v59, %v10525_v59 }
0x112d   :  { %v2947_v41 = vrot.slane %v2931_v40, %v11716_v10  ;;  %v2939_v22 = vcombine.high %v2931_v40, %v2931_v40  ;;  %v2938_v51 = vrot.slane %v2924_v20, %v11716_v10 }
0x112f   :  { %2993 = vbcast.lane.b32.xlu0 %v2987_v50, 264  ;;  %2989 = vbcast.lane.b32.xlu1 %v2987_v50, 256  ;;  %v10551_v11 = vrot.slane %v2947_v41, %v11717_v0  ;;  %v2961_v37 = vrot.slane %v2939_v22, %v11716_v10  ;;  %v2969_v17 = vcombine.high %v2947_v41, %v2947_v41 }
0x1130   :  { %v2940_v22 = vcombine.high %v2938_v51, %v2938_v51 }
0x1131   :  { %v10565_v28 = vrot.slane %v2961_v37, %v11717_v0  ;;  %v10578_v62 = vrot.slane %v2969_v17, %v11717_v0 }
0x1133   :  { %3004 = vbcast.lane.b32.xlu0 %v2998_v14, 264  ;;  %3000 = vbcast.lane.b32.xlu1 %v2998_v14, 256 }
0x1137   :  { %3015 = vbcast.lane.b32.xlu0 %v3009_v31, 264  ;;  %3011 = vbcast.lane.b32.xlu1 %v3009_v31, 256 }
0x113b   :  { %3026 = vbcast.lane.b32.xlu0 %v3020_v5, 264  ;;  %3022 = vbcast.lane.b32.xlu1 %v3020_v5, 256 }
0x113f   :  { %3037 = vbcast.lane.b32.xlu0 %v3031_v13, 264  ;;  %3033 = vbcast.lane.b32.xlu1 %v3031_v13, 256 }
0x1143   :  { %3048 = vbcast.lane.b32.xlu0 %v3042_v44, 264  ;;  %3044 = vbcast.lane.b32.xlu1 %v3042_v44, 256 }
0x1147   :  { %3059 = vbcast.lane.b32.xlu0 %v10543_v43, 264  ;;  %3055 = vbcast.lane.b32.xlu1 %v10543_v43, 256 }
0x114b   :  { %3270 = vbcast.lane.b32.xlu0 %v2976_v7, 264  ;;  %3266 = vbcast.lane.b32.xlu1 %v2976_v7, 256  ;;  %v2971_v7 = vcombine.high %v2961_v37, %v2961_v37 }
0x114f   :  { %3292 = vbcast.lane.b32.xlu0 %v2998_v14, 264  ;;  %3277 = vbcast.lane.b32.xlu1 %v2987_v50, 256 }
0x1153   :  { %3303 = vbcast.lane.b32.xlu0 %v3009_v31, 264  ;;  %3281 = vbcast.lane.b32.xlu1 %v2987_v50, 264 }
0x1157   :  { %3314 = vbcast.lane.b32.xlu0 %v3020_v5, 264  ;;  %3288 = vbcast.lane.b32.xlu1 %v2998_v14, 256 }
0x115b   :  { %3325 = vbcast.lane.b32.xlu0 %v3031_v13, 264  ;;  %3299 = vbcast.lane.b32.xlu1 %v3009_v31, 256 }
0x115f   :  { %3336 = vbcast.lane.b32.xlu0 %v3042_v44, 264  ;;  %3310 = vbcast.lane.b32.xlu1 %v3020_v5, 256 }
0x1163   :  { %3321 = vbcast.lane.b32.xlu1 %v3031_v13, 256  ;;  %v2954_v13 = vrot.slane %v2938_v51, %v11716_v10 }
0x1167   :  { %3332 = vbcast.lane.b32.xlu1 %v3042_v44, 256  ;;  %v10592_v44 = vrot.slane %v2971_v7, %v11717_v0 }
0x119d   :  { %v2983_v55 = vpop.permute.xlu0 %2982  ;;  %v2979_v38 = vpop.permute.xlu1 %2978 }
0x119e   :  { %vm3102_vm14 = vcmp.ge.f32.partialorder %v10551_v11, %v2983_v55  ;;  %vm3101_vm15 = vcmp.ge.f32.partialorder %v10551_v11, %v2979_v38 }
0x119f   :  { %v10557_v19 = vsel %vm3102_vm14, 1.0, %v11713_v9  ;;  %v10560_v2 = vsel %vm3101_vm15, 1.0, %v11713_v9 }
0x11a0   :  { %v3152_v63 = vsel %vm1494_vm8, %v10557_v19, 0.0  ;;  %v3149_v29 = vsel %vm306_vm3, %v10560_v2, 0.0 }
0x11a1   :  { %v2994_v49 = vpop.permute.xlu0 %2993  ;;  %v2990_v16 = vpop.permute.xlu1 %2989  ;;  %3153 = vadd.xlane.f32.xlu0 %v3152_v63  ;;  %3150 = vadd.xlane.f32.xlu1 %v3149_v29  ;;  %v10607_v63 = vrot.slane %v2954_v13, %v11717_v0 }
0x11a2   :  { %vm3104_vm0 = vcmp.ge.f32.partialorder %v10565_v28, %v2994_v49  ;;  %vm3103_vm14 = vcmp.ge.f32.partialorder %v10565_v28, %v2990_v16  ;;  %v2968_v49 = vrot.slane %v2940_v22, %v11716_v10 }
0x11a3   :  { %v10574_v3 = vsel %vm3103_vm14, 1.0, %v11713_v9  ;;  %v10583_v31 = vsel %vm3104_vm0, 1.0, %v11713_v9 }
0x11a4   :  { %v3155_v35 = vsel %vm306_vm3, %v10574_v3, 0.0  ;;  %v3158_v41 = vsel %vm1494_vm8, %v10583_v31, 0.0 }
0x11a5   :  { %v3005_v50 = vpop.permute.xlu0 %3004  ;;  %v3001_v14 = vpop.permute.xlu1 %3000  ;;  %3156 = vadd.xlane.f32.xlu0 %v3155_v35 }
0x11a6   :  { %vm3106_vm15 = vcmp.ge.f32.partialorder %v10578_v62, %v3005_v50  ;;  %vm3105_vm14 = vcmp.ge.f32.partialorder %v10578_v62, %v3001_v14  ;;  %v10623_v50 = vrot.slane %v2968_v49, %v11717_v0 }
0x11a7   :  { %v10588_v5 = vsel %vm3105_vm14, 1.0, %v11713_v9  ;;  %v10599_v38 = vsel %vm3106_vm15, 1.0, %v11713_v9 }
0x11a8   :  { %v3161_v40 = vsel %vm306_vm3, %v10588_v5, 0.0  ;;  %v3164_v29 = vsel %vm1494_vm8, %v10599_v38, 0.0 }
0x11a9   :  { %v3016_v37 = vpop.permute.xlu0 %3015  ;;  %v3012_v55 = vpop.permute.xlu1 %3011  ;;  %3162 = vadd.xlane.f32.xlu1 %v3161_v40  ;;  %3159 = vadd.xlane.f32.xlu0 %v3158_v41  ;;  %v2970_v41 = vcombine.high %v2954_v13, %v2954_v13  ;;  %v2972_v13 = vcombine.high %v2968_v49, %v2968_v49 }
0x11aa   :  { %vm3108_vm0 = vcmp.ge.f32.partialorder %v10592_v44, %v3016_v37  ;;  %vm3107_vm14 = vcmp.ge.f32.partialorder %v10592_v44, %v3012_v55 }
0x11ab   :  { %v10604_v20 = vsel %vm3107_vm14, 1.0, %v11713_v9  ;;  %v10615_v35 = vsel %vm3108_vm0, 1.0, %v11713_v9 }
0x11ac   :  { %v3167_v17 = vsel %vm306_vm3, %v10604_v20, 0.0  ;;  %v3170_v14 = vsel %vm1494_vm8, %v10615_v35, 0.0 }
0x11ad   :  { %v3027_v16 = vpop.permute.xlu0 %3026  ;;  %v3023_v51 = vpop.permute.xlu1 %3022  ;;  %3165 = vadd.xlane.f32.xlu0 %v3164_v29  ;;  %3168 = vadd.xlane.f32.xlu1 %v3167_v17  ;;  %v10634_v17 = vrot.slane %v2970_v41, %v11717_v0  ;;  %v3092_v41 = vrot.slane %v2972_v13, %v11717_v0  ;;  %v3197_v13 = vmul.f32 %v10560_v2, %v10551_v11 }
0x11ae   :  { %vm3110_vm15 = vcmp.ge.f32.partialorder %v10607_v63, %v3027_v16  ;;  %vm3109_vm14 = vcmp.ge.f32.partialorder %v10607_v63, %v3023_v51 }
0x11af   :  { %v10620_v7 = vsel %vm3109_vm14, 1.0, %v11713_v9  ;;  %v7948_v55 = vsel %vm3110_vm15, 1.0, %v11713_v9 }
0x11b0   :  { %v3173_v40 = vsel %vm306_vm3, %v10620_v7, 0.0  ;;  %v3176_v16 = vsel %vm1494_vm8, %v7948_v55, 0.0 }
0x11b1   :  { %v3038_v22 = vpop.permute.xlu0 %3037  ;;  %v3034_v37 = vpop.permute.xlu1 %3033  ;;  %3171 = vadd.xlane.f32.xlu0 %v3170_v14  ;;  %3174 = vadd.xlane.f32.xlu1 %v3173_v40 }
0x11b2   :  { %vm3112_vm0 = vcmp.ge.f32.partialorder %v10623_v50, %v3038_v22  ;;  %vm3111_vm14 = vcmp.ge.f32.partialorder %v10623_v50, %v3034_v37 }
0x11b3   :  { %v7949_v29 = vsel %vm3111_vm14, 1.0, %v11713_v9  ;;  %v7950_v14 = vsel %vm3112_vm0, 1.0, %v11713_v9 }
0x11b4   :  { %v3179_v51 = vsel %vm306_vm3, %v7949_v29, 0.0  ;;  %v3182_v22 = vsel %vm1494_vm8, %v7950_v14, 0.0 }
0x11b5   :  { %v3049_v6 = vpop.permute.xlu0 %3048  ;;  %v3045_v57 = vpop.permute.xlu1 %3044  ;;  %3177 = vadd.xlane.f32.xlu0 %v3176_v16  ;;  %3180 = vadd.xlane.f32.xlu1 %v3179_v51 }
0x11b6   :  { %vm3114_vm15 = vcmp.ge.f32.partialorder %v10634_v17, %v3049_v6  ;;  %vm3113_vm5 = vcmp.ge.f32.partialorder %v10634_v17, %v3045_v57 }
0x11b7   :  { %v7951_v40 = vsel %vm3113_vm5, 1.0, %v11713_v9  ;;  %v7952_v16 = vsel %vm3114_vm15, 1.0, %v11713_v9 }
0x11b8   :  { %v3185_v37 = vsel %vm306_vm3, %v7951_v40, 0.0  ;;  %v3188_v57 = vsel %vm1494_vm8, %v7952_v16, 0.0 }
0x11b9   :  { %v3060_v56 = vpop.permute.xlu0 %3059  ;;  %v3056_v49 = vpop.permute.xlu1 %3055  ;;  %3183 = vadd.xlane.f32.xlu0 %v3182_v22  ;;  %3186 = vadd.xlane.f32.xlu1 %v3185_v37  ;;  %v3198_v22 = vmul.f32 %v10557_v19, %v10551_v11 }
0x11ba   :  { %vm3116_vm14 = vcmp.ge.f32.partialorder %v3092_v41, %v3060_v56  ;;  %vm3115_vm0 = vcmp.ge.f32.partialorder %v3092_v41, %v3056_v49  ;;  %v3199_v56 = vmul.f32 %v10574_v3, %v10565_v28  ;;  %v3213_v49 = vsel %vm306_vm3, %v3197_v13, 0.0 }
0x11bb   :  { %v7953_v6 = vsel %vm3115_vm0, 1.0, %v11713_v9  ;;  %v7954_v52 = vsel %vm3116_vm14, 1.0, %v11713_v9  ;;  %v3216_v48 = vsel %vm1494_vm8, %v3198_v22, 0.0  ;;  %v3202_v3 = vmul.f32 %v10599_v38, %v10578_v62 }
0x11bc   :  { %v3191_v51 = vsel %vm306_vm3, %v7953_v6, 0.0  ;;  %v3194_v37 = vsel %vm1494_vm8, %v7954_v52, 0.0  ;;  %v3219_v2 = vsel %vm306_vm3, %v3199_v56, 0.0  ;;  %v3203_v13 = vmul.f32 %v10604_v20, %v10592_v44 }
0x11bd   :  { %3189 = vadd.xlane.f32.xlu0 %v3188_v57  ;;  %3192 = vadd.xlane.f32.xlu1 %v3191_v51  ;;  %v3200_v57 = vmul.f32 %v10583_v31, %v10565_v28  ;;  %v3201_v51 = vmul.f32 %v10588_v5, %v10578_v62  ;;  %v3228_v22 = vsel %vm1494_vm8, %v3202_v3, 0.0  ;;  %v3205_v31 = vmul.f32 %v10620_v7, %v10607_v63 }
0x11be   :  { %v3231_v28 = vsel %vm306_vm3, %v3203_v13, 0.0  ;;  %v3206_v38 = vmul.f32 %v7948_v55, %v10607_v63  ;;  %v3207_v20 = vmul.f32 %v7949_v29, %v10623_v50  ;;  %v3210_v63 = vmul.f32 %v7952_v16, %v10634_v17 }
0x11bf   :  { %v3222_v11 = vsel %vm1494_vm8, %v3200_v57, 0.0  ;;  %v3225_v19 = vsel %vm306_vm3, %v3201_v51, 0.0  ;;  %v3237_v62 = vsel %vm306_vm3, %v3205_v31, 0.0  ;;  %v3211_v55 = vmul.f32 %v7953_v6, %v3092_v41 }
0x11c0   :  { %v3240_v56 = vsel %vm1494_vm8, %v3206_v38, 0.0  ;;  %v3252_v29 = vsel %vm1494_vm8, %v3210_v63, 0.0  ;;  %v3212_v57 = vmul.f32 %v7954_v52, %v3092_v41 }
0x11c1   :  { %3195 = vadd.xlane.f32.xlu0 %v3194_v37  ;;  %3214 = vadd.xlane.f32.xlu1 %v3213_v49  ;;  %v3243_v37 = vsel %vm306_vm3, %v3207_v20, 0.0 }
0x11c5   :  { %3217 = vadd.xlane.f32.xlu0 %v3216_v48  ;;  %3220 = vadd.xlane.f32.xlu1 %v3219_v2  ;;  %v3204_v48 = vmul.f32 %v10615_v35, %v10592_v44  ;;  %v3208_v44 = vmul.f32 %v7950_v14, %v10623_v50  ;;  %v3209_v35 = vmul.f32 %v7951_v40, %v10634_v17  ;;  %v3255_v2 = vsel %vm306_vm3, %v3211_v55, 0.0  ;;  %v3267_v14 = vpop.permute.xlu1 %3266  ;;  %v3271_v17 = vpop.permute.xlu0 %3270 }
0x11c6   :  { %v3258_v50 = vsel %vm1494_vm8, %v3212_v57, 0.0 }
0x11c7   :  { %v3234_v5 = vsel %vm1494_vm8, %v3204_v48, 0.0  ;;  %v3246_v7 = vsel %vm1494_vm8, %v3208_v44, 0.0  ;;  %v3249_v49 = vsel %vm306_vm3, %v3209_v35, 0.0 }
0x11c9   :  { %3223 = vadd.xlane.f32.xlu0 %v3222_v11  ;;  %3226 = vadd.xlane.f32.xlu1 %v3225_v19  ;;  %v3278_v40 = vpop.permute.xlu1 %3277  ;;  %v3293_v6 = vpop.permute.xlu0 %3292 }
0x11cd   :  { %3229 = vadd.xlane.f32.xlu0 %v3228_v22  ;;  %3232 = vadd.xlane.f32.xlu1 %v3231_v28  ;;  %v3282_v16 = vpop.permute.xlu1 %3281  ;;  %v3304_v11 = vpop.permute.xlu0 %3303 }
0x11d1   :  { %3235 = vadd.xlane.f32.xlu0 %v3234_v5  ;;  %3238 = vadd.xlane.f32.xlu1 %v3237_v62  ;;  %v3289_v51 = vpop.permute.xlu1 %3288  ;;  %v10692_v3 = vpop.permute.xlu0 %3314 }
0x11d5   :  { %3241 = vadd.xlane.f32.xlu0 %v3240_v56  ;;  %3244 = vadd.xlane.f32.xlu1 %v3243_v37  ;;  %v3300_v19 = vpop.permute.xlu1 %3299  ;;  %v10696_v41 = vpop.permute.xlu0 %3325 }
0x11d9   :  { %3247 = vadd.xlane.f32.xlu0 %v3246_v7  ;;  %3250 = vadd.xlane.f32.xlu1 %v3249_v49  ;;  %v10694_v52 = vpop.permute.xlu1 %3310  ;;  %v10700_v22 = vpop.permute.xlu0 %3336 }
0x11dd   :  { %3253 = vadd.xlane.f32.xlu0 %v3252_v29  ;;  %3256 = vadd.xlane.f32.xlu1 %v3255_v2  ;;  %v10698_v13 = vpop.permute.xlu1 %3321 }
0x11e1   :  { %3259 = vadd.xlane.f32.xlu0 %v3258_v50  ;;  %v10702_v28 = vpop.permute.xlu1 %3332 }
0x11ee   :  { %3343 = vbcast.lane.b32.xlu1 %v10543_v43, 256 }
0x11f7   :  { %3347 = vbcast.lane.b32.xlu0 %v10543_v43, 264 }
0x122e   :  { %v3154_v43 = vpop.xlane.xlu0 %3153  ;;  %v3151_v48 = vpop.xlane.xlu1 %3150 }
0x122f   :  { %v3365_v50 = vmul.f32 %v3267_v14, %v3151_v48  ;;  %v3366_v39 = vmul.f32 %v3271_v17, %v3154_v43 }
0x1232   :  { %v3157_v31 = vpop.xlane.xlu0 %3156 }
0x1233   :  { %v3367_v30 = vmul.f32 %v3278_v40, %v3157_v31 }
0x1236   :  { %v3163_v5 = vpop.xlane.xlu1 %3162  ;;  %v3160_v62 = vpop.xlane.xlu0 %3159 }
0x1237   :  { %v3368_v27 = vmul.f32 %v3282_v16, %v3160_v62  ;;  %v3369_v14 = vmul.f32 %v3289_v51, %v3163_v5 }
0x123a   :  { %v3166_v38 = vpop.xlane.xlu0 %3165  ;;  %v3169_v20 = vpop.xlane.xlu1 %3168 }
0x123b   :  { %v3370_v17 = vmul.f32 %v3293_v6, %v3166_v38  ;;  %v3371_v48 = vmul.f32 %v3300_v19, %v3169_v20 }
0x123e   :  { %v3172_v56 = vpop.xlane.xlu0 %3171  ;;  %v3175_v37 = vpop.xlane.xlu1 %3174 }
0x1242   :  { %v3178_v44 = vpop.xlane.xlu0 %3177  ;;  %v3181_v35 = vpop.xlane.xlu1 %3180 }
0x1243   :  { %v3374_v6 = vmul.f32 %v10692_v3, %v3178_v44  ;;  %v3375_v20 = vmul.f32 %v10698_v13, %v3181_v35 }
0x1246   :  { %v10704_v7 = vpop.xlane.xlu0 %3183  ;;  %v10706_v49 = vpop.xlane.xlu1 %3186 }
0x124a   :  { %v10708_v63 = vpop.xlane.xlu0 %3189  ;;  %v10710_v55 = vpop.xlane.xlu1 %3192 }
0x124e   :  { %v10712_v29 = vpop.xlane.xlu0 %3195  ;;  %v3215_v2 = vpop.xlane.xlu1 %3214 }
0x124f   :  { %v7955_v57 = vadd.f32 -1.0, %v3215_v2 }
0x1251   :  { %vm3397_vm5 = vcmp.gt.f32.partialorder %v3365_v50, %v7955_v57 }
0x1252   :  { %v3218_v45 = vpop.xlane.xlu0 %3217  ;;  %v3221_v42 = vpop.xlane.xlu1 %3220  ;;  %v7971_v24 = vsel %vm3397_vm5, 1.0, %v11713_v9 }
0x1253   :  { %v7956_v36 = vadd.f32 -1.0, %v3218_v45  ;;  %v7957_v33 = vadd.f32 -1.0, %v3221_v42 }
0x1255   :  { %vm3398_vm15 = vcmp.gt.f32.partialorder %v3366_v39, %v7956_v36  ;;  %vm3399_vm14 = vcmp.gt.f32.partialorder %v3367_v30, %v7957_v33 }
0x1256   :  { %v7972_v21 = vsel %vm3398_vm15, 1.0, %v11713_v9  ;;  %v3224_v18 = vpop.xlane.xlu0 %3223  ;;  %v3227_v34 = vpop.xlane.xlu1 %3226  ;;  %v7973_v45 = vsel %vm3399_vm14, 1.0, %v11713_v9 }
0x1257   :  { %v8910_v4 = vpack.i.bf16 %v7972_v21, %v7971_v24  ;;  %v7958_v15 = vadd.f32 -1.0, %v3224_v18  ;;  %v7959_v2 = vadd.f32 -1.0, %v3227_v34  ;;  %v3372_v21 = vmul.f32 %v3304_v11, %v3172_v56 }
0x1258   :  { %v3373_v34 = vmul.f32 %v10694_v52, %v3175_v37  ;;  %v3376_v52 = vmul.f32 %v10696_v41, %v10704_v7 }
0x1259   :  { %vm3400_vm0 = vcmp.gt.f32.partialorder %v3368_v27, %v7958_v15  ;;  %8911 = vperm.xlu1 %8874, %v8910_v4   ;;  %vm3401_vm5 = vcmp.gt.f32.partialorder %v3369_v14, %v7959_v2  ;;  %v3377_v14 = vmul.f32 %v10702_v28, %v10706_v49 }
0x125a   :  { %v7974_v42 = vsel %vm3400_vm0, 1.0, %v11713_v9  ;;  %v3230_v36 = vpop.xlane.xlu0 %3229  ;;  %v3233_v39 = vpop.xlane.xlu1 %3232  ;;  %v7975_v18 = vsel %vm3401_vm5, 1.0, %v11713_v9 }
0x125b   :  { %v8915_v40 = vpack.i.bf16 %v7974_v42, %v7973_v45  ;;  %v7960_v16 = vadd.f32 -1.0, %v3230_v36  ;;  %v7961_v43 = vadd.f32 -1.0, %v3233_v39 }
0x125d   :  { %vm3402_vm15 = vcmp.gt.f32.partialorder %v3370_v17, %v7960_v16  ;;  %8916 = vperm.xlu0 %8868, %v8915_v40   ;;  %vm3403_vm14 = vcmp.gt.f32.partialorder %v3371_v48, %v7961_v43  ;;  %v3378_v17 = vmul.f32 %v10700_v22, %v10708_v63 }
0x125e   :  { %v7976_v24 = vsel %vm3402_vm15, 1.0, %v11713_v9  ;;  %v3236_v27 = vpop.xlane.xlu0 %3235  ;;  %v3239_v30 = vpop.xlane.xlu1 %3238  ;;  %v7977_v51 = vsel %vm3403_vm14, 1.0, %v11713_v9 }
0x125f   :  { %v8920_v33 = vpack.i.bf16 %v7976_v24, %v7975_v18  ;;  %v7962_v15 = vadd.f32 -1.0, %v3236_v27  ;;  %v7963_v4 = vadd.f32 -1.0, %v3239_v30 }
0x1261   :  { %vm3404_vm0 = vcmp.gt.f32.partialorder %v3372_v21, %v7962_v15  ;;  %8921 = vperm.xlu1 %8874, %v8920_v33   ;;  %vm3405_vm5 = vcmp.gt.f32.partialorder %v3373_v34, %v7963_v4 }
0x1262   :  { %v7978_v11 = vsel %vm3404_vm0, 1.0, %v11713_v9  ;;  %v3242_v19 = vpop.xlane.xlu0 %3241  ;;  %v3245_v31 = vpop.xlane.xlu1 %3244  ;;  %v7979_v56 = vsel %vm3405_vm5, 1.0, %v11713_v9 }
0x1263   :  { %v8925_v5 = vpack.i.bf16 %v7978_v11, %v7977_v51  ;;  %v7964_v62 = vadd.f32 -1.0, %v3242_v19  ;;  %v7965_v38 = vadd.f32 -1.0, %v3245_v31 }
0x1265   :  { %vm3406_vm15 = vcmp.gt.f32.partialorder %v3374_v6, %v7964_v62  ;;  %8926 = vperm.xlu0 %8868, %v8925_v5   ;;  %vm3407_vm14 = vcmp.gt.f32.partialorder %v3375_v20, %v7965_v38 }
0x1266   :  { %v7980_v3 = vsel %vm3406_vm15, 1.0, %v11713_v9  ;;  %v3248_v37 = vpop.xlane.xlu0 %3247  ;;  %v3251_v44 = vpop.xlane.xlu1 %3250  ;;  %v7981_v13 = vsel %vm3407_vm14, 1.0, %v11713_v9 }
0x1267   :  { %v8930_v57 = vpack.i.bf16 %v7980_v3, %v7979_v56  ;;  %v7966_v50 = vadd.f32 -1.0, %v3248_v37  ;;  %v7967_v2 = vadd.f32 -1.0, %v3251_v44 }
0x1269   :  { %vm3408_vm0 = vcmp.gt.f32.partialorder %v3376_v52, %v7966_v50  ;;  %8931 = vperm.xlu1 %8874, %v8930_v57   ;;  %vm3409_vm5 = vcmp.gt.f32.partialorder %v3377_v14, %v7967_v2 }
0x126a   :  { %v7982_v35 = vsel %vm3408_vm0, 1.0, %v11713_v9  ;;  %v3254_v41 = vpop.xlane.xlu0 %3253  ;;  %v3257_v7 = vpop.xlane.xlu1 %3256  ;;  %v7983_v36 = vsel %vm3409_vm5, 1.0, %v11713_v9  ;;  %vm11730_vm5 = vcmask 523264  }
0x126b   :  { %v8935_v45 = vpack.i.bf16 %v7982_v35, %v7981_v13  ;;  %v7968_v42 = vadd.f32 -1.0, %v3254_v41  ;;  %v7969_v43 = vadd.f32 -1.0, %v3257_v7 }
0x126d   :  { %vm3410_vm15 = vcmp.gt.f32.partialorder %v3378_v17, %v7968_v42  ;;  %8936 = vperm.xlu0 %8868, %v8935_v45  }
0x126e   :  { %v7984_v28 = vsel %vm3410_vm15, 1.0, %v11713_v9  ;;  %v3260_v49 = vpop.xlane.xlu0 %3259  ;;  %v3344_v39 = vpop.permute.xlu1 %3343 }
0x126f   :  { %v8940_v40 = vpack.i.bf16 %v7984_v28, %v7983_v36  ;;  %v3379_v16 = vmul.f32 %v3344_v39, %v10710_v55  ;;  %v7970_v21 = vadd.f32 -1.0, %v3260_v49 }
0x1271   :  { %8941 = vperm.xlu1 %8874, %v8940_v40   ;;  %vm3411_vm14 = vcmp.gt.f32.partialorder %v3379_v16, %v7969_v43 }
0x1272   :  { %v3348_v48 = vpop.permute.xlu0 %3347  ;;  %v7985_v63 = vsel %vm3411_vm14, 1.0, %v11713_v9 }
0x1273   :  { %v3380_v22 = vmul.f32 %v3348_v48, %v10712_v29 }
0x1275   :  { %vm3412_vm0 = vcmp.gt.f32.partialorder %v3380_v22, %v7970_v21 }
0x1276   :  { %v7986_v18 = vsel %vm3412_vm0, 1.0, %v11713_v9 }
0x1277   :  { %v8945_v24 = vpack.i.bf16 %v7986_v18, %v7985_v63 }
0x1279   :  { %8946 = vperm.xlu0 %8868, %v8945_v24  }
0x12d8   :  { %v8912_v27 = vpop.permute.xlu1 %8911 }
0x12d9   :  { %v8914_v19 = vunpack.i.h.bf16 %v8912_v27  ;;  %v8913_v31 = vunpack.i.l.bf16 %v8912_v27 }
0x12db   :  { %v3516_v14 = vrot.slane %v8914_v19, %v10358_v25  ;;  %v3512_v13 = vrot.slane %v8913_v31, %v10355_v54 }
0x12dc   :  { %v8917_v30 = vpop.permute.xlu0 %8916 }
0x12dd   :  { %v8919_v55 = vunpack.i.h.bf16 %v8917_v30  ;;  %v8918_v34 = vunpack.i.l.bf16 %v8917_v30  ;;  %v3517_v40 = vsel %vm1863_vm1, %v3516_v14, %v3512_v13  ;;  %v1955_v14 = vsub.f32 0.0, %v10395_v8 }
0x12df   :  { %v3525_v52 = vrot.slane %v8919_v55, %v10358_v25  ;;  %v3521_v56 = vrot.slane %v8918_v34, %v10355_v54 }
0x12e0   :  { %v8922_v33 = vpop.permute.xlu1 %8921 }
0x12e1   :  { %v8924_v6 = vunpack.i.h.bf16 %v8922_v33  ;;  %v8923_v51 = vunpack.i.l.bf16 %v8922_v33  ;;  %v3526_v45 = vsel %vm1863_vm1, %v3525_v52, %v3521_v56 }
0x12e2   :  { %v3581_v43 = vsel %vm1928_vm6, %v3526_v45, %v3517_v40 }
0x12e3   :  { %v3534_v44 = vrot.slane %v8924_v6, %v10358_v25  ;;  %v3530_v57 = vrot.slane %v8923_v51, %v10355_v54 }
0x12e4   :  { %v8927_v15 = vpop.permute.xlu0 %8926 }
0x12e5   :  { %v8929_v29 = vunpack.i.h.bf16 %v8927_v15  ;;  %v8928_v5 = vunpack.i.l.bf16 %v8927_v15  ;;  %v3535_v28 = vsel %vm1863_vm1, %v3534_v44, %v3530_v57 }
0x12e6   :  { %v3582_v22 = vsel %vm1930_vm7, %v3535_v28, %v3581_v43 }
0x12e7   :  { %v3543_v35 = vrot.slane %v8929_v29, %v10358_v25  ;;  %v3539_v41 = vrot.slane %v8928_v5, %v10355_v54 }
0x12e8   :  { %v8932_v4 = vpop.permute.xlu1 %8931 }
0x12e9   :  { %v8934_v62 = vunpack.i.h.bf16 %v8932_v4  ;;  %v8933_v38 = vunpack.i.l.bf16 %v8932_v4  ;;  %v3544_v16 = vsel %vm1863_vm1, %v3543_v35, %v3539_v41 }
0x12ea   :  { %v3583_v30 = vsel %vm1932_vm9, %v3544_v16, %v3582_v22 }
0x12eb   :  { %v3552_v7 = vrot.slane %v8934_v62, %v10358_v25  ;;  %v3548_v17 = vrot.slane %v8933_v38, %v10355_v54 }
0x12ec   :  { %v8937_v11 = vpop.permute.xlu0 %8936 }
0x12ed   :  { %v8939_v3 = vunpack.i.h.bf16 %v8937_v11  ;;  %v8938_v37 = vunpack.i.l.bf16 %v8937_v11  ;;  %v3553_v48 = vsel %vm1863_vm1, %v3552_v7, %v3548_v17 }
0x12ee   :  { %v3584_v4 = vsel %vm1934_vm10, %v3553_v48, %v3583_v30 }
0x12ef   :  { %v3561_v42 = vrot.slane %v8939_v3, %v10358_v25  ;;  %v3557_v36 = vrot.slane %v8938_v37, %v10355_v54 }
0x12f0   :  { %v8942_v20 = vpop.permute.xlu1 %8941 }
0x12f1   :  { %v8944_v50 = vunpack.i.h.bf16 %v8942_v20  ;;  %v8943_v2 = vunpack.i.l.bf16 %v8942_v20  ;;  %v3562_v24 = vsel %vm1863_vm1, %v3561_v42, %v3557_v36  ;;  %v1956_v20 = vadd.f32 1e-10, %v10395_v8 }
0x12f2   :  { %v3585_v55 = vsel %vm1936_vm11, %v3562_v24, %v3584_v4 }
0x12f3   :  { %v3570_v49 = vrot.slane %v8944_v50, %v10358_v25  ;;  %v3566_v39 = vrot.slane %v8943_v2, %v10355_v54 }
0x12f5   :  { %v3571_v27 = vsel %vm1863_vm1, %v3570_v49, %v3566_v39 }
0x12f6   :  { %v3586_v6 = vsel %vm1938_vm12, %v3571_v27, %v3585_v55 }
0x12f8   :  { %v8947_v21 = vpop.permute.xlu0 %8946 }
0x12f9   :  { %v8949_v63 = vunpack.i.h.bf16 %v8947_v21  ;;  %v8948_v18 = vunpack.i.l.bf16 %v8947_v21 }
0x12fb   :  { %v3579_v33 = vrot.slane %v8949_v63, %v10358_v25  ;;  %v3575_v15 = vrot.slane %v8948_v18, %v10355_v54 }
0x12fd   :  { %v3580_v34 = vsel %vm1863_vm1, %v3579_v33, %v3575_v15 }
0x12fe   :  { %v3587_v51 = vsel %vm1940_vm13, %v3580_v34, %v3586_v6 }
0x12ff   :  { %v3589_v11 = vsel %vm306_vm3, %v3587_v51, 0.0  ;;  %v3592_v19 = vmul.f32 %v3587_v51, %v10525_v59 }
0x1300   :  { %3590 = vadd.xlane.f32.xlu1 %v3589_v11 }
0x1301   :  { %v3593_v31 = vsel %vm306_vm3, %v3592_v19, 0.0 }
0x1302   :  { %3594 = vadd.xlane.f32.xlu0 %v3593_v31 }
0x138d   :  { %v3591_v29 = vpop.xlane.xlu1 %3590 }
0x138e   :  { %9100 = vrcp.f32 %v3591_v29 }
0x138f   :  { %v3595_v5 = vpop.xlane.xlu0 %3594  ;;  %9102 = vlog2.f32 %v1956_v20 }
0x1390   :  { %v7987_v62 = vadd.f32 -1.0, %v3595_v5 }
0x1398   :  { %v9101_v38 = vpop.eup %9100 }
0x1399   :  { %v3598_v52 = vmul.f32 %v9101_v38, %v7987_v62  ;;  %v9103_v57 = vpop.eup %9102 }
0x139a   :  { %v1958_v50 = vmul.f32 0.6931472, %v9103_v57 }
0x139b   :  { %v3599_v56 = vsub.f32 %v10525_v59, %v3598_v52 }
0x139c   :  { %v1959_v41 = vmul.f32 %v1958_v50, %v1955_v14 }
0x139d   :  { %v3600_v3 = vmax.f32 %v3599_v56, 0.0 }
0x139f   :  { %v3602_v37 = vadd.f32 1e-10, %v3600_v3  ;;  %v3607_v44 = vmul.f32 %v3600_v3, %v9969_v12  ;;  %v3601_v13 = vsub.f32 0.0, %v3600_v3 }
0x13a1   :  { %9104 = vlog2.f32 %v3602_v37  ;;  %7990 = vmatmul.mubr.msk.f32.vlgmr.msra.gmra.mrb[12].mxu0 %vm306_vm3, %v3607_v44 }
0x13a2   :  { %4090 = vmatprep.mubr.f32.mxu0 %v11713_v9 }
0x13ab   :  { %v9105_v2 = vpop.eup %9104 }
0x13ac   :  { %v3604_v35 = vmul.f32 0.6931472, %v9105_v2 }
0x13ae   :  { %v3605_v7 = vmul.f32 %v3604_v35, %v3601_v13  ;;  %v3609_v35 = vld [vmem:[#allocation13 + $0x8] sm:$0x3] }
0x13b0   :  { %v10781_v59 = vadd.f32 %v3605_v7, %v1959_v41 }
0x1474   :  { %v3681_v17 = vpop.f32.mrb[12].mxu0 }
0x1475   :  { %v3686_v45 = vrot.slane %v3681_v17, 4  ;;  %v3700_v42 = vmul.f32 %v3681_v17, %v3681_v17  ;;  %v3683_v36 = vpop.f32.mrb[13].mxu0 }
0x1476   :  { %v3692_v28 = vrot.slane %v3683_v36, 4  ;;  %v3701_v49 = vmul.f32 %v3683_v36, %v3683_v36 }
0x1477   :  { %v3687_v39 = vadd.f32 %v3686_v45, %v3681_v17  ;;  %v3702_v40 = vrot.slane %v3700_v42, 4 }
0x1478   :  { %v3693_v16 = vadd.f32 %v3692_v28, %v3683_v36  ;;  %v3708_v43 = vrot.slane %v3701_v49, 4 }
0x1479   :  { %v3688_v48 = vrot.slane %v3687_v39, 2  ;;  %v3703_v21 = vadd.f32 %v3702_v40, %v3700_v42 }
0x147a   :  { %v3694_v22 = vrot.slane %v3693_v16, 2  ;;  %v3709_v8 = vadd.f32 %v3708_v43, %v3701_v49 }
0x147b   :  { %v3689_v63 = vadd.f32 %v3688_v48, %v3687_v39  ;;  %v3704_v18 = vrot.slane %v3703_v21, 2  ;;  %v3611_v48 = vld [vmem:[#allocation14 + $0x8] sm:$0x3] }
0x147c   :  { %v3695_v24 = vadd.f32 %v3694_v22, %v3693_v16  ;;  %v3710_v27 = vrot.slane %v3709_v8, 2 }
0x147d   :  { %v3690_v30 = vrot.slane %v3689_v63, 1  ;;  %v3705_v33 = vadd.f32 %v3704_v18, %v3703_v21 }
0x147e   :  { %v3696_v15 = vrot.slane %v3695_v24, 1  ;;  %v3711_v4 = vadd.f32 %v3710_v27, %v3709_v8 }
0x147f   :  { %v3691_v55 = vadd.f32 %v3690_v30, %v3689_v63  ;;  %v3706_v34 = vrot.slane %v3705_v33, 1 }
0x1480   :  { %v3697_v6 = vadd.f32 %v3696_v15, %v3695_v24  ;;  %v3712_v51 = vrot.slane %v3711_v4, 1  ;;  %v3991_v15 = vld [vmem:[#allocation16 + $0x408] sm:$0xff] }
0x1481   :  { %v3698_v11 = vmul.f32 0.125, %v3691_v55  ;;  %v3707_v19 = vadd.f32 %v3706_v34, %v3705_v33  ;;  %v3990_v34 = vld [vmem:[#allocation16 + $0x400] sm:$0xff] }
0x1482   :  { %v3699_v31 = vmul.f32 0.125, %v3697_v6  ;;  %v3713_v29 = vadd.f32 %v3712_v51, %v3711_v4  ;;  %v3993_v4 = vld [vmem:[#allocation16 + $0x418] sm:$0xff]  ;;  %v3992_v6 = vld [vmem:[#allocation16 + $0x410] sm:$0xff] }
0x1483   :  { %v3714_v5 = vmul.f32 0.125, %v3707_v19  ;;  %v3716_v62 = vmul.f32 %v3698_v11, %v3698_v11  ;;  %v8533_v55 = vpack.c.bf16 %v3993_v4, %v3991_v15  ;;  %v8535_v51 = vpack.c.bf16 %v3992_v6, %v3990_v34  ;;  %v3997_v19 = vld [vmem:[#allocation16 + $0x438] sm:$0xff]  ;;  %v4020_v15 = vld [vmem:[#allocation16 + $0x4f0] sm:$0xff] }
0x1484   :  { %v3715_v38 = vmul.f32 0.125, %v3713_v29  ;;  %v3717_v20 = vmul.f32 %v3699_v31, %v3699_v31  ;;  %v3994_v29 = vld [vmem:[#allocation16 + $0x420] sm:$0xff] }
0x1485   :  { %v3718_v52 = vsub.f32 %v3714_v5, %v3716_v62  ;;  %8534 = vmatprep.subr.bf16.mxu0 %v8533_v55  ;;  %v3996_v5 = vld [vmem:[#allocation16 + $0x430] sm:$0xff] }
0x1486   :  { %v3719_v56 = vsub.f32 %v3715_v38, %v3717_v20  ;;  %8536 = vmatpush1.bf16.msra.mxu0 %v8535_v51  ;;  %v8539_v62 = vpack.c.bf16 %v3996_v5, %v3994_v29  ;;  %v3999_v38 = vld [vmem:[#allocation16 + $0x448] sm:$0xff]  ;;  %v4001_v20 = vld [vmem:[#allocation16 + $0x458] sm:$0xff] }
0x1487   :  { %v3720_v3 = vmax.f32 %v3718_v52, 0.0  ;;  %v8541_v52 = vpack.c.bf16 %v4001_v20, %v3999_v38 }
0x1488   :  { %v3721_v37 = vmax.f32 %v3719_v56, 0.0  ;;  %v3998_v56 = vld [vmem:[#allocation16 + $0x440] sm:$0xff] }
0x1489   :  { %v3722_v44 = vadd.f32 1e-05, %v3720_v3  ;;  %v4000_v3 = vld [vmem:[#allocation16 + $0x450] sm:$0xff] }
0x148a   :  { %v3723_v57 = vadd.f32 1e-05, %v3721_v37  ;;  %v8543_v37 = vpack.c.bf16 %v4000_v3, %v3998_v56 }
0x148b   :  { %9106 = vrsqrt.f32 %v3722_v44  ;;  %v4003_v44 = vld [vmem:[#allocation16 + $0x468] sm:$0xff] }
0x148c   :  { %9108 = vrsqrt.f32 %v3723_v57  ;;  %v4005_v57 = vld [vmem:[#allocation16 + $0x478] sm:$0xff] }
0x1495   :  { %v9107_v50 = vpop.eup %9106 }
0x1496   :  { %v9109_v2 = vpop.eup %9108 }
0x1497   :  { %v3728_v14 = vcombine.low %v9107_v50, %v9109_v2  ;;  %v8545_v50 = vpack.c.bf16 %v4005_v57, %v4003_v44  ;;  %v4002_v2 = vld [vmem:[#allocation16 + $0x460] sm:$0xff] }
0x1499   :  { %v3735_v13 = vrot.slane %v3728_v14, %v11716_v10  ;;  %v4004_v14 = vld [vmem:[#allocation16 + $0x470] sm:$0xff] }
0x149b   :  { %v3742_v41 = vrot.slane %v3735_v13, %v11716_v10  ;;  %v8547_v13 = vpack.c.bf16 %v4004_v14, %v4002_v2 }
0x149d   :  { %v3744_v7 = vmul.f32 %v3742_v41, %v3609_v35  ;;  %v4007_v35 = vld [vmem:[#allocation16 + $0x488] sm:$0xff]  ;;  %v4009_v41 = vld [vmem:[#allocation16 + $0x498] sm:$0xff] }
0x149f   :  { %v3749_v45 = vrot.slane %v3744_v7, %v11717_v0  ;;  %v3753_v42 = vrot.slane %v3744_v7, %v11718_v26  ;;  %v4006_v7 = vld [vmem:[#allocation16 + $0x480] sm:$0xff] }
0x14a1   :  { %v3756_v28 = vmul.f32 %v3749_v45, %v3698_v11  ;;  %v3757_v49 = vmul.f32 %v3753_v42, %v3699_v31  ;;  %v3778_v39 = vmul.f32 %v3753_v42, %v3683_v36  ;;  %v3777_v40 = vmul.f32 %v3749_v45, %v3681_v17  ;;  %v3995_v11 = vld [vmem:[#allocation16 + $0x428] sm:$0xff]  ;;  %v4008_v42 = vld [vmem:[#allocation16 + $0x490] sm:$0xff] }
0x14a2   :  { %v8537_v31 = vpack.c.bf16 %v3997_v19, %v3995_v11  ;;  %v8549_v45 = vpack.c.bf16 %v4009_v41, %v4007_v35 }
0x14a3   :  { %v3760_v16 = vcombine.low %v3756_v28, %v3757_v49  ;;  %v4011_v28 = vld [vmem:[#allocation16 + $0x4a8] sm:$0xff]  ;;  %v4013_v49 = vld [vmem:[#allocation16 + $0x4b8] sm:$0xff] }
0x14a4   :  { %8538 = vmatprep.subr.bf16.mxu0 %v8537_v31 }
0x14a5   :  { %v3767_v43 = vrot.slane %v3760_v16, %v11716_v10  ;;  %8540 = vmatpush1.bf16.msra.mxu0 %v8539_v62  ;;  %v4010_v16 = vld [vmem:[#allocation16 + $0x4a0] sm:$0xff] }
0x14a6   :  { %8542 = vmatprep.subr.bf16.mxu0 %v8541_v52 }
0x14a7   :  { %v3774_v21 = vrot.slane %v3767_v43, %v11716_v10  ;;  %v4012_v43 = vld [vmem:[#allocation16 + $0x4b0] sm:$0xff] }
0x14a9   :  { %v3776_v22 = vsub.f32 %v3611_v48, %v3774_v21  ;;  %8544 = vmatpush1.bf16.msra.mxu0 %v8543_v37  ;;  %v4015_v48 = vld [vmem:[#allocation16 + $0x4c8] sm:$0xff]  ;;  %v4017_v21 = vld [vmem:[#allocation16 + $0x4d8] sm:$0xff] }
0x14aa   :  { %8546 = vmatprep.subr.bf16.mxu0 %v8545_v50 }
0x14ab   :  { %v3787_v8 = vrot.slane %v3776_v22, %v11718_v26  ;;  %v3783_v63 = vrot.slane %v3776_v22, %v11717_v0  ;;  %v8555_v22 = vpack.c.bf16 %v4012_v43, %v4010_v16 }
0x14ad   :  { %v3791_v18 = vadd.f32 %v3787_v8, %v3778_v39  ;;  %v3790_v24 = vadd.f32 %v3783_v63, %v3777_v40  ;;  %8548 = vmatpush1.bf16.msra.mxu0 %v8547_v13  ;;  %v8551_v39 = vpack.c.bf16 %v4008_v42, %v4006_v7  ;;  %v8553_v40 = vpack.c.bf16 %v4013_v49, %v4011_v28  ;;  %v4014_v63 = vld [vmem:[#allocation16 + $0x4c0] sm:$0xff] }
0x14ae   :  { %8550 = vmatprep.subr.bf16.mxu0 %v8549_v45  ;;  %v8557_v8 = vpack.c.bf16 %v4017_v21, %v4015_v48 }
0x14af   :  { %v7991_v27 = vmul.f32 -1.442695, %v3791_v18  ;;  %v4016_v18 = vld [vmem:[#allocation16 + $0x4d0] sm:$0xff] }
0x14b1   :  { %9110 = vpow2.f32 %v7991_v27  ;;  %8552 = vmatpush1.bf16.msra.mxu0 %v8551_v39  ;;  %v4021_v27 = vld [vmem:[#allocation16 + $0x4f8] sm:$0xff] }
0x14b2   :  { %8554 = vmatprep.subr.bf16.mxu0 %v8553_v40 }
0x14b5   :  { %8556 = vmatpush1.bf16.msra.mxu0 %v8555_v22 }
0x14b6   :  { %8558 = vmatprep.subr.bf16.mxu0 %v8557_v8 }
0x14bb   :  { %v9111_v30 = vpop.eup %9110 }
0x14bc   :  { %v3795_v33 = vadd.f32 1.0, %v9111_v30  ;;  %v8559_v30 = vpack.c.bf16 %v4016_v18, %v4014_v63 }
0x14be   :  { %9112 = vrcp.f32 %v3795_v33  ;;  %8560 = vmatpush1.bf16.msra.mxu0 %v8559_v30 }
0x14c8   :  { %v9113_v36 = vpop.eup %9112 }
0x14c9   :  { %v10791_v17 = vmul.f32 %v9113_v36, %v3790_v24  ;;  %v4019_v24 = vld [vmem:[#allocation16 + $0x4e8] sm:$0xff]  ;;  %v4018_v36 = vld [vmem:[#allocation16 + $0x4e0] sm:$0xff] }
0x14ca   :  { %v8561_v33 = vpack.c.bf16 %v4021_v27, %v4019_v24  ;;  %v8563_v4 = vpack.c.bf16 %v4020_v15, %v4018_v36  ;;  %v3800_v15 = vld [vmem:[#allocation13 + $0xa] sm:$0x3] }
0x14cb   :  { %3868 = vmatmul.mubr.f32.vlgmr.msra.gmra.mrb[8].mxu1 %v10791_v17 }
0x14cc   :  { %4313 = vmatprep.mubr.f32.mxu1 %v11713_v9  ;;  %8562 = vmatprep.subr.bf16.mxu0 %v8561_v33 }
0x14cd   :  { %8564 = vmatpush1.bf16.msra.mxu0 %v8563_v4 }
0x14ce   :  { %8597 = vmatprep.subr.bf16.mxu0 %v11719_v53 }
0x159e   :  { %v3869_v55 = vpop.f32.mrb[8].mxu1 }
0x159f   :  { %v3874_v34 = vrot.slane %v3869_v55, 4  ;;  %v3888_v6 = vmul.f32 %v3869_v55, %v3869_v55  ;;  %v3871_v51 = vpop.f32.mrb[9].mxu1 }
0x15a0   :  { %v3880_v11 = vrot.slane %v3871_v51, 4  ;;  %v3889_v19 = vmul.f32 %v3871_v51, %v3871_v51 }
0x15a1   :  { %v3875_v31 = vadd.f32 %v3874_v34, %v3869_v55  ;;  %v3890_v29 = vrot.slane %v3888_v6, 4 }
0x15a2   :  { %v3881_v5 = vadd.f32 %v3880_v11, %v3871_v51  ;;  %v3896_v62 = vrot.slane %v3889_v19, 4 }
0x15a3   :  { %v3876_v38 = vrot.slane %v3875_v31, 2  ;;  %v3891_v20 = vadd.f32 %v3890_v29, %v3888_v6 }
0x15a4   :  { %v3882_v52 = vrot.slane %v3881_v5, 2  ;;  %v3897_v56 = vadd.f32 %v3896_v62, %v3889_v19 }
0x15a5   :  { %v3877_v3 = vadd.f32 %v3876_v38, %v3875_v31  ;;  %v3892_v37 = vrot.slane %v3891_v20, 2 }
0x15a6   :  { %v3883_v44 = vadd.f32 %v3882_v52, %v3881_v5  ;;  %v3898_v57 = vrot.slane %v3897_v56, 2 }
0x15a7   :  { %v3878_v50 = vrot.slane %v3877_v3, 1  ;;  %v3893_v2 = vadd.f32 %v3892_v37, %v3891_v20  ;;  %v3802_v20 = vld [vmem:[#allocation14 + $0xa] sm:$0x3] }
0x15a8   :  { %v3884_v14 = vrot.slane %v3883_v44, 1  ;;  %v3899_v13 = vadd.f32 %v3898_v57, %v3897_v56 }
0x15a9   :  { %v3879_v35 = vadd.f32 %v3878_v50, %v3877_v3  ;;  %v3894_v41 = vrot.slane %v3893_v2, 1 }
0x15aa   :  { %v3885_v7 = vadd.f32 %v3884_v14, %v3883_v44  ;;  %v3900_v45 = vrot.slane %v3899_v13, 1 }
0x15ab   :  { %v3886_v42 = vmul.f32 0.125, %v3879_v35  ;;  %v3895_v28 = vadd.f32 %v3894_v41, %v3893_v2  ;;  %v4214_v41 = vld [vmem:[#allocation16 + $0x508] sm:$0xff] }
0x15ac   :  { %v3887_v49 = vmul.f32 0.125, %v3885_v7  ;;  %v3901_v39 = vadd.f32 %v3900_v45, %v3899_v13  ;;  %v4216_v7 = vld [vmem:[#allocation16 + $0x518] sm:$0xff] }
0x15ad   :  { %v3902_v40 = vmul.f32 0.125, %v3895_v28  ;;  %v3904_v16 = vmul.f32 %v3886_v42, %v3886_v42  ;;  %v8565_v45 = vpack.c.bf16 %v4216_v7, %v4214_v41  ;;  %v4215_v28 = vld [vmem:[#allocation16 + $0x510] sm:$0xff] }
0x15ae   :  { %v3903_v43 = vmul.f32 0.125, %v3901_v39  ;;  %v3905_v48 = vmul.f32 %v3887_v49, %v3887_v49  ;;  %v4218_v39 = vld [vmem:[#allocation16 + $0x528] sm:$0xff]  ;;  %v4243_v41 = vld [vmem:[#allocation16 + $0x5f0] sm:$0xff] }
0x15af   :  { %v3906_v21 = vsub.f32 %v3902_v40, %v3904_v16  ;;  %8566 = vmatprep.subr.bf16.mxu1 %v8565_v45  ;;  %v4220_v40 = vld [vmem:[#allocation16 + $0x538] sm:$0xff] }
0x15b0   :  { %v3907_v22 = vsub.f32 %v3903_v43, %v3905_v48  ;;  %v8569_v16 = vpack.c.bf16 %v4220_v40, %v4218_v39  ;;  %v4217_v43 = vld [vmem:[#allocation16 + $0x520] sm:$0xff] }
0x15b1   :  { %v3908_v8 = vmax.f32 %v3906_v21, 0.0  ;;  %v4222_v21 = vld [vmem:[#allocation16 + $0x548] sm:$0xff] }
0x15b2   :  { %v3909_v63 = vmax.f32 %v3907_v22, 0.0  ;;  %v4224_v22 = vld [vmem:[#allocation16 + $0x558] sm:$0xff] }
0x15b3   :  { %v3910_v18 = vadd.f32 1e-05, %v3908_v8  ;;  %v8573_v8 = vpack.c.bf16 %v4224_v22, %v4222_v21 }
0x15b4   :  { %v3911_v24 = vadd.f32 1e-05, %v3909_v63  ;;  %v4221_v63 = vld [vmem:[#allocation16 + $0x540] sm:$0xff] }
0x15b5   :  { %9114 = vrsqrt.f32 %v3910_v18  ;;  %v4223_v18 = vld [vmem:[#allocation16 + $0x550] sm:$0xff] }
0x15b6   :  { %9116 = vrsqrt.f32 %v3911_v24  ;;  %v8575_v24 = vpack.c.bf16 %v4223_v18, %v4221_v63 }
0x15bf   :  { %v9115_v27 = vpop.eup %9114 }
0x15c0   :  { %v9117_v30 = vpop.eup %9116 }
0x15c1   :  { %v3916_v33 = vcombine.low %v9115_v27, %v9117_v30  ;;  %v4226_v27 = vld [vmem:[#allocation16 + $0x568] sm:$0xff]  ;;  %v4228_v30 = vld [vmem:[#allocation16 + $0x578] sm:$0xff] }
0x15c3   :  { %v3923_v36 = vrot.slane %v3916_v33, %v11716_v10  ;;  %v8577_v33 = vpack.c.bf16 %v4228_v30, %v4226_v27 }
0x15c5   :  { %v3930_v4 = vrot.slane %v3923_v36, %v11716_v10  ;;  %v4225_v36 = vld [vmem:[#allocation16 + $0x560] sm:$0xff] }
0x15c7   :  { %v3932_v34 = vmul.f32 %v3930_v4, %v3800_v15  ;;  %v4227_v15 = vld [vmem:[#allocation16 + $0x570] sm:$0xff] }
0x15c8   :  { %v8579_v4 = vpack.c.bf16 %v4227_v15, %v4225_v36 }
0x15c9   :  { %v3937_v6 = vrot.slane %v3932_v34, %v11717_v0  ;;  %v3941_v11 = vrot.slane %v3932_v34, %v11718_v26  ;;  %v4230_v34 = vld [vmem:[#allocation16 + $0x588] sm:$0xff] }
0x15cb   :  { %v3944_v19 = vmul.f32 %v3937_v6, %v3886_v42  ;;  %v3945_v31 = vmul.f32 %v3941_v11, %v3887_v49  ;;  %v3965_v29 = vmul.f32 %v3937_v6, %v3869_v55  ;;  %v3966_v5 = vmul.f32 %v3941_v11, %v3871_v51  ;;  %v4213_v42 = vld [vmem:[#allocation16 + $0x500] sm:$0xff]  ;;  %v4232_v6 = vld [vmem:[#allocation16 + $0x598] sm:$0xff] }
0x15cc   :  { %v8567_v49 = vpack.c.bf16 %v4215_v28, %v4213_v42  ;;  %v4229_v11 = vld [vmem:[#allocation16 + $0x580] sm:$0xff] }
0x15cd   :  { %v3948_v62 = vcombine.low %v3944_v19, %v3945_v31  ;;  %v8581_v19 = vpack.c.bf16 %v4232_v6, %v4230_v34  ;;  %v4231_v31 = vld [vmem:[#allocation16 + $0x590] sm:$0xff] }
0x15ce   :  { %8568 = vmatpush1.bf16.msra.mxu1 %v8567_v49 }
0x15cf   :  { %v3955_v38 = vrot.slane %v3948_v62, %v11716_v10  ;;  %8570 = vmatprep.subr.bf16.mxu1 %v8569_v16  ;;  %v8583_v62 = vpack.c.bf16 %v4231_v31, %v4229_v11 }
0x15d1   :  { %v3962_v52 = vrot.slane %v3955_v38, %v11716_v10 }
0x15d3   :  { %v3964_v56 = vsub.f32 %v3802_v20, %v3962_v52  ;;  %v4233_v20 = vld [vmem:[#allocation16 + $0x5a0] sm:$0xff]  ;;  %v4235_v52 = vld [vmem:[#allocation16 + $0x5b0] sm:$0xff] }
0x15d5   :  { %v3971_v3 = vrot.slane %v3964_v56, %v11717_v0  ;;  %v3975_v37 = vrot.slane %v3964_v56, %v11718_v26  ;;  %v4238_v56 = vld [vmem:[#allocation16 + $0x5c8] sm:$0xff] }
0x15d7   :  { %v3979_v44 = vadd.f32 %v3975_v37, %v3966_v5  ;;  %v3978_v57 = vadd.f32 %v3971_v3, %v3965_v29  ;;  %v4234_v29 = vld [vmem:[#allocation16 + $0x5a8] sm:$0xff]  ;;  %v4236_v5 = vld [vmem:[#allocation16 + $0x5b8] sm:$0xff]  ;;  %v8587_v37 = vpack.c.bf16 %v4235_v52, %v4233_v20 }
0x15d8   :  { %v8585_v38 = vpack.c.bf16 %v4236_v5, %v4234_v29  ;;  %v4240_v3 = vld [vmem:[#allocation16 + $0x5d8] sm:$0xff] }
0x15d9   :  { %v7992_v50 = vmul.f32 -1.442695, %v3979_v44  ;;  %v8589_v44 = vpack.c.bf16 %v4240_v3, %v4238_v56 }
0x15db   :  { %9118 = vpow2.f32 %v7992_v50  ;;  %v4239_v50 = vld [vmem:[#allocation16 + $0x5d0] sm:$0xff] }
0x15e5   :  { %v9119_v2 = vpop.eup %9118 }
0x15e6   :  { %v3983_v14 = vadd.f32 1.0, %v9119_v2  ;;  %v4242_v2 = vld [vmem:[#allocation16 + $0x5e8] sm:$0xff] }
0x15e8   :  { %9120 = vrcp.f32 %v3983_v14  ;;  %v4244_v14 = vld [vmem:[#allocation16 + $0x5f8] sm:$0xff] }
0x15f2   :  { %v9121_v55 = vpop.eup %9120 }
0x15f3   :  { %v3986_v51 = vmul.f32 %v9121_v55, %v3978_v57  ;;  %v4237_v57 = vld [vmem:[#allocation16 + $0x5c0] sm:$0xff] }
0x15f4   :  { %v8591_v55 = vpack.c.bf16 %v4239_v50, %v4237_v57 }
0x15f5   :  { %v3987_v13 = vadd.f32 %v3986_v51, %v10791_v17  ;;  %v4219_v17 = vld [vmem:[#allocation16 + $0x530] sm:$0xff]  ;;  %v8593_v51 = vpack.c.bf16 %v4244_v14, %v4242_v2 }
0x15f6   :  { %v8571_v48 = vpack.c.bf16 %v4219_v17, %v4217_v43 }
0x15f7   :  { %v10805_v35 = vmul.f32 0.70710677, %v3987_v13  ;;  %v4241_v13 = vld [vmem:[#allocation16 + $0x5e0] sm:$0xff] }
0x15f8   :  { %8572 = vmatpush1.bf16.msra.mxu1 %v8571_v48  ;;  %v8595_v7 = vpack.c.bf16 %v4243_v41, %v4241_v13  ;;  %v4023_v41 = vld [vmem:[#allocation17 + $0x8] sm:$0x3] }
0x15f9   :  { %4091 = vmatmul.mubr.f32.vlgmr.msra.gmra.mrb[14].mxu0 %v10805_v35  ;;  %8574 = vmatprep.subr.bf16.mxu1 %v8573_v8 }
0x15fa   :  { %8226 = vmatprep.mubr.msk.f32.mxu0 %vm9637_vm4, %v11713_v9 }
0x15fc   :  { %8576 = vmatpush1.bf16.msra.mxu1 %v8575_v24 }
0x15fd   :  { %8578 = vmatprep.subr.bf16.mxu1 %v8577_v33 }
0x1600   :  { %8580 = vmatpush1.bf16.msra.mxu1 %v8579_v4 }
0x1601   :  { %8582 = vmatprep.subr.bf16.mxu1 %v8581_v19 }
0x1604   :  { %8584 = vmatpush1.bf16.msra.mxu1 %v8583_v62 }
0x1605   :  { %8586 = vmatprep.subr.bf16.mxu1 %v8585_v38 }
0x1608   :  { %8588 = vmatpush1.bf16.msra.mxu1 %v8587_v37 }
0x1609   :  { %8590 = vmatprep.subr.bf16.mxu1 %v8589_v44 }
0x160c   :  { %8592 = vmatpush1.bf16.msra.mxu1 %v8591_v55 }
0x160d   :  { %8594 = vmatprep.subr.bf16.mxu1 %v8593_v51 }
0x1610   :  { %8596 = vmatpush1.bf16.msra.mxu1 %v8595_v7 }
0x16cc   :  { %v4092_v45 = vpop.f32.mrb[14].mxu0 }
0x16cd   :  { %v4097_v42 = vrot.slane %v4092_v45, 4  ;;  %v4111_v28 = vmul.f32 %v4092_v45, %v4092_v45  ;;  %v4094_v49 = vpop.f32.mrb[15].mxu0 }
0x16ce   :  { %v4103_v39 = vrot.slane %v4094_v49, 4  ;;  %v4112_v40 = vmul.f32 %v4094_v49, %v4094_v49 }
0x16cf   :  { %v4098_v16 = vadd.f32 %v4097_v42, %v4092_v45  ;;  %v4113_v43 = vrot.slane %v4111_v28, 4 }
0x16d0   :  { %v4104_v17 = vadd.f32 %v4103_v39, %v4094_v49  ;;  %v4119_v48 = vrot.slane %v4112_v40, 4 }
0x16d1   :  { %v4099_v21 = vrot.slane %v4098_v16, 2  ;;  %v4114_v22 = vadd.f32 %v4113_v43, %v4111_v28 }
0x16d2   :  { %v4105_v8 = vrot.slane %v4104_v17, 2  ;;  %v4120_v63 = vadd.f32 %v4119_v48, %v4112_v40 }
0x16d3   :  { %v4100_v18 = vadd.f32 %v4099_v21, %v4098_v16  ;;  %v4115_v24 = vrot.slane %v4114_v22, 2 }
0x16d4   :  { %v4106_v27 = vadd.f32 %v4105_v8, %v4104_v17  ;;  %v4121_v30 = vrot.slane %v4120_v63, 2 }
0x16d5   :  { %v4101_v33 = vrot.slane %v4100_v18, 1  ;;  %v4116_v36 = vadd.f32 %v4115_v24, %v4114_v22  ;;  %v4025_v22 = vld [vmem:[#allocation19 + $0x8] sm:$0x3] }
0x16d6   :  { %v4107_v15 = vrot.slane %v4106_v27, 1  ;;  %v4122_v4 = vadd.f32 %v4121_v30, %v4120_v63 }
0x16d7   :  { %v4102_v34 = vadd.f32 %v4101_v33, %v4100_v18  ;;  %v4117_v6 = vrot.slane %v4116_v36, 1 }
0x16d8   :  { %v4108_v11 = vadd.f32 %v4107_v15, %v4106_v27  ;;  %v4123_v19 = vrot.slane %v4122_v4, 1 }
0x16d9   :  { %v4109_v31 = vmul.f32 0.125, %v4102_v34  ;;  %v4118_v29 = vadd.f32 %v4117_v6, %v4116_v36  ;;  %v7995_v6 = vld [vmem:[%s11598_s11 + $0x80] sm:$0xff] }
0x16da   :  { %v4110_v5 = vmul.f32 0.125, %v4108_v11  ;;  %v4124_v62 = vadd.f32 %v4123_v19, %v4122_v4  ;;  %v7996_v11 = vld [vmem:[%s11598_s11 + $0x88] sm:$0xff]  ;;  %v7997_v19 = vld [vmem:[%s11598_s11 + $0x90] sm:$0xff] }
0x16db   :  { %v4125_v38 = vmul.f32 0.125, %v4118_v29  ;;  %v4127_v20 = vmul.f32 %v4109_v31, %v4109_v31 }
0x16dc   :  { %v4126_v52 = vmul.f32 0.125, %v4124_v62  ;;  %v4128_v56 = vmul.f32 %v4110_v5, %v4110_v5  ;;  %v8000_v62 = vld [vmem:[%s11598_s11 + $0xa8] sm:$0xff] }
0x16dd   :  { %v4129_v3 = vsub.f32 %v4125_v38, %v4127_v20  ;;  %v8001_v20 = vld [vmem:[%s11598_s11 + $0xb0] sm:$0xff] }
0x16de   :  { %v4130_v37 = vsub.f32 %v4126_v52, %v4128_v56  ;;  %v8002_v52 = vld [vmem:[%s11598_s11 + $0xb8] sm:$0xff] }
0x16df   :  { %v4131_v44 = vmax.f32 %v4129_v3, 0.0  ;;  %v8607_v56 = vpack.c.bf16 %v8002_v52, %v8001_v20  ;;  %v4246_v52 = vld [vmem:[#allocation17 + $0xa] sm:$0x3] }
0x16e0   :  { %v4132_v57 = vmax.f32 %v4130_v37, 0.0 }
0x16e1   :  { %v4133_v50 = vadd.f32 1e-05, %v4131_v44 }
0x16e2   :  { %v4134_v2 = vadd.f32 1e-05, %v4132_v57 }
0x16e3   :  { %9122 = vrsqrt.f32 %v4133_v50 }
0x16e4   :  { %9124 = vrsqrt.f32 %v4134_v2 }
0x16ed   :  { %v9123_v14 = vpop.eup %9122 }
0x16ee   :  { %v9125_v55 = vpop.eup %9124 }
0x16ef   :  { %v4139_v51 = vcombine.low %v9123_v14, %v9125_v55 }
0x16f1   :  { %v4146_v13 = vrot.slane %v4139_v51, %v11716_v10 }
0x16f3   :  { %v4153_v7 = vrot.slane %v4146_v13, %v11716_v10 }
0x16f5   :  { %v4155_v42 = vmul.f32 %v4153_v7, %v4023_v41 }
0x16f7   :  { %v4160_v28 = vrot.slane %v4155_v42, %v11717_v0  ;;  %v4164_v39 = vrot.slane %v4155_v42, %v11718_v26 }
0x16f9   :  { %v4167_v40 = vmul.f32 %v4160_v28, %v4109_v31  ;;  %v4168_v16 = vmul.f32 %v4164_v39, %v4110_v5  ;;  %v4188_v43 = vmul.f32 %v4160_v28, %v4092_v45  ;;  %v4189_v17 = vmul.f32 %v4164_v39, %v4094_v49  ;;  %v7999_v5 = vld [vmem:[%s11598_s11 + $0xa0] sm:$0xff] }
0x16fa   :  { %v8598_v31 = vpack.c.bf16 %v7996_v11, %v7995_v6  ;;  %v8604_v38 = vpack.c.bf16 %v8000_v62, %v7999_v5 }
0x16fb   :  { %v4171_v48 = vcombine.low %v4167_v40, %v4168_v16 }
0x16fc   :  { %8599 = vmatpush3.bf16.msra.mxu0 %v8598_v31 }
0x16fd   :  { %v4178_v21 = vrot.slane %v4171_v48, %v11716_v10  ;;  %8600 = vmatprep.subr.bf16.mxu0 %v11719_v53 }
0x16ff   :  { %v4185_v8 = vrot.slane %v4178_v21, %v11716_v10 }
0x1701   :  { %v4187_v63 = vsub.f32 %v4025_v22, %v4185_v8 }
0x1703   :  { %v4194_v18 = vrot.slane %v4187_v63, %v11717_v0  ;;  %v4198_v24 = vrot.slane %v4187_v63, %v11718_v26 }
0x1705   :  { %v4202_v27 = vadd.f32 %v4198_v24, %v4189_v17  ;;  %v4201_v30 = vadd.f32 %v4194_v18, %v4188_v43 }
0x1707   :  { %v7993_v33 = vmul.f32 -1.442695, %v4202_v27 }
0x1709   :  { %9126 = vpow2.f32 %v7993_v33 }
0x1713   :  { %v9127_v36 = vpop.eup %9126 }
0x1714   :  { %v4206_v15 = vadd.f32 1.0, %v9127_v36 }
0x1716   :  { %9128 = vrcp.f32 %v4206_v15 }
0x1720   :  { %v9129_v45 = vpop.eup %9128 }
0x1721   :  { %v4209_v49 = vmul.f32 %v9129_v45, %v4201_v30 }
0x1723   :  { %v4210_v4 = vadd.f32 %v4209_v49, %v10805_v35  ;;  %v7998_v35 = vld [vmem:[%s11598_s11 + $0x98] sm:$0xff] }
0x1724   :  { %v8601_v29 = vpack.c.bf16 %v7998_v35, %v7997_v19 }
0x1725   :  { %v10819_v34 = vmul.f32 0.70710677, %v4210_v4 }
0x1726   :  { %8602 = vmatpush3.bf16.msra.mxu0 %v8601_v29 }
0x1727   :  { %4314 = vmatmul.mubr.f32.vlgmr.msra.gmra.mrb[10].mxu1 %v10819_v34  ;;  %8603 = vmatprep.subr.bf16.mxu0 %v11719_v53 }
0x1728   :  { %5736 = vmatprep.mubr.f32.mxu1 %v11713_v9 }
0x172a   :  { %8605 = vmatpush3.bf16.msra.mxu0 %v8604_v38 }
0x172b   :  { %8606 = vmatprep.subr.bf16.mxu0 %v11719_v53 }
0x172e   :  { %8608 = vmatpush3.bf16.msra.mxu0 %v8607_v56 }
0x172f   :  { %8611 = vmatprep.subr.msk.bf16.mxu0 %vm9955_vm2, %v11720_v47 }
0x17fa   :  { %v4315_v3 = vpop.f32.mrb[10].mxu1 }
0x17fb   :  { %v4320_v37 = vrot.slane %v4315_v3, 4  ;;  %v4334_v44 = vmul.f32 %v4315_v3, %v4315_v3  ;;  %v4317_v57 = vpop.f32.mrb[11].mxu1 }
0x17fc   :  { %v4326_v50 = vrot.slane %v4317_v57, 4  ;;  %v4335_v2 = vmul.f32 %v4317_v57, %v4317_v57 }
0x17fd   :  { %v4321_v14 = vadd.f32 %v4320_v37, %v4315_v3  ;;  %v4336_v55 = vrot.slane %v4334_v44, 4 }
0x17fe   :  { %v4327_v51 = vadd.f32 %v4326_v50, %v4317_v57  ;;  %v4342_v13 = vrot.slane %v4335_v2, 4 }
0x17ff   :  { %v4322_v41 = vrot.slane %v4321_v14, 2  ;;  %v4337_v7 = vadd.f32 %v4336_v55, %v4334_v44 }
0x1800   :  { %v4328_v42 = vrot.slane %v4327_v51, 2  ;;  %v4343_v28 = vadd.f32 %v4342_v13, %v4335_v2 }
0x1801   :  { %v4323_v39 = vadd.f32 %v4322_v41, %v4321_v14  ;;  %v4338_v40 = vrot.slane %v4337_v7, 2 }
0x1802   :  { %v4329_v16 = vadd.f32 %v4328_v42, %v4327_v51  ;;  %v4344_v43 = vrot.slane %v4343_v28, 2 }
0x1803   :  { %v4324_v17 = vrot.slane %v4323_v39, 1  ;;  %v4339_v48 = vadd.f32 %v4338_v40, %v4337_v7  ;;  %v4248_v7 = vld [vmem:[#allocation19 + $0xa] sm:$0x3] }
0x1804   :  { %v4330_v21 = vrot.slane %v4329_v16, 1  ;;  %v4345_v22 = vadd.f32 %v4344_v43, %v4343_v28 }
0x1805   :  { %v4325_v8 = vadd.f32 %v4324_v17, %v4323_v39  ;;  %v4340_v63 = vrot.slane %v4339_v48, 1 }
0x1806   :  { %v4331_v18 = vadd.f32 %v4330_v21, %v4329_v16  ;;  %v4346_v24 = vrot.slane %v4345_v22, 1 }
0x1807   :  { %v4332_v27 = vmul.f32 0.125, %v4325_v8  ;;  %v4341_v30 = vadd.f32 %v4340_v63, %v4339_v48  ;;  %v2789_v63 = vmax.f32 %v10499_v58, 0.0 }
0x1808   :  { %v4333_v33 = vmul.f32 0.125, %v4331_v18  ;;  %v4347_v36 = vadd.f32 %v4346_v24, %v4345_v22 }
0x1809   :  { %v4348_v15 = vmul.f32 0.125, %v4341_v30  ;;  %v4350_v45 = vmul.f32 %v4332_v27, %v4332_v27 }
0x180a   :  { %v4349_v49 = vmul.f32 0.125, %v4347_v36  ;;  %v4351_v4 = vmul.f32 %v4333_v33, %v4333_v33 }
0x180b   :  { %v4352_v6 = vsub.f32 %v4348_v15, %v4350_v45 }
0x180c   :  { %v4353_v11 = vsub.f32 %v4349_v49, %v4351_v4 }
0x180d   :  { %v4354_v19 = vmax.f32 %v4352_v6, 0.0 }
0x180e   :  { %v4355_v31 = vmax.f32 %v4353_v11, 0.0 }
0x180f   :  { %v4356_v35 = vadd.f32 1e-05, %v4354_v19 }
0x1810   :  { %v4357_v29 = vadd.f32 1e-05, %v4355_v31 }
0x1811   :  { %9130 = vrsqrt.f32 %v4356_v35 }
0x1812   :  { %9132 = vrsqrt.f32 %v4357_v29 }
0x181b   :  { %v9131_v5 = vpop.eup %9130 }
0x181c   :  { %v9133_v62 = vpop.eup %9132 }
0x181d   :  { %v4362_v38 = vcombine.low %v9131_v5, %v9133_v62 }
0x181f   :  { %v4369_v20 = vrot.slane %v4362_v38, %v11716_v10 }
0x1821   :  { %v4376_v56 = vrot.slane %v4369_v20, %v11716_v10 }
0x1823   :  { %v4378_v37 = vmul.f32 %v4376_v56, %v4246_v52 }
0x1825   :  { %v4383_v44 = vrot.slane %v4378_v37, %v11717_v0  ;;  %v4387_v50 = vrot.slane %v4378_v37, %v11718_v26 }
0x1827   :  { %v4390_v2 = vmul.f32 %v4383_v44, %v4332_v27  ;;  %v4391_v14 = vmul.f32 %v4387_v50, %v4333_v33  ;;  %v4411_v55 = vmul.f32 %v4383_v44, %v4315_v3  ;;  %v4412_v51 = vmul.f32 %v4387_v50, %v4317_v57  ;;  %v4522_v50 = vld [vmem:[#allocation20 + $0x2] sm:$0x1] }
0x1829   :  { %v4394_v13 = vcombine.low %v4390_v2, %v4391_v14 }
0x182b   :  { %v4401_v41 = vrot.slane %v4394_v13, %v11716_v10 }
0x182d   :  { %v4408_v42 = vrot.slane %v4401_v41, %v11716_v10 }
0x182f   :  { %v4410_v28 = vsub.f32 %v4248_v7, %v4408_v42 }
0x1831   :  { %v4417_v39 = vrot.slane %v4410_v28, %v11717_v0  ;;  %v4421_v40 = vrot.slane %v4410_v28, %v11718_v26 }
0x1833   :  { %v4425_v16 = vadd.f32 %v4421_v40, %v4412_v51  ;;  %v4424_v43 = vadd.f32 %v4417_v39, %v4411_v55  ;;  %v4524_v55 = vld [vmem:[#allocation22 + $0x2] sm:$0x1] }
0x1834   :  { %v9215_v39 = vld [vmem:[#allocation5] sm:$0xff] }
0x1835   :  { %v7994_v17 = vmul.f32 -1.442695, %v4425_v16 }
0x1837   :  { %9134 = vpow2.f32 %v7994_v17 }
0x1841   :  { %v9135_v48 = vpop.eup %9134 }
0x1842   :  { %v4429_v21 = vadd.f32 1.0, %v9135_v48 }
0x1844   :  { %9136 = vrcp.f32 %v4429_v21 }
0x184e   :  { %v9137_v3 = vpop.eup %9136 }
0x184f   :  { %v4432_v57 = vmul.f32 %v9137_v3, %v4424_v43 }
0x1851   :  { %v4433_v22 = vadd.f32 %v4432_v57, %v10819_v34 }
0x1853   :  { %v4434_v8 = vmul.f32 0.70710677, %v4433_v22 }
0x1855   :  { %4447 = vrot.lane.b32.xlu0 %v4434_v8, %s9638_s19  ;;  %v4435_v18 = vmax.f32 %v4434_v8, 0.0  ;;  %v11731_v8 = vld [vmem:[#allocation64_spill] sm:$0xff] }
0x1857   :  { %v10864_v24 = vadd.f32 %v4435_v18, %v2789_v63  ;;  %v11732_v18 = vld [vmem:[#allocation65_spill] sm:$0xff] }
0x18c7   :  { %v4448_v27 = vpop.permute.xlu0 %4447 }
0x18c8   :  { %8227 = vmatmul.mubr.msk.f32.vlgmr.msra.gmra.mrb[16].mxu0 %vm11730_vm5, %v4448_v27 }
0x18c9   :  { %8614 = vmatpush1.bf16.msk.msra.mxu0 %vm9955_vm2, %v11722_v23  ;;  %5325 = vmatprep.mubr.f32.mxu0 %v11713_v9 }
0x18ca   :  { %8616 = vmatprep.subr.bf16.mxu0 %v11723_v46 }
0x199b   :  { %v4517_v34 = vpop.f32.mrb[16].mxu0 }
0x199c   :  { %v4525_v30 = vsel %vm306_vm3, %v4517_v34, 0.0  ;;  %v4533_v58 = vmul.f32 %v4517_v34, %v4517_v34  ;;  %v8228_v33 = vpop.f32.mrb[17].mxu0 }
0x199d   :  { %v4526_v36 = vrot.slane %v4525_v30, 4 }
0x199e   :  { %v4534_v15 = vsel %vm306_vm3, %v4533_v58, 0.0 }
0x199f   :  { %v4527_v45 = vadd.f32 %v4526_v36, %v4525_v30  ;;  %v4535_v49 = vrot.slane %v4534_v15, 4 }
0x19a1   :  { %v4528_v4 = vrot.slane %v4527_v45, 2  ;;  %v4536_v6 = vadd.f32 %v4535_v49, %v4534_v15 }
0x19a3   :  { %v4529_v11 = vadd.f32 %v4528_v4, %v4527_v45  ;;  %v4537_v19 = vrot.slane %v4536_v6, 2 }
0x19a5   :  { %v4530_v31 = vrot.slane %v4529_v11, 1  ;;  %v4538_v35 = vadd.f32 %v4537_v19, %v4536_v6 }
0x19a7   :  { %v4531_v29 = vadd.f32 %v4530_v31, %v4529_v11  ;;  %v4539_v5 = vrot.slane %v4538_v35, 1 }
0x19a9   :  { %v4532_v62 = vmul.f32 0.125, %v4531_v29  ;;  %v4540_v38 = vadd.f32 %v4539_v5, %v4538_v35 }
0x19ab   :  { %v4541_v20 = vmul.f32 0.125, %v4540_v38  ;;  %v4542_v52 = vmul.f32 %v4532_v62, %v4532_v62 }
0x19ad   :  { %v4543_v56 = vsub.f32 %v4541_v20, %v4542_v52 }
0x19af   :  { %v4544_v37 = vmax.f32 %v4543_v56, 0.0 }
0x19b1   :  { %v4545_v44 = vadd.f32 1e-05, %v4544_v37 }
0x19b3   :  { %9138 = vrsqrt.f32 %v4545_v44 }
0x19bd   :  { %v9139_v2 = vpop.eup %9138 }
0x19be   :  { %v4547_v14 = vmul.f32 %v9139_v2, %v4522_v50 }
0x19c0   :  { %v4548_v51 = vmul.f32 %v4547_v14, %v4532_v62  ;;  %v4554_v13 = vrot.slane %v4547_v14, %v11717_v0 }
0x19c2   :  { %v4549_v41 = vsub.f32 %v4524_v55, %v4548_v51  ;;  %v4556_v7 = vmul.f32 %v4554_v13, %v4517_v34  ;;  %v11733_v34 = vld [vmem:[#allocation66_spill] sm:$0xff] }
0x19c4   :  { %v4561_v42 = vrot.slane %v4549_v41, %v11717_v0 }
0x19c6   :  { %v4563_v28 = vadd.f32 %v4561_v42, %v4556_v7 }
0x19c8   :  { %v4564_v40 = vmul.f32 %v9215_v39, %v4563_v28 }
0x19ca   :  { %v4565_v16 = vsel %vm306_vm3, %v4564_v40, -inf }
0x19cb   :  { %4566 = vmax.xlane.f32.xlu1 %v4565_v16 }
0x1a58   :  { %v4567_v43 = vpop.xlane.xlu1 %4566 }
0x1a59   :  { %v10877_v17 = vsub.f32 %v4564_v40, %v4567_v43 }
0x1a5b   :  { %v4622_v48 = vrot.slane %v10877_v17, %v11717_v0  ;;  %v4633_v21 = vrot.slane %v10877_v17, %v11718_v26  ;;  %v4644_v3 = vrot.slane %v10877_v17, %v11724_v60  ;;  %v4655_v57 = vrot.slane %v10877_v17, %v11725_v32 }
0x1a5c   :  { %v4666_v22 = vrot.slane %v10877_v17, %v11726_v1  ;;  %v4677_v63 = vrot.slane %v10877_v17, %v11731_v8  ;;  %v4688_v27 = vrot.slane %v10877_v17, %v11732_v18  ;;  %v10895_v30 = vrot.slane %v10877_v17, %v11733_v34 }
0x1a5d   :  { %4628 = vbcast.lane.b32.xlu0 %v4622_v48, 264  ;;  %4624 = vbcast.lane.b32.xlu1 %v4622_v48, 256  ;;  %v4577_v58 = vrot.slane %v10877_v17, %v11716_v10  ;;  %v4570_v19 = vcombine.high %v10877_v17, %v10877_v17 }
0x1a5f   :  { %v4593_v33 = vrot.slane %v4577_v58, %v11716_v10  ;;  %v4585_v36 = vcombine.high %v4577_v58, %v4577_v58  ;;  %v4584_v52 = vrot.slane %v4570_v19, %v11716_v10 }
0x1a61   :  { %4639 = vbcast.lane.b32.xlu0 %v4633_v21, 264  ;;  %4635 = vbcast.lane.b32.xlu1 %v4633_v21, 256  ;;  %v10903_v15 = vrot.slane %v4593_v33, %v11717_v0  ;;  %v4607_v45 = vrot.slane %v4585_v36, %v11716_v10  ;;  %v4615_v5 = vcombine.high %v4593_v33, %v4593_v33 }
0x1a62   :  { %v4600_v51 = vrot.slane %v4584_v52, %v11716_v10  ;;  %v4586_v42 = vcombine.high %v4584_v52, %v4584_v52 }
0x1a63   :  { %v10917_v31 = vrot.slane %v4607_v45, %v11717_v0  ;;  %v10930_v56 = vrot.slane %v4615_v5, %v11717_v0  ;;  %v4617_v44 = vcombine.high %v4607_v45, %v4607_v45 }
0x1a64   :  { %v10959_v43 = vrot.slane %v4600_v51, %v11717_v0  ;;  %v4616_v45 = vcombine.high %v4600_v51, %v4600_v51 }
0x1a65   :  { %4650 = vbcast.lane.b32.xlu0 %v4644_v3, 264  ;;  %4646 = vbcast.lane.b32.xlu1 %v4644_v3, 256  ;;  %v10944_v13 = vrot.slane %v4617_v44, %v11717_v0 }
0x1a69   :  { %4661 = vbcast.lane.b32.xlu0 %v4655_v57, 264  ;;  %4657 = vbcast.lane.b32.xlu1 %v4655_v57, 256 }
0x1a6d   :  { %4672 = vbcast.lane.b32.xlu0 %v4666_v22, 264  ;;  %4668 = vbcast.lane.b32.xlu1 %v4666_v22, 256 }
0x1a71   :  { %4683 = vbcast.lane.b32.xlu0 %v4677_v63, 264  ;;  %4679 = vbcast.lane.b32.xlu1 %v4677_v63, 256 }
0x1a75   :  { %4694 = vbcast.lane.b32.xlu0 %v4688_v27, 264  ;;  %4690 = vbcast.lane.b32.xlu1 %v4688_v27, 256 }
0x1a79   :  { %4705 = vbcast.lane.b32.xlu0 %v10895_v30, 264  ;;  %4701 = vbcast.lane.b32.xlu1 %v10895_v30, 256 }
0x1a7d   :  { %4916 = vbcast.lane.b32.xlu0 %v4622_v48, 264  ;;  %4912 = vbcast.lane.b32.xlu1 %v4622_v48, 256 }
0x1a81   :  { %4938 = vbcast.lane.b32.xlu0 %v4644_v3, 264  ;;  %4923 = vbcast.lane.b32.xlu1 %v4633_v21, 256 }
0x1a85   :  { %4949 = vbcast.lane.b32.xlu0 %v4655_v57, 264  ;;  %4927 = vbcast.lane.b32.xlu1 %v4633_v21, 264 }
0x1a89   :  { %4960 = vbcast.lane.b32.xlu0 %v4666_v22, 264  ;;  %4934 = vbcast.lane.b32.xlu1 %v4644_v3, 256  ;;  %v4614_v3 = vrot.slane %v4586_v42, %v11716_v10 }
0x1a8b   :  { %v10975_v58 = vrot.slane %v4614_v3, %v11717_v0 }
0x1a8d   :  { %4971 = vbcast.lane.b32.xlu0 %v4677_v63, 264  ;;  %4945 = vbcast.lane.b32.xlu1 %v4655_v57, 256 }
0x1a91   :  { %4982 = vbcast.lane.b32.xlu0 %v4688_v27, 264  ;;  %4956 = vbcast.lane.b32.xlu1 %v4666_v22, 256 }
0x1a95   :  { %4967 = vbcast.lane.b32.xlu1 %v4677_v63, 256 }
0x1a99   :  { %4978 = vbcast.lane.b32.xlu1 %v4688_v27, 256 }
0x1acf   :  { %v4629_v49 = vpop.permute.xlu0 %4628  ;;  %v4625_v4 = vpop.permute.xlu1 %4624 }
0x1ad0   :  { %vm4748_vm15 = vcmp.ge.f32.partialorder %v10903_v15, %v4629_v49  ;;  %vm4747_vm14 = vcmp.ge.f32.partialorder %v10903_v15, %v4625_v4 }
0x1ad1   :  { %v10909_v6 = vsel %vm4748_vm15, 1.0, %v11713_v9  ;;  %v10912_v11 = vsel %vm4747_vm14, 1.0, %v11713_v9 }
0x1ad2   :  { %v4798_v35 = vsel %vm1494_vm8, %v10909_v6, 0.0  ;;  %v4795_v29 = vsel %vm306_vm3, %v10912_v11, 0.0 }
0x1ad3   :  { %v4640_v62 = vpop.permute.xlu0 %4639  ;;  %v4636_v38 = vpop.permute.xlu1 %4635  ;;  %4799 = vadd.xlane.f32.xlu0 %v4798_v35  ;;  %4796 = vadd.xlane.f32.xlu1 %v4795_v29  ;;  %v10986_v29 = vrot.slane %v4616_v45, %v11717_v0 }
0x1ad4   :  { %vm4750_vm0 = vcmp.ge.f32.partialorder %v10917_v31, %v4640_v62  ;;  %vm4749_vm5 = vcmp.ge.f32.partialorder %v10917_v31, %v4636_v38  ;;  %v4618_v38 = vcombine.high %v4614_v3, %v4614_v3  ;;  %v4843_v3 = vmul.f32 %v10912_v11, %v10903_v15 }
0x1ad5   :  { %v10926_v20 = vsel %vm4749_vm5, 1.0, %v11713_v9  ;;  %v10935_v14 = vsel %vm4750_vm0, 1.0, %v11713_v9 }
0x1ad6   :  { %v4801_v37 = vsel %vm306_vm3, %v10926_v20, 0.0  ;;  %v4804_v7 = vsel %vm1494_vm8, %v10935_v14, 0.0  ;;  %v4845_v45 = vmul.f32 %v10926_v20, %v10917_v31 }
0x1ad7   :  { %v4651_v50 = vpop.permute.xlu0 %4650  ;;  %v4647_v2 = vpop.permute.xlu1 %4646  ;;  %4802 = vadd.xlane.f32.xlu0 %v4801_v37 }
0x1ad8   :  { %vm4752_vm15 = vcmp.ge.f32.partialorder %v10930_v56, %v4651_v50  ;;  %vm4751_vm14 = vcmp.ge.f32.partialorder %v10930_v56, %v4647_v2  ;;  %v4738_v2 = vrot.slane %v4618_v38, %v11717_v0  ;;  %v4865_v11 = vsel %vm306_vm3, %v4845_v45, 0.0 }
0x1ad9   :  { %v10940_v55 = vsel %vm4751_vm14, 1.0, %v11713_v9  ;;  %v10951_v40 = vsel %vm4752_vm15, 1.0, %v11713_v9 }
0x1ada   :  { %v4807_v41 = vsel %vm306_vm3, %v10940_v55, 0.0  ;;  %v4810_v48 = vsel %vm1494_vm8, %v10951_v40, 0.0 }
0x1adb   :  { %v4662_v28 = vpop.permute.xlu0 %4661  ;;  %v4658_v39 = vpop.permute.xlu1 %4657  ;;  %4808 = vadd.xlane.f32.xlu1 %v4807_v41  ;;  %4805 = vadd.xlane.f32.xlu0 %v4804_v7 }
0x1adc   :  { %vm4754_vm0 = vcmp.ge.f32.partialorder %v10944_v13, %v4662_v28  ;;  %vm4753_vm5 = vcmp.ge.f32.partialorder %v10944_v13, %v4658_v39 }
0x1add   :  { %v10956_v16 = vsel %vm4753_vm5, 1.0, %v11713_v9  ;;  %v10967_v63 = vsel %vm4754_vm0, 1.0, %v11713_v9 }
0x1ade   :  { %v4813_v21 = vsel %vm306_vm3, %v10956_v16, 0.0  ;;  %v4816_v33 = vsel %vm1494_vm8, %v10967_v63, 0.0  ;;  %v4849_v20 = vmul.f32 %v10956_v16, %v10944_v13 }
0x1adf   :  { %v4673_v57 = vpop.permute.xlu0 %4672  ;;  %v4669_v22 = vpop.permute.xlu1 %4668  ;;  %4811 = vadd.xlane.f32.xlu0 %v4810_v48  ;;  %4814 = vadd.xlane.f32.xlu1 %v4813_v21 }
0x1ae0   :  { %vm4756_vm15 = vcmp.ge.f32.partialorder %v10959_v43, %v4673_v57  ;;  %vm4755_vm14 = vcmp.ge.f32.partialorder %v10959_v43, %v4669_v22 }
0x1ae1   :  { %v10972_v27 = vsel %vm4755_vm14, 1.0, %v11713_v9  ;;  %v8013_v19 = vsel %vm4756_vm15, 1.0, %v11713_v9 }
0x1ae2   :  { %v4819_v36 = vsel %vm306_vm3, %v10972_v27, 0.0  ;;  %v4822_v5 = vsel %vm1494_vm8, %v8013_v19, 0.0 }
0x1ae3   :  { %v4684_v49 = vpop.permute.xlu0 %4683  ;;  %v4680_v4 = vpop.permute.xlu1 %4679  ;;  %4817 = vadd.xlane.f32.xlu0 %v4816_v33  ;;  %4820 = vadd.xlane.f32.xlu1 %v4819_v36  ;;  %v4859_v33 = vsel %vm306_vm3, %v4843_v3, 0.0  ;;  %v4844_v36 = vmul.f32 %v10909_v6, %v10903_v15  ;;  %v4848_v6 = vmul.f32 %v10951_v40, %v10930_v56  ;;  %v4852_v40 = vmul.f32 %v8013_v19, %v10959_v43 }
0x1ae4   :  { %vm4758_vm0 = vcmp.ge.f32.partialorder %v10975_v58, %v4684_v49  ;;  %vm4757_vm5 = vcmp.ge.f32.partialorder %v10975_v58, %v4680_v4  ;;  %v4846_v4 = vmul.f32 %v10935_v14, %v10917_v31  ;;  %v4877_v31 = vsel %vm306_vm3, %v4849_v20, 0.0 }
0x1ae5   :  { %v8014_v35 = vsel %vm4757_vm5, 1.0, %v11713_v9  ;;  %v8015_v44 = vsel %vm4758_vm0, 1.0, %v11713_v9  ;;  %v4862_v49 = vsel %vm1494_vm8, %v4844_v36, 0.0  ;;  %v4874_v38 = vsel %vm1494_vm8, %v4848_v6, 0.0 }
0x1ae6   :  { %v4825_v62 = vsel %vm306_vm3, %v8014_v35, 0.0  ;;  %v4828_v51 = vsel %vm1494_vm8, %v8015_v44, 0.0  ;;  %v4850_v14 = vmul.f32 %v10967_v63, %v10944_v13  ;;  %v4853_v16 = vmul.f32 %v8014_v35, %v10975_v58 }
0x1ae7   :  { %v4695_v52 = vpop.permute.xlu0 %4694  ;;  %v4691_v37 = vpop.permute.xlu1 %4690  ;;  %4823 = vadd.xlane.f32.xlu0 %v4822_v5  ;;  %4826 = vadd.xlane.f32.xlu1 %v4825_v62  ;;  %v4847_v5 = vmul.f32 %v10940_v55, %v10930_v56  ;;  %v4868_v62 = vsel %vm1494_vm8, %v4846_v4, 0.0  ;;  %v4851_v55 = vmul.f32 %v10972_v27, %v10959_v43  ;;  %v4854_v13 = vmul.f32 %v8015_v44, %v10975_v58 }
0x1ae8   :  { %vm4760_vm15 = vcmp.ge.f32.partialorder %v10986_v29, %v4695_v52  ;;  %vm4759_vm14 = vcmp.ge.f32.partialorder %v10986_v29, %v4691_v37  ;;  %v4880_v52 = vsel %vm1494_vm8, %v4850_v14, 0.0  ;;  %v4886_v37 = vsel %vm1494_vm8, %v4852_v40, 0.0 }
0x1ae9   :  { %v8016_v50 = vsel %vm4759_vm14, 1.0, %v11713_v9  ;;  %v8017_v28 = vsel %vm4760_vm15, 1.0, %v11713_v9  ;;  %v4871_v15 = vsel %vm306_vm3, %v4847_v5, 0.0  ;;  %v4883_v56 = vsel %vm306_vm3, %v4851_v55, 0.0 }
0x1aea   :  { %v4831_v41 = vsel %vm306_vm3, %v8016_v50, 0.0  ;;  %v4834_v48 = vsel %vm1494_vm8, %v8017_v28, 0.0  ;;  %v4855_v63 = vmul.f32 %v8016_v50, %v10986_v29  ;;  %v4892_v27 = vsel %vm1494_vm8, %v4854_v13, 0.0 }
0x1aeb   :  { %v4706_v7 = vpop.permute.xlu0 %4705  ;;  %v4702_v42 = vpop.permute.xlu1 %4701  ;;  %4829 = vadd.xlane.f32.xlu0 %v4828_v51  ;;  %4832 = vadd.xlane.f32.xlu1 %v4831_v41  ;;  %v4889_v51 = vsel %vm306_vm3, %v4853_v16, 0.0  ;;  %v4856_v43 = vmul.f32 %v8017_v28, %v10986_v29 }
0x1aec   :  { %vm4762_vm5 = vcmp.ge.f32.partialorder %v4738_v2, %v4706_v7  ;;  %vm4761_vm0 = vcmp.ge.f32.partialorder %v4738_v2, %v4702_v42  ;;  %v4895_v41 = vsel %vm306_vm3, %v4855_v63, 0.0 }
0x1aed   :  { %v8018_v39 = vsel %vm4761_vm0, 1.0, %v11713_v9  ;;  %v8019_v57 = vsel %vm4762_vm5, 1.0, %v11713_v9  ;;  %v4898_v35 = vsel %vm1494_vm8, %v4856_v43, 0.0 }
0x1aee   :  { %v4837_v21 = vsel %vm306_vm3, %v8018_v39, 0.0  ;;  %v4840_v22 = vsel %vm1494_vm8, %v8019_v57, 0.0  ;;  %v4857_v19 = vmul.f32 %v8018_v39, %v4738_v2  ;;  %v4858_v42 = vmul.f32 %v8019_v57, %v4738_v2 }
0x1aef   :  { %4835 = vadd.xlane.f32.xlu0 %v4834_v48  ;;  %4838 = vadd.xlane.f32.xlu1 %v4837_v21  ;;  %v4913_v44 = vpop.permute.xlu1 %4912  ;;  %v4917_v29 = vpop.permute.xlu0 %4916 }
0x1af0   :  { %v4901_v7 = vsel %vm306_vm3, %v4857_v19, 0.0  ;;  %v4904_v58 = vsel %vm1494_vm8, %v4858_v42, 0.0 }
0x1af3   :  { %4841 = vadd.xlane.f32.xlu0 %v4840_v22  ;;  %4860 = vadd.xlane.f32.xlu1 %v4859_v33  ;;  %v4924_v50 = vpop.permute.xlu1 %4923  ;;  %v4939_v39 = vpop.permute.xlu0 %4938 }
0x1af7   :  { %4863 = vadd.xlane.f32.xlu0 %v4862_v49  ;;  %4866 = vadd.xlane.f32.xlu1 %v4865_v11  ;;  %v4928_v28 = vpop.permute.xlu1 %4927  ;;  %v4950_v21 = vpop.permute.xlu0 %4949 }
0x1afb   :  { %4869 = vadd.xlane.f32.xlu0 %v4868_v62  ;;  %4872 = vadd.xlane.f32.xlu1 %v4871_v15  ;;  %v4935_v48 = vpop.permute.xlu1 %4934  ;;  %v11044_v22 = vpop.permute.xlu0 %4960 }
0x1aff   :  { %4875 = vadd.xlane.f32.xlu0 %v4874_v38  ;;  %4878 = vadd.xlane.f32.xlu1 %v4877_v31  ;;  %v4946_v3 = vpop.permute.xlu1 %4945  ;;  %v11048_v57 = vpop.permute.xlu0 %4971 }
0x1b03   :  { %4881 = vadd.xlane.f32.xlu0 %v4880_v52  ;;  %4884 = vadd.xlane.f32.xlu1 %v4883_v56  ;;  %v11046_v2 = vpop.permute.xlu1 %4956  ;;  %v11052_v36 = vpop.permute.xlu0 %4982 }
0x1b07   :  { %4887 = vadd.xlane.f32.xlu0 %v4886_v37  ;;  %4890 = vadd.xlane.f32.xlu1 %v4889_v51  ;;  %v11050_v33 = vpop.permute.xlu1 %4967 }
0x1b0b   :  { %4893 = vadd.xlane.f32.xlu0 %v4892_v27  ;;  %4896 = vadd.xlane.f32.xlu1 %v4895_v41  ;;  %v11054_v45 = vpop.permute.xlu1 %4978 }
0x1b0f   :  { %4899 = vadd.xlane.f32.xlu0 %v4898_v35  ;;  %4902 = vadd.xlane.f32.xlu1 %v4901_v7 }
0x1b13   :  { %4905 = vadd.xlane.f32.xlu0 %v4904_v58 }
0x1b20   :  { %4989 = vbcast.lane.b32.xlu1 %v10895_v30, 256 }
0x1b29   :  { %4993 = vbcast.lane.b32.xlu0 %v10895_v30, 264 }
0x1b60   :  { %v4800_v30 = vpop.xlane.xlu0 %4799  ;;  %v4797_v49 = vpop.xlane.xlu1 %4796 }
0x1b61   :  { %v5011_v51 = vmul.f32 %v4913_v44, %v4797_v49  ;;  %v5012_v27 = vmul.f32 %v4917_v29, %v4800_v30 }
0x1b64   :  { %v4803_v11 = vpop.xlane.xlu0 %4802 }
0x1b65   :  { %v5013_v19 = vmul.f32 %v4924_v50, %v4803_v11 }
0x1b68   :  { %v4809_v4 = vpop.xlane.xlu1 %4808  ;;  %v4806_v5 = vpop.xlane.xlu0 %4805 }
0x1b69   :  { %v5014_v35 = vmul.f32 %v4928_v28, %v4806_v5  ;;  %v5015_v44 = vmul.f32 %v4935_v48, %v4809_v4 }
0x1b6c   :  { %v4812_v62 = vpop.xlane.xlu0 %4811  ;;  %v4815_v15 = vpop.xlane.xlu1 %4814 }
0x1b6d   :  { %v5016_v29 = vmul.f32 %v4939_v39, %v4812_v62 }
0x1b70   :  { %v4818_v6 = vpop.xlane.xlu0 %4817  ;;  %v4821_v20 = vpop.xlane.xlu1 %4820 }
0x1b74   :  { %v4824_v38 = vpop.xlane.xlu0 %4823  ;;  %v4827_v31 = vpop.xlane.xlu1 %4826 }
0x1b78   :  { %v11056_v14 = vpop.xlane.xlu0 %4829  ;;  %v11058_v55 = vpop.xlane.xlu1 %4832 }
0x1b7c   :  { %v11060_v52 = vpop.xlane.xlu0 %4835  ;;  %v11062_v56 = vpop.xlane.xlu1 %4838 }
0x1b80   :  { %v11064_v40 = vpop.xlane.xlu0 %4841  ;;  %v4861_v16 = vpop.xlane.xlu1 %4860 }
0x1b81   :  { %v8020_v37 = vadd.f32 -1.0, %v4861_v16 }
0x1b83   :  { %vm5043_vm15 = vcmp.gt.f32.partialorder %v5011_v51, %v8020_v37  ;;  %v5017_v51 = vmul.f32 %v4946_v3, %v4815_v15 }
0x1b84   :  { %v4864_v13 = vpop.xlane.xlu0 %4863  ;;  %v4867_v63 = vpop.xlane.xlu1 %4866  ;;  %v8036_v7 = vsel %vm5043_vm15, 1.0, %v11713_v9 }
0x1b85   :  { %v8021_v41 = vadd.f32 -1.0, %v4864_v13  ;;  %v8022_v43 = vadd.f32 -1.0, %v4867_v63  ;;  %v5018_v13 = vmul.f32 %v4950_v21, %v4818_v6  ;;  %v5019_v63 = vmul.f32 %v11046_v2, %v4821_v20 }
0x1b86   :  { %v5022_v2 = vmul.f32 %v11048_v57, %v11056_v14 }
0x1b87   :  { %vm5044_vm14 = vcmp.gt.f32.partialorder %v5012_v27, %v8021_v41  ;;  %vm5045_vm5 = vcmp.gt.f32.partialorder %v5013_v19, %v8022_v43  ;;  %v5020_v27 = vmul.f32 %v11044_v22, %v4824_v38 }
0x1b88   :  { %v8037_v42 = vsel %vm5044_vm14, 1.0, %v11713_v9  ;;  %v4870_v58 = vpop.xlane.xlu0 %4869  ;;  %v4873_v34 = vpop.xlane.xlu1 %4872  ;;  %v8038_v30 = vsel %vm5045_vm5, 1.0, %v11713_v9 }
0x1b89   :  { %v8950_v18 = vpack.i.bf16 %v8037_v42, %v8036_v7  ;;  %v8023_v8 = vadd.f32 -1.0, %v4870_v58  ;;  %v8024_v16 = vadd.f32 -1.0, %v4873_v34 }
0x1b8b   :  { %vm5046_vm0 = vcmp.gt.f32.partialorder %v5014_v35, %v8023_v8  ;;  %8951 = vperm.xlu1 %8874, %v8950_v18   ;;  %vm5047_vm15 = vcmp.gt.f32.partialorder %v5015_v44, %v8024_v16  ;;  %v5021_v35 = vmul.f32 %v11050_v33, %v4827_v31  ;;  %v5023_v44 = vmul.f32 %v11054_v45, %v11058_v55 }
0x1b8c   :  { %v8039_v50 = vsel %vm5046_vm0, 1.0, %v11713_v9  ;;  %v4876_v49 = vpop.xlane.xlu0 %4875  ;;  %v4879_v28 = vpop.xlane.xlu1 %4878  ;;  %v8040_v34 = vsel %vm5047_vm15, 1.0, %v11713_v9 }
0x1b8d   :  { %v8955_v11 = vpack.i.bf16 %v8039_v50, %v8038_v30  ;;  %v8025_v5 = vadd.f32 -1.0, %v4876_v49  ;;  %v8026_v37 = vadd.f32 -1.0, %v4879_v28 }
0x1b8f   :  { %vm5048_vm14 = vcmp.gt.f32.partialorder %v5016_v29, %v8025_v5  ;;  %8956 = vperm.xlu0 %8868, %v8955_v11   ;;  %vm5049_vm5 = vcmp.gt.f32.partialorder %v5017_v51, %v8026_v37  ;;  %v5024_v29 = vmul.f32 %v11052_v36, %v11060_v52 }
0x1b90   :  { %v8041_v8 = vsel %vm5048_vm14, 1.0, %v11713_v9  ;;  %v4882_v18 = vpop.xlane.xlu0 %4881  ;;  %v4885_v39 = vpop.xlane.xlu1 %4884  ;;  %v8042_v3 = vsel %vm5049_vm5, 1.0, %v11713_v9 }
0x1b91   :  { %v8960_v48 = vpack.i.bf16 %v8041_v8, %v8040_v34  ;;  %v8027_v4 = vadd.f32 -1.0, %v4882_v18  ;;  %v8028_v62 = vadd.f32 -1.0, %v4885_v39 }
0x1b93   :  { %vm5050_vm0 = vcmp.gt.f32.partialorder %v5018_v13, %v8027_v4  ;;  %8961 = vperm.xlu1 %8874, %v8960_v48   ;;  %vm5051_vm15 = vcmp.gt.f32.partialorder %v5019_v63, %v8028_v62 }
0x1b94   :  { %v8043_v21 = vsel %vm5050_vm0, 1.0, %v11713_v9  ;;  %v4888_v15 = vpop.xlane.xlu0 %4887  ;;  %v4891_v6 = vpop.xlane.xlu1 %4890  ;;  %v8044_v20 = vsel %vm5051_vm15, 1.0, %v11713_v9 }
0x1b95   :  { %v8965_v41 = vpack.i.bf16 %v8043_v21, %v8042_v3  ;;  %v8029_v43 = vadd.f32 -1.0, %v4888_v15  ;;  %v8030_v19 = vadd.f32 -1.0, %v4891_v6 }
0x1b97   :  { %vm5052_vm14 = vcmp.gt.f32.partialorder %v5020_v27, %v8029_v43  ;;  %8966 = vperm.xlu0 %8868, %v8965_v41   ;;  %vm5053_vm5 = vcmp.gt.f32.partialorder %v5021_v35, %v8030_v19 }
0x1b98   :  { %v8045_v22 = vsel %vm5052_vm14, 1.0, %v11713_v9  ;;  %v4894_v38 = vpop.xlane.xlu0 %4893  ;;  %v4897_v7 = vpop.xlane.xlu1 %4896  ;;  %v8046_v33 = vsel %vm5053_vm5, 1.0, %v11713_v9 }
0x1b99   :  { %v8970_v42 = vpack.i.bf16 %v8045_v22, %v8044_v20  ;;  %v8031_v58 = vadd.f32 -1.0, %v4894_v38  ;;  %v8032_v16 = vadd.f32 -1.0, %v4897_v7 }
0x1b9b   :  { %vm5054_vm0 = vcmp.gt.f32.partialorder %v5022_v2, %v8031_v58  ;;  %8971 = vperm.xlu1 %8874, %v8970_v42   ;;  %vm5055_vm15 = vcmp.gt.f32.partialorder %v5023_v44, %v8032_v16 }
0x1b9c   :  { %v8047_v31 = vsel %vm5054_vm0, 1.0, %v11713_v9  ;;  %v4900_v57 = vpop.xlane.xlu0 %4899  ;;  %v4903_v14 = vpop.xlane.xlu1 %4902  ;;  %v8048_v49 = vsel %vm5055_vm15, 1.0, %v11713_v9  ;;  %vm11750_vm15 = vcmask 523264  }
0x1b9d   :  { %v8975_v30 = vpack.i.bf16 %v8047_v31, %v8046_v33  ;;  %v8033_v50 = vadd.f32 -1.0, %v4900_v57  ;;  %v8034_v37 = vadd.f32 -1.0, %v4903_v14 }
0x1b9f   :  { %vm5056_vm14 = vcmp.gt.f32.partialorder %v5024_v29, %v8033_v50  ;;  %8976 = vperm.xlu0 %8868, %v8975_v30  }
0x1ba0   :  { %v8049_v45 = vsel %vm5056_vm14, 1.0, %v11713_v9  ;;  %v4906_v55 = vpop.xlane.xlu0 %4905  ;;  %v4990_v28 = vpop.permute.xlu1 %4989 }
0x1ba1   :  { %v8980_v11 = vpack.i.bf16 %v8049_v45, %v8048_v49  ;;  %v5025_v5 = vmul.f32 %v4990_v28, %v11062_v56  ;;  %v8035_v13 = vadd.f32 -1.0, %v4906_v55 }
0x1ba3   :  { %8981 = vperm.xlu1 %8874, %v8980_v11   ;;  %vm5057_vm5 = vcmp.gt.f32.partialorder %v5025_v5, %v8034_v37 }
0x1ba4   :  { %v4994_v51 = vpop.permute.xlu0 %4993  ;;  %v8050_v52 = vsel %vm5057_vm5, 1.0, %v11713_v9 }
0x1ba5   :  { %v5026_v36 = vmul.f32 %v4994_v51, %v11064_v40 }
0x1ba7   :  { %vm5058_vm0 = vcmp.gt.f32.partialorder %v5026_v36, %v8035_v13 }
0x1ba8   :  { %v8051_v34 = vsel %vm5058_vm0, 1.0, %v11713_v9 }
0x1ba9   :  { %v8985_v8 = vpack.i.bf16 %v8051_v34, %v8050_v52 }
0x1bab   :  { %8986 = vperm.xlu0 %8868, %v8985_v8  }
0x1c0a   :  { %v8952_v18 = vpop.permute.xlu1 %8951 }
0x1c0b   :  { %v8954_v15 = vunpack.i.h.bf16 %v8952_v18  ;;  %v8953_v6 = vunpack.i.l.bf16 %v8952_v18 }
0x1c0d   :  { %v5162_v44 = vrot.slane %v8954_v15, %v10358_v25  ;;  %v5158_v33 = vrot.slane %v8953_v6, %v10355_v54 }
0x1c0e   :  { %v8957_v39 = vpop.permute.xlu0 %8956 }
0x1c0f   :  { %v8959_v56 = vunpack.i.h.bf16 %v8957_v39  ;;  %v8958_v63 = vunpack.i.l.bf16 %v8957_v39  ;;  %v5163_v11 = vsel %vm1863_vm1, %v5162_v44, %v5158_v33  ;;  %v11738_v44 = vld [vmem:[#allocation47_spill] sm:$0xff]  ;;  %v11739_v33 = vld [vmem:[#allocation48_spill] sm:$0xff] }
0x1c11   :  { %v5171_v2 = vrot.slane %v8959_v56, %v10358_v25  ;;  %v5167_v20 = vrot.slane %v8958_v63, %v10355_v54 }
0x1c12   :  { %v8962_v48 = vpop.permute.xlu1 %8961 }
0x1c13   :  { %v8964_v27 = vunpack.i.h.bf16 %v8962_v48  ;;  %v8963_v3 = vunpack.i.l.bf16 %v8962_v48  ;;  %v5172_v30 = vsel %vm1863_vm1, %v5171_v2, %v5167_v20 }
0x1c14   :  { %v5227_v37 = vsel %vm1928_vm6, %v5172_v30, %v5163_v11  ;;  %v11741_v30 = vld [vmem:[#allocation50_spill] sm:$0xff]  ;;  %v11746_v11 = vld [vmem:[#allocation55_spill] sm:$0xff] }
0x1c15   :  { %v5180_v7 = vrot.slane %v8964_v27, %v10358_v25  ;;  %v5176_v42 = vrot.slane %v8963_v3, %v10355_v54 }
0x1c16   :  { %v8967_v4 = vpop.permute.xlu0 %8966 }
0x1c17   :  { %v8969_v40 = vunpack.i.h.bf16 %v8967_v4  ;;  %v8968_v41 = vunpack.i.l.bf16 %v8967_v4  ;;  %v5181_v45 = vsel %vm1863_vm1, %v5180_v7, %v5176_v42  ;;  %v11734_v7 = vld [vmem:[#allocation43_spill] sm:$0xff]  ;;  %v11735_v42 = vld [vmem:[#allocation44_spill] sm:$0xff] }
0x1c18   :  { %v5228_v36 = vsel %vm1930_vm7, %v5181_v45, %v5227_v37  ;;  %v11743_v45 = vld [vmem:[#allocation52_spill] sm:$0xff]  ;;  %v11748_v37 = vld [vmem:[#allocation57_spill] sm:$0xff] }
0x1c19   :  { %v5189_v31 = vrot.slane %v8969_v40, %v10358_v25  ;;  %v5185_v57 = vrot.slane %v8968_v41, %v10355_v54 }
0x1c1a   :  { %v8972_v62 = vpop.permute.xlu1 %8971 }
0x1c1b   :  { %v8974_v43 = vunpack.i.h.bf16 %v8972_v62  ;;  %v8973_v19 = vunpack.i.l.bf16 %v8972_v62  ;;  %v5190_v5 = vsel %vm1863_vm1, %v5189_v31, %v5185_v57 }
0x1c1c   :  { %v5229_v18 = vsel %vm1932_vm9, %v5190_v5, %v5228_v36  ;;  %v11747_v5 = vld [vmem:[#allocation56_spill] sm:$0xff] }
0x1c1d   :  { %v5198_v14 = vrot.slane %v8974_v43, %v10358_v25  ;;  %v5194_v29 = vrot.slane %v8973_v19, %v10355_v54 }
0x1c1e   :  { %v8977_v21 = vpop.permute.xlu0 %8976 }
0x1c1f   :  { %v8979_v22 = vunpack.i.h.bf16 %v8977_v21  ;;  %v8978_v38 = vunpack.i.l.bf16 %v8977_v21  ;;  %v5199_v51 = vsel %vm1863_vm1, %v5198_v14, %v5194_v29  ;;  %v11740_v14 = vld [vmem:[#allocation49_spill] sm:$0xff] }
0x1c20   :  { %v5230_v62 = vsel %vm1934_vm10, %v5199_v51, %v5229_v18 }
0x1c21   :  { %v5207_v50 = vrot.slane %v8979_v22, %v10358_v25  ;;  %v5203_v49 = vrot.slane %v8978_v38, %v10355_v54 }
0x1c22   :  { %v8982_v35 = vpop.permute.xlu1 %8981 }
0x1c23   :  { %v8984_v58 = vunpack.i.h.bf16 %v8982_v35  ;;  %v8983_v16 = vunpack.i.l.bf16 %v8982_v35  ;;  %v5208_v52 = vsel %vm1863_vm1, %v5207_v50, %v5203_v49  ;;  %v11742_v49 = vld [vmem:[#allocation51_spill] sm:$0xff] }
0x1c24   :  { %v5231_v56 = vsel %vm1936_vm11, %v5208_v52, %v5230_v62 }
0x1c25   :  { %v5216_v55 = vrot.slane %v8984_v58, %v10358_v25  ;;  %v5212_v28 = vrot.slane %v8983_v16, %v10355_v54  ;;  %v11736_v58 = vld [vmem:[#allocation45_spill] sm:$0xff]  ;;  %v11737_v16 = vld [vmem:[#allocation46_spill] sm:$0xff] }
0x1c27   :  { %v5217_v39 = vsel %vm1863_vm1, %v5216_v55, %v5212_v28  ;;  %v11744_v55 = vld [vmem:[#allocation53_spill] sm:$0xff]  ;;  %v11745_v28 = vld [vmem:[#allocation54_spill] sm:$0xff] }
0x1c28   :  { %v5232_v27 = vsel %vm1938_vm12, %v5217_v39, %v5231_v56 }
0x1c2a   :  { %v8987_v13 = vpop.permute.xlu0 %8986 }
0x1c2b   :  { %v8989_v34 = vunpack.i.h.bf16 %v8987_v13  ;;  %v8988_v8 = vunpack.i.l.bf16 %v8987_v13 }
0x1c2d   :  { %v5225_v48 = vrot.slane %v8989_v34, %v10358_v25  ;;  %v5221_v4 = vrot.slane %v8988_v8, %v10355_v54 }
0x1c2f   :  { %v5226_v63 = vsel %vm1863_vm1, %v5225_v48, %v5221_v4 }
0x1c30   :  { %v5233_v3 = vsel %vm1940_vm13, %v5226_v63, %v5232_v27 }
0x1c31   :  { %v5235_v21 = vsel %vm306_vm3, %v5233_v3, 0.0  ;;  %v5238_v15 = vmul.f32 %v5233_v3, %v10877_v17 }
0x1c32   :  { %5236 = vadd.xlane.f32.xlu1 %v5235_v21 }
0x1c33   :  { %v5239_v6 = vsel %vm306_vm3, %v5238_v15, 0.0 }
0x1c34   :  { %5240 = vadd.xlane.f32.xlu0 %v5239_v6 }
0x1cbf   :  { %v5237_v40 = vpop.xlane.xlu1 %5236 }
0x1cc0   :  { %9140 = vrcp.f32 %v5237_v40 }
0x1cc1   :  { %v5241_v41 = vpop.xlane.xlu0 %5240 }
0x1cc2   :  { %v8052_v43 = vadd.f32 -1.0, %v5241_v41 }
0x1cca   :  { %v9141_v19 = vpop.eup %9140 }
0x1ccb   :  { %v5244_v35 = vmul.f32 %v9141_v19, %v8052_v43 }
0x1ccd   :  { %v5245_v2 = vsub.f32 %v10877_v17, %v5244_v35 }
0x1ccf   :  { %v5246_v20 = vmax.f32 %v5245_v2, 0.0 }
0x1cd1   :  { %v5248_v22 = vadd.f32 1e-10, %v5246_v20  ;;  %v5253_v38 = vmul.f32 %v5246_v20, %v9969_v12  ;;  %v5247_v31 = vsub.f32 0.0, %v5246_v20 }
0x1cd3   :  { %9142 = vlog2.f32 %v5248_v22  ;;  %8055 = vmatmul.mubr.msk.f32.vlgmr.msra.gmra.mrb[18].mxu0 %vm306_vm3, %v5253_v38 }
0x1cd4   :  { %8618 = vmatpush1.bf16.msra.mxu0 %v11734_v7  ;;  %5513 = vmatprep.mubr.f32.mxu0 %v11713_v9 }
0x1cd5   :  { %8620 = vmatprep.subr.bf16.mxu0 %v11735_v42 }
0x1cd8   :  { %8622 = vmatpush1.bf16.msra.mxu0 %v11736_v58 }
0x1cd9   :  { %8624 = vmatprep.subr.bf16.mxu0 %v11737_v16 }
0x1cdc   :  { %8626 = vmatpush1.bf16.msra.mxu0 %v11738_v44 }
0x1cdd   :  { %v9143_v17 = vpop.eup %9142  ;;  %8628 = vmatprep.subr.bf16.mxu0 %v11739_v33 }
0x1cde   :  { %v5250_v57 = vmul.f32 0.6931472, %v9143_v17 }
0x1ce0   :  { %8630 = vmatpush1.bf16.msra.mxu0 %v11740_v14  ;;  %v5251_v29 = vmul.f32 %v5250_v57, %v5247_v31 }
0x1ce1   :  { %8632 = vmatprep.subr.bf16.mxu0 %v11741_v30 }
0x1ce2   :  { %v11140_v50 = vadd.f32 %v5251_v29, %v10781_v59 }
0x1ce4   :  { %8634 = vmatpush1.bf16.msra.mxu0 %v11742_v49 }
0x1ce5   :  { %8636 = vmatprep.subr.bf16.mxu0 %v11743_v45 }
0x1ce8   :  { %8638 = vmatpush1.bf16.msra.mxu0 %v11744_v55 }
0x1ce9   :  { %8640 = vmatprep.subr.bf16.mxu0 %v11745_v28 }
0x1cec   :  { %8642 = vmatpush1.bf16.msra.mxu0 %v11746_v11 }
0x1ced   :  { %8644 = vmatprep.subr.bf16.mxu0 %v11747_v5 }
0x1cf0   :  { %8646 = vmatpush1.bf16.msra.mxu0 %v11748_v37 }
0x1da6   :  { %v5327_v51 = vpop.f32.mrb[18].mxu0 }
0x1da7   :  { %v5332_v13 = vrot.slane %v5327_v51, 4  ;;  %v5346_v36 = vmul.f32 %v5327_v51, %v5327_v51  ;;  %v5329_v52 = vpop.f32.mrb[19].mxu0 }
0x1da8   :  { %v5338_v59 = vrot.slane %v5329_v52, 4  ;;  %v5347_v34 = vmul.f32 %v5329_v52, %v5329_v52 }
0x1da9   :  { %v5333_v8 = vadd.f32 %v5332_v13, %v5327_v51  ;;  %v5348_v18 = vrot.slane %v5346_v36, 4 }
0x1daa   :  { %v5339_v39 = vadd.f32 %v5338_v59, %v5329_v52  ;;  %v5354_v48 = vrot.slane %v5347_v34, 4 }
0x1dab   :  { %v5334_v4 = vrot.slane %v5333_v8, 2  ;;  %v5349_v62 = vadd.f32 %v5348_v18, %v5346_v36 }
0x1dac   :  { %v5340_v56 = vrot.slane %v5339_v39, 2  ;;  %v5355_v63 = vadd.f32 %v5354_v48, %v5347_v34 }
0x1dad   :  { %v5335_v27 = vadd.f32 %v5334_v4, %v5333_v8  ;;  %v5350_v3 = vrot.slane %v5349_v62, 2 }
0x1dae   :  { %v5341_v21 = vadd.f32 %v5340_v56, %v5339_v39  ;;  %v5356_v15 = vrot.slane %v5355_v63, 2 }
0x1daf   :  { %v5336_v6 = vrot.slane %v5335_v27, 1  ;;  %v5351_v40 = vadd.f32 %v5350_v3, %v5349_v62 }
0x1db0   :  { %v5342_v41 = vrot.slane %v5341_v21, 1  ;;  %v5357_v43 = vadd.f32 %v5356_v15, %v5355_v63 }
0x1db1   :  { %v5337_v19 = vadd.f32 %v5336_v6, %v5335_v27  ;;  %v5352_v35 = vrot.slane %v5351_v40, 1  ;;  %v5255_v27 = vld [vmem:[#allocation13 + $0xc] sm:$0x3] }
0x1db2   :  { %v5343_v2 = vadd.f32 %v5342_v41, %v5341_v21  ;;  %v5358_v20 = vrot.slane %v5357_v43, 1 }
0x1db3   :  { %v5344_v22 = vmul.f32 0.125, %v5337_v19  ;;  %v5353_v38 = vadd.f32 %v5352_v35, %v5351_v40 }
0x1db4   :  { %v5345_v17 = vmul.f32 0.125, %v5343_v2  ;;  %v5359_v31 = vadd.f32 %v5358_v20, %v5357_v43  ;;  %v5257_v20 = vld [vmem:[#allocation14 + $0xc] sm:$0x3] }
0x1db5   :  { %v5360_v57 = vmul.f32 0.125, %v5353_v38  ;;  %v5362_v29 = vmul.f32 %v5344_v22, %v5344_v22 }
0x1db6   :  { %v5361_v13 = vmul.f32 0.125, %v5359_v31  ;;  %v5363_v36 = vmul.f32 %v5345_v17, %v5345_v17 }
0x1db7   :  { %v5364_v59 = vsub.f32 %v5360_v57, %v5362_v29 }
0x1db8   :  { %v5365_v34 = vsub.f32 %v5361_v13, %v5363_v36 }
0x1db9   :  { %v5366_v8 = vmax.f32 %v5364_v59, 0.0 }
0x1dba   :  { %v5367_v18 = vmax.f32 %v5365_v34, 0.0 }
0x1dbb   :  { %v5368_v39 = vadd.f32 1e-05, %v5366_v8  ;;  %v5639_v8 = vld [vmem:[#allocation16 + $0x618] sm:$0xff] }
0x1dbc   :  { %v5369_v48 = vadd.f32 1e-05, %v5367_v18 }
0x1dbd   :  { %9144 = vrsqrt.f32 %v5368_v39  ;;  %v5636_v39 = vld [vmem:[#allocation16 + $0x600] sm:$0xff] }
0x1dbe   :  { %9146 = vrsqrt.f32 %v5369_v48  ;;  %v5638_v48 = vld [vmem:[#allocation16 + $0x610] sm:$0xff] }
0x1dc7   :  { %v9145_v4 = vpop.eup %9144 }
0x1dc8   :  { %v9147_v62 = vpop.eup %9146 }
0x1dc9   :  { %v5374_v56 = vcombine.low %v9145_v4, %v9147_v62  ;;  %v8649_v4 = vpack.c.bf16 %v5638_v48, %v5636_v39  ;;  %v5641_v62 = vld [vmem:[#allocation16 + $0x628] sm:$0xff]  ;;  %v5658_v39 = vld [vmem:[#allocation16 + $0x6b0] sm:$0xff] }
0x1dca   :  { %v5661_v48 = vld [vmem:[#allocation16 + $0x6c8] sm:$0xff] }
0x1dcb   :  { %v5381_v63 = vrot.slane %v5374_v56, %v11716_v10  ;;  %v5643_v56 = vld [vmem:[#allocation16 + $0x638] sm:$0xff] }
0x1dcd   :  { %v5388_v3 = vrot.slane %v5381_v63, %v11716_v10  ;;  %v8651_v63 = vpack.c.bf16 %v5643_v56, %v5641_v62 }
0x1dcf   :  { %v5390_v21 = vmul.f32 %v5388_v3, %v5255_v27  ;;  %v5640_v27 = vld [vmem:[#allocation16 + $0x620] sm:$0xff]  ;;  %v5642_v3 = vld [vmem:[#allocation16 + $0x630] sm:$0xff] }
0x1dd1   :  { %v5395_v15 = vrot.slane %v5390_v21, %v11717_v0  ;;  %v5399_v6 = vrot.slane %v5390_v21, %v11718_v26  ;;  %v8653_v21 = vpack.c.bf16 %v5642_v3, %v5640_v27  ;;  %v5662_v27 = vld [vmem:[#allocation16 + $0x6d0] sm:$0xff]  ;;  %v5665_v3 = vld [vmem:[#allocation16 + $0x6e8] sm:$0xff] }
0x1dd3   :  { %v5402_v40 = vmul.f32 %v5395_v15, %v5344_v22  ;;  %v5403_v41 = vmul.f32 %v5399_v6, %v5345_v17  ;;  %v5424_v43 = vmul.f32 %v5399_v6, %v5329_v52  ;;  %v5423_v19 = vmul.f32 %v5395_v15, %v5327_v51  ;;  %v5637_v17 = vld [vmem:[#allocation16 + $0x608] sm:$0xff]  ;;  %v5647_v6 = vld [vmem:[#allocation16 + $0x658] sm:$0xff] }
0x1dd4   :  { %v8647_v18 = vpack.c.bf16 %v5639_v8, %v5637_v17  ;;  %v5645_v15 = vld [vmem:[#allocation16 + $0x648] sm:$0xff] }
0x1dd5   :  { %v5406_v35 = vcombine.low %v5402_v40, %v5403_v41  ;;  %v8655_v40 = vpack.c.bf16 %v5647_v6, %v5645_v15  ;;  %v5644_v41 = vld [vmem:[#allocation16 + $0x640] sm:$0xff] }
0x1dd6   :  { %8648 = vmatprep.subr.bf16.mxu1 %v8647_v18  ;;  %v5656_v18 = vld [vmem:[#allocation16 + $0x6a0] sm:$0xff] }
0x1dd7   :  { %v5413_v2 = vrot.slane %v5406_v35, %v11716_v10  ;;  %8650 = vmatpush1.bf16.msra.mxu1 %v8649_v4  ;;  %v5649_v35 = vld [vmem:[#allocation16 + $0x668] sm:$0xff]  ;;  %v5663_v4 = vld [vmem:[#allocation16 + $0x6d8] sm:$0xff]  ;;  %v8669_v62 = vpack.c.bf16 %v5658_v39, %v5656_v18 }
0x1dd8   :  { %8652 = vmatprep.subr.bf16.mxu1 %v8651_v63  ;;  %v8671_v56 = vpack.c.bf16 %v5663_v4, %v5661_v48  ;;  %v5660_v63 = vld [vmem:[#allocation16 + $0x6c0] sm:$0xff] }
0x1dd9   :  { %v5420_v38 = vrot.slane %v5413_v2, %v11716_v10  ;;  %v5651_v2 = vld [vmem:[#allocation16 + $0x678] sm:$0xff]  ;;  %v8673_v15 = vpack.c.bf16 %v5662_v27, %v5660_v63 }
0x1ddb   :  { %v5422_v31 = vsub.f32 %v5257_v20, %v5420_v38  ;;  %8654 = vmatpush1.bf16.msra.mxu1 %v8653_v21  ;;  %v8659_v20 = vpack.c.bf16 %v5651_v2, %v5649_v35  ;;  %v5648_v38 = vld [vmem:[#allocation16 + $0x660] sm:$0xff]  ;;  %v5667_v21 = vld [vmem:[#allocation16 + $0x6f8] sm:$0xff] }
0x1ddc   :  { %8656 = vmatprep.subr.bf16.mxu1 %v8655_v40  ;;  %v8675_v6 = vpack.c.bf16 %v5667_v21, %v5665_v3  ;;  %v5664_v40 = vld [vmem:[#allocation16 + $0x6e0] sm:$0xff] }
0x1ddd   :  { %v5433_v57 = vrot.slane %v5422_v31, %v11718_v26  ;;  %v5429_v29 = vrot.slane %v5422_v31, %v11717_v0  ;;  %v5650_v31 = vld [vmem:[#allocation16 + $0x670] sm:$0xff] }
0x1ddf   :  { %v5437_v13 = vadd.f32 %v5433_v57, %v5424_v43  ;;  %v5436_v36 = vadd.f32 %v5429_v29, %v5423_v19  ;;  %v5646_v43 = vld [vmem:[#allocation16 + $0x650] sm:$0xff]  ;;  %v8661_v57 = vpack.c.bf16 %v5650_v31, %v5648_v38  ;;  %v5653_v29 = vld [vmem:[#allocation16 + $0x688] sm:$0xff] }
0x1de0   :  { %v8657_v19 = vpack.c.bf16 %v5646_v43, %v5644_v41  ;;  %v5666_v41 = vld [vmem:[#allocation16 + $0x6f0] sm:$0xff] }
0x1de1   :  { %v8056_v59 = vmul.f32 -1.442695, %v5437_v13  ;;  %v5655_v13 = vld [vmem:[#allocation16 + $0x698] sm:$0xff]  ;;  %v8677_v43 = vpack.c.bf16 %v5666_v41, %v5664_v40 }
0x1de2   :  { %8658 = vmatpush1.bf16.msra.mxu1 %v8657_v19 }
0x1de3   :  { %9148 = vpow2.f32 %v8056_v59  ;;  %8660 = vmatprep.subr.bf16.mxu1 %v8659_v20  ;;  %v8663_v59 = vpack.c.bf16 %v5655_v13, %v5653_v29 }
0x1de6   :  { %8662 = vmatpush1.bf16.msra.mxu1 %v8661_v57 }
0x1de7   :  { %8664 = vmatprep.subr.bf16.mxu1 %v8663_v59 }
0x1ded   :  { %v9149_v34 = vpop.eup %9148 }
0x1dee   :  { %v5441_v22 = vadd.f32 1.0, %v9149_v34  ;;  %v5654_v34 = vld [vmem:[#allocation16 + $0x690] sm:$0xff] }
0x1df0   :  { %9150 = vrcp.f32 %v5441_v22  ;;  %v5657_v22 = vld [vmem:[#allocation16 + $0x6a8] sm:$0xff] }
0x1dfa   :  { %v9151_v52 = vpop.eup %9150 }
0x1dfb   :  { %v11157_v51 = vmul.f32 %v9151_v52, %v5436_v36  ;;  %v5652_v36 = vld [vmem:[#allocation16 + $0x680] sm:$0xff]  ;;  %v5659_v52 = vld [vmem:[#allocation16 + $0x6b8] sm:$0xff] }
0x1dfc   :  { %v8665_v17 = vpack.c.bf16 %v5654_v34, %v5652_v36  ;;  %v8667_v8 = vpack.c.bf16 %v5659_v52, %v5657_v22 }
0x1dfd   :  { %5514 = vmatmul.mubr.f32.vlgmr.msra.gmra.mrb[20].mxu0 %v11157_v51 }
0x1dfe   :  { %5959 = vmatprep.mubr.f32.mxu0 %v11713_v9  ;;  %8666 = vmatpush1.bf16.msra.mxu1 %v8665_v17 }
0x1dff   :  { %8668 = vmatprep.subr.bf16.mxu1 %v8667_v8 }
0x1e02   :  { %8670 = vmatpush1.bf16.msra.mxu1 %v8669_v62 }
0x1e03   :  { %8672 = vmatprep.subr.bf16.mxu1 %v8671_v56 }
0x1e06   :  { %8674 = vmatpush1.bf16.msra.mxu1 %v8673_v15 }
0x1e07   :  { %8676 = vmatprep.subr.bf16.mxu1 %v8675_v6 }
0x1e0a   :  { %8678 = vmatpush1.bf16.msra.mxu1 %v8677_v43 }
0x1e0b   :  { %8711 = vmatprep.subr.bf16.mxu1 %v11719_v53 }
0x1ed0   :  { %v5515_v19 = vpop.f32.mrb[20].mxu0 }
0x1ed1   :  { %v5520_v35 = vrot.slane %v5515_v19, 4  ;;  %v5534_v2 = vmul.f32 %v5515_v19, %v5515_v19  ;;  %v5517_v20 = vpop.f32.mrb[21].mxu0 }
0x1ed2   :  { %v5526_v38 = vrot.slane %v5517_v20, 4  ;;  %v5535_v31 = vmul.f32 %v5517_v20, %v5517_v20 }
0x1ed3   :  { %v5521_v57 = vadd.f32 %v5520_v35, %v5515_v19  ;;  %v5536_v29 = vrot.slane %v5534_v2, 4 }
0x1ed4   :  { %v5527_v13 = vadd.f32 %v5526_v38, %v5517_v20  ;;  %v5542_v36 = vrot.slane %v5535_v31, 4 }
0x1ed5   :  { %v5522_v59 = vrot.slane %v5521_v57, 2  ;;  %v5537_v34 = vadd.f32 %v5536_v29, %v5534_v2 }
0x1ed6   :  { %v5528_v22 = vrot.slane %v5527_v13, 2  ;;  %v5543_v52 = vadd.f32 %v5542_v36, %v5535_v31 }
0x1ed7   :  { %v5523_v17 = vadd.f32 %v5522_v59, %v5521_v57  ;;  %v5538_v8 = vrot.slane %v5537_v34, 2 }
0x1ed8   :  { %v5529_v18 = vadd.f32 %v5528_v22, %v5527_v13  ;;  %v5544_v39 = vrot.slane %v5543_v52, 2 }
0x1ed9   :  { %v5524_v48 = vrot.slane %v5523_v17, 1  ;;  %v5539_v4 = vadd.f32 %v5538_v8, %v5537_v34  ;;  %v5446_v8 = vld [vmem:[#allocation13 + $0xe] sm:$0x3] }
0x1eda   :  { %v5530_v62 = vrot.slane %v5529_v18, 1  ;;  %v5545_v56 = vadd.f32 %v5544_v39, %v5543_v52 }
0x1edb   :  { %v5525_v63 = vadd.f32 %v5524_v48, %v5523_v17  ;;  %v5540_v27 = vrot.slane %v5539_v4, 1 }
0x1edc   :  { %v5531_v3 = vadd.f32 %v5530_v62, %v5529_v18  ;;  %v5546_v21 = vrot.slane %v5545_v56, 1 }
0x1edd   :  { %v5532_v15 = vmul.f32 0.125, %v5525_v63  ;;  %v5541_v6 = vadd.f32 %v5540_v27, %v5539_v4 }
0x1ede   :  { %v5533_v40 = vmul.f32 0.125, %v5531_v3  ;;  %v5547_v41 = vadd.f32 %v5546_v21, %v5545_v56 }
0x1edf   :  { %v5548_v43 = vmul.f32 0.125, %v5541_v6  ;;  %v5550_v35 = vmul.f32 %v5532_v15, %v5532_v15  ;;  %v5448_v6 = vld [vmem:[#allocation14 + $0xe] sm:$0x3] }
0x1ee0   :  { %v5549_v2 = vmul.f32 0.125, %v5547_v41  ;;  %v5551_v38 = vmul.f32 %v5533_v40, %v5533_v40 }
0x1ee1   :  { %v5552_v31 = vsub.f32 %v5548_v43, %v5550_v35 }
0x1ee2   :  { %v5553_v57 = vsub.f32 %v5549_v2, %v5551_v38 }
0x1ee3   :  { %v5554_v29 = vmax.f32 %v5552_v31, 0.0 }
0x1ee4   :  { %v5555_v13 = vmax.f32 %v5553_v57, 0.0 }
0x1ee5   :  { %v5556_v36 = vadd.f32 1e-05, %v5554_v29 }
0x1ee6   :  { %v5557_v59 = vadd.f32 1e-05, %v5555_v13 }
0x1ee7   :  { %9152 = vrsqrt.f32 %v5556_v36  ;;  %v5860_v36 = vld [vmem:[#allocation16 + $0x708] sm:$0xff] }
0x1ee8   :  { %9154 = vrsqrt.f32 %v5557_v59  ;;  %v5862_v59 = vld [vmem:[#allocation16 + $0x718] sm:$0xff] }
0x1ef1   :  { %v9153_v34 = vpop.eup %9152 }
0x1ef2   :  { %v9155_v22 = vpop.eup %9154 }
0x1ef3   :  { %v5562_v52 = vcombine.low %v9153_v34, %v9155_v22  ;;  %v8679_v34 = vpack.c.bf16 %v5862_v59, %v5860_v36  ;;  %v5859_v22 = vld [vmem:[#allocation16 + $0x700] sm:$0xff] }
0x1ef5   :  { %v5569_v17 = vrot.slane %v5562_v52, %v11716_v10  ;;  %v5861_v52 = vld [vmem:[#allocation16 + $0x710] sm:$0xff]  ;;  %8680 = vmatprep.subr.bf16.mxu0 %v8679_v34  ;;  %v5879_v34 = vld [vmem:[#allocation16 + $0x7a0] sm:$0xff] }
0x1ef7   :  { %v5576_v18 = vrot.slane %v5569_v17, %v11716_v10  ;;  %v8681_v17 = vpack.c.bf16 %v5861_v52, %v5859_v22  ;;  %v5881_v22 = vld [vmem:[#allocation16 + $0x7b0] sm:$0xff]  ;;  %v5884_v52 = vld [vmem:[#allocation16 + $0x7c8] sm:$0xff] }
0x1ef9   :  { %v5578_v39 = vmul.f32 %v5576_v18, %v5446_v8  ;;  %8682 = vmatpush1.bf16.msra.mxu0 %v8681_v17  ;;  %v5864_v8 = vld [vmem:[#allocation16 + $0x728] sm:$0xff]  ;;  %v5866_v18 = vld [vmem:[#allocation16 + $0x738] sm:$0xff] }
0x1efa   :  { %v5886_v17 = vld [vmem:[#allocation16 + $0x7d8] sm:$0xff] }
0x1efb   :  { %v5583_v48 = vrot.slane %v5578_v39, %v11717_v0  ;;  %v5587_v4 = vrot.slane %v5578_v39, %v11718_v26  ;;  %v8683_v39 = vpack.c.bf16 %v5866_v18, %v5864_v8  ;;  %v8701_v8 = vpack.c.bf16 %v5881_v22, %v5879_v34 }
0x1efc   :  { %v8703_v18 = vpack.c.bf16 %v5886_v17, %v5884_v52 }
0x1efd   :  { %v5590_v62 = vmul.f32 %v5583_v48, %v5532_v15  ;;  %v5591_v56 = vmul.f32 %v5587_v4, %v5533_v40  ;;  %v5611_v63 = vmul.f32 %v5583_v48, %v5515_v19  ;;  %v5612_v27 = vmul.f32 %v5587_v4, %v5517_v20  ;;  %v5863_v48 = vld [vmem:[#allocation16 + $0x720] sm:$0xff]  ;;  %8684 = vmatprep.subr.bf16.mxu0 %v8683_v39 }
0x1efe   :  { %v5883_v39 = vld [vmem:[#allocation16 + $0x7c0] sm:$0xff] }
0x1eff   :  { %v5594_v3 = vcombine.low %v5590_v62, %v5591_v56  ;;  %v5868_v62 = vld [vmem:[#allocation16 + $0x748] sm:$0xff]  ;;  %v5870_v56 = vld [vmem:[#allocation16 + $0x758] sm:$0xff] }
0x1f01   :  { %v5601_v21 = vrot.slane %v5594_v3, %v11716_v10  ;;  %v5869_v3 = vld [vmem:[#allocation16 + $0x750] sm:$0xff] }
0x1f03   :  { %v5608_v41 = vrot.slane %v5601_v21, %v11716_v10 }
0x1f05   :  { %v5610_v43 = vsub.f32 %v5448_v6, %v5608_v41  ;;  %v5872_v6 = vld [vmem:[#allocation16 + $0x768] sm:$0xff]  ;;  %v5874_v41 = vld [vmem:[#allocation16 + $0x778] sm:$0xff] }
0x1f07   :  { %v5617_v35 = vrot.slane %v5610_v43, %v11717_v0  ;;  %v5621_v2 = vrot.slane %v5610_v43, %v11718_v26  ;;  %v8691_v43 = vpack.c.bf16 %v5874_v41, %v5872_v6 }
0x1f09   :  { %v5625_v38 = vadd.f32 %v5621_v2, %v5612_v27  ;;  %v5624_v31 = vadd.f32 %v5617_v35, %v5611_v63  ;;  %v8687_v63 = vpack.c.bf16 %v5870_v56, %v5868_v62  ;;  %v5867_v27 = vld [vmem:[#allocation16 + $0x740] sm:$0xff]  ;;  %v5873_v2 = vld [vmem:[#allocation16 + $0x770] sm:$0xff] }
0x1f0a   :  { %v8689_v21 = vpack.c.bf16 %v5869_v3, %v5867_v27  ;;  %v5871_v35 = vld [vmem:[#allocation16 + $0x760] sm:$0xff]  ;;  %v5889_v27 = vld [vmem:[#allocation16 + $0x7f0] sm:$0xff] }
0x1f0b   :  { %v8057_v57 = vmul.f32 -1.442695, %v5625_v38  ;;  %v8693_v38 = vpack.c.bf16 %v5873_v2, %v5871_v35 }
0x1f0d   :  { %9156 = vpow2.f32 %v8057_v57  ;;  %v5878_v57 = vld [vmem:[#allocation16 + $0x798] sm:$0xff] }
0x1f17   :  { %v9157_v29 = vpop.eup %9156 }
0x1f18   :  { %v5629_v15 = vadd.f32 1.0, %v9157_v29  ;;  %v5875_v29 = vld [vmem:[#allocation16 + $0x780] sm:$0xff] }
0x1f1a   :  { %9158 = vrcp.f32 %v5629_v15 }
0x1f24   :  { %v9159_v19 = vpop.eup %9158 }
0x1f25   :  { %v5632_v20 = vmul.f32 %v9159_v19, %v5624_v31  ;;  %v5876_v31 = vld [vmem:[#allocation16 + $0x788] sm:$0xff]  ;;  %v5877_v19 = vld [vmem:[#allocation16 + $0x790] sm:$0xff] }
0x1f26   :  { %v8695_v15 = vpack.c.bf16 %v5878_v57, %v5876_v31  ;;  %v8697_v36 = vpack.c.bf16 %v5877_v19, %v5875_v29 }
0x1f27   :  { %v5633_v40 = vadd.f32 %v5632_v20, %v11157_v51  ;;  %v5865_v51 = vld [vmem:[#allocation16 + $0x730] sm:$0xff]  ;;  %v5880_v20 = vld [vmem:[#allocation16 + $0x7a8] sm:$0xff] }
0x1f28   :  { %v8685_v4 = vpack.c.bf16 %v5865_v51, %v5863_v48  ;;  %v5885_v48 = vld [vmem:[#allocation16 + $0x7d0] sm:$0xff]  ;;  %v5888_v51 = vld [vmem:[#allocation16 + $0x7e8] sm:$0xff] }
0x1f29   :  { %v11171_v13 = vmul.f32 0.70710677, %v5633_v40  ;;  %v5882_v40 = vld [vmem:[#allocation16 + $0x7b8] sm:$0xff]  ;;  %v8705_v62 = vpack.c.bf16 %v5885_v48, %v5883_v39 }
0x1f2a   :  { %8686 = vmatpush1.bf16.msra.mxu0 %v8685_v4  ;;  %v8699_v59 = vpack.c.bf16 %v5882_v40, %v5880_v20  ;;  %v5890_v4 = vld [vmem:[#allocation16 + $0x7f8] sm:$0xff] }
0x1f2b   :  { %5737 = vmatmul.mubr.f32.vlgmr.msra.gmra.mrb[12].mxu1 %v11171_v13  ;;  %8688 = vmatprep.subr.bf16.mxu0 %v8687_v63  ;;  %v8707_v56 = vpack.c.bf16 %v5890_v4, %v5888_v51  ;;  %v5887_v63 = vld [vmem:[#allocation16 + $0x7e0] sm:$0xff] }
0x1f2c   :  { %8245 = vmatprep.mubr.msk.f32.mxu1 %vm9637_vm4, %v11713_v9  ;;  %v8709_v3 = vpack.c.bf16 %v5889_v27, %v5887_v63 }
0x1f2e   :  { %8690 = vmatpush1.bf16.msra.mxu0 %v8689_v21 }
0x1f2f   :  { %8692 = vmatprep.subr.bf16.mxu0 %v8691_v43 }
0x1f32   :  { %8694 = vmatpush1.bf16.msra.mxu0 %v8693_v38 }
0x1f33   :  { %8696 = vmatprep.subr.bf16.mxu0 %v8695_v15 }
0x1f36   :  { %8698 = vmatpush1.bf16.msra.mxu0 %v8697_v36 }
0x1f37   :  { %8700 = vmatprep.subr.bf16.mxu0 %v8699_v59 }
0x1f3a   :  { %8702 = vmatpush1.bf16.msra.mxu0 %v8701_v8 }
0x1f3b   :  { %8704 = vmatprep.subr.bf16.mxu0 %v8703_v18 }
0x1f3e   :  { %8706 = vmatpush1.bf16.msra.mxu0 %v8705_v62 }
0x1f3f   :  { %8708 = vmatprep.subr.bf16.mxu0 %v8707_v56 }
0x1f42   :  { %8710 = vmatpush1.bf16.msra.mxu0 %v8709_v3 }
0x1ffe   :  { %v5738_v21 = vpop.f32.mrb[12].mxu1 }
0x1fff   :  { %v5743_v6 = vrot.slane %v5738_v21, 4  ;;  %v5757_v41 = vmul.f32 %v5738_v21, %v5738_v21  ;;  %v5740_v43 = vpop.f32.mrb[13].mxu1 }
0x2000   :  { %v5749_v35 = vrot.slane %v5740_v43, 4  ;;  %v5758_v2 = vmul.f32 %v5740_v43, %v5740_v43 }
0x2001   :  { %v5744_v38 = vadd.f32 %v5743_v6, %v5738_v21  ;;  %v5759_v31 = vrot.slane %v5757_v41, 4 }
0x2002   :  { %v5750_v57 = vadd.f32 %v5749_v35, %v5740_v43  ;;  %v5765_v29 = vrot.slane %v5758_v2, 4 }
0x2003   :  { %v5745_v15 = vrot.slane %v5744_v38, 2  ;;  %v5760_v19 = vadd.f32 %v5759_v31, %v5757_v41 }
0x2004   :  { %v5751_v20 = vrot.slane %v5750_v57, 2  ;;  %v5766_v40 = vadd.f32 %v5765_v29, %v5758_v2 }
0x2005   :  { %v5746_v36 = vadd.f32 %v5745_v15, %v5744_v38  ;;  %v5761_v59 = vrot.slane %v5760_v19, 2 }
0x2006   :  { %v5752_v34 = vadd.f32 %v5751_v20, %v5750_v57  ;;  %v5767_v22 = vrot.slane %v5766_v40, 2 }
0x2007   :  { %v5747_v52 = vrot.slane %v5746_v36, 1  ;;  %v5762_v17 = vadd.f32 %v5761_v59, %v5760_v19  ;;  %v5669_v59 = vld [vmem:[#allocation17 + $0xc] sm:$0x3] }
0x2008   :  { %v5753_v8 = vrot.slane %v5752_v34, 1  ;;  %v5768_v18 = vadd.f32 %v5767_v22, %v5766_v40 }
0x2009   :  { %v5748_v39 = vadd.f32 %v5747_v52, %v5746_v36  ;;  %v5763_v48 = vrot.slane %v5762_v17, 1 }
0x200a   :  { %v5754_v51 = vadd.f32 %v5753_v8, %v5752_v34  ;;  %v5769_v4 = vrot.slane %v5768_v18, 1 }
0x200b   :  { %v5755_v62 = vmul.f32 0.125, %v5748_v39  ;;  %v5764_v56 = vadd.f32 %v5763_v48, %v5762_v17 }
0x200c   :  { %v5756_v63 = vmul.f32 0.125, %v5754_v51  ;;  %v5770_v27 = vadd.f32 %v5769_v4, %v5768_v18 }
0x200d   :  { %v5771_v3 = vmul.f32 0.125, %v5764_v56  ;;  %v5773_v6 = vmul.f32 %v5755_v62, %v5755_v62  ;;  %v5671_v56 = vld [vmem:[#allocation19 + $0xc] sm:$0x3] }
0x200e   :  { %v5772_v41 = vmul.f32 0.125, %v5770_v27  ;;  %v5774_v35 = vmul.f32 %v5756_v63, %v5756_v63 }
0x200f   :  { %v5775_v2 = vsub.f32 %v5771_v3, %v5773_v6 }
0x2010   :  { %v5776_v38 = vsub.f32 %v5772_v41, %v5774_v35 }
0x2011   :  { %v5777_v31 = vmax.f32 %v5775_v2, 0.0 }
0x2012   :  { %v5778_v57 = vmax.f32 %v5776_v38, 0.0 }
0x2013   :  { %v5779_v29 = vadd.f32 1e-05, %v5777_v31 }
0x2014   :  { %v5780_v15 = vadd.f32 1e-05, %v5778_v57 }
0x2015   :  { %9160 = vrsqrt.f32 %v5779_v29  ;;  %v8060_v29 = vld [vmem:[%s11598_s11 + $0xc0] sm:$0xff] }
0x2016   :  { %9162 = vrsqrt.f32 %v5780_v15  ;;  %v8061_v15 = vld [vmem:[%s11598_s11 + $0xc8] sm:$0xff] }
0x201f   :  { %v9161_v19 = vpop.eup %9160 }
0x2020   :  { %v9163_v20 = vpop.eup %9162 }
0x2021   :  { %v5785_v40 = vcombine.low %v9161_v19, %v9163_v20  ;;  %v8062_v19 = vld [vmem:[%s11598_s11 + $0xd0] sm:$0xff]  ;;  %v8712_v20 = vpack.c.bf16 %v8061_v15, %v8060_v29 }
0x2023   :  { %v5792_v36 = vrot.slane %v5785_v40, %v11716_v10  ;;  %8713 = vmatpush3.bf16.msra.mxu1 %v8712_v20 }
0x2024   :  { %8714 = vmatprep.subr.bf16.mxu1 %v11719_v53 }
0x2025   :  { %v5799_v34 = vrot.slane %v5792_v36, %v11716_v10  ;;  %v8064_v36 = vld [vmem:[%s11598_s11 + $0xe0] sm:$0xff] }
0x2027   :  { %v5801_v22 = vmul.f32 %v5799_v34, %v5669_v59  ;;  %v8065_v59 = vld [vmem:[%s11598_s11 + $0xe8] sm:$0xff] }
0x2028   :  { %v8718_v34 = vpack.c.bf16 %v8065_v59, %v8064_v36 }
0x2029   :  { %v5806_v52 = vrot.slane %v5801_v22, %v11717_v0  ;;  %v5810_v17 = vrot.slane %v5801_v22, %v11718_v26  ;;  %v8066_v22 = vld [vmem:[%s11598_s11 + $0xf0] sm:$0xff] }
0x202b   :  { %v5813_v8 = vmul.f32 %v5806_v52, %v5755_v62  ;;  %v5814_v18 = vmul.f32 %v5810_v17, %v5756_v63  ;;  %v5834_v39 = vmul.f32 %v5806_v52, %v5738_v21  ;;  %v5835_v48 = vmul.f32 %v5810_v17, %v5740_v43  ;;  %v8067_v52 = vld [vmem:[%s11598_s11 + $0xf8] sm:$0xff] }
0x202c   :  { %v8721_v17 = vpack.c.bf16 %v8067_v52, %v8066_v22 }
0x202d   :  { %v5817_v51 = vcombine.low %v5813_v8, %v5814_v18 }
0x202f   :  { %v5824_v4 = vrot.slane %v5817_v51, %v11716_v10 }
0x2031   :  { %v5831_v27 = vrot.slane %v5824_v4, %v11716_v10 }
0x2033   :  { %v5833_v3 = vsub.f32 %v5671_v56, %v5831_v27 }
0x2035   :  { %v5840_v6 = vrot.slane %v5833_v3, %v11717_v0  ;;  %v5844_v41 = vrot.slane %v5833_v3, %v11718_v26 }
0x2037   :  { %v5848_v35 = vadd.f32 %v5844_v41, %v5835_v48  ;;  %v5847_v2 = vadd.f32 %v5840_v6, %v5834_v39 }
0x2039   :  { %v8058_v38 = vmul.f32 -1.442695, %v5848_v35 }
0x203b   :  { %9164 = vpow2.f32 %v8058_v38 }
0x2045   :  { %v9165_v31 = vpop.eup %9164 }
0x2046   :  { %v5852_v62 = vadd.f32 1.0, %v9165_v31 }
0x2048   :  { %9166 = vrcp.f32 %v5852_v62 }
0x2052   :  { %v9167_v21 = vpop.eup %9166 }
0x2053   :  { %v5855_v43 = vmul.f32 %v9167_v21, %v5847_v2 }
0x2055   :  { %v5856_v63 = vadd.f32 %v5855_v43, %v11171_v13  ;;  %v8063_v13 = vld [vmem:[%s11598_s11 + $0xd8] sm:$0xff]  ;;  %s9640_s11 = smov [#allocation27]  }
0x2056   :  { %v8715_v40 = vpack.c.bf16 %v8063_v13, %v8062_v19 }
0x2057   :  { %v11185_v57 = vmul.f32 0.70710677, %v5856_v63 }
0x2058   :  { %8716 = vmatpush3.bf16.msra.mxu1 %v8715_v40 }
0x2059   :  { %5960 = vmatmul.mubr.f32.vlgmr.msra.gmra.mrb[22].mxu0 %v11185_v57  ;;  %8717 = vmatprep.subr.bf16.mxu1 %v11719_v53 }
0x205a   :  { %7382 = vmatprep.mubr.f32.mxu0 %v11713_v9 }
0x205c   :  { %8719 = vmatpush3.bf16.msra.mxu1 %v8718_v34 }
0x205d   :  { %8720 = vmatprep.subr.bf16.mxu1 %v11719_v53 }
0x2060   :  { %8722 = vmatpush3.bf16.msra.mxu1 %v8721_v17 }
0x2061   :  { %8725 = vmatprep.subr.msk.bf16.mxu1 %vm9955_vm2, %v11720_v47 }
0x212c   :  { %v5961_v8 = vpop.f32.mrb[22].mxu0 }
0x212d   :  { %v5966_v18 = vrot.slane %v5961_v8, 4  ;;  %v5980_v39 = vmul.f32 %v5961_v8, %v5961_v8  ;;  %v5963_v48 = vpop.f32.mrb[23].mxu0 }
0x212e   :  { %v5972_v51 = vrot.slane %v5963_v48, 4  ;;  %v5981_v4 = vmul.f32 %v5963_v48, %v5963_v48 }
0x212f   :  { %v5967_v56 = vadd.f32 %v5966_v18, %v5961_v8  ;;  %v5982_v27 = vrot.slane %v5980_v39, 4 }
0x2130   :  { %v5973_v3 = vadd.f32 %v5972_v51, %v5963_v48  ;;  %v5988_v6 = vrot.slane %v5981_v4, 4 }
0x2131   :  { %v5968_v41 = vrot.slane %v5967_v56, 2  ;;  %v5983_v35 = vadd.f32 %v5982_v27, %v5980_v39 }
0x2132   :  { %v5974_v2 = vrot.slane %v5973_v3, 2  ;;  %v5989_v38 = vadd.f32 %v5988_v6, %v5981_v4 }
0x2133   :  { %v5969_v31 = vadd.f32 %v5968_v41, %v5967_v56  ;;  %v5984_v62 = vrot.slane %v5983_v35, 2 }
0x2134   :  { %v5975_v21 = vadd.f32 %v5974_v2, %v5973_v3  ;;  %v5990_v43 = vrot.slane %v5989_v38, 2 }
0x2135   :  { %v5970_v63 = vrot.slane %v5969_v31, 1  ;;  %v5985_v47 = vadd.f32 %v5984_v62, %v5983_v35 }
0x2136   :  { %v5976_v29 = vrot.slane %v5975_v21, 1  ;;  %v5991_v15 = vadd.f32 %v5990_v43, %v5989_v38 }
0x2137   :  { %v5971_v19 = vadd.f32 %v5970_v63, %v5969_v31  ;;  %v5986_v20 = vrot.slane %v5985_v47, 1  ;;  %v5892_v31 = vld [vmem:[#allocation17 + $0xe] sm:$0x3] }
0x2138   :  { %v5977_v13 = vadd.f32 %v5976_v29, %v5975_v21  ;;  %v5992_v40 = vrot.slane %v5991_v15, 1 }
0x2139   :  { %v5978_v36 = vmul.f32 0.125, %v5971_v19  ;;  %v5987_v59 = vadd.f32 %v5986_v20, %v5985_v47 }
0x213a   :  { %v5979_v34 = vmul.f32 0.125, %v5977_v13  ;;  %v5993_v22 = vadd.f32 %v5992_v40, %v5991_v15  ;;  %v5894_v40 = vld [vmem:[#allocation19 + $0xe] sm:$0x3] }
0x213b   :  { %v5994_v52 = vmul.f32 0.125, %v5987_v59  ;;  %v5996_v17 = vmul.f32 %v5978_v36, %v5978_v36 }
0x213c   :  { %v5995_v18 = vmul.f32 0.125, %v5993_v22  ;;  %v5997_v39 = vmul.f32 %v5979_v34, %v5979_v34 }
0x213d   :  { %v5998_v51 = vsub.f32 %v5994_v52, %v5996_v17 }
0x213e   :  { %v5999_v4 = vsub.f32 %v5995_v18, %v5997_v39 }
0x213f   :  { %v6000_v56 = vmax.f32 %v5998_v51, 0.0 }
0x2140   :  { %v6001_v27 = vmax.f32 %v5999_v4, 0.0 }
0x2141   :  { %v6002_v3 = vadd.f32 1e-05, %v6000_v56 }
0x2142   :  { %v6003_v6 = vadd.f32 1e-05, %v6001_v27 }
0x2143   :  { %9168 = vrsqrt.f32 %v6002_v3 }
0x2144   :  { %9170 = vrsqrt.f32 %v6003_v6 }
0x214d   :  { %v9169_v41 = vpop.eup %9168 }
0x214e   :  { %v9171_v35 = vpop.eup %9170 }
0x214f   :  { %v6008_v2 = vcombine.low %v9169_v41, %v9171_v35 }
0x2151   :  { %v6015_v38 = vrot.slane %v6008_v2, %v11716_v10 }
0x2153   :  { %v6022_v62 = vrot.slane %v6015_v38, %v11716_v10 }
0x2155   :  { %v6024_v21 = vmul.f32 %v6022_v62, %v5892_v31 }
0x2157   :  { %v6029_v43 = vrot.slane %v6024_v21, %v11717_v0  ;;  %v6033_v63 = vrot.slane %v6024_v21, %v11718_v26 }
0x2159   :  { %v6036_v47 = vmul.f32 %v6029_v43, %v5978_v36  ;;  %v6037_v29 = vmul.f32 %v6033_v63, %v5979_v34  ;;  %v6057_v15 = vmul.f32 %v6029_v43, %v5961_v8  ;;  %v6058_v19 = vmul.f32 %v6033_v63, %v5963_v48 }
0x215b   :  { %v6040_v20 = vcombine.low %v6036_v47, %v6037_v29 }
0x215d   :  { %v6047_v13 = vrot.slane %v6040_v20, %v11716_v10 }
0x215f   :  { %v6054_v59 = vrot.slane %v6047_v13, %v11716_v10 }
0x2161   :  { %v6056_v22 = vsub.f32 %v5894_v40, %v6054_v59 }
0x2163   :  { %v6063_v52 = vrot.slane %v6056_v22, %v11717_v0  ;;  %v6067_v17 = vrot.slane %v6056_v22, %v11718_v26 }
0x2165   :  { %v6071_v18 = vadd.f32 %v6067_v17, %v6058_v19  ;;  %v6070_v39 = vadd.f32 %v6063_v52, %v6057_v15  ;;  %v6168_v52 = vld [vmem:[#allocation20 + $0x3] sm:$0x1] }
0x2167   :  { %v8059_v51 = vmul.f32 -1.442695, %v6071_v18 }
0x2169   :  { %9172 = vpow2.f32 %v8059_v51 }
0x2173   :  { %v9173_v4 = vpop.eup %9172 }
0x2174   :  { %v6075_v36 = vadd.f32 1.0, %v9173_v4 }
0x2176   :  { %9174 = vrcp.f32 %v6075_v36 }
0x2180   :  { %v9175_v8 = vpop.eup %9174 }
0x2181   :  { %v6078_v48 = vmul.f32 %v9175_v8, %v6070_v39  ;;  %v6170_v39 = vld [vmem:[#allocation22 + $0x3] sm:$0x1] }
0x2183   :  { %v6079_v34 = vadd.f32 %v6078_v48, %v11185_v57 }
0x2185   :  { %v6080_v56 = vmul.f32 0.70710677, %v6079_v34 }
0x2187   :  { %6093 = vrot.lane.b32.xlu0 %v6080_v56, %s9638_s19  ;;  %v6081_v27 = vmax.f32 %v6080_v56, 0.0  ;;  %v9216_v56 = vld [vmem:[#allocation5] sm:$0xff]  ;;  %s7844_s19 = sshll.u32 %s9640_s11, 4  ;;  %s7845_s19 = int_to_ptr.vmem [resolvable:$true] %s7844_s19 }
0x2188   :  { %s9547_s6 = scalar_lea.vmem %s7845_s19, 128  ;;  %p9552_p9 = scmp.lt.s32.totalorder %s7845_s19, %s7845_s19 }
0x2189   :  { %v11230_v3 = vadd.f32 %v6081_v27, %v10864_v24  ;;  %p9548_p8 = scmp.ne.s32.totalorder %s7845_s19, %s9547_s6  ;;  %p9553_p10 = scmp.lt.s32.totalorder %s9547_s6, %s9547_s6 }
0x218b   :  { %11749 = vst [vmem:[#allocation40_spill] sm:$0xff] %v11230_v3  ;;  %p9554_p11 = por %p9553_p10, %p9552_p9 }
0x218d   :  { %p9555_p12 = pnand %p9554_p11, %p9548_p8 }
0x21f9   :  { %v6094_v6 = vpop.permute.xlu0 %6093 }
0x21fa   :  { %8246 = vmatmul.mubr.msk.f32.vlgmr.msra.gmra.mrb[14].mxu1 %vm11750_vm15, %v6094_v6 }
0x21fb   :  { %8728 = vmatpush1.bf16.msk.msra.mxu1 %vm9955_vm2, %v11722_v23  ;;  %6971 = vmatprep.mubr.f32.mxu1 %v11713_v9 }
0x21fc   :  { %8730 = vmatprep.subr.bf16.mxu1 %v11723_v46 }
0x22cd   :  { %v6163_v41 = vpop.f32.mrb[14].mxu1 }
0x22ce   :  { %v6171_v57 = vsel %vm306_vm3, %v6163_v41, 0.0  ;;  %v6179_v35 = vmul.f32 %v6163_v41, %v6163_v41  ;;  %v8247_v2 = vpop.f32.mrb[15].mxu1 }
0x22cf   :  { %v6172_v38 = vrot.slane %v6171_v57, 4 }
0x22d0   :  { %v6180_v24 = vsel %vm306_vm3, %v6179_v35, 0.0 }
0x22d1   :  { %v6173_v31 = vadd.f32 %v6172_v38, %v6171_v57  ;;  %v6181_v62 = vrot.slane %v6180_v24, 4 }
0x22d3   :  { %v6174_v21 = vrot.slane %v6173_v31, 2  ;;  %v6182_v43 = vadd.f32 %v6181_v62, %v6180_v24  ;;  %v11751_v62 = vld [vmem:[#allocation64_spill] sm:$0xff] }
0x22d5   :  { %v6175_v63 = vadd.f32 %v6174_v21, %v6173_v31  ;;  %v6183_v47 = vrot.slane %v6182_v43, 2 }
0x22d7   :  { %v6176_v61 = vrot.slane %v6175_v63, 1  ;;  %v6184_v23 = vadd.f32 %v6183_v47, %v6182_v43  ;;  %v11752_v43 = vld [vmem:[#allocation65_spill] sm:$0xff] }
0x22d9   :  { %v6177_v29 = vadd.f32 %v6176_v61, %v6175_v63  ;;  %v6185_v15 = vrot.slane %v6184_v23, 1  ;;  %v11753_v63 = vld [vmem:[#allocation66_spill] sm:$0xff] }
0x22db   :  { %v6178_v19 = vmul.f32 0.125, %v6177_v29  ;;  %v6186_v46 = vadd.f32 %v6185_v15, %v6184_v23 }
0x22dd   :  { %v6187_v20 = vmul.f32 0.125, %v6186_v46  ;;  %v6188_v13 = vmul.f32 %v6178_v19, %v6178_v19 }
0x22df   :  { %v6189_v40 = vsub.f32 %v6187_v20, %v6188_v13 }
0x22e1   :  { %v6190_v59 = vmax.f32 %v6189_v40, 0.0 }
0x22e3   :  { %v6191_v22 = vadd.f32 1e-05, %v6190_v59 }
0x22e5   :  { %9176 = vrsqrt.f32 %v6191_v22 }
0x22ef   :  { %v9177_v17 = vpop.eup %9176 }
0x22f0   :  { %v6193_v18 = vmul.f32 %v9177_v17, %v6168_v52 }
0x22f2   :  { %v6194_v51 = vmul.f32 %v6193_v18, %v6178_v19  ;;  %v6200_v4 = vrot.slane %v6193_v18, %v11717_v0 }
0x22f4   :  { %v6195_v36 = vsub.f32 %v6170_v39, %v6194_v51  ;;  %v6202_v8 = vmul.f32 %v6200_v4, %v6163_v41 }
0x22f6   :  { %v6207_v48 = vrot.slane %v6195_v36, %v11717_v0 }
0x22f8   :  { %v6209_v34 = vadd.f32 %v6207_v48, %v6202_v8 }
0x22fa   :  { %v6210_v27 = vmul.f32 %v9216_v56, %v6209_v34 }
0x22fc   :  { %v6211_v6 = vsel %vm306_vm3, %v6210_v27, -inf }
0x22fd   :  { %6212 = vmax.xlane.f32.xlu1 %v6211_v6 }
0x238a   :  { %v6213_v57 = vpop.xlane.xlu1 %6212 }
0x238b   :  { %v11243_v35 = vsub.f32 %v6210_v27, %v6213_v57 }
0x238d   :  { %v6268_v2 = vrot.slane %v11243_v35, %v11717_v0  ;;  %v6279_v38 = vrot.slane %v11243_v35, %v11718_v26  ;;  %v6290_v41 = vrot.slane %v11243_v35, %v11724_v60  ;;  %v6301_v24 = vrot.slane %v11243_v35, %v11725_v32 }
0x238e   :  { %v6312_v31 = vrot.slane %v11243_v35, %v11726_v1  ;;  %v6323_v21 = vrot.slane %v11243_v35, %v11751_v62  ;;  %v6334_v60 = vrot.slane %v11243_v35, %v11752_v43  ;;  %v11261_v32 = vrot.slane %v11243_v35, %v11753_v63 }
0x238f   :  { %6274 = vbcast.lane.b32.xlu0 %v6268_v2, 264  ;;  %6270 = vbcast.lane.b32.xlu1 %v6268_v2, 256  ;;  %v6223_v1 = vrot.slane %v11243_v35, %v11716_v10  ;;  %v6216_v13 = vcombine.high %v11243_v35, %v11243_v35 }
0x2391   :  { %v6239_v47 = vrot.slane %v6223_v1, %v11716_v10  ;;  %v6231_v61 = vcombine.high %v6223_v1, %v6223_v1  ;;  %v6230_v51 = vrot.slane %v6216_v13, %v11716_v10 }
0x2393   :  { %6285 = vbcast.lane.b32.xlu0 %v6279_v38, 264  ;;  %6281 = vbcast.lane.b32.xlu1 %v6279_v38, 256  ;;  %v11269_v23 = vrot.slane %v6239_v47, %v11717_v0  ;;  %v6253_v29 = vrot.slane %v6231_v61, %v11716_v10  ;;  %v6261_v52 = vcombine.high %v6239_v47, %v6239_v47 }
0x2394   :  { %v6246_v6 = vrot.slane %v6230_v51, %v11716_v10 }
0x2395   :  { %v11283_v40 = vrot.slane %v6253_v29, %v11717_v0  ;;  %v11296_v4 = vrot.slane %v6261_v52, %v11717_v0  ;;  %v6263_v8 = vcombine.high %v6253_v29, %v6253_v29 }
0x2396   :  { %v11325_v43 = vrot.slane %v6246_v6, %v11717_v0 }
0x2397   :  { %6296 = vbcast.lane.b32.xlu0 %v6290_v41, 264  ;;  %6292 = vbcast.lane.b32.xlu1 %v6290_v41, 256  ;;  %v11310_v57 = vrot.slane %v6263_v8, %v11717_v0 }
0x239b   :  { %6307 = vbcast.lane.b32.xlu0 %v6301_v24, 264  ;;  %6303 = vbcast.lane.b32.xlu1 %v6301_v24, 256 }
0x239f   :  { %6318 = vbcast.lane.b32.xlu0 %v6312_v31, 264  ;;  %6314 = vbcast.lane.b32.xlu1 %v6312_v31, 256 }
0x23a3   :  { %6329 = vbcast.lane.b32.xlu0 %v6323_v21, 264  ;;  %6325 = vbcast.lane.b32.xlu1 %v6323_v21, 256 }
0x23a7   :  { %6340 = vbcast.lane.b32.xlu0 %v6334_v60, 264  ;;  %6336 = vbcast.lane.b32.xlu1 %v6334_v60, 256 }
0x23ab   :  { %6351 = vbcast.lane.b32.xlu0 %v11261_v32, 264  ;;  %6347 = vbcast.lane.b32.xlu1 %v11261_v32, 256 }
0x23af   :  { %6562 = vbcast.lane.b32.xlu0 %v6268_v2, 264  ;;  %6558 = vbcast.lane.b32.xlu1 %v6268_v2, 256 }
0x23b3   :  { %6584 = vbcast.lane.b32.xlu0 %v6290_v41, 264  ;;  %6569 = vbcast.lane.b32.xlu1 %v6279_v38, 256 }
0x23b7   :  { %6595 = vbcast.lane.b32.xlu0 %v6301_v24, 264  ;;  %6573 = vbcast.lane.b32.xlu1 %v6279_v38, 264 }
0x23bb   :  { %6606 = vbcast.lane.b32.xlu0 %v6312_v31, 264  ;;  %6580 = vbcast.lane.b32.xlu1 %v6290_v41, 256  ;;  %v6232_v41 = vcombine.high %v6230_v51, %v6230_v51 }
0x23bd   :  { %v6260_v1 = vrot.slane %v6232_v41, %v11716_v10 }
0x23bf   :  { %6617 = vbcast.lane.b32.xlu0 %v6323_v21, 264  ;;  %6591 = vbcast.lane.b32.xlu1 %v6301_v24, 256 }
0x23c3   :  { %6628 = vbcast.lane.b32.xlu0 %v6334_v60, 264  ;;  %6602 = vbcast.lane.b32.xlu1 %v6312_v31, 256 }
0x23c7   :  { %6613 = vbcast.lane.b32.xlu1 %v6323_v21, 256 }
0x23cb   :  { %6624 = vbcast.lane.b32.xlu1 %v6334_v60, 256 }
0x2401   :  { %v6275_v15 = vpop.permute.xlu0 %6274  ;;  %v6271_v19 = vpop.permute.xlu1 %6270 }
0x2402   :  { %vm6394_vm2 = vcmp.ge.f32.partialorder %v11269_v23, %v6275_v15  ;;  %vm6393_vm14 = vcmp.ge.f32.partialorder %v11269_v23, %v6271_v19  ;;  %v11339_v19 = vrot.slane %v6260_v1, %v11717_v0 }
0x2403   :  { %v11275_v46 = vsel %vm6394_vm2, 1.0, %v11713_v9  ;;  %v11278_v20 = vsel %vm6393_vm14, 1.0, %v11713_v9 }
0x2404   :  { %v6444_v59 = vsel %vm1494_vm8, %v11275_v46, 0.0  ;;  %v6441_v22 = vsel %vm306_vm3, %v11278_v20, 0.0 }
0x2405   :  { %v6286_v17 = vpop.permute.xlu0 %6285  ;;  %v6282_v18 = vpop.permute.xlu1 %6281  ;;  %6445 = vadd.xlane.f32.xlu0 %v6444_v59  ;;  %6442 = vadd.xlane.f32.xlu1 %v6441_v22  ;;  %v6262_v22 = vcombine.high %v6246_v6, %v6246_v6 }
0x2406   :  { %vm6396_vm5 = vcmp.ge.f32.partialorder %v11283_v40, %v6286_v17  ;;  %vm6395_vm0 = vcmp.ge.f32.partialorder %v11283_v40, %v6282_v18 }
0x2407   :  { %v11292_v39 = vsel %vm6395_vm0, 1.0, %v11713_v9  ;;  %v11301_v48 = vsel %vm6396_vm5, 1.0, %v11713_v9 }
0x2408   :  { %v6447_v36 = vsel %vm306_vm3, %v11292_v39, 0.0  ;;  %v6450_v38 = vsel %vm1494_vm8, %v11301_v48, 0.0 }
0x2409   :  { %v6297_v34 = vpop.permute.xlu0 %6296  ;;  %v6293_v56 = vpop.permute.xlu1 %6292  ;;  %6448 = vadd.xlane.f32.xlu0 %v6447_v36  ;;  %v11349_v36 = vrot.slane %v6262_v22, %v11717_v0 }
0x240a   :  { %vm6398_vm15 = vcmp.ge.f32.partialorder %v11296_v4, %v6297_v34  ;;  %vm6397_vm2 = vcmp.ge.f32.partialorder %v11296_v4, %v6293_v56  ;;  %v6264_v56 = vcombine.high %v6260_v1, %v6260_v1 }
0x240b   :  { %v11306_v27 = vsel %vm6397_vm2, 1.0, %v11713_v9  ;;  %v11317_v24 = vsel %vm6398_vm15, 1.0, %v11713_v9 }
0x240c   :  { %v6453_v2 = vsel %vm306_vm3, %v11306_v27, 0.0  ;;  %v6456_v60 = vsel %vm1494_vm8, %v11317_v24, 0.0 }
0x240d   :  { %v6308_v31 = vpop.permute.xlu0 %6307  ;;  %v6304_v62 = vpop.permute.xlu1 %6303  ;;  %6454 = vadd.xlane.f32.xlu1 %v6453_v2  ;;  %6451 = vadd.xlane.f32.xlu0 %v6450_v38 }
0x240e   :  { %vm6400_vm14 = vcmp.ge.f32.partialorder %v11310_v57, %v6308_v31  ;;  %vm6399_vm5 = vcmp.ge.f32.partialorder %v11310_v57, %v6304_v62  ;;  %v6384_v31 = vrot.slane %v6264_v56, %v11717_v0 }
0x240f   :  { %v11322_v21 = vsel %vm6399_vm5, 1.0, %v11713_v9  ;;  %v11333_v47 = vsel %vm6400_vm14, 1.0, %v11713_v9 }
0x2410   :  { %v6459_v63 = vsel %vm306_vm3, %v11322_v21, 0.0  ;;  %v6462_v13 = vsel %vm1494_vm8, %v11333_v47, 0.0 }
0x2411   :  { %v6319_v61 = vpop.permute.xlu0 %6318  ;;  %v6315_v29 = vpop.permute.xlu1 %6314  ;;  %6457 = vadd.xlane.f32.xlu0 %v6456_v60  ;;  %6460 = vadd.xlane.f32.xlu1 %v6459_v63 }
0x2412   :  { %vm6402_vm0 = vcmp.ge.f32.partialorder %v11325_v43, %v6319_v61  ;;  %vm6401_vm15 = vcmp.ge.f32.partialorder %v11325_v43, %v6315_v29 }
0x2413   :  { %v8077_v15 = vsel %vm6401_vm15, 1.0, %v11713_v9  ;;  %v8078_v52 = vsel %vm6402_vm0, 1.0, %v11713_v9 }
0x2414   :  { %v6465_v59 = vsel %vm306_vm3, %v8077_v15, 0.0  ;;  %v6468_v8 = vsel %vm1494_vm8, %v8078_v52, 0.0 }
0x2415   :  { %v6330_v17 = vpop.permute.xlu0 %6329  ;;  %v6326_v18 = vpop.permute.xlu1 %6325  ;;  %6463 = vadd.xlane.f32.xlu0 %v6462_v13  ;;  %6466 = vadd.xlane.f32.xlu1 %v6465_v59  ;;  %v6489_v13 = vmul.f32 %v11278_v20, %v11269_v23  ;;  %v6492_v20 = vmul.f32 %v11301_v48, %v11283_v40  ;;  %v6497_v48 = vmul.f32 %v8077_v15, %v11325_v43 }
0x2416   :  { %vm6404_vm2 = vcmp.ge.f32.partialorder %v11339_v19, %v6330_v17  ;;  %vm6403_vm14 = vcmp.ge.f32.partialorder %v11339_v19, %v6326_v18  ;;  %v6490_v18 = vmul.f32 %v11275_v46, %v11269_v23  ;;  %v6494_v23 = vmul.f32 %v11317_v24, %v11296_v4 }
0x2417   :  { %v8079_v51 = vsel %vm6403_vm14, 1.0, %v11713_v9  ;;  %v8080_v6 = vsel %vm6404_vm2, 1.0, %v11713_v9  ;;  %v6505_v56 = vsel %vm306_vm3, %v6489_v13, 0.0  ;;  %v6495_v46 = vmul.f32 %v11322_v21, %v11310_v57 }
0x2418   :  { %v6471_v34 = vsel %vm306_vm3, %v8079_v51, 0.0  ;;  %v6474_v62 = vsel %vm1494_vm8, %v8080_v6, 0.0  ;;  %v6499_v24 = vmul.f32 %v8079_v51, %v11339_v19 }
0x2419   :  { %v6341_v2 = vpop.permute.xlu0 %6340  ;;  %v6337_v38 = vpop.permute.xlu1 %6336  ;;  %6469 = vadd.xlane.f32.xlu0 %v6468_v8  ;;  %6472 = vadd.xlane.f32.xlu1 %v6471_v34  ;;  %v6491_v8 = vmul.f32 %v11292_v39, %v11283_v40  ;;  %v6514_v39 = vsel %vm1494_vm8, %v6492_v20, 0.0  ;;  %v6496_v40 = vmul.f32 %v11333_v47, %v11310_v57  ;;  %v6500_v57 = vmul.f32 %v8080_v6, %v11339_v19 }
0x241a   :  { %vm6406_vm5 = vcmp.ge.f32.partialorder %v11349_v36, %v6341_v2  ;;  %vm6405_vm0 = vcmp.ge.f32.partialorder %v11349_v36, %v6337_v38  ;;  %v6493_v2 = vmul.f32 %v11306_v27, %v11296_v4  ;;  %v6508_v38 = vsel %vm1494_vm8, %v6490_v18, 0.0 }
0x241b   :  { %v8081_v41 = vsel %vm6405_vm0, 1.0, %v11713_v9  ;;  %v8082_v63 = vsel %vm6406_vm5, 1.0, %v11713_v9  ;;  %v6520_v27 = vsel %vm1494_vm8, %v6494_v23, 0.0  ;;  %v6498_v4 = vmul.f32 %v8078_v52, %v11325_v43 }
0x241c   :  { %v6477_v60 = vsel %vm306_vm3, %v8081_v41, 0.0  ;;  %v6480_v59 = vsel %vm1494_vm8, %v8082_v63, 0.0  ;;  %v6526_v21 = vsel %vm1494_vm8, %v6496_v40, 0.0  ;;  %v6501_v47 = vmul.f32 %v8081_v41, %v11349_v36 }
0x241d   :  { %v6352_v1 = vpop.permute.xlu0 %6351  ;;  %v6348_v61 = vpop.permute.xlu1 %6347  ;;  %6475 = vadd.xlane.f32.xlu0 %v6474_v62  ;;  %6478 = vadd.xlane.f32.xlu1 %v6477_v60  ;;  %v6511_v62 = vsel %vm306_vm3, %v6491_v8, 0.0  ;;  %v6517_v60 = vsel %vm306_vm3, %v6493_v2, 0.0  ;;  %v6532_v15 = vsel %vm1494_vm8, %v6498_v4, 0.0  ;;  %v6535_v13 = vsel %vm306_vm3, %v6499_v24, 0.0 }
0x241e   :  { %vm6408_vm15 = vcmp.ge.f32.partialorder %v6384_v31, %v6352_v1  ;;  %vm6407_vm2 = vcmp.ge.f32.partialorder %v6384_v31, %v6348_v61  ;;  %v6523_v1 = vsel %vm306_vm3, %v6495_v46, 0.0  ;;  %v6529_v61 = vsel %vm306_vm3, %v6497_v48, 0.0 }
0x241f   :  { %v8083_v29 = vsel %vm6407_vm2, 1.0, %v11713_v9  ;;  %v8084_v17 = vsel %vm6408_vm15, 1.0, %v11713_v9  ;;  %v6502_v43 = vmul.f32 %v8082_v63, %v11349_v36  ;;  %v6538_v51 = vsel %vm1494_vm8, %v6500_v57, 0.0 }
0x2420   :  { %v6483_v22 = vsel %vm306_vm3, %v8083_v29, 0.0  ;;  %v6486_v34 = vsel %vm1494_vm8, %v8084_v17, 0.0  ;;  %v6503_v52 = vmul.f32 %v8083_v29, %v6384_v31 }
0x2421   :  { %6481 = vadd.xlane.f32.xlu0 %v6480_v59  ;;  %6484 = vadd.xlane.f32.xlu1 %v6483_v22  ;;  %v6541_v59 = vsel %vm306_vm3, %v6501_v47, 0.0  ;;  %v6504_v22 = vmul.f32 %v8084_v17, %v6384_v31  ;;  %v6544_v19 = vsel %vm1494_vm8, %v6502_v43, 0.0  ;;  %v6559_v36 = vpop.permute.xlu1 %6558  ;;  %v6563_v29 = vpop.permute.xlu0 %6562 }
0x2422   :  { %v6547_v6 = vsel %vm306_vm3, %v6503_v52, 0.0 }
0x2423   :  { %v6550_v41 = vsel %vm1494_vm8, %v6504_v22, 0.0 }
0x2425   :  { %6487 = vadd.xlane.f32.xlu0 %v6486_v34  ;;  %6506 = vadd.xlane.f32.xlu1 %v6505_v56  ;;  %v6570_v63 = vpop.permute.xlu1 %6569  ;;  %v6585_v8 = vpop.permute.xlu0 %6584 }
0x2429   :  { %6509 = vadd.xlane.f32.xlu0 %v6508_v38  ;;  %6512 = vadd.xlane.f32.xlu1 %v6511_v62  ;;  %v6574_v18 = vpop.permute.xlu1 %6573  ;;  %v6596_v31 = vpop.permute.xlu0 %6595 }
0x242d   :  { %6515 = vadd.xlane.f32.xlu0 %v6514_v39  ;;  %6518 = vadd.xlane.f32.xlu1 %v6517_v60  ;;  %v6581_v34 = vpop.permute.xlu1 %6580  ;;  %v11406_v56 = vpop.permute.xlu0 %6606 }
0x2431   :  { %6521 = vadd.xlane.f32.xlu0 %v6520_v27  ;;  %6524 = vadd.xlane.f32.xlu1 %v6523_v1  ;;  %v6592_v17 = vpop.permute.xlu1 %6591  ;;  %v11410_v2 = vpop.permute.xlu0 %6617 }
0x2435   :  { %6527 = vadd.xlane.f32.xlu0 %v6526_v21  ;;  %6530 = vadd.xlane.f32.xlu1 %v6529_v61  ;;  %v11408_v20 = vpop.permute.xlu1 %6602  ;;  %v11414_v62 = vpop.permute.xlu0 %6628 }
0x2439   :  { %6533 = vadd.xlane.f32.xlu0 %v6532_v15  ;;  %6536 = vadd.xlane.f32.xlu1 %v6535_v13  ;;  %v11412_v38 = vpop.permute.xlu1 %6613 }
0x243d   :  { %6539 = vadd.xlane.f32.xlu0 %v6538_v51  ;;  %6542 = vadd.xlane.f32.xlu1 %v6541_v59  ;;  %v11416_v23 = vpop.permute.xlu1 %6624 }
0x2441   :  { %6545 = vadd.xlane.f32.xlu0 %v6544_v19  ;;  %6548 = vadd.xlane.f32.xlu1 %v6547_v6 }
0x2445   :  { %6551 = vadd.xlane.f32.xlu0 %v6550_v41 }
0x2452   :  { %6635 = vbcast.lane.b32.xlu1 %v11261_v32, 256 }
0x245b   :  { %6639 = vbcast.lane.b32.xlu0 %v11261_v32, 264 }
0x2492   :  { %v6446_v32 = vpop.xlane.xlu0 %6445  ;;  %v6443_v46 = vpop.xlane.xlu1 %6442 }
0x2493   :  { %v6657_v51 = vmul.f32 %v6559_v36, %v6443_v46  ;;  %v6658_v19 = vmul.f32 %v6563_v29, %v6446_v32 }
0x2496   :  { %v6449_v39 = vpop.xlane.xlu0 %6448 }
0x2497   :  { %v6659_v3 = vmul.f32 %v6570_v63, %v6449_v39 }
0x249a   :  { %v6455_v60 = vpop.xlane.xlu1 %6454  ;;  %v6452_v40 = vpop.xlane.xlu0 %6451 }
0x249b   :  { %v6660_v53 = vmul.f32 %v6574_v18, %v6452_v40  ;;  %v6661_v36 = vmul.f32 %v6581_v34, %v6455_v60 }
0x249e   :  { %v6458_v48 = vpop.xlane.xlu0 %6457  ;;  %v6461_v27 = vpop.xlane.xlu1 %6460 }
0x249f   :  { %v6662_v29 = vmul.f32 %v6585_v8, %v6458_v48 }
0x24a2   :  { %v6464_v1 = vpop.xlane.xlu0 %6463  ;;  %v6467_v4 = vpop.xlane.xlu1 %6466 }
0x24a3   :  { %v6665_v8 = vmul.f32 %v11408_v20, %v6467_v4 }
0x24a6   :  { %v6470_v24 = vpop.xlane.xlu0 %6469  ;;  %v6473_v21 = vpop.xlane.xlu1 %6472 }
0x24a7   :  { %v6666_v34 = vmul.f32 %v11406_v56, %v6470_v24 }
0x24aa   :  { %v11418_v61 = vpop.xlane.xlu0 %6475  ;;  %v11420_v57 = vpop.xlane.xlu1 %6478 }
0x24ab   :  { %v6668_v20 = vmul.f32 %v11410_v2, %v11418_v61 }
0x24ae   :  { %v11422_v47 = vpop.xlane.xlu0 %6481  ;;  %v11424_v15 = vpop.xlane.xlu1 %6484 }
0x24b2   :  { %v11426_v13 = vpop.xlane.xlu0 %6487  ;;  %v6507_v43 = vpop.xlane.xlu1 %6506 }
0x24b3   :  { %v8085_v52 = vadd.f32 -1.0, %v6507_v43 }
0x24b5   :  { %vm6689_vm8 = vcmp.gt.f32.partialorder %v6657_v51, %v8085_v52  ;;  %v6663_v51 = vmul.f32 %v6592_v17, %v6461_v27 }
0x24b6   :  { %v6510_v59 = vpop.xlane.xlu0 %6509  ;;  %v6513_v22 = vpop.xlane.xlu1 %6512  ;;  %v8101_v26 = vsel %vm6689_vm8, 1.0, %v11713_v9 }
0x24b7   :  { %v8086_v6 = vadd.f32 -1.0, %v6510_v59  ;;  %v8087_v41 = vadd.f32 -1.0, %v6513_v22  ;;  %v6667_v22 = vmul.f32 %v11412_v38, %v6473_v21 }
0x24b9   :  { %vm6690_vm14 = vcmp.gt.f32.partialorder %v6658_v19, %v8086_v6  ;;  %vm6691_vm5 = vcmp.gt.f32.partialorder %v6659_v3, %v8087_v41 }
0x24ba   :  { %v8102_v0 = vsel %vm6690_vm14, 1.0, %v11713_v9  ;;  %v6516_v10 = vpop.xlane.xlu0 %6515  ;;  %v6519_v37 = vpop.xlane.xlu1 %6518  ;;  %v8103_v32 = vsel %vm6691_vm5, 1.0, %v11713_v9 }
0x24bb   :  { %v8990_v5 = vpack.i.bf16 %v8102_v0, %v8101_v26  ;;  %v8088_v11 = vadd.f32 -1.0, %v6516_v10  ;;  %v8089_v43 = vadd.f32 -1.0, %v6519_v37  ;;  %v6664_v0 = vmul.f32 %v6596_v31, %v6464_v1 }
0x24bd   :  { %vm6692_vm0 = vcmp.gt.f32.partialorder %v6660_v53, %v8088_v11  ;;  %8991 = vperm.xlu1 %8874, %v8990_v5   ;;  %vm6693_vm15 = vcmp.gt.f32.partialorder %v6661_v36, %v8089_v43  ;;  %v6669_v36 = vmul.f32 %v11416_v23, %v11420_v57 }
0x24be   :  { %v8104_v63 = vsel %vm6692_vm0, 1.0, %v11713_v9  ;;  %v6522_v46 = vpop.xlane.xlu0 %6521  ;;  %v6525_v18 = vpop.xlane.xlu1 %6524  ;;  %v8105_v10 = vsel %vm6693_vm15, 1.0, %v11713_v9 }
0x24bf   :  { %v8995_v39 = vpack.i.bf16 %v8104_v63, %v8103_v32  ;;  %v8090_v40 = vadd.f32 -1.0, %v6522_v46  ;;  %v8091_v52 = vadd.f32 -1.0, %v6525_v18 }
0x24c1   :  { %vm6694_vm2 = vcmp.gt.f32.partialorder %v6662_v29, %v8090_v40  ;;  %8996 = vperm.xlu0 %8868, %v8995_v39   ;;  %vm6695_vm8 = vcmp.gt.f32.partialorder %v6663_v51, %v8091_v52  ;;  %v6670_v29 = vmul.f32 %v11414_v62, %v11422_v47 }
0x24c2   :  { %v8106_v26 = vsel %vm6694_vm2, 1.0, %v11713_v9  ;;  %v6528_v53 = vpop.xlane.xlu0 %6527  ;;  %v6531_v11 = vpop.xlane.xlu1 %6530  ;;  %v8107_v17 = vsel %vm6695_vm8, 1.0, %v11713_v9 }
0x24c3   :  { %v9000_v5 = vpack.i.bf16 %v8106_v26, %v8105_v10  ;;  %v8092_v37 = vadd.f32 -1.0, %v6528_v53  ;;  %v8093_v3 = vadd.f32 -1.0, %v6531_v11 }
0x24c5   :  { %vm6696_vm14 = vcmp.gt.f32.partialorder %v6664_v0, %v8092_v37  ;;  %9001 = vperm.xlu1 %8874, %v9000_v5   ;;  %vm6697_vm5 = vcmp.gt.f32.partialorder %v6665_v8, %v8093_v3 }
0x24c6   :  { %v8108_v31 = vsel %vm6696_vm14, 1.0, %v11713_v9  ;;  %v6534_v60 = vpop.xlane.xlu0 %6533  ;;  %v6537_v48 = vpop.xlane.xlu1 %6536  ;;  %v8109_v4 = vsel %vm6697_vm5, 1.0, %v11713_v9 }
0x24c7   :  { %v9005_v27 = vpack.i.bf16 %v8108_v31, %v8107_v17  ;;  %v8094_v1 = vadd.f32 -1.0, %v6534_v60  ;;  %v8095_v59 = vadd.f32 -1.0, %v6537_v48 }
0x24c9   :  { %vm6698_vm0 = vcmp.gt.f32.partialorder %v6666_v34, %v8094_v1  ;;  %9006 = vperm.xlu0 %8868, %v9005_v27   ;;  %vm6699_vm15 = vcmp.gt.f32.partialorder %v6667_v22, %v8095_v59 }
0x24ca   :  { %v8110_v56 = vsel %vm6698_vm0, 1.0, %v11713_v9  ;;  %v6540_v24 = vpop.xlane.xlu0 %6539  ;;  %v6543_v19 = vpop.xlane.xlu1 %6542  ;;  %v8111_v38 = vsel %vm6699_vm15, 1.0, %v11713_v9 }
0x24cb   :  { %v9010_v6 = vpack.i.bf16 %v8110_v56, %v8109_v4  ;;  %v8096_v41 = vadd.f32 -1.0, %v6540_v24  ;;  %v8097_v43 = vadd.f32 -1.0, %v6543_v19 }
0x24cd   :  { %vm6700_vm2 = vcmp.gt.f32.partialorder %v6668_v20, %v8096_v41  ;;  %9011 = vperm.xlu1 %8874, %v9010_v6   ;;  %vm6701_vm8 = vcmp.gt.f32.partialorder %v6669_v36, %v8097_v43 }
0x24ce   :  { %v8112_v21 = vsel %vm6700_vm2, 1.0, %v11713_v9  ;;  %v6546_v2 = vpop.xlane.xlu0 %6545  ;;  %v6549_v61 = vpop.xlane.xlu1 %6548  ;;  %v8113_v46 = vsel %vm6701_vm8, 1.0, %v11713_v9 }
0x24cf   :  { %v9015_v32 = vpack.i.bf16 %v8112_v21, %v8111_v38  ;;  %v8098_v63 = vadd.f32 -1.0, %v6546_v2  ;;  %v8099_v52 = vadd.f32 -1.0, %v6549_v61 }
0x24d1   :  { %vm6702_vm14 = vcmp.gt.f32.partialorder %v6670_v29, %v8098_v63  ;;  %9016 = vperm.xlu0 %8868, %v9015_v32  }
0x24d2   :  { %v8114_v23 = vsel %vm6702_vm14, 1.0, %v11713_v9  ;;  %v6552_v57 = vpop.xlane.xlu0 %6551  ;;  %v6636_v18 = vpop.permute.xlu1 %6635 }
0x24d3   :  { %v9020_v39 = vpack.i.bf16 %v8114_v23, %v8113_v46  ;;  %v6671_v40 = vmul.f32 %v6636_v18, %v11424_v15  ;;  %v8100_v0 = vadd.f32 -1.0, %v6552_v57 }
0x24d5   :  { %9021 = vperm.xlu1 %8874, %v9020_v39   ;;  %vm6703_vm5 = vcmp.gt.f32.partialorder %v6671_v40, %v8099_v52 }
0x24d6   :  { %v6640_v51 = vpop.permute.xlu0 %6639  ;;  %v8115_v47 = vsel %vm6703_vm5, 1.0, %v11713_v9 }
0x24d7   :  { %v6672_v62 = vmul.f32 %v6640_v51, %v11426_v13 }
0x24d9   :  { %vm6704_vm0 = vcmp.gt.f32.partialorder %v6672_v62, %v8100_v0 }
0x24da   :  { %v8116_v10 = vsel %vm6704_vm0, 1.0, %v11713_v9 }
0x24db   :  { %v9025_v26 = vpack.i.bf16 %v8116_v10, %v8115_v47 }
0x24dd   :  { %9026 = vperm.xlu0 %8868, %v9025_v26  }
0x253c   :  { %v8992_v53 = vpop.permute.xlu1 %8991 }
0x253d   :  { %v8994_v60 = vunpack.i.h.bf16 %v8992_v53  ;;  %v8993_v48 = vunpack.i.l.bf16 %v8992_v53 }
0x253f   :  { %v6808_v36 = vrot.slane %v8994_v60, %v10358_v25  ;;  %v6804_v38 = vrot.slane %v8993_v48, %v10355_v54 }
0x2540   :  { %v8997_v11 = vpop.permute.xlu0 %8996 }
0x2541   :  { %v8999_v15 = vunpack.i.h.bf16 %v8997_v11  ;;  %v8998_v8 = vunpack.i.l.bf16 %v8997_v11  ;;  %v6809_v39 = vsel %vm1863_vm1, %v6808_v36, %v6804_v38 }
0x2543   :  { %v6817_v20 = vrot.slane %v8999_v15, %v10358_v25  ;;  %v6813_v4 = vrot.slane %v8998_v8, %v10355_v54 }
0x2544   :  { %v9002_v5 = vpop.permute.xlu1 %9001 }
0x2545   :  { %v9004_v34 = vunpack.i.h.bf16 %v9002_v5  ;;  %v9003_v17 = vunpack.i.l.bf16 %v9002_v5  ;;  %v6818_v32 = vsel %vm1863_vm1, %v6817_v20, %v6813_v4 }
0x2546   :  { %v6873_v52 = vsel %vm1928_vm6, %v6818_v32, %v6809_v39 }
0x2547   :  { %v6826_v19 = vrot.slane %v9004_v34, %v10358_v25  ;;  %v6822_v6 = vrot.slane %v9003_v17, %v10355_v54 }
0x2548   :  { %v9007_v37 = vpop.permute.xlu0 %9006 }
0x2549   :  { %v9009_v13 = vunpack.i.h.bf16 %v9007_v37  ;;  %v9008_v27 = vunpack.i.l.bf16 %v9007_v37  ;;  %v6827_v23 = vsel %vm1863_vm1, %v6826_v19, %v6822_v6 }
0x254a   :  { %v6874_v62 = vsel %vm1930_vm7, %v6827_v23, %v6873_v52 }
0x254b   :  { %v6835_v21 = vrot.slane %v9009_v13, %v10358_v25  ;;  %v6831_v2 = vrot.slane %v9008_v27, %v10355_v54 }
0x254c   :  { %v9012_v3 = vpop.permute.xlu1 %9011 }
0x254d   :  { %v9014_v1 = vunpack.i.h.bf16 %v9012_v3  ;;  %v9013_v59 = vunpack.i.l.bf16 %v9012_v3  ;;  %v6836_v40 = vsel %vm1863_vm1, %v6835_v21, %v6831_v2 }
0x254e   :  { %v6875_v53 = vsel %vm1932_vm9, %v6836_v40, %v6874_v62 }
0x254f   :  { %v6844_v61 = vrot.slane %v9014_v1, %v10358_v25  ;;  %v6840_v29 = vrot.slane %v9013_v59, %v10355_v54 }
0x2550   :  { %v9017_v31 = vpop.permute.xlu0 %9016 }
0x2551   :  { %v9019_v56 = vunpack.i.h.bf16 %v9017_v31  ;;  %v9018_v24 = vunpack.i.l.bf16 %v9017_v31  ;;  %v6845_v51 = vsel %vm1863_vm1, %v6844_v61, %v6840_v29 }
0x2552   :  { %v6876_v3 = vsel %vm1934_vm10, %v6845_v51, %v6875_v53 }
0x2553   :  { %v6853_v63 = vrot.slane %v9019_v56, %v10358_v25  ;;  %v6849_v46 = vrot.slane %v9018_v24, %v10355_v54 }
0x2554   :  { %v9022_v22 = vpop.permute.xlu1 %9021 }
0x2555   :  { %v9024_v41 = vunpack.i.h.bf16 %v9022_v22  ;;  %v9023_v43 = vunpack.i.l.bf16 %v9022_v22  ;;  %v6854_v47 = vsel %vm1863_vm1, %v6853_v63, %v6849_v46 }
0x2556   :  { %v6877_v15 = vsel %vm1936_vm11, %v6854_v47, %v6876_v3 }
0x2557   :  { %v6862_v57 = vrot.slane %v9024_v41, %v10358_v25  ;;  %v6858_v18 = vrot.slane %v9023_v43, %v10355_v54 }
0x2559   :  { %v6863_v11 = vsel %vm1863_vm1, %v6862_v57, %v6858_v18 }
0x255a   :  { %v6878_v34 = vsel %vm1938_vm12, %v6863_v11, %v6877_v15 }
0x255c   :  { %v9027_v0 = vpop.permute.xlu0 %9026 }
0x255d   :  { %v9029_v10 = vunpack.i.h.bf16 %v9027_v0  ;;  %v9028_v26 = vunpack.i.l.bf16 %v9027_v0 }
0x255f   :  { %v6871_v5 = vrot.slane %v9029_v10, %v10358_v25  ;;  %v6867_v37 = vrot.slane %v9028_v26, %v10355_v54 }
0x2561   :  { %v6872_v8 = vsel %vm1863_vm1, %v6871_v5, %v6867_v37 }
0x2562   :  { %v6879_v17 = vsel %vm1940_vm13, %v6872_v8, %v6878_v34 }
0x2563   :  { %v6881_v31 = vsel %vm306_vm3, %v6879_v17, 0.0  ;;  %v6884_v60 = vmul.f32 %v6879_v17, %v11243_v35 }
0x2564   :  { %6882 = vadd.xlane.f32.xlu1 %v6881_v31 }
0x2565   :  { %v6885_v48 = vsel %vm306_vm3, %v6884_v60, 0.0 }
0x2566   :  { %6886 = vadd.xlane.f32.xlu0 %v6885_v48 }
0x25f1   :  { %v6883_v25 = vpop.xlane.xlu1 %6882 }
0x25f2   :  { %9178 = vrcp.f32 %v6883_v25 }
0x25f3   :  { %v6887_v54 = vpop.xlane.xlu0 %6886 }
0x25f4   :  { %v8117_v13 = vadd.f32 -1.0, %v6887_v54 }
0x25fc   :  { %v9179_v27 = vpop.eup %9178 }
0x25fd   :  { %v6890_v1 = vmul.f32 %v9179_v27, %v8117_v13 }
0x25ff   :  { %v6891_v59 = vsub.f32 %v11243_v35, %v6890_v1 }
0x2601   :  { %v6892_v22 = vmax.f32 %v6891_v59, 0.0  ;;  %v11757_v59 = vld [vmem:[#allocation58_spill] sm:$0xff] }
0x2603   :  { %v6894_v20 = vadd.f32 1e-10, %v6892_v22  ;;  %v6899_v4 = vmul.f32 %v6892_v22, %v9969_v12  ;;  %v6893_v56 = vsub.f32 0.0, %v6892_v22 }
0x2605   :  { %9180 = vlog2.f32 %v6894_v20  ;;  %8120 = vmatmul.mubr.msk.f32.vlgmr.msra.gmra.mrb[16].mxu1 %vm306_vm3, %v6899_v4  ;;  %v6901_v20 = vld [vmem:[#allocation13 + $0x10] sm:$0x3] }
0x2606   :  { %8732 = vmatpush1.bf16.msra.mxu1 %v11734_v7  ;;  %7159 = vmatprep.mubr.f32.mxu1 %v11713_v9 }
0x2607   :  { %8734 = vmatprep.subr.bf16.mxu1 %v11735_v42 }
0x260a   :  { %8736 = vmatpush1.bf16.msra.mxu1 %v11736_v58  ;;  %v11754_v58 = vld [vmem:[#allocation55_spill] sm:$0xff] }
0x260b   :  { %8738 = vmatprep.subr.bf16.mxu1 %v11737_v16  ;;  %v11755_v16 = vld [vmem:[#allocation56_spill] sm:$0xff] }
0x260e   :  { %8740 = vmatpush1.bf16.msra.mxu1 %v11738_v44  ;;  %v11756_v44 = vld [vmem:[#allocation57_spill] sm:$0xff] }
0x260f   :  { %v9181_v35 = vpop.eup %9180  ;;  %8742 = vmatprep.subr.bf16.mxu1 %v11739_v33 }
0x2610   :  { %v6896_v12 = vmul.f32 0.6931472, %v9181_v35 }
0x2612   :  { %v6897_v24 = vmul.f32 %v6896_v12, %v6893_v56  ;;  %8744 = vmatpush1.bf16.msra.mxu1 %v11740_v14  ;;  %v11758_v56 = vld [vmem:[#allocation59_spill] sm:$0xff] }
0x2613   :  { %8746 = vmatprep.subr.bf16.mxu1 %v11741_v30 }
0x2614   :  { %v6898_v7 = vadd.f32 %v6897_v24, %v11140_v50  ;;  %v11759_v24 = vld [vmem:[#allocation60_spill] sm:$0xff] }
0x2616   :  { %v7818_v42 = vsel %vm306_vm3, %v6898_v7, 0.0  ;;  %8748 = vmatpush1.bf16.msra.mxu1 %v11742_v49  ;;  %vm11762_vm3 = vcmask 523264  }
0x2617   :  { %7819 = vadd.xlane.f32.xlu0 %v7818_v42  ;;  %8750 = vmatprep.subr.bf16.mxu1 %v11743_v45 }
0x261a   :  { %8752 = vmatpush1.bf16.msra.mxu1 %v11744_v55 }
0x261b   :  { %8754 = vmatprep.subr.bf16.mxu1 %v11745_v28 }
0x261e   :  { %8756 = vmatpush1.bf16.msra.mxu1 %v11754_v58 }
0x261f   :  { %8758 = vmatprep.subr.bf16.mxu1 %v11755_v16 }
0x2622   :  { %8760 = vmatpush1.bf16.msra.mxu1 %v11756_v44 }
0x26a4   :  { %v7820_v33 = vpop.xlane.xlu0 %7819 }
0x26a5   :  { %v7821_v14 = vrot.slane %v7820_v33, 4 }
0x26a7   :  { %v7822_v30 = vadd.f32 %v7821_v14, %v7820_v33 }
0x26a9   :  { %v7823_v50 = vrot.slane %v7822_v30, 2 }
0x26ab   :  { %v7824_v19 = vadd.f32 %v7823_v50, %v7822_v30  ;;  %v6903_v30 = vld [vmem:[#allocation14 + $0x10] sm:$0x3] }
0x26ad   :  { %v7825_v6 = vrot.slane %v7824_v19, 1 }
0x26af   :  { %v7826_v49 = vadd.f32 %v7825_v6, %v7824_v19 }
0x26b1   :  { %7827 = vst [vmem:[#allocation27] sm:$0xff] %v7826_v49 }
0x26d8   :  { %v6973_v41 = vpop.f32.mrb[16].mxu1 }
0x26d9   :  { %v6978_v45 = vrot.slane %v6973_v41, 4  ;;  %v6992_v43 = vmul.f32 %v6973_v41, %v6973_v41  ;;  %v6975_v55 = vpop.f32.mrb[17].mxu1 }
0x26da   :  { %v6984_v36 = vrot.slane %v6975_v55, 4  ;;  %v6993_v28 = vmul.f32 %v6975_v55, %v6975_v55 }
0x26db   :  { %v6979_v38 = vadd.f32 %v6978_v45, %v6973_v41  ;;  %v6994_v21 = vrot.slane %v6992_v43, 4 }
0x26dc   :  { %v6985_v2 = vadd.f32 %v6984_v36, %v6975_v55  ;;  %v7000_v61 = vrot.slane %v6993_v28, 4 }
0x26dd   :  { %v6980_v29 = vrot.slane %v6979_v38, 2  ;;  %v6995_v32 = vadd.f32 %v6994_v21, %v6992_v43  ;;  %v7283_v21 = vld [vmem:[#allocation16 + $0x808] sm:$0xff] }
0x26de   :  { %v6986_v63 = vrot.slane %v6985_v2, 2  ;;  %v7001_v46 = vadd.f32 %v7000_v61, %v6993_v28 }
0x26df   :  { %v6981_v23 = vadd.f32 %v6980_v29, %v6979_v38  ;;  %v6996_v57 = vrot.slane %v6995_v32, 2  ;;  %v7282_v29 = vld [vmem:[#allocation16 + $0x800] sm:$0xff] }
0x26e0   :  { %v6987_v18 = vadd.f32 %v6986_v63, %v6985_v2  ;;  %v7002_v39 = vrot.slane %v7001_v46, 2  ;;  %v7285_v2 = vld [vmem:[#allocation16 + $0x818] sm:$0xff] }
0x26e1   :  { %v6982_v40 = vrot.slane %v6981_v23, 1  ;;  %v6997_v52 = vadd.f32 %v6996_v57, %v6995_v32  ;;  %v8761_v61 = vpack.c.bf16 %v7285_v2, %v7283_v21  ;;  %v7284_v32 = vld [vmem:[#allocation16 + $0x810] sm:$0xff] }
0x26e2   :  { %v6988_v51 = vrot.slane %v6987_v18, 1  ;;  %v7003_v0 = vadd.f32 %v7002_v39, %v7001_v46  ;;  %v8763_v63 = vpack.c.bf16 %v7284_v32, %v7282_v29  ;;  %v7287_v46 = vld [vmem:[#allocation16 + $0x828] sm:$0xff]  ;;  %v7288_v39 = vld [vmem:[#allocation16 + $0x830] sm:$0xff] }
0x26e3   :  { %v6983_v62 = vadd.f32 %v6982_v40, %v6981_v23  ;;  %v6998_v47 = vrot.slane %v6997_v52, 1  ;;  %8762 = vmatprep.subr.bf16.mxu0 %v8761_v61  ;;  %v7289_v23 = vld [vmem:[#allocation16 + $0x838] sm:$0xff] }
0x26e4   :  { %v6989_v10 = vadd.f32 %v6988_v51, %v6987_v18  ;;  %v7004_v26 = vrot.slane %v7003_v0, 1  ;;  %8764 = vmatpush1.bf16.msra.mxu0 %v8763_v63  ;;  %v8765_v57 = vpack.c.bf16 %v7289_v23, %v7287_v46  ;;  %v7286_v18 = vld [vmem:[#allocation16 + $0x820] sm:$0xff]  ;;  %v7293_v51 = vld [vmem:[#allocation16 + $0x858] sm:$0xff] }
0x26e5   :  { %v6990_v53 = vmul.f32 0.125, %v6983_v62  ;;  %v6999_v11 = vadd.f32 %v6998_v47, %v6997_v52  ;;  %v8767_v40 = vpack.c.bf16 %v7288_v39, %v7286_v18  ;;  %v7291_v52 = vld [vmem:[#allocation16 + $0x848] sm:$0xff]  ;;  %v7290_v62 = vld [vmem:[#allocation16 + $0x840] sm:$0xff]  ;;  %v7292_v47 = vld [vmem:[#allocation16 + $0x850] sm:$0xff] }
0x26e6   :  { %v6991_v5 = vmul.f32 0.125, %v6989_v10  ;;  %v7005_v37 = vadd.f32 %v7004_v26, %v7003_v0  ;;  %8766 = vmatprep.subr.bf16.mxu0 %v8765_v57  ;;  %v8769_v0 = vpack.c.bf16 %v7293_v51, %v7291_v52  ;;  %v8771_v10 = vpack.c.bf16 %v7292_v47, %v7290_v62  ;;  %v7295_v26 = vld [vmem:[#allocation16 + $0x868] sm:$0xff] }
0x26e7   :  { %v7006_v3 = vmul.f32 0.125, %v6999_v11  ;;  %v7008_v15 = vmul.f32 %v6990_v53, %v6990_v53 }
0x26e8   :  { %v7007_v8 = vmul.f32 0.125, %v7005_v37  ;;  %v7009_v34 = vmul.f32 %v6991_v5, %v6991_v5  ;;  %8768 = vmatpush1.bf16.msra.mxu0 %v8767_v40  ;;  %v7296_v37 = vld [vmem:[#allocation16 + $0x870] sm:$0xff] }
0x26e9   :  { %v7010_v17 = vsub.f32 %v7006_v3, %v7008_v15  ;;  %8770 = vmatprep.subr.bf16.mxu0 %v8769_v0  ;;  %v7299_v15 = vld [vmem:[#allocation16 + $0x888] sm:$0xff] }
0x26ea   :  { %v7011_v31 = vsub.f32 %v7007_v8, %v7009_v34  ;;  %v7301_v8 = vld [vmem:[#allocation16 + $0x898] sm:$0xff]  ;;  %v7298_v34 = vld [vmem:[#allocation16 + $0x880] sm:$0xff] }
0x26eb   :  { %v7012_v60 = vmax.f32 %v7010_v17, 0.0  ;;  %v8777_v17 = vpack.c.bf16 %v7301_v8, %v7299_v15 }
0x26ec   :  { %v7013_v48 = vmax.f32 %v7011_v31, 0.0  ;;  %8772 = vmatpush1.bf16.msra.mxu0 %v8771_v10  ;;  %v7300_v31 = vld [vmem:[#allocation16 + $0x890] sm:$0xff] }
0x26ed   :  { %v7014_v25 = vadd.f32 1e-05, %v7012_v60  ;;  %v7303_v60 = vld [vmem:[#allocation16 + $0x8a8] sm:$0xff] }
0x26ee   :  { %v7015_v54 = vadd.f32 1e-05, %v7013_v48  ;;  %v7305_v48 = vld [vmem:[#allocation16 + $0x8b8] sm:$0xff] }
0x26ef   :  { %9182 = vrsqrt.f32 %v7014_v25  ;;  %v8779_v25 = vpack.c.bf16 %v7300_v31, %v7298_v34 }
0x26f0   :  { %9184 = vrsqrt.f32 %v7015_v54  ;;  %v8781_v54 = vpack.c.bf16 %v7305_v48, %v7303_v60 }
0x26f9   :  { %v9183_v13 = vpop.eup %9182 }
0x26fa   :  { %v9185_v27 = vpop.eup %9184 }
0x26fb   :  { %v7020_v1 = vcombine.low %v9183_v13, %v9185_v27  ;;  %v7302_v13 = vld [vmem:[#allocation16 + $0x8a0] sm:$0xff]  ;;  %v7304_v27 = vld [vmem:[#allocation16 + $0x8b0] sm:$0xff] }
0x26fd   :  { %v7027_v22 = vrot.slane %v7020_v1, %v11757_v59  ;;  %v7307_v1 = vld [vmem:[#allocation16 + $0x8c8] sm:$0xff] }
0x26ff   :  { %v7034_v4 = vrot.slane %v7027_v22, %v11757_v59  ;;  %v7309_v22 = vld [vmem:[#allocation16 + $0x8d8] sm:$0xff] }
0x2701   :  { %v7036_v35 = vmul.f32 %v7034_v4, %v6901_v20  ;;  %v8783_v20 = vpack.c.bf16 %v7304_v27, %v7302_v13  ;;  %v8785_v4 = vpack.c.bf16 %v7309_v22, %v7307_v1  ;;  %v7092_v27 = vld [vmem:[#allocation13 + $0x12] sm:$0x3] }
0x2703   :  { %v7041_v12 = vrot.slane %v7036_v35, %v11758_v56  ;;  %v7045_v7 = vrot.slane %v7036_v35, %v11759_v24  ;;  %v7306_v35 = vld [vmem:[#allocation16 + $0x8c0] sm:$0xff] }
0x2705   :  { %v7048_v42 = vmul.f32 %v7041_v12, %v6990_v53  ;;  %v7049_v58 = vmul.f32 %v7045_v7, %v6991_v5  ;;  %v7070_v16 = vmul.f32 %v7045_v7, %v6975_v55  ;;  %v7069_v44 = vmul.f32 %v7041_v12, %v6973_v41  ;;  %v7297_v53 = vld [vmem:[#allocation16 + $0x878] sm:$0xff]  ;;  %v7294_v5 = vld [vmem:[#allocation16 + $0x860] sm:$0xff]  ;;  %v7308_v12 = vld [vmem:[#allocation16 + $0x8d0] sm:$0xff] }
0x2706   :  { %v8773_v11 = vpack.c.bf16 %v7297_v53, %v7295_v26  ;;  %v8775_v3 = vpack.c.bf16 %v7296_v37, %v7294_v5  ;;  %v7311_v7 = vld [vmem:[#allocation16 + $0x8e8] sm:$0xff] }
0x2707   :  { %v7052_v33 = vcombine.low %v7048_v42, %v7049_v58  ;;  %v7313_v42 = vld [vmem:[#allocation16 + $0x8f8] sm:$0xff]  ;;  %v8787_v58 = vpack.c.bf16 %v7308_v12, %v7306_v35 }
0x2708   :  { %8774 = vmatprep.subr.bf16.mxu0 %v8773_v11 }
0x2709   :  { %v7059_v14 = vrot.slane %v7052_v33, %v11757_v59  ;;  %8776 = vmatpush1.bf16.msra.mxu0 %v8775_v3  ;;  %v7312_v33 = vld [vmem:[#allocation16 + $0x8f0] sm:$0xff] }
0x270a   :  { %8778 = vmatprep.subr.bf16.mxu0 %v8777_v17 }
0x270b   :  { %v7066_v50 = vrot.slane %v7059_v14, %v11757_v59 }
0x270d   :  { %v7068_v19 = vsub.f32 %v6903_v30, %v7066_v50  ;;  %8780 = vmatpush1.bf16.msra.mxu0 %v8779_v25  ;;  %v11760_v30 = vmov 0.0|0.0  }
0x270e   :  { %8782 = vmatprep.subr.bf16.mxu0 %v8781_v54 }
0x270f   :  { %v7079_v6 = vrot.slane %v7068_v19, %v11759_v24  ;;  %v7075_v49 = vrot.slane %v7068_v19, %v11758_v56 }
0x2711   :  { %v7083_v45 = vadd.f32 %v7079_v6, %v7070_v16  ;;  %v7082_v43 = vadd.f32 %v7075_v49, %v7069_v44  ;;  %8784 = vmatpush1.bf16.msra.mxu0 %v8783_v20  ;;  %v8789_v16 = vpack.c.bf16 %v7313_v42, %v7311_v7  ;;  %v7310_v44 = vld [vmem:[#allocation16 + $0x8e0] sm:$0xff] }
0x2712   :  { %8786 = vmatprep.subr.bf16.mxu0 %v8785_v4  ;;  %v8791_v14 = vpack.c.bf16 %v7312_v33, %v7310_v44  ;;  %v7094_v44 = vld [vmem:[#allocation14 + $0x12] sm:$0x3] }
0x2713   :  { %v8121_v36 = vmul.f32 -1.442695, %v7083_v45 }
0x2715   :  { %9186 = vpow2.f32 %v8121_v36  ;;  %8788 = vmatpush1.bf16.msra.mxu0 %v8787_v58 }
0x2716   :  { %8790 = vmatprep.subr.bf16.mxu0 %v8789_v16 }
0x2719   :  { %8792 = vmatpush1.bf16.msra.mxu0 %v8791_v14 }
0x271a   :  { %8825 = vmatprep.subr.bf16.mxu0 %v11760_v30 }
0x271f   :  { %v9187_v28 = vpop.eup %9186 }
0x2720   :  { %v7087_v38 = vadd.f32 1.0, %v9187_v28 }
0x2722   :  { %9188 = vrcp.f32 %v7087_v38 }
0x272c   :  { %v9189_v55 = vpop.eup %9188 }
0x272d   :  { %v11518_v41 = vmul.f32 %v9189_v55, %v7082_v43 }
0x272f   :  { %7160 = vmatmul.mubr.f32.vlgmr.msra.gmra.mrb[18].mxu1 %v11518_v41 }
0x2730   :  { %7605 = vmatprep.mubr.f32.mxu1 %v11713_v9 }
0x2802   :  { %v7161_v50 = vpop.f32.mrb[18].mxu1 }
0x2803   :  { %v7166_v19 = vrot.slane %v7161_v50, 4  ;;  %v7180_v6 = vmul.f32 %v7161_v50, %v7161_v50  ;;  %v7163_v49 = vpop.f32.mrb[19].mxu1 }
0x2804   :  { %v7172_v45 = vrot.slane %v7163_v49, 4  ;;  %v7181_v43 = vmul.f32 %v7163_v49, %v7163_v49 }
0x2805   :  { %v7167_v36 = vadd.f32 %v7166_v19, %v7161_v50  ;;  %v7182_v28 = vrot.slane %v7180_v6, 4 }
0x2806   :  { %v7173_v38 = vadd.f32 %v7172_v45, %v7163_v49  ;;  %v7188_v55 = vrot.slane %v7181_v43, 4 }
0x2807   :  { %v7168_v21 = vrot.slane %v7167_v36, 2  ;;  %v7183_v2 = vadd.f32 %v7182_v28, %v7180_v6 }
0x2808   :  { %v7174_v61 = vrot.slane %v7173_v38, 2  ;;  %v7189_v29 = vadd.f32 %v7188_v55, %v7181_v43 }
0x2809   :  { %v7169_v32 = vadd.f32 %v7168_v21, %v7167_v36  ;;  %v7184_v63 = vrot.slane %v7183_v2, 2 }
0x280a   :  { %v7175_v46 = vadd.f32 %v7174_v61, %v7173_v38  ;;  %v7190_v23 = vrot.slane %v7189_v29, 2  ;;  %v7508_v61 = vld [vmem:[#allocation16 + $0x918] sm:$0xff] }
0x280b   :  { %v7170_v57 = vrot.slane %v7169_v32, 1  ;;  %v7185_v18 = vadd.f32 %v7184_v63, %v7183_v2  ;;  %v7506_v2 = vld [vmem:[#allocation16 + $0x908] sm:$0xff]  ;;  %v7507_v63 = vld [vmem:[#allocation16 + $0x910] sm:$0xff] }
0x280c   :  { %v7176_v39 = vrot.slane %v7175_v46, 1  ;;  %v7191_v40 = vadd.f32 %v7190_v23, %v7189_v29  ;;  %v8793_v29 = vpack.c.bf16 %v7508_v61, %v7506_v2  ;;  %v7510_v23 = vld [vmem:[#allocation16 + $0x928] sm:$0xff] }
0x280d   :  { %v7171_v52 = vadd.f32 %v7170_v57, %v7169_v32  ;;  %v7186_v51 = vrot.slane %v7185_v18, 1  ;;  %v7505_v32 = vld [vmem:[#allocation16 + $0x900] sm:$0xff]  ;;  %v7512_v57 = vld [vmem:[#allocation16 + $0x938] sm:$0xff] }
0x280e   :  { %v7177_v0 = vadd.f32 %v7176_v39, %v7175_v46  ;;  %v7192_v62 = vrot.slane %v7191_v40, 1  ;;  %v8795_v46 = vpack.c.bf16 %v7507_v63, %v7505_v32  ;;  %8794 = vmatprep.subr.bf16.mxu1 %v8793_v29  ;;  %v7509_v39 = vld [vmem:[#allocation16 + $0x920] sm:$0xff] }
0x280f   :  { %v7178_v47 = vmul.f32 0.125, %v7171_v52  ;;  %v7187_v10 = vadd.f32 %v7186_v51, %v7185_v18  ;;  %v8797_v18 = vpack.c.bf16 %v7512_v57, %v7510_v23  ;;  %v7514_v52 = vld [vmem:[#allocation16 + $0x948] sm:$0xff]  ;;  %v7516_v51 = vld [vmem:[#allocation16 + $0x958] sm:$0xff] }
0x2810   :  { %v7179_v26 = vmul.f32 0.125, %v7177_v0  ;;  %v7193_v53 = vadd.f32 %v7192_v62, %v7191_v40  ;;  %8796 = vmatpush1.bf16.msra.mxu1 %v8795_v46  ;;  %v8801_v0 = vpack.c.bf16 %v7516_v51, %v7514_v52  ;;  %v7515_v62 = vld [vmem:[#allocation16 + $0x950] sm:$0xff] }
0x2811   :  { %v7194_v11 = vmul.f32 0.125, %v7187_v10  ;;  %v7196_v5 = vmul.f32 %v7178_v47, %v7178_v47  ;;  %8798 = vmatprep.subr.bf16.mxu1 %v8797_v18  ;;  %v7518_v10 = vld [vmem:[#allocation16 + $0x968] sm:$0xff] }
0x2812   :  { %v7195_v37 = vmul.f32 0.125, %v7193_v53  ;;  %v7197_v3 = vmul.f32 %v7179_v26, %v7179_v26 }
0x2813   :  { %v7198_v15 = vsub.f32 %v7194_v11, %v7196_v5  ;;  %v7517_v11 = vld [vmem:[#allocation16 + $0x960] sm:$0xff]  ;;  %v7519_v5 = vld [vmem:[#allocation16 + $0x970] sm:$0xff] }
0x2814   :  { %v7199_v8 = vsub.f32 %v7195_v37, %v7197_v3  ;;  %v8807_v37 = vpack.c.bf16 %v7519_v5, %v7517_v11  ;;  %v7522_v3 = vld [vmem:[#allocation16 + $0x988] sm:$0xff] }
0x2815   :  { %v7200_v34 = vmax.f32 %v7198_v15, 0.0  ;;  %v7524_v15 = vld [vmem:[#allocation16 + $0x998] sm:$0xff] }
0x2816   :  { %v7201_v17 = vmax.f32 %v7199_v8, 0.0  ;;  %v7521_v8 = vld [vmem:[#allocation16 + $0x980] sm:$0xff] }
0x2817   :  { %v7202_v31 = vadd.f32 1e-05, %v7200_v34  ;;  %v8809_v34 = vpack.c.bf16 %v7524_v15, %v7522_v3 }
0x2818   :  { %v7203_v60 = vadd.f32 1e-05, %v7201_v17  ;;  %v7523_v17 = vld [vmem:[#allocation16 + $0x990] sm:$0xff] }
0x2819   :  { %9190 = vrsqrt.f32 %v7202_v31  ;;  %v7526_v31 = vld [vmem:[#allocation16 + $0x9a8] sm:$0xff] }
0x281a   :  { %9192 = vrsqrt.f32 %v7203_v60  ;;  %v7528_v60 = vld [vmem:[#allocation16 + $0x9b8] sm:$0xff] }
0x2823   :  { %v9191_v48 = vpop.eup %9190 }
0x2824   :  { %v9193_v25 = vpop.eup %9192 }
0x2825   :  { %v7208_v54 = vcombine.low %v9191_v48, %v9193_v25  ;;  %v8811_v48 = vpack.c.bf16 %v7523_v17, %v7521_v8  ;;  %v8813_v25 = vpack.c.bf16 %v7528_v60, %v7526_v31 }
0x2827   :  { %v7215_v13 = vrot.slane %v7208_v54, %v11757_v59  ;;  %v7525_v54 = vld [vmem:[#allocation16 + $0x9a0] sm:$0xff] }
0x2829   :  { %v7222_v1 = vrot.slane %v7215_v13, %v11757_v59  ;;  %v7527_v13 = vld [vmem:[#allocation16 + $0x9b0] sm:$0xff] }
0x282b   :  { %v7224_v22 = vmul.f32 %v7222_v1, %v7092_v27  ;;  %v7530_v27 = vld [vmem:[#allocation16 + $0x9c8] sm:$0xff]  ;;  %v7532_v1 = vld [vmem:[#allocation16 + $0x9d8] sm:$0xff] }
0x282d   :  { %v7229_v20 = vrot.slane %v7224_v22, %v11758_v56  ;;  %v7233_v4 = vrot.slane %v7224_v22, %v11759_v24  ;;  %v8815_v22 = vpack.c.bf16 %v7527_v13, %v7525_v54  ;;  %v7315_v54 = vld [vmem:[#allocation17 + $0x10] sm:$0x3] }
0x282f   :  { %v7236_v35 = vmul.f32 %v7229_v20, %v7178_v47  ;;  %v7237_v12 = vmul.f32 %v7233_v4, %v7179_v26  ;;  %v7257_v7 = vmul.f32 %v7229_v20, %v7161_v50  ;;  %v7258_v42 = vmul.f32 %v7233_v4, %v7163_v49  ;;  %v7520_v26 = vld [vmem:[#allocation16 + $0x978] sm:$0xff]  ;;  %v7529_v4 = vld [vmem:[#allocation16 + $0x9c0] sm:$0xff] }
0x2830   :  { %v8805_v53 = vpack.c.bf16 %v7520_v26, %v7518_v10  ;;  %v8817_v20 = vpack.c.bf16 %v7532_v1, %v7530_v27 }
0x2831   :  { %v7240_v58 = vcombine.low %v7236_v35, %v7237_v12  ;;  %v7531_v35 = vld [vmem:[#allocation16 + $0x9d0] sm:$0xff]  ;;  %v7534_v12 = vld [vmem:[#allocation16 + $0x9e8] sm:$0xff] }
0x2833   :  { %v7247_v16 = vrot.slane %v7240_v58, %v11757_v59 }
0x2835   :  { %v7254_v33 = vrot.slane %v7247_v16, %v11757_v59  ;;  %v7533_v16 = vld [vmem:[#allocation16 + $0x9e0] sm:$0xff] }
0x2837   :  { %v7256_v14 = vsub.f32 %v7094_v44, %v7254_v33  ;;  %v7535_v44 = vld [vmem:[#allocation16 + $0x9f0] sm:$0xff] }
0x2838   :  { %v8823_v33 = vpack.c.bf16 %v7535_v44, %v7533_v16 }
0x2839   :  { %v7263_v19 = vrot.slane %v7256_v14, %v11758_v56  ;;  %v7267_v6 = vrot.slane %v7256_v14, %v11759_v24 }
0x283b   :  { %v7271_v45 = vadd.f32 %v7267_v6, %v7258_v42  ;;  %v7270_v43 = vadd.f32 %v7263_v19, %v7257_v7  ;;  %v7536_v7 = vld [vmem:[#allocation16 + $0x9f8] sm:$0xff]  ;;  %v8819_v42 = vpack.c.bf16 %v7531_v35, %v7529_v4 }
0x283c   :  { %v8821_v58 = vpack.c.bf16 %v7536_v7, %v7534_v12 }
0x283d   :  { %v8122_v36 = vmul.f32 -1.442695, %v7271_v45 }
0x283f   :  { %9194 = vpow2.f32 %v8122_v36 }
0x2849   :  { %v9195_v28 = vpop.eup %9194 }
0x284a   :  { %v7275_v38 = vadd.f32 1.0, %v9195_v28 }
0x284c   :  { %9196 = vrcp.f32 %v7275_v38 }
0x2856   :  { %v9197_v50 = vpop.eup %9196 }
0x2857   :  { %v7278_v49 = vmul.f32 %v9197_v50, %v7270_v43 }
0x2859   :  { %v7279_v55 = vadd.f32 %v7278_v49, %v11518_v41  ;;  %v7511_v41 = vld [vmem:[#allocation16 + $0x930] sm:$0xff] }
0x285a   :  { %v8799_v40 = vpack.c.bf16 %v7511_v41, %v7509_v39 }
0x285b   :  { %v11532_v21 = vmul.f32 0.70710677, %v7279_v55 }
0x285c   :  { %8800 = vmatpush1.bf16.msra.mxu1 %v8799_v40 }
0x285d   :  { %7383 = vmatmul.mubr.f32.vlgmr.msra.gmra.mrb[24].mxu0 %v11532_v21  ;;  %8802 = vmatprep.subr.bf16.mxu1 %v8801_v0 }
0x285e   :  { %8264 = vmatprep.mubr.msk.f32.mxu0 %vm9637_vm4, %v11713_v9  ;;  %v7513_v9 = vld [vmem:[#allocation16 + $0x940] sm:$0xff] }
0x285f   :  { %v8803_v47 = vpack.c.bf16 %v7515_v62, %v7513_v9 }
0x2861   :  { %8804 = vmatpush1.bf16.msra.mxu1 %v8803_v47 }
0x2862   :  { %8806 = vmatprep.subr.bf16.mxu1 %v8805_v53 }
0x2865   :  { %8808 = vmatpush1.bf16.msra.mxu1 %v8807_v37 }
0x2866   :  { %8810 = vmatprep.subr.bf16.mxu1 %v8809_v34 }
0x2869   :  { %8812 = vmatpush1.bf16.msra.mxu1 %v8811_v48 }
0x286a   :  { %8814 = vmatprep.subr.bf16.mxu1 %v8813_v25 }
0x286d   :  { %8816 = vmatpush1.bf16.msra.mxu1 %v8815_v22 }
0x286e   :  { %8818 = vmatprep.subr.bf16.mxu1 %v8817_v20 }
0x2871   :  { %8820 = vmatpush1.bf16.msra.mxu1 %v8819_v42 }
0x2872   :  { %8822 = vmatprep.subr.bf16.mxu1 %v8821_v58  ;;  %v7317_v58 = vld [vmem:[#allocation19 + $0x10] sm:$0x3] }
0x2875   :  { %8824 = vmatpush1.bf16.msra.mxu1 %v8823_v33 }
0x2930   :  { %v7384_v14 = vpop.f32.mrb[24].mxu0 }
0x2931   :  { %v7389_v19 = vrot.slane %v7384_v14, 4  ;;  %v7403_v6 = vmul.f32 %v7384_v14, %v7384_v14  ;;  %v7386_v45 = vpop.f32.mrb[25].mxu0 }
0x2932   :  { %v7395_v43 = vrot.slane %v7386_v45, 4  ;;  %v7404_v36 = vmul.f32 %v7386_v45, %v7386_v45 }
0x2933   :  { %v7390_v28 = vadd.f32 %v7389_v19, %v7384_v14  ;;  %v7405_v38 = vrot.slane %v7403_v6, 4 }
0x2934   :  { %v7396_v50 = vadd.f32 %v7395_v43, %v7386_v45  ;;  %v7411_v49 = vrot.slane %v7404_v36, 4 }
0x2935   :  { %v7391_v55 = vrot.slane %v7390_v28, 2  ;;  %v7406_v2 = vadd.f32 %v7405_v38, %v7403_v6 }
0x2936   :  { %v7397_v61 = vrot.slane %v7396_v50, 2  ;;  %v7412_v29 = vadd.f32 %v7411_v49, %v7404_v36 }
0x2937   :  { %v7392_v32 = vadd.f32 %v7391_v55, %v7390_v28  ;;  %v7407_v63 = vrot.slane %v7406_v2, 2  ;;  %v7729_v55 = vld [vmem:[#allocation23] sm:$0xff] }
0x2938   :  { %v7398_v46 = vadd.f32 %v7397_v61, %v7396_v50  ;;  %v7413_v23 = vrot.slane %v7412_v29, 2 }
0x2939   :  { %v7393_v57 = vrot.slane %v7392_v32, 1  ;;  %v7408_v18 = vadd.f32 %v7407_v63, %v7406_v2  ;;  %v7730_v2 = vld [vmem:[#allocation23 + $0x8] sm:$0xff] }
0x293a   :  { %v7399_v39 = vrot.slane %v7398_v46, 1  ;;  %v7414_v41 = vadd.f32 %v7413_v23, %v7412_v29  ;;  %v8826_v61 = vpack.c.bf16 %v7730_v2, %v7729_v55  ;;  %v7731_v29 = vld [vmem:[#allocation23 + $0x10] sm:$0xff]  ;;  %v7734_v23 = vld [vmem:[#allocation23 + $0x28] sm:$0xff] }
0x293b   :  { %v7394_v40 = vadd.f32 %v7393_v57, %v7392_v32  ;;  %v7409_v52 = vrot.slane %v7408_v18, 1  ;;  %v7732_v32 = vld [vmem:[#allocation23 + $0x18] sm:$0xff] }
0x293c   :  { %v7400_v51 = vadd.f32 %v7399_v39, %v7398_v46  ;;  %v7415_v0 = vrot.slane %v7414_v41, 1  ;;  %8827 = vmatpush3.bf16.msra.mxu0 %v8826_v61  ;;  %v8829_v63 = vpack.c.bf16 %v7732_v32, %v7731_v29  ;;  %v7733_v46 = vld [vmem:[#allocation23 + $0x20] sm:$0xff] }
0x293d   :  { %v7401_v9 = vmul.f32 0.125, %v7394_v40  ;;  %v7410_v62 = vadd.f32 %v7409_v52, %v7408_v18  ;;  %8828 = vmatprep.subr.bf16.mxu0 %v11760_v30  ;;  %v8832_v57 = vpack.c.bf16 %v7734_v23, %v7733_v46  ;;  %v7736_v18 = vld [vmem:[#allocation23 + $0x38] sm:$0xff]  ;;  %v7540_v23 = vld [vmem:[#allocation19 + $0x12] sm:$0x3] }
0x293e   :  { %v7402_v47 = vmul.f32 0.125, %v7400_v51  ;;  %v7416_v10 = vadd.f32 %v7415_v0, %v7414_v41 }
0x293f   :  { %v7417_v26 = vmul.f32 0.125, %v7410_v62  ;;  %v7419_v53 = vmul.f32 %v7401_v9, %v7401_v9 }
0x2940   :  { %v7418_v11 = vmul.f32 0.125, %v7416_v10  ;;  %v7420_v5 = vmul.f32 %v7402_v47, %v7402_v47  ;;  %8830 = vmatpush3.bf16.msra.mxu0 %v8829_v63 }
0x2941   :  { %v7421_v37 = vsub.f32 %v7417_v26, %v7419_v53  ;;  %8831 = vmatprep.subr.bf16.mxu0 %v11760_v30 }
0x2942   :  { %v7422_v3 = vsub.f32 %v7418_v11, %v7420_v5 }
0x2943   :  { %v7423_v15 = vmax.f32 %v7421_v37, 0.0 }
0x2944   :  { %v7424_v8 = vmax.f32 %v7422_v3, 0.0  ;;  %8833 = vmatpush3.bf16.msra.mxu0 %v8832_v57 }
0x2945   :  { %v7425_v34 = vadd.f32 1e-05, %v7423_v15  ;;  %8834 = vmatprep.subr.bf16.mxu0 %v11760_v30 }
0x2946   :  { %v7426_v17 = vadd.f32 1e-05, %v7424_v8 }
0x2947   :  { %9198 = vrsqrt.f32 %v7425_v34 }
0x2948   :  { %9200 = vrsqrt.f32 %v7426_v17 }
0x2951   :  { %v9199_v31 = vpop.eup %9198 }
0x2952   :  { %v9201_v60 = vpop.eup %9200 }
0x2953   :  { %v7431_v48 = vcombine.low %v9199_v31, %v9201_v60 }
0x2955   :  { %v7438_v25 = vrot.slane %v7431_v48, %v11757_v59 }
0x2957   :  { %v7445_v13 = vrot.slane %v7438_v25, %v11757_v59 }
0x2959   :  { %v7447_v27 = vmul.f32 %v7445_v13, %v7315_v54 }
0x295b   :  { %v7452_v1 = vrot.slane %v7447_v27, %v11758_v56  ;;  %v7456_v22 = vrot.slane %v7447_v27, %v11759_v24 }
0x295d   :  { %v7459_v20 = vmul.f32 %v7452_v1, %v7401_v9  ;;  %v7460_v4 = vmul.f32 %v7456_v22, %v7402_v47  ;;  %v7480_v35 = vmul.f32 %v7452_v1, %v7384_v14  ;;  %v7481_v12 = vmul.f32 %v7456_v22, %v7386_v45 }
0x295f   :  { %v7463_v7 = vcombine.low %v7459_v20, %v7460_v4 }
0x2961   :  { %v7470_v42 = vrot.slane %v7463_v7, %v11757_v59 }
0x2963   :  { %v7477_v16 = vrot.slane %v7470_v42, %v11757_v59 }
0x2965   :  { %v7479_v44 = vsub.f32 %v7317_v58, %v7477_v16 }
0x2967   :  { %v7486_v33 = vrot.slane %v7479_v44, %v11758_v56  ;;  %v7490_v19 = vrot.slane %v7479_v44, %v11759_v24 }
0x2969   :  { %v7494_v6 = vadd.f32 %v7490_v19, %v7481_v12  ;;  %v7493_v43 = vadd.f32 %v7486_v33, %v7480_v35 }
0x296b   :  { %v8123_v36 = vmul.f32 -1.442695, %v7494_v6 }
0x296d   :  { %9202 = vpow2.f32 %v8123_v36 }
0x2977   :  { %v9203_v28 = vpop.eup %9202 }
0x2978   :  { %v7498_v38 = vadd.f32 1.0, %v9203_v28 }
0x297a   :  { %9204 = vrcp.f32 %v7498_v38  ;;  %v7538_v38 = vld [vmem:[#allocation17 + $0x12] sm:$0x3] }
0x2984   :  { %v9205_v14 = vpop.eup %9204 }
0x2985   :  { %v7501_v45 = vmul.f32 %v9205_v14, %v7493_v43 }
0x2987   :  { %v7502_v50 = vadd.f32 %v7501_v45, %v11532_v21  ;;  %v7735_v21 = vld [vmem:[#allocation23 + $0x30] sm:$0xff] }
0x2988   :  { %v8835_v39 = vpack.c.bf16 %v7736_v18, %v7735_v21 }
0x2989   :  { %v11546_v49 = vmul.f32 0.70710677, %v7502_v50 }
0x298a   :  { %8836 = vmatpush3.bf16.msra.mxu0 %v8835_v39 }
0x298b   :  { %7606 = vmatmul.mubr.f32.vlgmr.msra.gmra.mrb[20].mxu1 %v11546_v49 }
0x2a5e   :  { %v7607_v41 = vpop.f32.mrb[20].mxu1 }
0x2a5f   :  { %v7612_v40 = vrot.slane %v7607_v41, 4  ;;  %v7626_v52 = vmul.f32 %v7607_v41, %v7607_v41  ;;  %v7609_v51 = vpop.f32.mrb[21].mxu1 }
0x2a60   :  { %v7618_v0 = vrot.slane %v7609_v51, 4  ;;  %v7627_v9 = vmul.f32 %v7609_v51, %v7609_v51 }
0x2a61   :  { %v7613_v62 = vadd.f32 %v7612_v40, %v7607_v41  ;;  %v7628_v47 = vrot.slane %v7626_v52, 4 }
0x2a62   :  { %v7619_v10 = vadd.f32 %v7618_v0, %v7609_v51  ;;  %v7634_v26 = vrot.slane %v7627_v9, 4 }
0x2a63   :  { %v7614_v53 = vrot.slane %v7613_v62, 2  ;;  %v7629_v11 = vadd.f32 %v7628_v47, %v7626_v52 }
0x2a64   :  { %v7620_v5 = vrot.slane %v7619_v10, 2  ;;  %v7635_v37 = vadd.f32 %v7634_v26, %v7627_v9 }
0x2a65   :  { %v7615_v3 = vadd.f32 %v7614_v53, %v7613_v62  ;;  %v7630_v15 = vrot.slane %v7629_v11, 2  ;;  %v11761_v53 = vld [vmem:[#allocation40_spill] sm:$0xff] }
0x2a66   :  { %v7621_v8 = vadd.f32 %v7620_v5, %v7619_v10  ;;  %v7636_v34 = vrot.slane %v7635_v37, 2 }
0x2a67   :  { %v7616_v30 = vrot.slane %v7615_v3, 1  ;;  %v7631_v17 = vadd.f32 %v7630_v15, %v7629_v11 }
0x2a68   :  { %v7622_v31 = vrot.slane %v7621_v8, 1  ;;  %v7637_v60 = vadd.f32 %v7636_v34, %v7635_v37 }
0x2a69   :  { %v7617_v48 = vadd.f32 %v7616_v30, %v7615_v3  ;;  %v7632_v25 = vrot.slane %v7631_v17, 1 }
0x2a6a   :  { %v7623_v54 = vadd.f32 %v7622_v31, %v7621_v8  ;;  %v7638_v13 = vrot.slane %v7637_v60, 1 }
0x2a6b   :  { %v7624_v27 = vmul.f32 0.125, %v7617_v48  ;;  %v7633_v1 = vadd.f32 %v7632_v25, %v7631_v17 }
0x2a6c   :  { %v7625_v22 = vmul.f32 0.125, %v7623_v54  ;;  %v7639_v20 = vadd.f32 %v7638_v13, %v7637_v60 }
0x2a6d   :  { %v7640_v4 = vmul.f32 0.125, %v7633_v1  ;;  %v7642_v35 = vmul.f32 %v7624_v27, %v7624_v27 }
0x2a6e   :  { %v7641_v12 = vmul.f32 0.125, %v7639_v20  ;;  %v7643_v7 = vmul.f32 %v7625_v22, %v7625_v22 }
0x2a6f   :  { %v7644_v42 = vsub.f32 %v7640_v4, %v7642_v35 }
0x2a70   :  { %v7645_v58 = vsub.f32 %v7641_v12, %v7643_v7 }
0x2a71   :  { %v7646_v16 = vmax.f32 %v7644_v42, 0.0 }
0x2a72   :  { %v7647_v44 = vmax.f32 %v7645_v58, 0.0 }
0x2a73   :  { %v7648_v33 = vadd.f32 1e-05, %v7646_v16 }
0x2a74   :  { %v7649_v19 = vadd.f32 1e-05, %v7647_v44 }
0x2a75   :  { %9206 = vrsqrt.f32 %v7648_v33 }
0x2a76   :  { %9208 = vrsqrt.f32 %v7649_v19 }
0x2a7f   :  { %v9207_v6 = vpop.eup %9206 }
0x2a80   :  { %v9209_v43 = vpop.eup %9208 }
0x2a81   :  { %v7654_v36 = vcombine.low %v9207_v6, %v9209_v43 }
0x2a83   :  { %v7661_v28 = vrot.slane %v7654_v36, %v11757_v59 }
0x2a85   :  { %v7668_v14 = vrot.slane %v7661_v28, %v11757_v59 }
0x2a87   :  { %v7670_v45 = vmul.f32 %v7668_v14, %v7538_v38 }
0x2a89   :  { %v7675_v50 = vrot.slane %v7670_v45, %v11758_v56  ;;  %v7679_v55 = vrot.slane %v7670_v45, %v11759_v24 }
0x2a8b   :  { %v7682_v2 = vmul.f32 %v7675_v50, %v7624_v27  ;;  %v7683_v61 = vmul.f32 %v7679_v55, %v7625_v22  ;;  %v7703_v29 = vmul.f32 %v7675_v50, %v7607_v41  ;;  %v7704_v32 = vmul.f32 %v7679_v55, %v7609_v51 }
0x2a8d   :  { %v7686_v63 = vcombine.low %v7682_v2, %v7683_v61 }
0x2a8f   :  { %v7693_v46 = vrot.slane %v7686_v63, %v11757_v59 }
0x2a91   :  { %v7700_v57 = vrot.slane %v7693_v46, %v11757_v59 }
0x2a93   :  { %v7702_v21 = vsub.f32 %v7540_v23, %v7700_v57 }
0x2a95   :  { %v7709_v18 = vrot.slane %v7702_v21, %v11758_v56  ;;  %v7713_v39 = vrot.slane %v7702_v21, %v11759_v24 }
0x2a97   :  { %v7716_v40 = vadd.f32 %v7709_v18, %v7703_v29  ;;  %v7717_v52 = vadd.f32 %v7713_v39, %v7704_v32 }
0x2a99   :  { %v8124_v0 = vmul.f32 -1.442695, %v7717_v52 }
0x2a9b   :  { %9210 = vpow2.f32 %v8124_v0 }
0x2aa5   :  { %v9211_v9 = vpop.eup %9210 }
0x2aa6   :  { %v7721_v62 = vadd.f32 1.0, %v9211_v9 }
0x2aa8   :  { %9212 = vrcp.f32 %v7721_v62 }
0x2ab2   :  { %v9213_v41 = vpop.eup %9212 }
0x2ab3   :  { %v7724_v51 = vmul.f32 %v9213_v41, %v7716_v40 }
0x2ab5   :  { %v7725_v47 = vadd.f32 %v7724_v51, %v11546_v49 }
0x2ab7   :  { %v7726_v10 = vmul.f32 0.70710677, %v7725_v47 }
0x2ab9   :  { %v7727_v26 = vmax.f32 %v7726_v10, 0.0 }
0x2abb   :  { %v7728_v59 = vadd.f32 %v7727_v26, %v11761_v53 }
0x2abd   :  { %8265 = vmatmul.mubr.msk.f32.vlgmr.msra.gmra.mrb[26].mxu0 %vm11762_vm3, %v7728_v59 }
0x2abe   :  { %9558 = shalt.err (!%p9555_p12)
}
0x2abf   :  { %s9559_s10 = scalar_lea.hbm %s11604_s17, 128 }
0x2ac0   :  { %p9560_p13 = scmp.ne.s32.totalorder %s11604_s17, %s9559_s10  ;;  %p9563_p0 = scmp.lt.u32.totalorder %s9559_s10, %s11604_s17 }
0x2ac2   :  { %p9565_p1 = pnand %p9563_p0, %p9560_p13 }
0x2ac4   :  { %9568 = shalt.err (!%p9565_p1)
}
0x2ac5   :  { %7847 = dma.vmem_to_hbm [thread:$0]  %s7845_s19, 128, %s11604_s17, [#allocation28]   ;;  %v8125_v56 = vld [vmem:[#allocation25] ss:$0 sm:$0xff] }
0x2ac6   :  { %s9641_s29 = smov [#allocation26]  }
0x2ac7   :  { %s7834_s12 = sshll.u32 %s9641_s29, 4  ;;  %s7835_s12 = int_to_ptr.vmem [resolvable:$true] %s7834_s12 }
0x2ac8   :  { %s9569_s20 = scalar_lea.vmem %s7835_s12, 128  ;;  %p9574_p3 = scmp.lt.s32.totalorder %s7835_s12, %s7835_s12 }
0x2ac9   :  { %p9570_p2 = scmp.ne.s32.totalorder %s7835_s12, %s9569_s20  ;;  %p9575_p4 = scmp.lt.s32.totalorder %s9569_s20, %s9569_s20 }
0x2acb   :  { %p9576_p5 = por %p9575_p4, %p9574_p3 }
0x2acd   :  { %p9577_p6 = pnand %p9576_p5, %p9570_p2 }
0x2b90   :  { %v7813_v24 = vpop.f32.mrb[26].mxu0 }
0x2b91   :  { %v7814_v49 = vadd.f32 %v8125_v56, %v7813_v24  ;;  %v8266_v11 = vpop.f32.mrb[27].mxu0 }
0x2b93   :  { %7817 = vst [vmem:[#allocation26] sm:$0xff] %v7814_v49 }
0x2b94   :  { %9580 = shalt.err (!%p9577_p6)
}
0x2b95   :  { %s9581_s13 = scalar_lea.hbm %s11603_s16, 128 }
0x2b96   :  { %p9582_p7 = scmp.ne.s32.totalorder %s11603_s16, %s9581_s13  ;;  %p9585_p8 = scmp.lt.u32.totalorder %s9581_s13, %s11603_s16 }
0x2b98   :  { %p9587_p9 = pnand %p9585_p8, %p9582_p7 }
0x2b9a   :  { %9590 = shalt.err (!%p9587_p9)
}
0x2b9b   :  { %7837 = dma.vmem_to_hbm [thread:$0]  %s7835_s12, 128, %s11603_s16, [#allocation4]  }
0x2b9c   :  { %9607 = dma.done.wait [#allocation4], 128  }
0x2b9d   :  { %9608 = vsyncadd [#allocation4], 4294967168 }
0x2b9e   :  { %9609 = dma.done.wait [#allocation28], 128  }
0x2b9f   :  { %9610 = vsyncadd [#allocation28], 4294967168 }
0x2ba0   :  { %7854 = vsyncpa [#allocation3], 1 }
0x2ba1   :  { %7855 = vsyncpa [#allocation6], 1 }
0x2ba2   :  { %7856 = vsyncpa [#allocation9], 1 }
0x2ba3   :  { %7857 = vsyncpa [#allocation12], 1 }
0x2ba4   :  { %7858 = vsyncpa [#allocation15], 1 }
0x2ba5   :  { %7859 = vsyncpa [#allocation18], 1 }
0x2ba6   :  { %7860 = vsyncpa [#allocation21], 1 }
0x2ba7   :  { %7861 = vsyncpa [#allocation24], 1 }
0x2ba8   :  { %7862 = vsyncpa [#allocation4], 1 }
0x2ba9   :  { %7863 = vsyncpa [#allocation28], 1 }

</bundles_post_ra>
